<compile_context>
chip_gen: v7x
topology: tpu7x:2x2x1
jax: 0.10.0
libtpu: 0.0.40
codegen_flags: <defaults>
</compile_context>

<pallas_src>
import jax
import jax.numpy as jnp
from jax.experimental import pallas as pl
from jax.experimental.pallas import tpu as pltpu

BF16 = jnp.bfloat16
F32 = jnp.float32


# ----------------------------------------------------------------------------
# Parameter init (PyTorch-style) and one-time kernel-layout preparation
# ----------------------------------------------------------------------------
def _conv_params(key, cout, cin, kh, kw):
    kw_, kb_ = jax.random.split(key)
    bound = 1.0 / jnp.sqrt(cin * kh * kw)
    w = jax.random.uniform(kw_, (cout, cin, kh, kw), F32, -bound, bound)
    b = jax.random.uniform(kb_, (cout,), F32, -bound, bound)
    return w, b


def _convt_params(key, cin, cout, kh, kw):
    kw_, kb_ = jax.random.split(key)
    bound = 1.0 / jnp.sqrt(cout * kh * kw)
    w = jax.random.uniform(kw_, (cin, cout, kh, kw), F32, -bound, bound)
    b = jax.random.uniform(kb_, (cout,), F32, -bound, bound)
    return w, b


def init_params(key, num_input_channels):
    keys = jax.random.split(key, 8)
    return {
        "enc1": _conv_params(keys[0], 16, num_input_channels, 3, 3),
        "enc2": _conv_params(keys[1], 32, 16, 3, 3),
        "enc3": _conv_params(keys[2], 64, 32, 3, 3),
        "enc4": _conv_params(keys[3], 128, 64, 5, 5),
        "dec1": _convt_params(keys[4], 128, 64, 5, 5),
        "dec2": _convt_params(keys[5], 64, 32, 3, 3),
        "dec3": _convt_params(keys[6], 32, 16, 3, 3),
        "dec4": _convt_params(keys[7], 16, num_input_channels, 3, 3),
    }


def _prep_conv(w, b):
    """Conv2d weight [co,ci,kh,kw] -> GEMM weight [(u,v,ci), co] in bf16."""
    co, ci, kh, kw = w.shape
    w2 = jnp.transpose(w, (2, 3, 1, 0)).reshape(kh * kw * ci, co).astype(BF16)
    return w2, b.reshape(1, co).astype(F32)


def _prep_dec1(w, b):
    """ConvTranspose2d(128->64, 5x5) on a 1x1 input as a dense [128, 25*64] GEMM."""
    ci, co, kh, kw = w.shape
    w5 = jnp.transpose(w, (0, 2, 3, 1)).reshape(ci, kh * kw * co).astype(BF16)
    b5 = jnp.tile(b, kh * kw).reshape(1, kh * kw * co).astype(F32)
    return w5, b5


def _prep_convt_s2(w, b):
    """ConvTranspose2d k=3,s=2,p=1,op=1 as a sub-pixel 2x2-window GEMM:
    weight [(di,dj,ci), (a,b,co)], valid kernel taps u = a+1-2*di (likewise v)."""
    ci, co = w.shape[0], w.shape[1]
    w6 = jnp.zeros((2, 2, ci, 2, 2, co), F32)
    for a in range(2):
        for di in range(2):
            u = a + 1 - 2 * di
            if not 0 <= u < 3:
                continue
            for bb in range(2):
                for dj in range(2):
                    v = bb + 1 - 2 * dj
                    if not 0 <= v < 3:
                        continue
                    w6 = w6.at[di, dj, :, a, bb, :].set(w[:, :, u, v])
    w6 = w6.reshape(4 * ci, 4 * co).astype(BF16)
    b6 = jnp.tile(b, 4).reshape(1, 4 * co).astype(F32)
    return w6, b6


def prepare_params(params):
    """One-time conversion to kernel layouts (no per-forward weight reshapes)."""
    p = {}
    p["enc1_w"], p["enc1_b"] = _prep_conv(*params["enc1"])     # [9*cin, 16]
    p["enc2_w"], p["enc2_b"] = _prep_conv(*params["enc2"])     # [144, 32]
    p["enc3_w"], p["enc3_b"] = _prep_conv(*params["enc3"])     # [288, 64]
    p["enc4_w"], p["enc4_b"] = _prep_conv(*params["enc4"])     # [1600, 128]
    p["dec1_w"], p["dec1_b"] = _prep_dec1(*params["dec1"])     # [128, 1600]
    p["dec2_w"], p["dec2_b"] = _prep_convt_s2(*params["dec2"])  # [256, 128]
    p["dec3_w"], p["dec3_b"] = _prep_convt_s2(*params["dec3"])  # [128, 64]
    p["dec4_w"], p["dec4_b"] = _prep_convt_s2(*params["dec4"])  # [64, 4*cin]
    # Column masks for +-1 shifts on a flattened 5x5 raster block ([25, 1]).
    w_idx = jnp.arange(25) % 5
    p["mask_w_first"] = (w_idx != 0).astype(BF16).reshape(25, 1)  # 0 where w == 0
    p["mask_w_last"] = (w_idx != 4).astype(BF16).reshape(25, 1)   # 0 where w == 4
    return p


# ----------------------------------------------------------------------------
# The fused kernel: enc1..enc4 + dec1..dec4 for ONE image per grid step.
#
# Row-order conventions (per image, all blocks are 25-row 5x5 rasters):
#   H1 [400,16] : enc1 output.  20x20 coord o1 = 4*l + 2*beta + alpha;
#                 rows ordered (alpha_h, alpha_w, beta_h, beta_w, l_h, l_w).
#   H2 [100,32] : enc2 output.  10x10 coord o2 = 2*l + beta;
#                 rows ordered (beta_h, beta_w, l_h, l_w).
#   H3 [25,64]  : enc3 output, 5x5 raster rows.
#   G2 [25,128] : dec2 output, 5x5 raster rows, cols (p,q,c32): the 10x10 map
#                 Y2[2i+p, 2j+q, :].
#   G3 [100,64] : dec3 output, rows (p0,q0,i,j) over the 10x10 grid (coord =
#                 2i+p0), cols (p,q,c16): the 20x20 map Y3.
#   G4 [400,4*cin]: dec4 output, rows (p,q,p0,q0,i,j) over the 20x20 grid,
#                 cols (r,s,cout): the 40x40 output phases.
# ----------------------------------------------------------------------------
def _autoencoder_kernel(p1_ref, mf_ref, ml_ref,
                        w1_ref, b1_ref, w2_ref, b2_ref, w3_ref, b3_ref,
                        w4_ref, b4_ref, w5_ref, b5_ref, w6_ref, b6_ref,
                        w7_ref, b7_ref, w8_ref, b8_ref, o_ref):
    mf = mf_ref[...]          # [25,1] bf16, 0 where local w == 0
    ml = ml_ref[...]          # [25,1] bf16, 0 where local w == 4

    def gemm(x, w_ref, b_ref, act):
        acc = jnp.dot(x, w_ref[...], preferred_element_type=F32) + b_ref[...]
        if act == "relu":
            acc = jnp.maximum(acc, 0.0)
        elif act == "sigmoid":
            acc = jax.nn.sigmoid(acc)
        return acc

    def shift5(x, dh, dw):
        """y[(h,w)] = x[(h+dh, w+dw)] on a [25,C] 5x5-raster block, 0 outside."""
        c = x.shape[1]
        if dh == 1:
            x = jnp.concatenate([x[5:, :], jnp.zeros((5, c), x.dtype)], axis=0)
        elif dh == -1:
            x = jnp.concatenate([jnp.zeros((5, c), x.dtype), x[:20, :]], axis=0)
        if dw == 1:
            x = jnp.concatenate([x[1:, :], jnp.zeros((1, c), x.dtype)], axis=0) * ml
        elif dw == -1:
            x = jnp.concatenate([jnp.zeros((1, c), x.dtype), x[:24, :]], axis=0) * mf
        return x

    # ----- enc1: Conv2d(cin->16, 3x3, s2, p1) on prebuilt digit-ordered patches
    h1 = gemm(p1_ref[...], w1_ref, b1_ref, "relu").astype(BF16)        # [400,16]

    # ----- enc1 -> enc2 patches (stride-2 im2col via parity digits) -----
    def enc_tap2(beta, u):
        # source coord 4*l + 2*beta + (u-1) -> (alpha_src, beta_src, dl)
        if u == 1:
            return 0, beta, 0
        if u == 2:
            return 1, beta, 0
        return (1, 0, 0) if beta == 1 else (1, 1, -1)

    cls_blocks = []
    for bh in (0, 1):
        for bw in (0, 1):
            taps = []
            for u in range(3):
                ah, sbh, dh = enc_tap2(bh, u)
                for v in range(3):
                    aw, sbw, dw = enc_tap2(bw, v)
                    src = ((ah * 2 + aw) * 2 + sbh) * 2 + sbw
                    taps.append(shift5(h1[src * 25:(src + 1) * 25, :], dh, dw))
            cls_blocks.append(jnp.concatenate(taps, axis=1))            # [25,144]
    p2 = jnp.concatenate(cls_blocks, axis=0)                            # [100,144]

    h2 = gemm(p2, w2_ref, b2_ref, "relu").astype(BF16)                  # [100,32]

    # ----- enc2 -> enc3 patches -----
    def enc_tap1(u):
        # source coord 2*l + (u-1) -> (beta_src, dl)
        if u == 1:
            return 0, 0
        if u == 2:
            return 1, 0
        return 1, -1

    taps = []
    for u in range(3):
        sbh, dh = enc_tap1(u)
        for v in range(3):
            sbw, dw = enc_tap1(v)
            src = sbh * 2 + sbw
            taps.append(shift5(h2[src * 25:(src + 1) * 25, :], dh, dw))
    p3 = jnp.concatenate(taps, axis=1)                                  # [25,288]

    h3 = gemm(p3, w3_ref, b3_ref, "relu").astype(BF16)                  # [25,64]

    # ----- enc4: Conv2d(64->128, 5x5 valid) as ONE K=1600 GEMM -----
    lhs4 = jnp.concatenate([h3[t:t + 1, :] for t in range(25)], axis=1)  # [1,1600]
    code = gemm(lhs4, w4_ref, b4_ref, None).astype(BF16)                # [1,128]

    # ----- dec1: ConvTranspose2d(128->64, 5x5) on 1x1 input = dense GEMM -----
    h5 = gemm(code, w5_ref, b5_ref, "relu").astype(BF16)                # [1,1600]

    # ----- dec2: sub-pixel ConvTranspose2d(64->32, k3 s2) as ONE patch GEMM --
    h5r = jnp.concatenate([h5[:, t * 64:(t + 1) * 64] for t in range(25)],
                          axis=0)                                       # [25,64]
    taps = [shift5(h5r, d, e) for d in (0, 1) for e in (0, 1)]
    pd2 = jnp.concatenate(taps, axis=1)                                 # [25,256]
    g2 = gemm(pd2, w6_ref, b6_ref, "relu").astype(BF16)                 # [25,128]

    # ----- dec2 -> dec3 patches (pixel-shuffle + 2x2 windows, in lanes/rows) --
    def dec_tap1(p, d):
        # hi-res coord 2i + p + d -> (phase, di)
        a = p + d
        return (a, 0) if a <= 1 else (0, 1)

    blocks = []
    for p0 in (0, 1):
        for q0 in (0, 1):
            taps = []
            for d in (0, 1):
                ah, dh = dec_tap1(p0, d)
                for e in (0, 1):
                    aw, dw = dec_tap1(q0, e)
                    ph = ah * 2 + aw
                    taps.append(shift5(g2[:, ph * 32:(ph + 1) * 32], dh, dw))
            blocks.append(jnp.concatenate(taps, axis=1))                # [25,128]
    p3d = jnp.concatenate(blocks, axis=0)                               # [100,128]

    g3 = gemm(p3d, w7_ref, b7_ref, "relu").astype(BF16)                 # [100,64]

    # ----- dec3 -> dec4 patches -----
    def dec_tap2(p, p0, d):
        # hi-res coord 4i + 2*p0 + p + d -> (phase, block_bit, di)
        a = p + d
        if a <= 1:
            return a, p0, 0
        return (0, 1, 0) if p0 == 0 else (0, 0, 1)

    blocks = []
    for pp in (0, 1):
        for qq in (0, 1):
            for p0 in (0, 1):
                for q0 in (0, 1):
                    taps = []
                    for d in (0, 1):
                        ah, sbh, dh = dec_tap2(pp, p0, d)
                        for e in (0, 1):
                            aw, sbw, dw = dec_tap2(qq, q0, e)
                            src = sbh * 2 + sbw
                            ph = ah * 2 + aw
                            blk = g3[src * 25:(src + 1) * 25,
                                     ph * 16:(ph + 1) * 16]
                            taps.append(shift5(blk, dh, dw))
                    blocks.append(jnp.concatenate(taps, axis=1))        # [25,64]
    p4 = jnp.concatenate(blocks, axis=0)                                # [400,64]

    # ----- dec4 + sigmoid (f32 epilogue) -----
    o_ref[...] = gemm(p4, w8_ref, b8_ref, "sigmoid").astype(o_ref.dtype)


def fused_forward(p, p1, n, cin):
    """p1: [n*400, 9*cin] bf16 digit-ordered enc1 patches -> [n*400, 4*cin] f32."""
    args = [p1, p["mask_w_first"], p["mask_w_last"],
            p["enc1_w"], p["enc1_b"], p["enc2_w"], p["enc2_b"],
            p["enc3_w"], p["enc3_b"], p["enc4_w"], p["enc4_b"],
            p["dec1_w"], p["dec1_b"], p["dec2_w"], p["dec2_b"],
            p["dec3_w"], p["dec3_b"], p["dec4_w"], p["dec4_b"]]
    in_specs = [pl.BlockSpec((400, p1.shape[1]), lambda b: (b, 0))]
    in_specs += [pl.BlockSpec(a.shape, lambda b: (0, 0)) for a in args[1:]]
    gs = pltpu.PrefetchScalarGridSpec(
        num_scalar_prefetch=0,
        grid=(n,),
        in_specs=in_specs,
        out_specs=pl.BlockSpec((400, 4 * cin), lambda b: (b, 0)))
    return pl.pallas_call(
        _autoencoder_kernel,
        out_shape=jax.ShapeDtypeStruct((n * 400, 4 * cin), F32),
        grid_spec=gs,
        compiler_params=pltpu.CompilerParams(
            dimension_semantics=("parallel",)),
    )(*args)


# ----------------------------------------------------------------------------
# XLA glue (layout only, at the kernel's input/output boundary)
# ----------------------------------------------------------------------------
def build_enc1_patches(x):
    """x: [n,40,40,cin] f32 -> [n*400, 9*cin] bf16, rows (b; a_h,a_w,b_h,b_w,l_h,l_w)."""
    n, _, _, cin = x.shape
    xp = jnp.pad(x, ((0, 0), (1, 1), (1, 1), (0, 0)))
    cols = [xp[:, u:u + 40:2, v:v + 40:2, :] for u in range(3) for v in range(3)]
    pat = jnp.stack(cols, axis=3).reshape(n, 20, 20, 9 * cin)
    # 20x20 coord o1 = 4*l + 2*beta + alpha  ->  split as (l, beta, alpha)
    pat = pat.reshape(n, 5, 2, 2, 5, 2, 2, 9 * cin)
    pat = pat.transpose(0, 3, 6, 2, 5, 1, 4, 7)
    return pat.reshape(n * 400, 9 * cin).astype(BF16)


def unscramble_output(g4, n, cin):
    """[n*400, 4*cin] rows (b; p,q,p0,q0,i,j) cols (r,s,c) -> [n, cin, 40, 40]."""
    y = g4.reshape(n, 2, 2, 2, 2, 5, 5, 2, 2, cin)
    # output coord H = 8*i + 4*p0 + 2*p + r   (W analogously)
    y = y.transpose(0, 9, 5, 3, 1, 7, 6, 4, 2, 8)
    return y.reshape(n, cin, 40, 40)


def autoencoder_forward(p, x_nchw):
    n, cin, h, w = x_nchw.shape
    # Kernel row bookkeeping is derived for 40x40 inputs (the smallest size for
    # which enc4's 5x5 valid conv sees a full 5x5 map: 40 -> 20 -> 10 -> 5).
    assert h == 40 and w == 40, "fused kernel expects 40x40 spatial input"
    x = jnp.transpose(x_nchw, (0, 2, 3, 1))                  # NCHW -> NHWC
    p1 = build_enc1_patches(x)
    g4 = fused_forward(p, p1, n, cin)
    return unscramble_output(g4, n, cin), None


# ----------------------------------------------------------------------------
# Pure-XLA f32 reference of the PyTorch module (for numerical validation)
# ----------------------------------------------------------------------------
def _ref_conv(x, w, b, stride, pad):
    y = jax.lax.conv_general_dilated(
        x, w, window_strides=(stride, stride),
        padding=((pad, pad), (pad, pad)),
        dimension_numbers=("NCHW", "OIHW", "NCHW"))
    return y + b[None, :, None, None]


def _ref_convt(x, w, b, stride, pad, outpad):
    k = w.shape[2]
    w_conv = jnp.transpose(w[:, :, ::-1, ::-1], (1, 0, 2, 3))
    lo, hi = k - 1 - pad, k - 1 - pad + outpad
    y = jax.lax.conv_general_dilated(
        x, w_conv, window_strides=(1, 1),
        padding=((lo, hi), (lo, hi)),
        lhs_dilation=(stride, stride),
        dimension_numbers=("NCHW", "OIHW", "NCHW"))
    return y + b[None, :, None, None]


def reference_forward(params, x):
    h = jax.nn.relu(_ref_conv(x, *params["enc1"], 2, 1))
    h = jax.nn.relu(_ref_conv(h, *params["enc2"], 2, 1))
    h = jax.nn.relu(_ref_conv(h, *params["enc3"], 2, 1))
    h = _ref_conv(h, *params["enc4"], 1, 0)
    h = jax.nn.relu(_ref_convt(h, *params["dec1"], 1, 0, 0))
    h = jax.nn.relu(_ref_convt(h, *params["dec2"], 2, 1, 1))
    h = jax.nn.relu(_ref_convt(h, *params["dec3"], 2, 1, 1))
    return jax.nn.sigmoid(_ref_convt(h, *params["dec4"], 2, 1, 1))


if __name__ == "__main__":
    num_input_channels = 4
    key = jax.random.PRNGKey(0)
    kp, kx = jax.random.split(key)

    params = init_params(kp, num_input_channels)
    prepared = prepare_params(params)
    # 40 is the smallest "nice" spatial size: 40 -> 20 -> 10 -> 5 -> 1 in the
    # encoder (the 5x5 valid conv needs a 5x5 map), and back to 40 exactly.
    x = jax.random.uniform(kx, (2, num_input_channels, 40, 40), F32)

    fwd = jax.jit(autoencoder_forward)
    dec, aux = fwd(prepared, x)
    dec = jax.block_until_ready(dec)

    assert dec.shape == (2, num_input_channels, 40, 40), dec.shape
    assert aux is None
    assert bool(jnp.all(jnp.isfinite(dec)))
    assert bool(jnp.all((dec >= 0.0) & (dec <= 1.0)))          # sigmoid range

    # Numerical check vs. a pure-XLA f32 reference (bf16-GEMM tolerance).
    ref = reference_forward(params, x)
    max_err = float(jnp.max(jnp.abs(dec - ref)))
    assert max_err < 3e-2, f"max abs error vs reference: {max_err}"
    print("KERNEL_OK")
</pallas_src>

<mosaic_0001>
module attributes {stable_mosaic.version = 11 : i64} {
  func.func @_autoencoder_kernel(%arg0: i32, %arg1: memref<400x36xbf16, #tpu.memory_space<vmem>>, %arg2: memref<25x1xbf16, #tpu.memory_space<vmem>>, %arg3: memref<25x1xbf16, #tpu.memory_space<vmem>>, %arg4: memref<36x16xbf16, #tpu.memory_space<vmem>>, %arg5: memref<1x16xf32, #tpu.memory_space<vmem>>, %arg6: memref<144x32xbf16, #tpu.memory_space<vmem>>, %arg7: memref<1x32xf32, #tpu.memory_space<vmem>>, %arg8: memref<288x64xbf16, #tpu.memory_space<vmem>>, %arg9: memref<1x64xf32, #tpu.memory_space<vmem>>, %arg10: memref<1600x128xbf16, #tpu.memory_space<vmem>>, %arg11: memref<1x128xf32, #tpu.memory_space<vmem>>, %arg12: memref<128x1600xbf16, #tpu.memory_space<vmem>>, %arg13: memref<1x1600xf32, #tpu.memory_space<vmem>>, %arg14: memref<256x128xbf16, #tpu.memory_space<vmem>>, %arg15: memref<1x128xf32, #tpu.memory_space<vmem>>, %arg16: memref<128x64xbf16, #tpu.memory_space<vmem>>, %arg17: memref<1x64xf32, #tpu.memory_space<vmem>>, %arg18: memref<64x16xbf16, #tpu.memory_space<vmem>>, %arg19: memref<1x16xf32, #tpu.memory_space<vmem>>, %arg20: memref<400x16xf32, #tpu.memory_space<vmem>>) attributes {dimension_semantics = [#tpu.dimension_semantics<parallel>], iteration_bounds = array<i64: 2>, scalar_prefetch = 0 : i64, scratch_operands = 0 : i64, tpu.core_type = #tpu.core_type<tc>, window_params = [{transform_indices = @transform_0, window_bounds = array<i64: 400, 36>}, {pipeline_mode = #tpu.pipeline_mode<synchronous>, transform_indices = @transform_1, window_bounds = array<i64: 25, 1>}, {pipeline_mode = #tpu.pipeline_mode<synchronous>, transform_indices = @transform_2, window_bounds = array<i64: 25, 1>}, {pipeline_mode = #tpu.pipeline_mode<synchronous>, transform_indices = @transform_3, window_bounds = array<i64: 36, 16>}, {pipeline_mode = #tpu.pipeline_mode<synchronous>, transform_indices = @transform_4, window_bounds = array<i64: 1, 16>}, {pipeline_mode = #tpu.pipeline_mode<synchronous>, transform_indices = @transform_5, window_bounds = array<i64: 144, 32>}, {pipeline_mode = #tpu.pipeline_mode<synchronous>, transform_indices = @transform_6, window_bounds = array<i64: 1, 32>}, {pipeline_mode = #tpu.pipeline_mode<synchronous>, transform_indices = @transform_7, window_bounds = array<i64: 288, 64>}, {pipeline_mode = #tpu.pipeline_mode<synchronous>, transform_indices = @transform_8, window_bounds = array<i64: 1, 64>}, {pipeline_mode = #tpu.pipeline_mode<synchronous>, transform_indices = @transform_9, window_bounds = array<i64: 1600, 128>}, {pipeline_mode = #tpu.pipeline_mode<synchronous>, transform_indices = @transform_10, window_bounds = array<i64: 1, 128>}, {pipeline_mode = #tpu.pipeline_mode<synchronous>, transform_indices = @transform_11, window_bounds = array<i64: 128, 1600>}, {pipeline_mode = #tpu.pipeline_mode<synchronous>, transform_indices = @transform_12, window_bounds = array<i64: 1, 1600>}, {pipeline_mode = #tpu.pipeline_mode<synchronous>, transform_indices = @transform_13, window_bounds = array<i64: 256, 128>}, {pipeline_mode = #tpu.pipeline_mode<synchronous>, transform_indices = @transform_14, window_bounds = array<i64: 1, 128>}, {pipeline_mode = #tpu.pipeline_mode<synchronous>, transform_indices = @transform_15, window_bounds = array<i64: 128, 64>}, {pipeline_mode = #tpu.pipeline_mode<synchronous>, transform_indices = @transform_16, window_bounds = array<i64: 1, 64>}, {pipeline_mode = #tpu.pipeline_mode<synchronous>, transform_indices = @transform_17, window_bounds = array<i64: 64, 16>}, {pipeline_mode = #tpu.pipeline_mode<synchronous>, transform_indices = @transform_18, window_bounds = array<i64: 1, 16>}, {transform_indices = @transform_19, window_bounds = array<i64: 400, 16>}]} {
    %c0 = arith.constant 0 : index
    %c0_0 = arith.constant 0 : index
    %0 = vector.load %arg2[%c0, %c0_0] : memref<25x1xbf16, #tpu.memory_space<vmem>>, vector<25x1xbf16>
    %c0_1 = arith.constant 0 : index
    %c0_2 = arith.constant 0 : index
    %1 = vector.load %arg3[%c0_1, %c0_2] : memref<25x1xbf16, #tpu.memory_space<vmem>>, vector<25x1xbf16>
    %c0_3 = arith.constant 0 : index
    %c0_4 = arith.constant 0 : index
    %2 = vector.load %arg1[%c0_3, %c0_4] : memref<400x36xbf16, #tpu.memory_space<vmem>>, vector<400x36xbf16>
    %c0_5 = arith.constant 0 : index
    %c0_6 = arith.constant 0 : index
    %3 = vector.load %arg4[%c0_5, %c0_6] : memref<36x16xbf16, #tpu.memory_space<vmem>>, vector<36x16xbf16>
    %cst = arith.constant dense<0.000000e+00> : vector<400x16xf32>
    %4 = tpu.matmul %2, %3, %cst {dimension_numbers = #tpu.dot_dimension_numbers<[1], [0], [0], [1], [0, 0, 1, 1], [], []>} : vector<400x36xbf16>, vector<36x16xbf16>, vector<400x16xf32> -> vector<400x16xf32>
    %c0_7 = arith.constant 0 : index
    %c0_8 = arith.constant 0 : index
    %5 = vector.load %arg5[%c0_7, %c0_8] : memref<1x16xf32, #tpu.memory_space<vmem>>, vector<1x16xf32>
    %6 = vector.broadcast %5 : vector<1x16xf32> to vector<400x16xf32>
    %7 = arith.addf %4, %6 : vector<400x16xf32>
    %cst_9 = arith.constant 0.000000e+00 : f32
    %8 = vector.broadcast %cst_9 : f32 to vector<400x16xf32>
    %9 = arith.maximumf %7, %8 : vector<400x16xf32>
    %10 = arith.truncf %9 : vector<400x16xf32> to vector<400x16xbf16>
    %11 = vector.extract_strided_slice %10 {offsets = [375, 0], sizes = [25, 16], strides = [1, 1]} : vector<400x16xbf16> to vector<25x16xbf16>
    %cst_10 = arith.constant 0.000000e+00 : bf16
    %12 = vector.broadcast %cst_10 : bf16 to vector<5x16xbf16>
    %13 = vector.extract_strided_slice %11 {offsets = [0, 0], sizes = [20, 16], strides = [1, 1]} : vector<25x16xbf16> to vector<20x16xbf16>
    %14 = tpu.concatenate %12, %13 in 0 : vector<5x16xbf16>, vector<20x16xbf16> -> vector<25x16xbf16>
    %cst_11 = arith.constant 0.000000e+00 : bf16
    %15 = vector.broadcast %cst_11 : bf16 to vector<1x16xbf16>
    %16 = vector.extract_strided_slice %14 {offsets = [0, 0], sizes = [24, 16], strides = [1, 1]} : vector<25x16xbf16> to vector<24x16xbf16>
    %17 = tpu.concatenate %15, %16 in 0 : vector<1x16xbf16>, vector<24x16xbf16> -> vector<25x16xbf16>
    %18 = vector.broadcast %0 : vector<25x1xbf16> to vector<25x16xbf16>
    %19 = arith.mulf %17, %18 : vector<25x16xbf16>
    %20 = vector.extract_strided_slice %10 {offsets = [250, 0], sizes = [25, 16], strides = [1, 1]} : vector<400x16xbf16> to vector<25x16xbf16>
    %cst_12 = arith.constant 0.000000e+00 : bf16
    %21 = vector.broadcast %cst_12 : bf16 to vector<5x16xbf16>
    %22 = vector.extract_strided_slice %20 {offsets = [0, 0], sizes = [20, 16], strides = [1, 1]} : vector<25x16xbf16> to vector<20x16xbf16>
    %23 = tpu.concatenate %21, %22 in 0 : vector<5x16xbf16>, vector<20x16xbf16> -> vector<25x16xbf16>
    %24 = vector.extract_strided_slice %10 {offsets = [350, 0], sizes = [25, 16], strides = [1, 1]} : vector<400x16xbf16> to vector<25x16xbf16>
    %cst_13 = arith.constant 0.000000e+00 : bf16
    %25 = vector.broadcast %cst_13 : bf16 to vector<5x16xbf16>
    %26 = vector.extract_strided_slice %24 {offsets = [0, 0], sizes = [20, 16], strides = [1, 1]} : vector<25x16xbf16> to vector<20x16xbf16>
    %27 = tpu.concatenate %25, %26 in 0 : vector<5x16xbf16>, vector<20x16xbf16> -> vector<25x16xbf16>
    %28 = vector.extract_strided_slice %10 {offsets = [125, 0], sizes = [25, 16], strides = [1, 1]} : vector<400x16xbf16> to vector<25x16xbf16>
    %cst_14 = arith.constant 0.000000e+00 : bf16
    %29 = vector.broadcast %cst_14 : bf16 to vector<1x16xbf16>
    %30 = vector.extract_strided_slice %28 {offsets = [0, 0], sizes = [24, 16], strides = [1, 1]} : vector<25x16xbf16> to vector<24x16xbf16>
    %31 = tpu.concatenate %29, %30 in 0 : vector<1x16xbf16>, vector<24x16xbf16> -> vector<25x16xbf16>
    %32 = vector.broadcast %0 : vector<25x1xbf16> to vector<25x16xbf16>
    %33 = arith.mulf %31, %32 : vector<25x16xbf16>
    %34 = vector.extract_strided_slice %10 {offsets = [0, 0], sizes = [25, 16], strides = [1, 1]} : vector<400x16xbf16> to vector<25x16xbf16>
    %35 = vector.extract_strided_slice %10 {offsets = [100, 0], sizes = [25, 16], strides = [1, 1]} : vector<400x16xbf16> to vector<25x16xbf16>
    %36 = vector.extract_strided_slice %10 {offsets = [325, 0], sizes = [25, 16], strides = [1, 1]} : vector<400x16xbf16> to vector<25x16xbf16>
    %cst_15 = arith.constant 0.000000e+00 : bf16
    %37 = vector.broadcast %cst_15 : bf16 to vector<1x16xbf16>
    %38 = vector.extract_strided_slice %36 {offsets = [0, 0], sizes = [24, 16], strides = [1, 1]} : vector<25x16xbf16> to vector<24x16xbf16>
    %39 = tpu.concatenate %37, %38 in 0 : vector<1x16xbf16>, vector<24x16xbf16> -> vector<25x16xbf16>
    %40 = vector.broadcast %0 : vector<25x1xbf16> to vector<25x16xbf16>
    %41 = arith.mulf %39, %40 : vector<25x16xbf16>
    %42 = vector.extract_strided_slice %10 {offsets = [200, 0], sizes = [25, 16], strides = [1, 1]} : vector<400x16xbf16> to vector<25x16xbf16>
    %43 = vector.extract_strided_slice %10 {offsets = [300, 0], sizes = [25, 16], strides = [1, 1]} : vector<400x16xbf16> to vector<25x16xbf16>
    %44 = tpu.concatenate %19, %23, %27, %33, %34, %35, %41, %42, %43 in 1 : vector<25x16xbf16>, vector<25x16xbf16>, vector<25x16xbf16>, vector<25x16xbf16>, vector<25x16xbf16>, vector<25x16xbf16>, vector<25x16xbf16>, vector<25x16xbf16>, vector<25x16xbf16> -> vector<25x144xbf16>
    %45 = vector.extract_strided_slice %10 {offsets = [350, 0], sizes = [25, 16], strides = [1, 1]} : vector<400x16xbf16> to vector<25x16xbf16>
    %cst_16 = arith.constant 0.000000e+00 : bf16
    %46 = vector.broadcast %cst_16 : bf16 to vector<5x16xbf16>
    %47 = vector.extract_strided_slice %45 {offsets = [0, 0], sizes = [20, 16], strides = [1, 1]} : vector<25x16xbf16> to vector<20x16xbf16>
    %48 = tpu.concatenate %46, %47 in 0 : vector<5x16xbf16>, vector<20x16xbf16> -> vector<25x16xbf16>
    %49 = vector.extract_strided_slice %10 {offsets = [275, 0], sizes = [25, 16], strides = [1, 1]} : vector<400x16xbf16> to vector<25x16xbf16>
    %cst_17 = arith.constant 0.000000e+00 : bf16
    %50 = vector.broadcast %cst_17 : bf16 to vector<5x16xbf16>
    %51 = vector.extract_strided_slice %49 {offsets = [0, 0], sizes = [20, 16], strides = [1, 1]} : vector<25x16xbf16> to vector<20x16xbf16>
    %52 = tpu.concatenate %50, %51 in 0 : vector<5x16xbf16>, vector<20x16xbf16> -> vector<25x16xbf16>
    %53 = vector.extract_strided_slice %10 {offsets = [375, 0], sizes = [25, 16], strides = [1, 1]} : vector<400x16xbf16> to vector<25x16xbf16>
    %cst_18 = arith.constant 0.000000e+00 : bf16
    %54 = vector.broadcast %cst_18 : bf16 to vector<5x16xbf16>
    %55 = vector.extract_strided_slice %53 {offsets = [0, 0], sizes = [20, 16], strides = [1, 1]} : vector<25x16xbf16> to vector<20x16xbf16>
    %56 = tpu.concatenate %54, %55 in 0 : vector<5x16xbf16>, vector<20x16xbf16> -> vector<25x16xbf16>
    %57 = vector.extract_strided_slice %10 {offsets = [100, 0], sizes = [25, 16], strides = [1, 1]} : vector<400x16xbf16> to vector<25x16xbf16>
    %58 = vector.extract_strided_slice %10 {offsets = [25, 0], sizes = [25, 16], strides = [1, 1]} : vector<400x16xbf16> to vector<25x16xbf16>
    %59 = vector.extract_strided_slice %10 {offsets = [125, 0], sizes = [25, 16], strides = [1, 1]} : vector<400x16xbf16> to vector<25x16xbf16>
    %60 = vector.extract_strided_slice %10 {offsets = [300, 0], sizes = [25, 16], strides = [1, 1]} : vector<400x16xbf16> to vector<25x16xbf16>
    %61 = vector.extract_strided_slice %10 {offsets = [225, 0], sizes = [25, 16], strides = [1, 1]} : vector<400x16xbf16> to vector<25x16xbf16>
    %62 = vector.extract_strided_slice %10 {offsets = [325, 0], sizes = [25, 16], strides = [1, 1]} : vector<400x16xbf16> to vector<25x16xbf16>
    %63 = tpu.concatenate %48, %52, %56, %57, %58, %59, %60, %61, %62 in 1 : vector<25x16xbf16>, vector<25x16xbf16>, vector<25x16xbf16>, vector<25x16xbf16>, vector<25x16xbf16>, vector<25x16xbf16>, vector<25x16xbf16>, vector<25x16xbf16>, vector<25x16xbf16> -> vector<25x144xbf16>
    %64 = vector.extract_strided_slice %10 {offsets = [325, 0], sizes = [25, 16], strides = [1, 1]} : vector<400x16xbf16> to vector<25x16xbf16>
    %cst_19 = arith.constant 0.000000e+00 : bf16
    %65 = vector.broadcast %cst_19 : bf16 to vector<1x16xbf16>
    %66 = vector.extract_strided_slice %64 {offsets = [0, 0], sizes = [24, 16], strides = [1, 1]} : vector<25x16xbf16> to vector<24x16xbf16>
    %67 = tpu.concatenate %65, %66 in 0 : vector<1x16xbf16>, vector<24x16xbf16> -> vector<25x16xbf16>
    %68 = vector.broadcast %0 : vector<25x1xbf16> to vector<25x16xbf16>
    %69 = arith.mulf %67, %68 : vector<25x16xbf16>
    %70 = vector.extract_strided_slice %10 {offsets = [200, 0], sizes = [25, 16], strides = [1, 1]} : vector<400x16xbf16> to vector<25x16xbf16>
    %71 = vector.extract_strided_slice %10 {offsets = [300, 0], sizes = [25, 16], strides = [1, 1]} : vector<400x16xbf16> to vector<25x16xbf16>
    %72 = vector.extract_strided_slice %10 {offsets = [175, 0], sizes = [25, 16], strides = [1, 1]} : vector<400x16xbf16> to vector<25x16xbf16>
    %cst_20 = arith.constant 0.000000e+00 : bf16
    %73 = vector.broadcast %cst_20 : bf16 to vector<1x16xbf16>
    %74 = vector.extract_strided_slice %72 {offsets = [0, 0], sizes = [24, 16], strides = [1, 1]} : vector<25x16xbf16> to vector<24x16xbf16>
    %75 = tpu.concatenate %73, %74 in 0 : vector<1x16xbf16>, vector<24x16xbf16> -> vector<25x16xbf16>
    %76 = vector.broadcast %0 : vector<25x1xbf16> to vector<25x16xbf16>
    %77 = arith.mulf %75, %76 : vector<25x16xbf16>
    %78 = vector.extract_strided_slice %10 {offsets = [50, 0], sizes = [25, 16], strides = [1, 1]} : vector<400x16xbf16> to vector<25x16xbf16>
    %79 = vector.extract_strided_slice %10 {offsets = [150, 0], sizes = [25, 16], strides = [1, 1]} : vector<400x16xbf16> to vector<25x16xbf16>
    %80 = vector.extract_strided_slice %10 {offsets = [375, 0], sizes = [25, 16], strides = [1, 1]} : vector<400x16xbf16> to vector<25x16xbf16>
    %cst_21 = arith.constant 0.000000e+00 : bf16
    %81 = vector.broadcast %cst_21 : bf16 to vector<1x16xbf16>
    %82 = vector.extract_strided_slice %80 {offsets = [0, 0], sizes = [24, 16], strides = [1, 1]} : vector<25x16xbf16> to vector<24x16xbf16>
    %83 = tpu.concatenate %81, %82 in 0 : vector<1x16xbf16>, vector<24x16xbf16> -> vector<25x16xbf16>
    %84 = vector.broadcast %0 : vector<25x1xbf16> to vector<25x16xbf16>
    %85 = arith.mulf %83, %84 : vector<25x16xbf16>
    %86 = vector.extract_strided_slice %10 {offsets = [250, 0], sizes = [25, 16], strides = [1, 1]} : vector<400x16xbf16> to vector<25x16xbf16>
    %87 = vector.extract_strided_slice %10 {offsets = [350, 0], sizes = [25, 16], strides = [1, 1]} : vector<400x16xbf16> to vector<25x16xbf16>
    %88 = tpu.concatenate %69, %70, %71, %77, %78, %79, %85, %86, %87 in 1 : vector<25x16xbf16>, vector<25x16xbf16>, vector<25x16xbf16>, vector<25x16xbf16>, vector<25x16xbf16>, vector<25x16xbf16>, vector<25x16xbf16>, vector<25x16xbf16>, vector<25x16xbf16> -> vector<25x144xbf16>
    %89 = vector.extract_strided_slice %10 {offsets = [300, 0], sizes = [25, 16], strides = [1, 1]} : vector<400x16xbf16> to vector<25x16xbf16>
    %90 = vector.extract_strided_slice %10 {offsets = [225, 0], sizes = [25, 16], strides = [1, 1]} : vector<400x16xbf16> to vector<25x16xbf16>
    %91 = vector.extract_strided_slice %10 {offsets = [325, 0], sizes = [25, 16], strides = [1, 1]} : vector<400x16xbf16> to vector<25x16xbf16>
    %92 = vector.extract_strided_slice %10 {offsets = [150, 0], sizes = [25, 16], strides = [1, 1]} : vector<400x16xbf16> to vector<25x16xbf16>
    %93 = vector.extract_strided_slice %10 {offsets = [75, 0], sizes = [25, 16], strides = [1, 1]} : vector<400x16xbf16> to vector<25x16xbf16>
    %94 = vector.extract_strided_slice %10 {offsets = [175, 0], sizes = [25, 16], strides = [1, 1]} : vector<400x16xbf16> to vector<25x16xbf16>
    %95 = vector.extract_strided_slice %10 {offsets = [350, 0], sizes = [25, 16], strides = [1, 1]} : vector<400x16xbf16> to vector<25x16xbf16>
    %96 = vector.extract_strided_slice %10 {offsets = [275, 0], sizes = [25, 16], strides = [1, 1]} : vector<400x16xbf16> to vector<25x16xbf16>
    %97 = vector.extract_strided_slice %10 {offsets = [375, 0], sizes = [25, 16], strides = [1, 1]} : vector<400x16xbf16> to vector<25x16xbf16>
    %98 = tpu.concatenate %89, %90, %91, %92, %93, %94, %95, %96, %97 in 1 : vector<25x16xbf16>, vector<25x16xbf16>, vector<25x16xbf16>, vector<25x16xbf16>, vector<25x16xbf16>, vector<25x16xbf16>, vector<25x16xbf16>, vector<25x16xbf16>, vector<25x16xbf16> -> vector<25x144xbf16>
    %99 = tpu.concatenate %44, %63, %88, %98 in 0 : vector<25x144xbf16>, vector<25x144xbf16>, vector<25x144xbf16>, vector<25x144xbf16> -> vector<100x144xbf16>
    %c0_22 = arith.constant 0 : index
    %c0_23 = arith.constant 0 : index
    %100 = vector.load %arg6[%c0_22, %c0_23] : memref<144x32xbf16, #tpu.memory_space<vmem>>, vector<144x32xbf16>
    %cst_24 = arith.constant dense<0.000000e+00> : vector<100x32xf32>
    %101 = tpu.matmul %99, %100, %cst_24 {dimension_numbers = #tpu.dot_dimension_numbers<[1], [0], [0], [1], [0, 0, 1, 1], [], []>} : vector<100x144xbf16>, vector<144x32xbf16>, vector<100x32xf32> -> vector<100x32xf32>
    %c0_25 = arith.constant 0 : index
    %c0_26 = arith.constant 0 : index
    %102 = vector.load %arg7[%c0_25, %c0_26] : memref<1x32xf32, #tpu.memory_space<vmem>>, vector<1x32xf32>
    %103 = vector.broadcast %102 : vector<1x32xf32> to vector<100x32xf32>
    %104 = arith.addf %101, %103 : vector<100x32xf32>
    %cst_27 = arith.constant 0.000000e+00 : f32
    %105 = vector.broadcast %cst_27 : f32 to vector<100x32xf32>
    %106 = arith.maximumf %104, %105 : vector<100x32xf32>
    %107 = arith.truncf %106 : vector<100x32xf32> to vector<100x32xbf16>
    %108 = vector.extract_strided_slice %107 {offsets = [75, 0], sizes = [25, 32], strides = [1, 1]} : vector<100x32xbf16> to vector<25x32xbf16>
    %cst_28 = arith.constant 0.000000e+00 : bf16
    %109 = vector.broadcast %cst_28 : bf16 to vector<5x32xbf16>
    %110 = vector.extract_strided_slice %108 {offsets = [0, 0], sizes = [20, 32], strides = [1, 1]} : vector<25x32xbf16> to vector<20x32xbf16>
    %111 = tpu.concatenate %109, %110 in 0 : vector<5x32xbf16>, vector<20x32xbf16> -> vector<25x32xbf16>
    %cst_29 = arith.constant 0.000000e+00 : bf16
    %112 = vector.broadcast %cst_29 : bf16 to vector<1x32xbf16>
    %113 = vector.extract_strided_slice %111 {offsets = [0, 0], sizes = [24, 32], strides = [1, 1]} : vector<25x32xbf16> to vector<24x32xbf16>
    %114 = tpu.concatenate %112, %113 in 0 : vector<1x32xbf16>, vector<24x32xbf16> -> vector<25x32xbf16>
    %115 = vector.broadcast %0 : vector<25x1xbf16> to vector<25x32xbf16>
    %116 = arith.mulf %114, %115 : vector<25x32xbf16>
    %117 = vector.extract_strided_slice %107 {offsets = [50, 0], sizes = [25, 32], strides = [1, 1]} : vector<100x32xbf16> to vector<25x32xbf16>
    %cst_30 = arith.constant 0.000000e+00 : bf16
    %118 = vector.broadcast %cst_30 : bf16 to vector<5x32xbf16>
    %119 = vector.extract_strided_slice %117 {offsets = [0, 0], sizes = [20, 32], strides = [1, 1]} : vector<25x32xbf16> to vector<20x32xbf16>
    %120 = tpu.concatenate %118, %119 in 0 : vector<5x32xbf16>, vector<20x32xbf16> -> vector<25x32xbf16>
    %121 = vector.extract_strided_slice %107 {offsets = [75, 0], sizes = [25, 32], strides = [1, 1]} : vector<100x32xbf16> to vector<25x32xbf16>
    %cst_31 = arith.constant 0.000000e+00 : bf16
    %122 = vector.broadcast %cst_31 : bf16 to vector<5x32xbf16>
    %123 = vector.extract_strided_slice %121 {offsets = [0, 0], sizes = [20, 32], strides = [1, 1]} : vector<25x32xbf16> to vector<20x32xbf16>
    %124 = tpu.concatenate %122, %123 in 0 : vector<5x32xbf16>, vector<20x32xbf16> -> vector<25x32xbf16>
    %125 = vector.extract_strided_slice %107 {offsets = [25, 0], sizes = [25, 32], strides = [1, 1]} : vector<100x32xbf16> to vector<25x32xbf16>
    %cst_32 = arith.constant 0.000000e+00 : bf16
    %126 = vector.broadcast %cst_32 : bf16 to vector<1x32xbf16>
    %127 = vector.extract_strided_slice %125 {offsets = [0, 0], sizes = [24, 32], strides = [1, 1]} : vector<25x32xbf16> to vector<24x32xbf16>
    %128 = tpu.concatenate %126, %127 in 0 : vector<1x32xbf16>, vector<24x32xbf16> -> vector<25x32xbf16>
    %129 = vector.broadcast %0 : vector<25x1xbf16> to vector<25x32xbf16>
    %130 = arith.mulf %128, %129 : vector<25x32xbf16>
    %131 = vector.extract_strided_slice %107 {offsets = [0, 0], sizes = [25, 32], strides = [1, 1]} : vector<100x32xbf16> to vector<25x32xbf16>
    %132 = vector.extract_strided_slice %107 {offsets = [25, 0], sizes = [25, 32], strides = [1, 1]} : vector<100x32xbf16> to vector<25x32xbf16>
    %133 = vector.extract_strided_slice %107 {offsets = [75, 0], sizes = [25, 32], strides = [1, 1]} : vector<100x32xbf16> to vector<25x32xbf16>
    %cst_33 = arith.constant 0.000000e+00 : bf16
    %134 = vector.broadcast %cst_33 : bf16 to vector<1x32xbf16>
    %135 = vector.extract_strided_slice %133 {offsets = [0, 0], sizes = [24, 32], strides = [1, 1]} : vector<25x32xbf16> to vector<24x32xbf16>
    %136 = tpu.concatenate %134, %135 in 0 : vector<1x32xbf16>, vector<24x32xbf16> -> vector<25x32xbf16>
    %137 = vector.broadcast %0 : vector<25x1xbf16> to vector<25x32xbf16>
    %138 = arith.mulf %136, %137 : vector<25x32xbf16>
    %139 = vector.extract_strided_slice %107 {offsets = [50, 0], sizes = [25, 32], strides = [1, 1]} : vector<100x32xbf16> to vector<25x32xbf16>
    %140 = vector.extract_strided_slice %107 {offsets = [75, 0], sizes = [25, 32], strides = [1, 1]} : vector<100x32xbf16> to vector<25x32xbf16>
    %141 = tpu.concatenate %116, %120, %124, %130, %131, %132, %138, %139, %140 in 1 : vector<25x32xbf16>, vector<25x32xbf16>, vector<25x32xbf16>, vector<25x32xbf16>, vector<25x32xbf16>, vector<25x32xbf16>, vector<25x32xbf16>, vector<25x32xbf16>, vector<25x32xbf16> -> vector<25x288xbf16>
    %c0_34 = arith.constant 0 : index
    %c0_35 = arith.constant 0 : index
    %142 = vector.load %arg8[%c0_34, %c0_35] : memref<288x64xbf16, #tpu.memory_space<vmem>>, vector<288x64xbf16>
    %cst_36 = arith.constant dense<0.000000e+00> : vector<25x64xf32>
    %143 = tpu.matmul %141, %142, %cst_36 {dimension_numbers = #tpu.dot_dimension_numbers<[1], [0], [0], [1], [0, 0, 1, 1], [], []>} : vector<25x288xbf16>, vector<288x64xbf16>, vector<25x64xf32> -> vector<25x64xf32>
    %c0_37 = arith.constant 0 : index
    %c0_38 = arith.constant 0 : index
    %144 = vector.load %arg9[%c0_37, %c0_38] : memref<1x64xf32, #tpu.memory_space<vmem>>, vector<1x64xf32>
    %145 = vector.broadcast %144 : vector<1x64xf32> to vector<25x64xf32>
    %146 = arith.addf %143, %145 : vector<25x64xf32>
    %cst_39 = arith.constant 0.000000e+00 : f32
    %147 = vector.broadcast %cst_39 : f32 to vector<25x64xf32>
    %148 = arith.maximumf %146, %147 : vector<25x64xf32>
    %149 = arith.truncf %148 : vector<25x64xf32> to vector<25x64xbf16>
    %150 = vector.extract_strided_slice %149 {offsets = [0, 0], sizes = [1, 64], strides = [1, 1]} : vector<25x64xbf16> to vector<1x64xbf16>
    %151 = vector.extract_strided_slice %149 {offsets = [1, 0], sizes = [1, 64], strides = [1, 1]} : vector<25x64xbf16> to vector<1x64xbf16>
    %152 = vector.extract_strided_slice %149 {offsets = [2, 0], sizes = [1, 64], strides = [1, 1]} : vector<25x64xbf16> to vector<1x64xbf16>
    %153 = vector.extract_strided_slice %149 {offsets = [3, 0], sizes = [1, 64], strides = [1, 1]} : vector<25x64xbf16> to vector<1x64xbf16>
    %154 = vector.extract_strided_slice %149 {offsets = [4, 0], sizes = [1, 64], strides = [1, 1]} : vector<25x64xbf16> to vector<1x64xbf16>
    %155 = vector.extract_strided_slice %149 {offsets = [5, 0], sizes = [1, 64], strides = [1, 1]} : vector<25x64xbf16> to vector<1x64xbf16>
    %156 = vector.extract_strided_slice %149 {offsets = [6, 0], sizes = [1, 64], strides = [1, 1]} : vector<25x64xbf16> to vector<1x64xbf16>
    %157 = vector.extract_strided_slice %149 {offsets = [7, 0], sizes = [1, 64], strides = [1, 1]} : vector<25x64xbf16> to vector<1x64xbf16>
    %158 = vector.extract_strided_slice %149 {offsets = [8, 0], sizes = [1, 64], strides = [1, 1]} : vector<25x64xbf16> to vector<1x64xbf16>
    %159 = vector.extract_strided_slice %149 {offsets = [9, 0], sizes = [1, 64], strides = [1, 1]} : vector<25x64xbf16> to vector<1x64xbf16>
    %160 = vector.extract_strided_slice %149 {offsets = [10, 0], sizes = [1, 64], strides = [1, 1]} : vector<25x64xbf16> to vector<1x64xbf16>
    %161 = vector.extract_strided_slice %149 {offsets = [11, 0], sizes = [1, 64], strides = [1, 1]} : vector<25x64xbf16> to vector<1x64xbf16>
    %162 = vector.extract_strided_slice %149 {offsets = [12, 0], sizes = [1, 64], strides = [1, 1]} : vector<25x64xbf16> to vector<1x64xbf16>
    %163 = vector.extract_strided_slice %149 {offsets = [13, 0], sizes = [1, 64], strides = [1, 1]} : vector<25x64xbf16> to vector<1x64xbf16>
    %164 = vector.extract_strided_slice %149 {offsets = [14, 0], sizes = [1, 64], strides = [1, 1]} : vector<25x64xbf16> to vector<1x64xbf16>
    %165 = vector.extract_strided_slice %149 {offsets = [15, 0], sizes = [1, 64], strides = [1, 1]} : vector<25x64xbf16> to vector<1x64xbf16>
    %166 = vector.extract_strided_slice %149 {offsets = [16, 0], sizes = [1, 64], strides = [1, 1]} : vector<25x64xbf16> to vector<1x64xbf16>
    %167 = vector.extract_strided_slice %149 {offsets = [17, 0], sizes = [1, 64], strides = [1, 1]} : vector<25x64xbf16> to vector<1x64xbf16>
    %168 = vector.extract_strided_slice %149 {offsets = [18, 0], sizes = [1, 64], strides = [1, 1]} : vector<25x64xbf16> to vector<1x64xbf16>
    %169 = vector.extract_strided_slice %149 {offsets = [19, 0], sizes = [1, 64], strides = [1, 1]} : vector<25x64xbf16> to vector<1x64xbf16>
    %170 = vector.extract_strided_slice %149 {offsets = [20, 0], sizes = [1, 64], strides = [1, 1]} : vector<25x64xbf16> to vector<1x64xbf16>
    %171 = vector.extract_strided_slice %149 {offsets = [21, 0], sizes = [1, 64], strides = [1, 1]} : vector<25x64xbf16> to vector<1x64xbf16>
    %172 = vector.extract_strided_slice %149 {offsets = [22, 0], sizes = [1, 64], strides = [1, 1]} : vector<25x64xbf16> to vector<1x64xbf16>
    %173 = vector.extract_strided_slice %149 {offsets = [23, 0], sizes = [1, 64], strides = [1, 1]} : vector<25x64xbf16> to vector<1x64xbf16>
    %174 = vector.extract_strided_slice %149 {offsets = [24, 0], sizes = [1, 64], strides = [1, 1]} : vector<25x64xbf16> to vector<1x64xbf16>
    %175 = tpu.concatenate %150, %151, %152, %153, %154, %155, %156, %157, %158, %159, %160, %161, %162, %163, %164, %165 in 1 : vector<1x64xbf16>, vector<1x64xbf16>, vector<1x64xbf16>, vector<1x64xbf16>, vector<1x64xbf16>, vector<1x64xbf16>, vector<1x64xbf16>, vector<1x64xbf16>, vector<1x64xbf16>, vector<1x64xbf16>, vector<1x64xbf16>, vector<1x64xbf16>, vector<1x64xbf16>, vector<1x64xbf16>, vector<1x64xbf16>, vector<1x64xbf16> -> vector<1x1024xbf16>
    %176 = tpu.concatenate %166, %167, %168, %169, %170, %171, %172, %173, %174 in 1 : vector<1x64xbf16>, vector<1x64xbf16>, vector<1x64xbf16>, vector<1x64xbf16>, vector<1x64xbf16>, vector<1x64xbf16>, vector<1x64xbf16>, vector<1x64xbf16>, vector<1x64xbf16> -> vector<1x576xbf16>
    %177 = tpu.concatenate %175, %176 in 1 : vector<1x1024xbf16>, vector<1x576xbf16> -> vector<1x1600xbf16>
    %c0_40 = arith.constant 0 : index
    %c0_41 = arith.constant 0 : index
    %178 = vector.load %arg10[%c0_40, %c0_41] : memref<1600x128xbf16, #tpu.memory_space<vmem>>, vector<1600x128xbf16>
    %cst_42 = arith.constant dense<0.000000e+00> : vector<1x128xf32>
    %179 = tpu.matmul %177, %178, %cst_42 {dimension_numbers = #tpu.dot_dimension_numbers<[1], [0], [0], [1], [0, 0, 1, 1], [], []>} : vector<1x1600xbf16>, vector<1600x128xbf16>, vector<1x128xf32> -> vector<1x128xf32>
    %c0_43 = arith.constant 0 : index
    %c0_44 = arith.constant 0 : index
    %180 = vector.load %arg11[%c0_43, %c0_44] : memref<1x128xf32, #tpu.memory_space<vmem>>, vector<1x128xf32>
    %181 = arith.addf %179, %180 : vector<1x128xf32>
    %182 = arith.truncf %181 : vector<1x128xf32> to vector<1x128xbf16>
    %c0_45 = arith.constant 0 : index
    %c0_46 = arith.constant 0 : index
    %183 = vector.load %arg12[%c0_45, %c0_46] : memref<128x1600xbf16, #tpu.memory_space<vmem>>, vector<128x1600xbf16>
    %cst_47 = arith.constant dense<0.000000e+00> : vector<1x1600xf32>
    %184 = tpu.matmul %182, %183, %cst_47 {dimension_numbers = #tpu.dot_dimension_numbers<[1], [0], [0], [1], [0, 0, 1, 1], [], []>} : vector<1x128xbf16>, vector<128x1600xbf16>, vector<1x1600xf32> -> vector<1x1600xf32>
    %c0_48 = arith.constant 0 : index
    %c0_49 = arith.constant 0 : index
    %185 = vector.load %arg13[%c0_48, %c0_49] : memref<1x1600xf32, #tpu.memory_space<vmem>>, vector<1x1600xf32>
    %186 = arith.addf %184, %185 : vector<1x1600xf32>
    %cst_50 = arith.constant 0.000000e+00 : f32
    %187 = vector.broadcast %cst_50 : f32 to vector<1x1600xf32>
    %188 = arith.maximumf %186, %187 : vector<1x1600xf32>
    %189 = arith.truncf %188 : vector<1x1600xf32> to vector<1x1600xbf16>
    %190 = vector.extract_strided_slice %189 {offsets = [0, 0], sizes = [1, 64], strides = [1, 1]} : vector<1x1600xbf16> to vector<1x64xbf16>
    %191 = vector.extract_strided_slice %189 {offsets = [0, 64], sizes = [1, 64], strides = [1, 1]} : vector<1x1600xbf16> to vector<1x64xbf16>
    %192 = vector.extract_strided_slice %189 {offsets = [0, 128], sizes = [1, 64], strides = [1, 1]} : vector<1x1600xbf16> to vector<1x64xbf16>
    %193 = vector.extract_strided_slice %189 {offsets = [0, 192], sizes = [1, 64], strides = [1, 1]} : vector<1x1600xbf16> to vector<1x64xbf16>
    %194 = vector.extract_strided_slice %189 {offsets = [0, 256], sizes = [1, 64], strides = [1, 1]} : vector<1x1600xbf16> to vector<1x64xbf16>
    %195 = vector.extract_strided_slice %189 {offsets = [0, 320], sizes = [1, 64], strides = [1, 1]} : vector<1x1600xbf16> to vector<1x64xbf16>
    %196 = vector.extract_strided_slice %189 {offsets = [0, 384], sizes = [1, 64], strides = [1, 1]} : vector<1x1600xbf16> to vector<1x64xbf16>
    %197 = vector.extract_strided_slice %189 {offsets = [0, 448], sizes = [1, 64], strides = [1, 1]} : vector<1x1600xbf16> to vector<1x64xbf16>
    %198 = vector.extract_strided_slice %189 {offsets = [0, 512], sizes = [1, 64], strides = [1, 1]} : vector<1x1600xbf16> to vector<1x64xbf16>
    %199 = vector.extract_strided_slice %189 {offsets = [0, 576], sizes = [1, 64], strides = [1, 1]} : vector<1x1600xbf16> to vector<1x64xbf16>
    %200 = vector.extract_strided_slice %189 {offsets = [0, 640], sizes = [1, 64], strides = [1, 1]} : vector<1x1600xbf16> to vector<1x64xbf16>
    %201 = vector.extract_strided_slice %189 {offsets = [0, 704], sizes = [1, 64], strides = [1, 1]} : vector<1x1600xbf16> to vector<1x64xbf16>
    %202 = vector.extract_strided_slice %189 {offsets = [0, 768], sizes = [1, 64], strides = [1, 1]} : vector<1x1600xbf16> to vector<1x64xbf16>
    %203 = vector.extract_strided_slice %189 {offsets = [0, 832], sizes = [1, 64], strides = [1, 1]} : vector<1x1600xbf16> to vector<1x64xbf16>
    %204 = vector.extract_strided_slice %189 {offsets = [0, 896], sizes = [1, 64], strides = [1, 1]} : vector<1x1600xbf16> to vector<1x64xbf16>
    %205 = vector.extract_strided_slice %189 {offsets = [0, 960], sizes = [1, 64], strides = [1, 1]} : vector<1x1600xbf16> to vector<1x64xbf16>
    %206 = vector.extract_strided_slice %189 {offsets = [0, 1024], sizes = [1, 64], strides = [1, 1]} : vector<1x1600xbf16> to vector<1x64xbf16>
    %207 = vector.extract_strided_slice %189 {offsets = [0, 1088], sizes = [1, 64], strides = [1, 1]} : vector<1x1600xbf16> to vector<1x64xbf16>
    %208 = vector.extract_strided_slice %189 {offsets = [0, 1152], sizes = [1, 64], strides = [1, 1]} : vector<1x1600xbf16> to vector<1x64xbf16>
    %209 = vector.extract_strided_slice %189 {offsets = [0, 1216], sizes = [1, 64], strides = [1, 1]} : vector<1x1600xbf16> to vector<1x64xbf16>
    %210 = vector.extract_strided_slice %189 {offsets = [0, 1280], sizes = [1, 64], strides = [1, 1]} : vector<1x1600xbf16> to vector<1x64xbf16>
    %211 = vector.extract_strided_slice %189 {offsets = [0, 1344], sizes = [1, 64], strides = [1, 1]} : vector<1x1600xbf16> to vector<1x64xbf16>
    %212 = vector.extract_strided_slice %189 {offsets = [0, 1408], sizes = [1, 64], strides = [1, 1]} : vector<1x1600xbf16> to vector<1x64xbf16>
    %213 = vector.extract_strided_slice %189 {offsets = [0, 1472], sizes = [1, 64], strides = [1, 1]} : vector<1x1600xbf16> to vector<1x64xbf16>
    %214 = vector.extract_strided_slice %189 {offsets = [0, 1536], sizes = [1, 64], strides = [1, 1]} : vector<1x1600xbf16> to vector<1x64xbf16>
    %215 = tpu.concatenate %190, %191, %192, %193, %194, %195, %196, %197, %198, %199, %200, %201, %202, %203, %204, %205 in 0 : vector<1x64xbf16>, vector<1x64xbf16>, vector<1x64xbf16>, vector<1x64xbf16>, vector<1x64xbf16>, vector<1x64xbf16>, vector<1x64xbf16>, vector<1x64xbf16>, vector<1x64xbf16>, vector<1x64xbf16>, vector<1x64xbf16>, vector<1x64xbf16>, vector<1x64xbf16>, vector<1x64xbf16>, vector<1x64xbf16>, vector<1x64xbf16> -> vector<16x64xbf16>
    %216 = tpu.concatenate %206, %207, %208, %209, %210, %211, %212, %213, %214 in 0 : vector<1x64xbf16>, vector<1x64xbf16>, vector<1x64xbf16>, vector<1x64xbf16>, vector<1x64xbf16>, vector<1x64xbf16>, vector<1x64xbf16>, vector<1x64xbf16>, vector<1x64xbf16> -> vector<9x64xbf16>
    %217 = tpu.concatenate %215, %216 in 0 : vector<16x64xbf16>, vector<9x64xbf16> -> vector<25x64xbf16>
    %218 = vector.extract_strided_slice %217 {offsets = [1, 0], sizes = [24, 64], strides = [1, 1]} : vector<25x64xbf16> to vector<24x64xbf16>
    %cst_51 = arith.constant 0.000000e+00 : bf16
    %219 = vector.broadcast %cst_51 : bf16 to vector<1x64xbf16>
    %220 = tpu.concatenate %218, %219 in 0 : vector<24x64xbf16>, vector<1x64xbf16> -> vector<25x64xbf16>
    %221 = vector.broadcast %1 : vector<25x1xbf16> to vector<25x64xbf16>
    %222 = arith.mulf %220, %221 : vector<25x64xbf16>
    %223 = vector.extract_strided_slice %217 {offsets = [5, 0], sizes = [20, 64], strides = [1, 1]} : vector<25x64xbf16> to vector<20x64xbf16>
    %cst_52 = arith.constant 0.000000e+00 : bf16
    %224 = vector.broadcast %cst_52 : bf16 to vector<5x64xbf16>
    %225 = tpu.concatenate %223, %224 in 0 : vector<20x64xbf16>, vector<5x64xbf16> -> vector<25x64xbf16>
    %226 = vector.extract_strided_slice %217 {offsets = [5, 0], sizes = [20, 64], strides = [1, 1]} : vector<25x64xbf16> to vector<20x64xbf16>
    %cst_53 = arith.constant 0.000000e+00 : bf16
    %227 = vector.broadcast %cst_53 : bf16 to vector<5x64xbf16>
    %228 = tpu.concatenate %226, %227 in 0 : vector<20x64xbf16>, vector<5x64xbf16> -> vector<25x64xbf16>
    %229 = vector.extract_strided_slice %228 {offsets = [1, 0], sizes = [24, 64], strides = [1, 1]} : vector<25x64xbf16> to vector<24x64xbf16>
    %cst_54 = arith.constant 0.000000e+00 : bf16
    %230 = vector.broadcast %cst_54 : bf16 to vector<1x64xbf16>
    %231 = tpu.concatenate %229, %230 in 0 : vector<24x64xbf16>, vector<1x64xbf16> -> vector<25x64xbf16>
    %232 = vector.broadcast %1 : vector<25x1xbf16> to vector<25x64xbf16>
    %233 = arith.mulf %231, %232 : vector<25x64xbf16>
    %234 = tpu.concatenate %217, %222, %225, %233 in 1 : vector<25x64xbf16>, vector<25x64xbf16>, vector<25x64xbf16>, vector<25x64xbf16> -> vector<25x256xbf16>
    %c0_55 = arith.constant 0 : index
    %c0_56 = arith.constant 0 : index
    %235 = vector.load %arg14[%c0_55, %c0_56] : memref<256x128xbf16, #tpu.memory_space<vmem>>, vector<256x128xbf16>
    %cst_57 = arith.constant dense<0.000000e+00> : vector<25x128xf32>
    %236 = tpu.matmul %234, %235, %cst_57 {dimension_numbers = #tpu.dot_dimension_numbers<[1], [0], [0], [1], [0, 0, 1, 1], [], []>} : vector<25x256xbf16>, vector<256x128xbf16>, vector<25x128xf32> -> vector<25x128xf32>
    %c0_58 = arith.constant 0 : index
    %c0_59 = arith.constant 0 : index
    %237 = vector.load %arg15[%c0_58, %c0_59] : memref<1x128xf32, #tpu.memory_space<vmem>>, vector<1x128xf32>
    %238 = vector.broadcast %237 : vector<1x128xf32> to vector<25x128xf32>
    %239 = arith.addf %236, %238 : vector<25x128xf32>
    %cst_60 = arith.constant 0.000000e+00 : f32
    %240 = vector.broadcast %cst_60 : f32 to vector<25x128xf32>
    %241 = arith.maximumf %239, %240 : vector<25x128xf32>
    %242 = arith.truncf %241 : vector<25x128xf32> to vector<25x128xbf16>
    %243 = vector.extract_strided_slice %242 {offsets = [0, 0], sizes = [25, 32], strides = [1, 1]} : vector<25x128xbf16> to vector<25x32xbf16>
    %244 = vector.extract_strided_slice %242 {offsets = [0, 32], sizes = [25, 32], strides = [1, 1]} : vector<25x128xbf16> to vector<25x32xbf16>
    %245 = vector.extract_strided_slice %242 {offsets = [0, 64], sizes = [25, 32], strides = [1, 1]} : vector<25x128xbf16> to vector<25x32xbf16>
    %246 = vector.extract_strided_slice %242 {offsets = [0, 96], sizes = [25, 32], strides = [1, 1]} : vector<25x128xbf16> to vector<25x32xbf16>
    %247 = tpu.concatenate %243, %244, %245, %246 in 1 : vector<25x32xbf16>, vector<25x32xbf16>, vector<25x32xbf16>, vector<25x32xbf16> -> vector<25x128xbf16>
    %248 = vector.extract_strided_slice %242 {offsets = [0, 32], sizes = [25, 32], strides = [1, 1]} : vector<25x128xbf16> to vector<25x32xbf16>
    %249 = vector.extract_strided_slice %242 {offsets = [0, 0], sizes = [25, 32], strides = [1, 1]} : vector<25x128xbf16> to vector<25x32xbf16>
    %250 = vector.extract_strided_slice %249 {offsets = [1, 0], sizes = [24, 32], strides = [1, 1]} : vector<25x32xbf16> to vector<24x32xbf16>
    %cst_61 = arith.constant 0.000000e+00 : bf16
    %251 = vector.broadcast %cst_61 : bf16 to vector<1x32xbf16>
    %252 = tpu.concatenate %250, %251 in 0 : vector<24x32xbf16>, vector<1x32xbf16> -> vector<25x32xbf16>
    %253 = vector.broadcast %1 : vector<25x1xbf16> to vector<25x32xbf16>
    %254 = arith.mulf %252, %253 : vector<25x32xbf16>
    %255 = vector.extract_strided_slice %242 {offsets = [0, 96], sizes = [25, 32], strides = [1, 1]} : vector<25x128xbf16> to vector<25x32xbf16>
    %256 = vector.extract_strided_slice %242 {offsets = [0, 64], sizes = [25, 32], strides = [1, 1]} : vector<25x128xbf16> to vector<25x32xbf16>
    %257 = vector.extract_strided_slice %256 {offsets = [1, 0], sizes = [24, 32], strides = [1, 1]} : vector<25x32xbf16> to vector<24x32xbf16>
    %cst_62 = arith.constant 0.000000e+00 : bf16
    %258 = vector.broadcast %cst_62 : bf16 to vector<1x32xbf16>
    %259 = tpu.concatenate %257, %258 in 0 : vector<24x32xbf16>, vector<1x32xbf16> -> vector<25x32xbf16>
    %260 = vector.broadcast %1 : vector<25x1xbf16> to vector<25x32xbf16>
    %261 = arith.mulf %259, %260 : vector<25x32xbf16>
    %262 = tpu.concatenate %248, %254, %255, %261 in 1 : vector<25x32xbf16>, vector<25x32xbf16>, vector<25x32xbf16>, vector<25x32xbf16> -> vector<25x128xbf16>
    %263 = vector.extract_strided_slice %242 {offsets = [0, 64], sizes = [25, 32], strides = [1, 1]} : vector<25x128xbf16> to vector<25x32xbf16>
    %264 = vector.extract_strided_slice %242 {offsets = [0, 96], sizes = [25, 32], strides = [1, 1]} : vector<25x128xbf16> to vector<25x32xbf16>
    %265 = vector.extract_strided_slice %242 {offsets = [0, 0], sizes = [25, 32], strides = [1, 1]} : vector<25x128xbf16> to vector<25x32xbf16>
    %266 = vector.extract_strided_slice %265 {offsets = [5, 0], sizes = [20, 32], strides = [1, 1]} : vector<25x32xbf16> to vector<20x32xbf16>
    %cst_63 = arith.constant 0.000000e+00 : bf16
    %267 = vector.broadcast %cst_63 : bf16 to vector<5x32xbf16>
    %268 = tpu.concatenate %266, %267 in 0 : vector<20x32xbf16>, vector<5x32xbf16> -> vector<25x32xbf16>
    %269 = vector.extract_strided_slice %242 {offsets = [0, 32], sizes = [25, 32], strides = [1, 1]} : vector<25x128xbf16> to vector<25x32xbf16>
    %270 = vector.extract_strided_slice %269 {offsets = [5, 0], sizes = [20, 32], strides = [1, 1]} : vector<25x32xbf16> to vector<20x32xbf16>
    %cst_64 = arith.constant 0.000000e+00 : bf16
    %271 = vector.broadcast %cst_64 : bf16 to vector<5x32xbf16>
    %272 = tpu.concatenate %270, %271 in 0 : vector<20x32xbf16>, vector<5x32xbf16> -> vector<25x32xbf16>
    %273 = tpu.concatenate %263, %264, %268, %272 in 1 : vector<25x32xbf16>, vector<25x32xbf16>, vector<25x32xbf16>, vector<25x32xbf16> -> vector<25x128xbf16>
    %274 = vector.extract_strided_slice %242 {offsets = [0, 96], sizes = [25, 32], strides = [1, 1]} : vector<25x128xbf16> to vector<25x32xbf16>
    %275 = vector.extract_strided_slice %242 {offsets = [0, 64], sizes = [25, 32], strides = [1, 1]} : vector<25x128xbf16> to vector<25x32xbf16>
    %276 = vector.extract_strided_slice %275 {offsets = [1, 0], sizes = [24, 32], strides = [1, 1]} : vector<25x32xbf16> to vector<24x32xbf16>
    %cst_65 = arith.constant 0.000000e+00 : bf16
    %277 = vector.broadcast %cst_65 : bf16 to vector<1x32xbf16>
    %278 = tpu.concatenate %276, %277 in 0 : vector<24x32xbf16>, vector<1x32xbf16> -> vector<25x32xbf16>
    %279 = vector.broadcast %1 : vector<25x1xbf16> to vector<25x32xbf16>
    %280 = arith.mulf %278, %279 : vector<25x32xbf16>
    %281 = vector.extract_strided_slice %242 {offsets = [0, 32], sizes = [25, 32], strides = [1, 1]} : vector<25x128xbf16> to vector<25x32xbf16>
    %282 = vector.extract_strided_slice %281 {offsets = [5, 0], sizes = [20, 32], strides = [1, 1]} : vector<25x32xbf16> to vector<20x32xbf16>
    %cst_66 = arith.constant 0.000000e+00 : bf16
    %283 = vector.broadcast %cst_66 : bf16 to vector<5x32xbf16>
    %284 = tpu.concatenate %282, %283 in 0 : vector<20x32xbf16>, vector<5x32xbf16> -> vector<25x32xbf16>
    %285 = vector.extract_strided_slice %242 {offsets = [0, 0], sizes = [25, 32], strides = [1, 1]} : vector<25x128xbf16> to vector<25x32xbf16>
    %286 = vector.extract_strided_slice %285 {offsets = [5, 0], sizes = [20, 32], strides = [1, 1]} : vector<25x32xbf16> to vector<20x32xbf16>
    %cst_67 = arith.constant 0.000000e+00 : bf16
    %287 = vector.broadcast %cst_67 : bf16 to vector<5x32xbf16>
    %288 = tpu.concatenate %286, %287 in 0 : vector<20x32xbf16>, vector<5x32xbf16> -> vector<25x32xbf16>
    %289 = vector.extract_strided_slice %288 {offsets = [1, 0], sizes = [24, 32], strides = [1, 1]} : vector<25x32xbf16> to vector<24x32xbf16>
    %cst_68 = arith.constant 0.000000e+00 : bf16
    %290 = vector.broadcast %cst_68 : bf16 to vector<1x32xbf16>
    %291 = tpu.concatenate %289, %290 in 0 : vector<24x32xbf16>, vector<1x32xbf16> -> vector<25x32xbf16>
    %292 = vector.broadcast %1 : vector<25x1xbf16> to vector<25x32xbf16>
    %293 = arith.mulf %291, %292 : vector<25x32xbf16>
    %294 = tpu.concatenate %274, %280, %284, %293 in 1 : vector<25x32xbf16>, vector<25x32xbf16>, vector<25x32xbf16>, vector<25x32xbf16> -> vector<25x128xbf16>
    %295 = tpu.concatenate %247, %262, %273, %294 in 0 : vector<25x128xbf16>, vector<25x128xbf16>, vector<25x128xbf16>, vector<25x128xbf16> -> vector<100x128xbf16>
    %c0_69 = arith.constant 0 : index
    %c0_70 = arith.constant 0 : index
    %296 = vector.load %arg16[%c0_69, %c0_70] : memref<128x64xbf16, #tpu.memory_space<vmem>>, vector<128x64xbf16>
    %cst_71 = arith.constant dense<0.000000e+00> : vector<100x64xf32>
    %297 = tpu.matmul %295, %296, %cst_71 {dimension_numbers = #tpu.dot_dimension_numbers<[1], [0], [0], [1], [0, 0, 1, 1], [], []>} : vector<100x128xbf16>, vector<128x64xbf16>, vector<100x64xf32> -> vector<100x64xf32>
    %c0_72 = arith.constant 0 : index
    %c0_73 = arith.constant 0 : index
    %298 = vector.load %arg17[%c0_72, %c0_73] : memref<1x64xf32, #tpu.memory_space<vmem>>, vector<1x64xf32>
    %299 = vector.broadcast %298 : vector<1x64xf32> to vector<100x64xf32>
    %300 = arith.addf %297, %299 : vector<100x64xf32>
    %cst_74 = arith.constant 0.000000e+00 : f32
    %301 = vector.broadcast %cst_74 : f32 to vector<100x64xf32>
    %302 = arith.maximumf %300, %301 : vector<100x64xf32>
    %303 = arith.truncf %302 : vector<100x64xf32> to vector<100x64xbf16>
    %304 = vector.extract_strided_slice %303 {offsets = [0, 0], sizes = [25, 16], strides = [1, 1]} : vector<100x64xbf16> to vector<25x16xbf16>
    %305 = vector.extract_strided_slice %303 {offsets = [0, 16], sizes = [25, 16], strides = [1, 1]} : vector<100x64xbf16> to vector<25x16xbf16>
    %306 = vector.extract_strided_slice %303 {offsets = [0, 32], sizes = [25, 16], strides = [1, 1]} : vector<100x64xbf16> to vector<25x16xbf16>
    %307 = vector.extract_strided_slice %303 {offsets = [0, 48], sizes = [25, 16], strides = [1, 1]} : vector<100x64xbf16> to vector<25x16xbf16>
    %308 = tpu.concatenate %304, %305, %306, %307 in 1 : vector<25x16xbf16>, vector<25x16xbf16>, vector<25x16xbf16>, vector<25x16xbf16> -> vector<25x64xbf16>
    %309 = vector.extract_strided_slice %303 {offsets = [25, 0], sizes = [25, 16], strides = [1, 1]} : vector<100x64xbf16> to vector<25x16xbf16>
    %310 = vector.extract_strided_slice %303 {offsets = [25, 16], sizes = [25, 16], strides = [1, 1]} : vector<100x64xbf16> to vector<25x16xbf16>
    %311 = vector.extract_strided_slice %303 {offsets = [25, 32], sizes = [25, 16], strides = [1, 1]} : vector<100x64xbf16> to vector<25x16xbf16>
    %312 = vector.extract_strided_slice %303 {offsets = [25, 48], sizes = [25, 16], strides = [1, 1]} : vector<100x64xbf16> to vector<25x16xbf16>
    %313 = tpu.concatenate %309, %310, %311, %312 in 1 : vector<25x16xbf16>, vector<25x16xbf16>, vector<25x16xbf16>, vector<25x16xbf16> -> vector<25x64xbf16>
    %314 = vector.extract_strided_slice %303 {offsets = [50, 0], sizes = [25, 16], strides = [1, 1]} : vector<100x64xbf16> to vector<25x16xbf16>
    %315 = vector.extract_strided_slice %303 {offsets = [50, 16], sizes = [25, 16], strides = [1, 1]} : vector<100x64xbf16> to vector<25x16xbf16>
    %316 = vector.extract_strided_slice %303 {offsets = [50, 32], sizes = [25, 16], strides = [1, 1]} : vector<100x64xbf16> to vector<25x16xbf16>
    %317 = vector.extract_strided_slice %303 {offsets = [50, 48], sizes = [25, 16], strides = [1, 1]} : vector<100x64xbf16> to vector<25x16xbf16>
    %318 = tpu.concatenate %314, %315, %316, %317 in 1 : vector<25x16xbf16>, vector<25x16xbf16>, vector<25x16xbf16>, vector<25x16xbf16> -> vector<25x64xbf16>
    %319 = vector.extract_strided_slice %303 {offsets = [75, 0], sizes = [25, 16], strides = [1, 1]} : vector<100x64xbf16> to vector<25x16xbf16>
    %320 = vector.extract_strided_slice %303 {offsets = [75, 16], sizes = [25, 16], strides = [1, 1]} : vector<100x64xbf16> to vector<25x16xbf16>
    %321 = vector.extract_strided_slice %303 {offsets = [75, 32], sizes = [25, 16], strides = [1, 1]} : vector<100x64xbf16> to vector<25x16xbf16>
    %322 = vector.extract_strided_slice %303 {offsets = [75, 48], sizes = [25, 16], strides = [1, 1]} : vector<100x64xbf16> to vector<25x16xbf16>
    %323 = tpu.concatenate %319, %320, %321, %322 in 1 : vector<25x16xbf16>, vector<25x16xbf16>, vector<25x16xbf16>, vector<25x16xbf16> -> vector<25x64xbf16>
    %324 = vector.extract_strided_slice %303 {offsets = [0, 16], sizes = [25, 16], strides = [1, 1]} : vector<100x64xbf16> to vector<25x16xbf16>
    %325 = vector.extract_strided_slice %303 {offsets = [25, 0], sizes = [25, 16], strides = [1, 1]} : vector<100x64xbf16> to vector<25x16xbf16>
    %326 = vector.extract_strided_slice %303 {offsets = [0, 48], sizes = [25, 16], strides = [1, 1]} : vector<100x64xbf16> to vector<25x16xbf16>
    %327 = vector.extract_strided_slice %303 {offsets = [25, 32], sizes = [25, 16], strides = [1, 1]} : vector<100x64xbf16> to vector<25x16xbf16>
    %328 = tpu.concatenate %324, %325, %326, %327 in 1 : vector<25x16xbf16>, vector<25x16xbf16>, vector<25x16xbf16>, vector<25x16xbf16> -> vector<25x64xbf16>
    %329 = vector.extract_strided_slice %303 {offsets = [25, 16], sizes = [25, 16], strides = [1, 1]} : vector<100x64xbf16> to vector<25x16xbf16>
    %330 = vector.extract_strided_slice %303 {offsets = [0, 0], sizes = [25, 16], strides = [1, 1]} : vector<100x64xbf16> to vector<25x16xbf16>
    %331 = vector.extract_strided_slice %330 {offsets = [1, 0], sizes = [24, 16], strides = [1, 1]} : vector<25x16xbf16> to vector<24x16xbf16>
    %cst_75 = arith.constant 0.000000e+00 : bf16
    %332 = vector.broadcast %cst_75 : bf16 to vector<1x16xbf16>
    %333 = tpu.concatenate %331, %332 in 0 : vector<24x16xbf16>, vector<1x16xbf16> -> vector<25x16xbf16>
    %334 = vector.broadcast %1 : vector<25x1xbf16> to vector<25x16xbf16>
    %335 = arith.mulf %333, %334 : vector<25x16xbf16>
    %336 = vector.extract_strided_slice %303 {offsets = [25, 48], sizes = [25, 16], strides = [1, 1]} : vector<100x64xbf16> to vector<25x16xbf16>
    %337 = vector.extract_strided_slice %303 {offsets = [0, 32], sizes = [25, 16], strides = [1, 1]} : vector<100x64xbf16> to vector<25x16xbf16>
    %338 = vector.extract_strided_slice %337 {offsets = [1, 0], sizes = [24, 16], strides = [1, 1]} : vector<25x16xbf16> to vector<24x16xbf16>
    %cst_76 = arith.constant 0.000000e+00 : bf16
    %339 = vector.broadcast %cst_76 : bf16 to vector<1x16xbf16>
    %340 = tpu.concatenate %338, %339 in 0 : vector<24x16xbf16>, vector<1x16xbf16> -> vector<25x16xbf16>
    %341 = vector.broadcast %1 : vector<25x1xbf16> to vector<25x16xbf16>
    %342 = arith.mulf %340, %341 : vector<25x16xbf16>
    %343 = tpu.concatenate %329, %335, %336, %342 in 1 : vector<25x16xbf16>, vector<25x16xbf16>, vector<25x16xbf16>, vector<25x16xbf16> -> vector<25x64xbf16>
    %344 = vector.extract_strided_slice %303 {offsets = [50, 16], sizes = [25, 16], strides = [1, 1]} : vector<100x64xbf16> to vector<25x16xbf16>
    %345 = vector.extract_strided_slice %303 {offsets = [75, 0], sizes = [25, 16], strides = [1, 1]} : vector<100x64xbf16> to vector<25x16xbf16>
    %346 = vector.extract_strided_slice %303 {offsets = [50, 48], sizes = [25, 16], strides = [1, 1]} : vector<100x64xbf16> to vector<25x16xbf16>
    %347 = vector.extract_strided_slice %303 {offsets = [75, 32], sizes = [25, 16], strides = [1, 1]} : vector<100x64xbf16> to vector<25x16xbf16>
    %348 = tpu.concatenate %344, %345, %346, %347 in 1 : vector<25x16xbf16>, vector<25x16xbf16>, vector<25x16xbf16>, vector<25x16xbf16> -> vector<25x64xbf16>
    %349 = vector.extract_strided_slice %303 {offsets = [75, 16], sizes = [25, 16], strides = [1, 1]} : vector<100x64xbf16> to vector<25x16xbf16>
    %350 = vector.extract_strided_slice %303 {offsets = [50, 0], sizes = [25, 16], strides = [1, 1]} : vector<100x64xbf16> to vector<25x16xbf16>
    %351 = vector.extract_strided_slice %350 {offsets = [1, 0], sizes = [24, 16], strides = [1, 1]} : vector<25x16xbf16> to vector<24x16xbf16>
    %cst_77 = arith.constant 0.000000e+00 : bf16
    %352 = vector.broadcast %cst_77 : bf16 to vector<1x16xbf16>
    %353 = tpu.concatenate %351, %352 in 0 : vector<24x16xbf16>, vector<1x16xbf16> -> vector<25x16xbf16>
    %354 = vector.broadcast %1 : vector<25x1xbf16> to vector<25x16xbf16>
    %355 = arith.mulf %353, %354 : vector<25x16xbf16>
    %356 = vector.extract_strided_slice %303 {offsets = [75, 48], sizes = [25, 16], strides = [1, 1]} : vector<100x64xbf16> to vector<25x16xbf16>
    %357 = vector.extract_strided_slice %303 {offsets = [50, 32], sizes = [25, 16], strides = [1, 1]} : vector<100x64xbf16> to vector<25x16xbf16>
    %358 = vector.extract_strided_slice %357 {offsets = [1, 0], sizes = [24, 16], strides = [1, 1]} : vector<25x16xbf16> to vector<24x16xbf16>
    %cst_78 = arith.constant 0.000000e+00 : bf16
    %359 = vector.broadcast %cst_78 : bf16 to vector<1x16xbf16>
    %360 = tpu.concatenate %358, %359 in 0 : vector<24x16xbf16>, vector<1x16xbf16> -> vector<25x16xbf16>
    %361 = vector.broadcast %1 : vector<25x1xbf16> to vector<25x16xbf16>
    %362 = arith.mulf %360, %361 : vector<25x16xbf16>
    %363 = tpu.concatenate %349, %355, %356, %362 in 1 : vector<25x16xbf16>, vector<25x16xbf16>, vector<25x16xbf16>, vector<25x16xbf16> -> vector<25x64xbf16>
    %364 = vector.extract_strided_slice %303 {offsets = [0, 32], sizes = [25, 16], strides = [1, 1]} : vector<100x64xbf16> to vector<25x16xbf16>
    %365 = vector.extract_strided_slice %303 {offsets = [0, 48], sizes = [25, 16], strides = [1, 1]} : vector<100x64xbf16> to vector<25x16xbf16>
    %366 = vector.extract_strided_slice %303 {offsets = [50, 0], sizes = [25, 16], strides = [1, 1]} : vector<100x64xbf16> to vector<25x16xbf16>
    %367 = vector.extract_strided_slice %303 {offsets = [50, 16], sizes = [25, 16], strides = [1, 1]} : vector<100x64xbf16> to vector<25x16xbf16>
    %368 = tpu.concatenate %364, %365, %366, %367 in 1 : vector<25x16xbf16>, vector<25x16xbf16>, vector<25x16xbf16>, vector<25x16xbf16> -> vector<25x64xbf16>
    %369 = vector.extract_strided_slice %303 {offsets = [25, 32], sizes = [25, 16], strides = [1, 1]} : vector<100x64xbf16> to vector<25x16xbf16>
    %370 = vector.extract_strided_slice %303 {offsets = [25, 48], sizes = [25, 16], strides = [1, 1]} : vector<100x64xbf16> to vector<25x16xbf16>
    %371 = vector.extract_strided_slice %303 {offsets = [75, 0], sizes = [25, 16], strides = [1, 1]} : vector<100x64xbf16> to vector<25x16xbf16>
    %372 = vector.extract_strided_slice %303 {offsets = [75, 16], sizes = [25, 16], strides = [1, 1]} : vector<100x64xbf16> to vector<25x16xbf16>
    %373 = tpu.concatenate %369, %370, %371, %372 in 1 : vector<25x16xbf16>, vector<25x16xbf16>, vector<25x16xbf16>, vector<25x16xbf16> -> vector<25x64xbf16>
    %374 = vector.extract_strided_slice %303 {offsets = [50, 32], sizes = [25, 16], strides = [1, 1]} : vector<100x64xbf16> to vector<25x16xbf16>
    %375 = vector.extract_strided_slice %303 {offsets = [50, 48], sizes = [25, 16], strides = [1, 1]} : vector<100x64xbf16> to vector<25x16xbf16>
    %376 = vector.extract_strided_slice %303 {offsets = [0, 0], sizes = [25, 16], strides = [1, 1]} : vector<100x64xbf16> to vector<25x16xbf16>
    %377 = vector.extract_strided_slice %376 {offsets = [5, 0], sizes = [20, 16], strides = [1, 1]} : vector<25x16xbf16> to vector<20x16xbf16>
    %cst_79 = arith.constant 0.000000e+00 : bf16
    %378 = vector.broadcast %cst_79 : bf16 to vector<5x16xbf16>
    %379 = tpu.concatenate %377, %378 in 0 : vector<20x16xbf16>, vector<5x16xbf16> -> vector<25x16xbf16>
    %380 = vector.extract_strided_slice %303 {offsets = [0, 16], sizes = [25, 16], strides = [1, 1]} : vector<100x64xbf16> to vector<25x16xbf16>
    %381 = vector.extract_strided_slice %380 {offsets = [5, 0], sizes = [20, 16], strides = [1, 1]} : vector<25x16xbf16> to vector<20x16xbf16>
    %cst_80 = arith.constant 0.000000e+00 : bf16
    %382 = vector.broadcast %cst_80 : bf16 to vector<5x16xbf16>
    %383 = tpu.concatenate %381, %382 in 0 : vector<20x16xbf16>, vector<5x16xbf16> -> vector<25x16xbf16>
    %384 = tpu.concatenate %374, %375, %379, %383 in 1 : vector<25x16xbf16>, vector<25x16xbf16>, vector<25x16xbf16>, vector<25x16xbf16> -> vector<25x64xbf16>
    %385 = vector.extract_strided_slice %303 {offsets = [75, 32], sizes = [25, 16], strides = [1, 1]} : vector<100x64xbf16> to vector<25x16xbf16>
    %386 = vector.extract_strided_slice %303 {offsets = [75, 48], sizes = [25, 16], strides = [1, 1]} : vector<100x64xbf16> to vector<25x16xbf16>
    %387 = vector.extract_strided_slice %303 {offsets = [25, 0], sizes = [25, 16], strides = [1, 1]} : vector<100x64xbf16> to vector<25x16xbf16>
    %388 = vector.extract_strided_slice %387 {offsets = [5, 0], sizes = [20, 16], strides = [1, 1]} : vector<25x16xbf16> to vector<20x16xbf16>
    %cst_81 = arith.constant 0.000000e+00 : bf16
    %389 = vector.broadcast %cst_81 : bf16 to vector<5x16xbf16>
    %390 = tpu.concatenate %388, %389 in 0 : vector<20x16xbf16>, vector<5x16xbf16> -> vector<25x16xbf16>
    %391 = vector.extract_strided_slice %303 {offsets = [25, 16], sizes = [25, 16], strides = [1, 1]} : vector<100x64xbf16> to vector<25x16xbf16>
    %392 = vector.extract_strided_slice %391 {offsets = [5, 0], sizes = [20, 16], strides = [1, 1]} : vector<25x16xbf16> to vector<20x16xbf16>
    %cst_82 = arith.constant 0.000000e+00 : bf16
    %393 = vector.broadcast %cst_82 : bf16 to vector<5x16xbf16>
    %394 = tpu.concatenate %392, %393 in 0 : vector<20x16xbf16>, vector<5x16xbf16> -> vector<25x16xbf16>
    %395 = tpu.concatenate %385, %386, %390, %394 in 1 : vector<25x16xbf16>, vector<25x16xbf16>, vector<25x16xbf16>, vector<25x16xbf16> -> vector<25x64xbf16>
    %396 = vector.extract_strided_slice %303 {offsets = [0, 48], sizes = [25, 16], strides = [1, 1]} : vector<100x64xbf16> to vector<25x16xbf16>
    %397 = vector.extract_strided_slice %303 {offsets = [25, 32], sizes = [25, 16], strides = [1, 1]} : vector<100x64xbf16> to vector<25x16xbf16>
    %398 = vector.extract_strided_slice %303 {offsets = [50, 16], sizes = [25, 16], strides = [1, 1]} : vector<100x64xbf16> to vector<25x16xbf16>
    %399 = vector.extract_strided_slice %303 {offsets = [75, 0], sizes = [25, 16], strides = [1, 1]} : vector<100x64xbf16> to vector<25x16xbf16>
    %400 = tpu.concatenate %396, %397, %398, %399 in 1 : vector<25x16xbf16>, vector<25x16xbf16>, vector<25x16xbf16>, vector<25x16xbf16> -> vector<25x64xbf16>
    %401 = vector.extract_strided_slice %303 {offsets = [25, 48], sizes = [25, 16], strides = [1, 1]} : vector<100x64xbf16> to vector<25x16xbf16>
    %402 = vector.extract_strided_slice %303 {offsets = [0, 32], sizes = [25, 16], strides = [1, 1]} : vector<100x64xbf16> to vector<25x16xbf16>
    %403 = vector.extract_strided_slice %402 {offsets = [1, 0], sizes = [24, 16], strides = [1, 1]} : vector<25x16xbf16> to vector<24x16xbf16>
    %cst_83 = arith.constant 0.000000e+00 : bf16
    %404 = vector.broadcast %cst_83 : bf16 to vector<1x16xbf16>
    %405 = tpu.concatenate %403, %404 in 0 : vector<24x16xbf16>, vector<1x16xbf16> -> vector<25x16xbf16>
    %406 = vector.broadcast %1 : vector<25x1xbf16> to vector<25x16xbf16>
    %407 = arith.mulf %405, %406 : vector<25x16xbf16>
    %408 = vector.extract_strided_slice %303 {offsets = [75, 16], sizes = [25, 16], strides = [1, 1]} : vector<100x64xbf16> to vector<25x16xbf16>
    %409 = vector.extract_strided_slice %303 {offsets = [50, 0], sizes = [25, 16], strides = [1, 1]} : vector<100x64xbf16> to vector<25x16xbf16>
    %410 = vector.extract_strided_slice %409 {offsets = [1, 0], sizes = [24, 16], strides = [1, 1]} : vector<25x16xbf16> to vector<24x16xbf16>
    %cst_84 = arith.constant 0.000000e+00 : bf16
    %411 = vector.broadcast %cst_84 : bf16 to vector<1x16xbf16>
    %412 = tpu.concatenate %410, %411 in 0 : vector<24x16xbf16>, vector<1x16xbf16> -> vector<25x16xbf16>
    %413 = vector.broadcast %1 : vector<25x1xbf16> to vector<25x16xbf16>
    %414 = arith.mulf %412, %413 : vector<25x16xbf16>
    %415 = tpu.concatenate %401, %407, %408, %414 in 1 : vector<25x16xbf16>, vector<25x16xbf16>, vector<25x16xbf16>, vector<25x16xbf16> -> vector<25x64xbf16>
    %416 = vector.extract_strided_slice %303 {offsets = [50, 48], sizes = [25, 16], strides = [1, 1]} : vector<100x64xbf16> to vector<25x16xbf16>
    %417 = vector.extract_strided_slice %303 {offsets = [75, 32], sizes = [25, 16], strides = [1, 1]} : vector<100x64xbf16> to vector<25x16xbf16>
    %418 = vector.extract_strided_slice %303 {offsets = [0, 16], sizes = [25, 16], strides = [1, 1]} : vector<100x64xbf16> to vector<25x16xbf16>
    %419 = vector.extract_strided_slice %418 {offsets = [5, 0], sizes = [20, 16], strides = [1, 1]} : vector<25x16xbf16> to vector<20x16xbf16>
    %cst_85 = arith.constant 0.000000e+00 : bf16
    %420 = vector.broadcast %cst_85 : bf16 to vector<5x16xbf16>
    %421 = tpu.concatenate %419, %420 in 0 : vector<20x16xbf16>, vector<5x16xbf16> -> vector<25x16xbf16>
    %422 = vector.extract_strided_slice %303 {offsets = [25, 0], sizes = [25, 16], strides = [1, 1]} : vector<100x64xbf16> to vector<25x16xbf16>
    %423 = vector.extract_strided_slice %422 {offsets = [5, 0], sizes = [20, 16], strides = [1, 1]} : vector<25x16xbf16> to vector<20x16xbf16>
    %cst_86 = arith.constant 0.000000e+00 : bf16
    %424 = vector.broadcast %cst_86 : bf16 to vector<5x16xbf16>
    %425 = tpu.concatenate %423, %424 in 0 : vector<20x16xbf16>, vector<5x16xbf16> -> vector<25x16xbf16>
    %426 = tpu.concatenate %416, %417, %421, %425 in 1 : vector<25x16xbf16>, vector<25x16xbf16>, vector<25x16xbf16>, vector<25x16xbf16> -> vector<25x64xbf16>
    %427 = vector.extract_strided_slice %303 {offsets = [75, 48], sizes = [25, 16], strides = [1, 1]} : vector<100x64xbf16> to vector<25x16xbf16>
    %428 = vector.extract_strided_slice %303 {offsets = [50, 32], sizes = [25, 16], strides = [1, 1]} : vector<100x64xbf16> to vector<25x16xbf16>
    %429 = vector.extract_strided_slice %428 {offsets = [1, 0], sizes = [24, 16], strides = [1, 1]} : vector<25x16xbf16> to vector<24x16xbf16>
    %cst_87 = arith.constant 0.000000e+00 : bf16
    %430 = vector.broadcast %cst_87 : bf16 to vector<1x16xbf16>
    %431 = tpu.concatenate %429, %430 in 0 : vector<24x16xbf16>, vector<1x16xbf16> -> vector<25x16xbf16>
    %432 = vector.broadcast %1 : vector<25x1xbf16> to vector<25x16xbf16>
    %433 = arith.mulf %431, %432 : vector<25x16xbf16>
    %434 = vector.extract_strided_slice %303 {offsets = [25, 16], sizes = [25, 16], strides = [1, 1]} : vector<100x64xbf16> to vector<25x16xbf16>
    %435 = vector.extract_strided_slice %434 {offsets = [5, 0], sizes = [20, 16], strides = [1, 1]} : vector<25x16xbf16> to vector<20x16xbf16>
    %cst_88 = arith.constant 0.000000e+00 : bf16
    %436 = vector.broadcast %cst_88 : bf16 to vector<5x16xbf16>
    %437 = tpu.concatenate %435, %436 in 0 : vector<20x16xbf16>, vector<5x16xbf16> -> vector<25x16xbf16>
    %438 = vector.extract_strided_slice %303 {offsets = [0, 0], sizes = [25, 16], strides = [1, 1]} : vector<100x64xbf16> to vector<25x16xbf16>
    %439 = vector.extract_strided_slice %438 {offsets = [5, 0], sizes = [20, 16], strides = [1, 1]} : vector<25x16xbf16> to vector<20x16xbf16>
    %cst_89 = arith.constant 0.000000e+00 : bf16
    %440 = vector.broadcast %cst_89 : bf16 to vector<5x16xbf16>
    %441 = tpu.concatenate %439, %440 in 0 : vector<20x16xbf16>, vector<5x16xbf16> -> vector<25x16xbf16>
    %442 = vector.extract_strided_slice %441 {offsets = [1, 0], sizes = [24, 16], strides = [1, 1]} : vector<25x16xbf16> to vector<24x16xbf16>
    %cst_90 = arith.constant 0.000000e+00 : bf16
    %443 = vector.broadcast %cst_90 : bf16 to vector<1x16xbf16>
    %444 = tpu.concatenate %442, %443 in 0 : vector<24x16xbf16>, vector<1x16xbf16> -> vector<25x16xbf16>
    %445 = vector.broadcast %1 : vector<25x1xbf16> to vector<25x16xbf16>
    %446 = arith.mulf %444, %445 : vector<25x16xbf16>
    %447 = tpu.concatenate %427, %433, %437, %446 in 1 : vector<25x16xbf16>, vector<25x16xbf16>, vector<25x16xbf16>, vector<25x16xbf16> -> vector<25x64xbf16>
    %448 = tpu.concatenate %308, %313, %318, %323, %328, %343, %348, %363, %368, %373, %384, %395, %400, %415, %426, %447 in 0 : vector<25x64xbf16>, vector<25x64xbf16>, vector<25x64xbf16>, vector<25x64xbf16>, vector<25x64xbf16>, vector<25x64xbf16>, vector<25x64xbf16>, vector<25x64xbf16>, vector<25x64xbf16>, vector<25x64xbf16>, vector<25x64xbf16>, vector<25x64xbf16>, vector<25x64xbf16>, vector<25x64xbf16>, vector<25x64xbf16>, vector<25x64xbf16> -> vector<400x64xbf16>
    %c0_91 = arith.constant 0 : index
    %c0_92 = arith.constant 0 : index
    %449 = vector.load %arg18[%c0_91, %c0_92] : memref<64x16xbf16, #tpu.memory_space<vmem>>, vector<64x16xbf16>
    %cst_93 = arith.constant dense<0.000000e+00> : vector<400x16xf32>
    %450 = tpu.matmul %448, %449, %cst_93 {dimension_numbers = #tpu.dot_dimension_numbers<[1], [0], [0], [1], [0, 0, 1, 1], [], []>} : vector<400x64xbf16>, vector<64x16xbf16>, vector<400x16xf32> -> vector<400x16xf32>
    %c0_94 = arith.constant 0 : index
    %c0_95 = arith.constant 0 : index
    %451 = vector.load %arg19[%c0_94, %c0_95] : memref<1x16xf32, #tpu.memory_space<vmem>>, vector<1x16xf32>
    %452 = vector.broadcast %451 : vector<1x16xf32> to vector<400x16xf32>
    %453 = arith.addf %450, %452 : vector<400x16xf32>
    %454 = arith.negf %453 : vector<400x16xf32>
    %455 = math.exp %454 : vector<400x16xf32>
    %cst_96 = arith.constant 1.000000e+00 : f32
    %456 = vector.broadcast %cst_96 : f32 to vector<400x16xf32>
    %457 = arith.addf %456, %455 : vector<400x16xf32>
    %458 = arith.divf %456, %457 : vector<400x16xf32>
    %c0_97 = arith.constant 0 : index
    %c0_98 = arith.constant 0 : index
    %459 = vector.load %arg20[%c0_97, %c0_98] : memref<400x16xf32, #tpu.memory_space<vmem>>, vector<400x16xf32>
    tpu.vector_store %arg20[%c0_97, %c0_98], %458 {strides = array<i32>} : memref<400x16xf32, #tpu.memory_space<vmem>>, vector<400x16xf32>,
    return
  }
  func.func @transform_0(%arg0: i32) -> (i32, i32) {
    %c0_i32 = arith.constant 0 : i32
    %c0_i32_0 = arith.constant 0 : i32
    return %arg0, %c0_i32 : i32, i32
  }
  func.func @transform_1(%arg0: i32) -> (i32, i32) {
    %c0_i32 = arith.constant 0 : i32
    %c0_i32_0 = arith.constant 0 : i32
    %c0_i32_1 = arith.constant 0 : i32
    return %c0_i32, %c0_i32_0 : i32, i32
  }
  func.func @transform_2(%arg0: i32) -> (i32, i32) {
    %c0_i32 = arith.constant 0 : i32
    %c0_i32_0 = arith.constant 0 : i32
    %c0_i32_1 = arith.constant 0 : i32
    return %c0_i32, %c0_i32_0 : i32, i32
  }
  func.func @transform_3(%arg0: i32) -> (i32, i32) {
    %c0_i32 = arith.constant 0 : i32
    %c0_i32_0 = arith.constant 0 : i32
    %c0_i32_1 = arith.constant 0 : i32
    return %c0_i32, %c0_i32_0 : i32, i32
  }
  func.func @transform_4(%arg0: i32) -> (i32, i32) {
    %c0_i32 = arith.constant 0 : i32
    %c0_i32_0 = arith.constant 0 : i32
    %c0_i32_1 = arith.constant 0 : i32
    return %c0_i32, %c0_i32_0 : i32, i32
  }
  func.func @transform_5(%arg0: i32) -> (i32, i32) {
    %c0_i32 = arith.constant 0 : i32
    %c0_i32_0 = arith.constant 0 : i32
    %c0_i32_1 = arith.constant 0 : i32
    return %c0_i32, %c0_i32_0 : i32, i32
  }
  func.func @transform_6(%arg0: i32) -> (i32, i32) {
    %c0_i32 = arith.constant 0 : i32
    %c0_i32_0 = arith.constant 0 : i32
    %c0_i32_1 = arith.constant 0 : i32
    return %c0_i32, %c0_i32_0 : i32, i32
  }
  func.func @transform_7(%arg0: i32) -> (i32, i32) {
    %c0_i32 = arith.constant 0 : i32
    %c0_i32_0 = arith.constant 0 : i32
    %c0_i32_1 = arith.constant 0 : i32
    return %c0_i32, %c0_i32_0 : i32, i32
  }
  func.func @transform_8(%arg0: i32) -> (i32, i32) {
    %c0_i32 = arith.constant 0 : i32
    %c0_i32_0 = arith.constant 0 : i32
    %c0_i32_1 = arith.constant 0 : i32
    return %c0_i32, %c0_i32_0 : i32, i32
  }
  func.func @transform_9(%arg0: i32) -> (i32, i32) {
    %c0_i32 = arith.constant 0 : i32
    %c0_i32_0 = arith.constant 0 : i32
    %c0_i32_1 = arith.constant 0 : i32
    return %c0_i32, %c0_i32_0 : i32, i32
  }
  func.func @transform_10(%arg0: i32) -> (i32, i32) {
    %c0_i32 = arith.constant 0 : i32
    %c0_i32_0 = arith.constant 0 : i32
    %c0_i32_1 = arith.constant 0 : i32
    return %c0_i32, %c0_i32_0 : i32, i32
  }
  func.func @transform_11(%arg0: i32) -> (i32, i32) {
    %c0_i32 = arith.constant 0 : i32
    %c0_i32_0 = arith.constant 0 : i32
    %c0_i32_1 = arith.constant 0 : i32
    return %c0_i32, %c0_i32_0 : i32, i32
  }
  func.func @transform_12(%arg0: i32) -> (i32, i32) {
    %c0_i32 = arith.constant 0 : i32
    %c0_i32_0 = arith.constant 0 : i32
    %c0_i32_1 = arith.constant 0 : i32
    return %c0_i32, %c0_i32_0 : i32, i32
  }
  func.func @transform_13(%arg0: i32) -> (i32, i32) {
    %c0_i32 = arith.constant 0 : i32
    %c0_i32_0 = arith.constant 0 : i32
    %c0_i32_1 = arith.constant 0 : i32
    return %c0_i32, %c0_i32_0 : i32, i32
  }
  func.func @transform_14(%arg0: i32) -> (i32, i32) {
    %c0_i32 = arith.constant 0 : i32
    %c0_i32_0 = arith.constant 0 : i32
    %c0_i32_1 = arith.constant 0 : i32
    return %c0_i32, %c0_i32_0 : i32, i32
  }
  func.func @transform_15(%arg0: i32) -> (i32, i32) {
    %c0_i32 = arith.constant 0 : i32
    %c0_i32_0 = arith.constant 0 : i32
    %c0_i32_1 = arith.constant 0 : i32
    return %c0_i32, %c0_i32_0 : i32, i32
  }
  func.func @transform_16(%arg0: i32) -> (i32, i32) {
    %c0_i32 = arith.constant 0 : i32
    %c0_i32_0 = arith.constant 0 : i32
    %c0_i32_1 = arith.constant 0 : i32
    return %c0_i32, %c0_i32_0 : i32, i32
  }
  func.func @transform_17(%arg0: i32) -> (i32, i32) {
    %c0_i32 = arith.constant 0 : i32
    %c0_i32_0 = arith.constant 0 : i32
    %c0_i32_1 = arith.constant 0 : i32
    return %c0_i32, %c0_i32_0 : i32, i32
  }
  func.func @transform_18(%arg0: i32) -> (i32, i32) {
    %c0_i32 = arith.constant 0 : i32
    %c0_i32_0 = arith.constant 0 : i32
    %c0_i32_1 = arith.constant 0 : i32
    return %c0_i32, %c0_i32_0 : i32, i32
  }
  func.func @transform_19(%arg0: i32) -> (i32, i32) {
    %c0_i32 = arith.constant 0 : i32
    %c0_i32_0 = arith.constant 0 : i32
    return %arg0, %c0_i32 : i32, i32
  }
}

</mosaic_0001>

<bundles_post_ra>
// kernel: autoencoder_forward.1
= control target key start
LH: loop header
LB: loop body
LE: loop exit
PB: predicated region body
PF: predicated region fallthrough
CT: control target
= control target key end

     0   :  { %s11544_s0 = inlined_call_operand.vmem [shape: bf16[800,36], index: 0, kind: input, shape index: {}]   ;;  %s11545_s1 = inlined_call_operand.vmem [shape: bf16[25,1], index: 1, kind: input, shape index: {}]   ;;  %s11546_s2 = inlined_call_operand.vmem [shape: bf16[25,1], index: 2, kind: input, shape index: {}]   ;;  %s11547_s3 = inlined_call_operand.vmem [shape: bf16[36,16], index: 3, kind: input, shape index: {}]   ;;  %s11548_s4 = inlined_call_operand.vmem [shape: f32[1,16], index: 4, kind: input, shape index: {}]   ;;  %s11549_s5 = inlined_call_operand.vmem [shape: bf16[144,32], index: 5, kind: input, shape index: {}]   ;;  %s11550_s6 = inlined_call_operand.vmem [shape: f32[1,32], index: 6, kind: input, shape index: {}]   ;;  %s11551_s7 = inlined_call_operand.vmem [shape: bf16[288,64], index: 7, kind: input, shape index: {}]   ;;  %s11552_s8 = inlined_call_operand.vmem [shape: f32[1,64], index: 8, kind: input, shape index: {}]   ;;  %s11553_s9 = inlined_call_operand.vmem [shape: bf16[1600,128], index: 9, kind: input, shape index: {}]   ;;  %s11554_s10 = inlined_call_operand.vmem [shape: f32[1,128], index: 10, kind: input, shape index: {}]   ;;  %s11555_s11 = inlined_call_operand.vmem [shape: bf16[128,1600], index: 11, kind: input, shape index: {}]   ;;  %s11556_s12 = inlined_call_operand.vmem [shape: f32[1,1600], index: 12, kind: input, shape index: {}]   ;;  %s11557_s13 = inlined_call_operand.vmem [shape: bf16[256,128], index: 13, kind: input, shape index: {}]   ;;  %s11558_s14 = inlined_call_operand.vmem [shape: f32[1,128], index: 14, kind: input, shape index: {}]   ;;  %s11559_s15 = inlined_call_operand.vmem [shape: bf16[128,64], index: 15, kind: input, shape index: {}]   ;;  %s11560_s16 = inlined_call_operand.vmem [shape: f32[1,64], index: 16, kind: input, shape index: {}]   ;;  %s11561_s17 = inlined_call_operand.vmem [shape: bf16[64,16], index: 17, kind: input, shape index: {}]   ;;  %s11562_s18 = inlined_call_operand.vmem [shape: f32[1,16], index: 18, kind: input, shape index: {}]   ;;  %s11563_s19 = inlined_call_operand.vmem [shape: f32[800,16], index: 19, kind: output, shape index: {}]  }
   0x1   :  { %11614 = sst [smem:[#allocation9_spill]] %s11544_s0  ;;  %s8788_s0 = smov 0  }
   0x2   :  { %11615 = sst [smem:[#allocation10_spill]] %s11545_s1 }
   0x3   :  { %11616 = sst [smem:[#allocation11_spill]] %s11546_s2 }
   0x4   :  { %11617 = sst [smem:[#allocation12_spill]] %s11547_s3 }
   0x5   :  { %11618 = sst [smem:[#allocation13_spill]] %s11548_s4 }
   0x6 LB: > { %s7081_s30 = sadd.s32 4294967295, %s8675_s0   ;;  %p7085_p0 = scmp.ge.s32.totalorder %s8675_s0, 1  ;;  %s8675_s0 = sphi %s8788_s0, %s29_s0  }
   0x7   : > { %p538_p1 = scmp.lt.s32.totalorder %s8675_s0, 3 }
   0x9   : > { %p539_p2 = pnand %p7085_p0, %p538_p1 }
   0xb   : > { %542 = sbr.rel (%p539_p2) target bundleno = 3303 (0xce7), region = 96 }
  0x12   : > { %s11619_s1 = sld [smem:[#allocation12_spill]]  ;;  %v11573_v1 = vmov 0.0   ;;  %vm11570_vm0 = vcmask 1041408   ;;  %vm11568_vm1 = vmmov 0   ;;  %s594_s25 = smul.u32 50, %s7081_s30  ;;  %vm817_vm2 = vcmask 293888  }
  0x13   : > { %7775 = vmatprep.subr.bf16.mxu0 %v11573_v1  ;;  %7781 = vmatprep.mubr.msk.bf16.mxu0 %vm11568_vm1, %v11573_v1  ;;  %s11620_s28 = sld [smem:[#allocation9_spill]]  ;;  %v11575_v8 = vmov 0   ;;  %s11621_s21 = sld [smem:[#allocation10_spill]]  ;;  %vm11610_vm3 = vsmask.f32 3328  ;;  %vm11591_vm4 = vcmask 1046528  }
  0x14   : > { %p595_p3 = scmp.lt.s32.totalorder %s594_s25, 99  ;;  %8100 = vset.pattern.permute.xlu0 %v11575_v8  ;;  %8101 = vset.pattern.permute.xlu1 %v11575_v8  ;;  %s11622_s4 = sld [smem:[#allocation13_spill]]  ;;  %vm11587_vm5 = vsmask.f32 256  ;;  %vm11586_vm6 = vcmask 1045504   ;;  %vm11613_vm7 = vcmask 1040384  }
  0x15   : > { %2096 = vmatprep.subr.bf16.mxu1 %v11575_v8  ;;  %s11592_s30 = smov 48   ;;  %s11594_s20 = smov 80   ;;  %vm8994_vm8 = vmand %vm11613_vm7, %vm11587_vm5  ;;  %vm11590_vm9 = vsmask.f32 1280  ;;  %vm11571_vm10 = vcmask 1042432   ;;  %vm11589_vm11 = vcmask 1044480  }
  0x16   : > { %s11858_s25 = smov (!%p595_p3, %s594_s25), 99  ;;  %vm11567_vm12 = vsmask.f32 6400  ;;  %vm1412_vm13 = vcmask 1043456   ;;  %s11596_s22 = smov 16  }
  0x17   : > { %s7086_s3 = sshll.u32 %s11858_s25, 2  ;;  %s11598_s2 = smov 112   ;;  %vm1554_vm14 = vsmask.f32 7424  ;;  %vm11585_vm15 = vsmask.f32 5376 }
  0x18   : > { %v8132_v0 = vld [vmem:[%s11619_s1] sm:$0xff]   ;;  %v8133_v2 = vld [vmem:[%s11619_s1 + $0x8] sm:$0xff]   ;;  %v8134_v3 = vld [vmem:[%s11619_s1 + $0x10] ss:$0 sps:$4 sm:$0x33]   ;;  %s11602_s23 = smov 32  }
  0x19   : > { %7776 = vmatpush3.bf16.msra.mxu0 %v8132_v0  ;;  %v895_v4 = vsel %vm11570_vm0, %v8134_v3, 0  ;;  %s8817_s29 = scalar_lea.vmem %s11620_s28, %s7086_s3  ;;  %v607_v9 = vld [vmem:[%s11621_s21] sm:$0xf]  ;;  %v608_v11 = vld [vmem:[%s11621_s21 + $0x4] sm:$0xf]  ;;  %s11606_s24 = smov 96  }
  0x1a   : > { %7777 = vmatprep.subr.bf16.mxu0 %v11573_v1  ;;  %v8135_v5 = vld [vmem:[%s8817_s29] sm:$0xff]   ;;  %v8136_v6 = vld [vmem:[%s8817_s29 + $0x8] sm:$0xff]   ;;  %v8137_v7 = vld [vmem:[%s8817_s29 + $0x10] sm:$0xff]   ;;  %1239 = vperm.xlu0 %8100, %v607_v9   ;;  %s11644_s27 = smov 32   ;;  %s11659_s3 = sld [smem:[#allocation11_spill]] }
  0x1b   : > { %v8138_v10 = vld [vmem:[%s8817_s29 + $0x18] sm:$0xff]   ;;  %v609_v12 = vld [vmem:[%s11621_s21 + $0x8] sm:$0xf]  ;;  %v8139_v13 = vld [vmem:[%s8817_s29 + $0x20] sm:$0xff]   ;;  %s11697_s1 = smov 112  }
  0x1c   : > { %1263 = vperm.xlu1 %8101, %v609_v12   ;;  %v610_v14 = vld [vmem:[%s11621_s21 + $0xc] sm:$0x1]  ;;  %v8141_v16 = vld [vmem:[%s8817_s29 + $0x30] sm:$0xff]   ;;  %v8142_v17 = vld [vmem:[%s8817_s29 + $0x38] sm:$0xff]  }
  0x1d   : > { %7778 = vmatpush3.bf16.msra.mxu0 %v8133_v2  ;;  %v8140_v15 = vld [vmem:[%s8817_s29 + $0x28] sm:$0xff]   ;;  %v8143_v18 = vld [vmem:[%s8817_s29 + $0x40] sm:$0xff]   ;;  %v8145_v20 = vld [vmem:[%s8817_s29 + $0x50] sm:$0xff]  }
  0x1e   : > { %7779 = vmatprep.subr.bf16.mxu0 %v11573_v1  ;;  %1251 = vperm.xlu0 %8100, %v608_v11   ;;  %v8144_v19 = vld [vmem:[%s8817_s29 + $0x48] sm:$0xff]   ;;  %v8146_v21 = vld [vmem:[%s8817_s29 + $0x58] sm:$0xff]   ;;  %v8147_v22 = vld [vmem:[%s8817_s29 + $0x60] sm:$0xff]  }
  0x1f   : > { %v8148_v23 = vld [vmem:[%s8817_s29 + $0x68] sm:$0xff]   ;;  %v8149_v24 = vld [vmem:[%s8817_s29 + $0x70] sm:$0xff]   ;;  %v8150_v25 = vld [vmem:[%s8817_s29 + $0x78] sm:$0xff]  }
  0x20   : > { %1275 = vperm.xlu1 %8101, %v610_v14   ;;  %v8151_v26 = vld [vmem:[%s8817_s29 + $0x80] sm:$0xff]   ;;  %v8152_v27 = vld [vmem:[%s8817_s29 + $0x88] sm:$0xff]   ;;  %v8153_v28 = vld [vmem:[%s8817_s29 + $0x90] sm:$0xff]  }
  0x21   : > { %7780 = vmatpush3.bf16.msra.mxu0 %v895_v4  ;;  %v8154_v29 = vld [vmem:[%s8817_s29 + $0x98] sm:$0xff]   ;;  %v8155_v30 = vld [vmem:[%s8817_s29 + $0xa0] sm:$0xff]   ;;  %v8156_v31 = vld [vmem:[%s8817_s29 + $0xa8] sm:$0xff]  }
  0x22   : > { %v8157_v32 = vld [vmem:[%s8817_s29 + $0xb0] sm:$0xff]   ;;  %v8158_v33 = vld [vmem:[%s8817_s29 + $0xb8] sm:$0xff]   ;;  %v8159_v34 = vld [vmem:[%s8817_s29 + $0xc0] sm:$0xff]   ;;  %s11600_s29 = smov 64  }
  0x23   : > { %v8935_v35 = vld [vmem:[%s11622_s4] ss:$0 sm:$0xff] }
  0x24   : > { %7782 = vmatmul.mubr.msk.bf16.vlgmr.msra.gmra.mrb[0].mxu0 %vm817_vm2, %v8135_v5 }
  0x25   : > { %7785 = vmatprep.mubr.msk.bf16.mxu0 %vm11568_vm1, %v11573_v1 }
  0x2c   : > { %7786 = vmatmul.mubr.msk.bf16.gmra.mrb[4].mxu0 %vm817_vm2, %v8136_v6 }
  0x2d   : > { %7789 = vmatprep.mubr.msk.bf16.mxu0 %vm11568_vm1, %v11573_v1 }
  0x34   : > { %7790 = vmatmul.mubr.msk.bf16.gmra.mrb[8].mxu0 %vm817_vm2, %v8137_v7 }
  0x35   : > { %7793 = vmatprep.mubr.msk.bf16.mxu0 %vm11568_vm1, %v11573_v1 }
  0x3c   : > { %7794 = vmatmul.mubr.msk.bf16.gmra.mrb[12].mxu0 %vm817_vm2, %v8138_v10 }
  0x3d   : > { %7797 = vmatprep.mubr.msk.bf16.mxu0 %vm11568_vm1, %v11573_v1 }
  0x44   : > { %7798 = vmatmul.mubr.msk.bf16.gmra.mrb[16].mxu0 %vm817_vm2, %v8139_v13 }
  0x45   : > { %7801 = vmatprep.mubr.msk.bf16.mxu0 %vm11568_vm1, %v11573_v1 }
  0x4c   : > { %7802 = vmatmul.mubr.msk.bf16.gmra.mrb[20].mxu0 %vm817_vm2, %v8140_v15 }
  0x4d   : > { %7805 = vmatprep.mubr.msk.bf16.mxu0 %vm11568_vm1, %v11573_v1 }
  0x54   : > { %7806 = vmatmul.mubr.msk.bf16.gmra.mrb[24].mxu0 %vm817_vm2, %v8141_v16 }
  0x55   : > { %7809 = vmatprep.mubr.msk.bf16.mxu0 %vm11568_vm1, %v11573_v1 }
  0x5c   : > { %7810 = vmatmul.mubr.msk.bf16.gmra.mrb[28].mxu0 %vm817_vm2, %v8142_v17 }
  0x5d   : > { %7813 = vmatprep.mubr.msk.bf16.mxu0 %vm11568_vm1, %v11573_v1 }
  0x64   : > { %7814 = vmatmul.mubr.msk.bf16.gmra.mrb[32].mxu0 %vm817_vm2, %v8143_v18 }
  0x65   : > { %7817 = vmatprep.mubr.msk.bf16.mxu0 %vm11568_vm1, %v11573_v1 }
  0x6c   : > { %7818 = vmatmul.mubr.msk.bf16.gmra.mrb[36].mxu0 %vm817_vm2, %v8144_v19 }
  0x6d   : > { %7821 = vmatprep.mubr.msk.bf16.mxu0 %vm11568_vm1, %v11573_v1 }
  0x74   : > { %7822 = vmatmul.mubr.msk.bf16.gmra.mrb[40].mxu0 %vm817_vm2, %v8145_v20 }
  0x75   : > { %7825 = vmatprep.mubr.msk.bf16.mxu0 %vm11568_vm1, %v11573_v1 }
  0x7c   : > { %7826 = vmatmul.mubr.msk.bf16.gmra.mrb[44].mxu0 %vm817_vm2, %v8146_v21 }
  0x7d   : > { %7829 = vmatprep.mubr.msk.bf16.mxu0 %vm11568_vm1, %v11573_v1 }
  0x84   : > { %7830 = vmatmul.mubr.msk.bf16.gmra.mrb[48].mxu0 %vm817_vm2, %v8147_v22 }
  0x85   : > { %7833 = vmatprep.mubr.msk.bf16.mxu0 %vm11568_vm1, %v11573_v1 }
  0x8c   : > { %7834 = vmatmul.mubr.msk.bf16.gmra.mrb[52].mxu0 %vm817_vm2, %v8148_v23 }
  0x8d   : > { %7837 = vmatprep.mubr.msk.bf16.mxu0 %vm11568_vm1, %v11573_v1 }
  0x94   : > { %7838 = vmatmul.mubr.msk.bf16.gmra.mrb[56].mxu0 %vm817_vm2, %v8149_v24 }
  0x95   : > { %7841 = vmatprep.mubr.msk.bf16.mxu0 %vm11568_vm1, %v11573_v1 }
  0x9c   : > { %7842 = vmatmul.mubr.msk.bf16.gmra.mrb[60].mxu0 %vm817_vm2, %v8150_v25 }
  0x9d   : > { %7845 = vmatprep.mubr.msk.bf16.mxu0 %vm11568_vm1, %v11573_v1 }
  0xa4   : > { %7846 = vmatmul.mubr.msk.bf16.gmra.mrb[64].mxu0 %vm817_vm2, %v8151_v26 }
  0xa5   : > { %7849 = vmatprep.mubr.msk.bf16.mxu0 %vm11568_vm1, %v11573_v1 }
  0xac   : > { %7850 = vmatmul.mubr.msk.bf16.gmra.mrb[68].mxu0 %vm817_vm2, %v8152_v27 }
  0xad   : > { %7853 = vmatprep.mubr.msk.bf16.mxu0 %vm11568_vm1, %v11573_v1 }
  0xb4   : > { %7854 = vmatmul.mubr.msk.bf16.gmra.mrb[72].mxu0 %vm817_vm2, %v8153_v28 }
  0xb5   : > { %7857 = vmatprep.mubr.msk.bf16.mxu0 %vm11568_vm1, %v11573_v1 }
  0xbc   : > { %7858 = vmatmul.mubr.msk.bf16.gmra.mrb[76].mxu0 %vm817_vm2, %v8154_v29 }
  0xbd   : > { %7861 = vmatprep.mubr.msk.bf16.mxu0 %vm11568_vm1, %v11573_v1 }
  0xc4   : > { %7862 = vmatmul.mubr.msk.bf16.gmra.mrb[80].mxu0 %vm817_vm2, %v8155_v30 }
  0xc5   : > { %7865 = vmatprep.mubr.msk.bf16.mxu0 %vm11568_vm1, %v11573_v1 }
  0xcc   : > { %7866 = vmatmul.mubr.msk.bf16.gmra.mrb[84].mxu0 %vm817_vm2, %v8156_v31 }
  0xcd   : > { %7869 = vmatprep.mubr.msk.bf16.mxu0 %vm11568_vm1, %v11573_v1 }
  0xd4   : > { %7870 = vmatmul.mubr.msk.bf16.gmra.mrb[88].mxu0 %vm817_vm2, %v8157_v32 }
  0xd5   : > { %7873 = vmatprep.mubr.msk.bf16.mxu0 %vm11568_vm1, %v11573_v1 }
  0xdc   : > { %7874 = vmatmul.mubr.msk.bf16.gmra.mrb[92].mxu0 %vm817_vm2, %v8158_v33 }
  0xdd   : > { %7877 = vmatprep.mubr.msk.bf16.mxu0 %vm11568_vm1, %v11573_v1  ;;  %vm11605_vm1 = vcmask 130048  }
  0xe4   : > { %7878 = vmatmul.mubr.msk.bf16.gmra.mrb[96].mxu0 %vm817_vm2, %v8159_v34  ;;  %vm11572_vm2 = vsmask.f32 2304 }
  0xf7   : > { %v931_v36 = vpop.f32.mrb[0].mxu0 }
  0xf8   : > { %v932_v37 = vadd.f32 %v8935_v35, %v931_v36  ;;  %v7783_v38 = vpop.f32.mrb[1].mxu0 }
  0xf9   : > { %v934_v39 = vpop.f32.mrb[2].mxu0 }
  0xfa   : > { %v935_v40 = vadd.f32 %v8935_v35, %v934_v39  ;;  %v7784_v41 = vpop.f32.mrb[3].mxu0  ;;  %v1130_v42 = vmax.f32 %v932_v37, 0.0 }
  0xfc   : > { %v1131_v43 = vmax.f32 %v935_v40, 0.0 }
  0xfe   : > { %v1180_v44 = vpack.c.bf16 %v1131_v43, %v1130_v42 }
  0xff   : > { %v939_v45 = vpop.f32.mrb[4].mxu0 }
 0x100   : > { %v940_v46 = vadd.f32 %v8935_v35, %v939_v45  ;;  %1391 = vrot.lane.b32.xlu1 %v1180_v44, %s11600_s29  ;;  %v7787_v47 = vpop.f32.mrb[5].mxu0 }
 0x101   : > { %v942_v48 = vpop.f32.mrb[6].mxu0 }
 0x102   : > { %v943_v49 = vadd.f32 %v8935_v35, %v942_v48  ;;  %v7788_v50 = vpop.f32.mrb[7].mxu0  ;;  %v1132_v51 = vmax.f32 %v940_v46, 0.0 }
 0x104   : > { %v1133_v52 = vmax.f32 %v943_v49, 0.0 }
 0x106   : > { %v1181_v53 = vpack.c.bf16 %v1133_v52, %v1132_v51 }
 0x107   : > { %v947_v54 = vpop.f32.mrb[8].mxu0 }
 0x108   : > { %v948_v55 = vadd.f32 %v8935_v35, %v947_v54  ;;  %1393 = vrot.lane.b32.xlu0 %v1181_v53, %s11600_s29  ;;  %v7791_v56 = vpop.f32.mrb[9].mxu0  ;;  %v1490_v60 = vshrl.u32 %v1181_v53, 16  ;;  %v1493_v61 = vshll.u32 %v1181_v53, 16 }
 0x109   : > { %v950_v57 = vpop.f32.mrb[10].mxu0 }
 0x10a   : > { %v951_v58 = vadd.f32 %v8935_v35, %v950_v57  ;;  %v7792_v59 = vpop.f32.mrb[11].mxu0  ;;  %v1134_v62 = vmax.f32 %v948_v55, 0.0  ;;  %v1492_v2 = vrot.slane %v1490_v60, 4  ;;  %v1495_v4 = vrot.slane %v1493_v61, 5 }
 0x10c   : > { %v1135_v63 = vmax.f32 %v951_v58, 0.0  ;;  %v1496_v17 = vor.u32 %v1495_v4, %v1492_v2 }
 0x10e   : > { %v1182_v0 = vpack.c.bf16 %v1135_v63, %v1134_v62 }
 0x10f   : > { %v955_v3 = vpop.f32.mrb[12].mxu0 }
 0x110   : > { %v1498_v5 = vshrl.u32 %v1182_v0, 16  ;;  %v1501_v6 = vshll.u32 %v1182_v0, 16  ;;  %v956_v7 = vadd.f32 %v8935_v35, %v955_v3  ;;  %v7795_v9 = vpop.f32.mrb[13].mxu0 }
 0x111   : > { %v958_v10 = vpop.f32.mrb[14].mxu0 }
 0x112   : > { %v1500_v11 = vrot.slane %v1498_v5, 4  ;;  %v1503_v12 = vrot.slane %v1501_v6, 5  ;;  %v959_v13 = vadd.f32 %v8935_v35, %v958_v10  ;;  %v7796_v14 = vpop.f32.mrb[15].mxu0  ;;  %v1136_v15 = vmax.f32 %v956_v7, 0.0 }
 0x113   : > { %v8681_v10 = vmov 839922192  }
 0x114   : > { %v1137_v16 = vmax.f32 %v959_v13, 0.0  ;;  %v1504_v18 = vor.u32 %v1503_v12, %v1500_v11  ;;  %v1243_v11 = vunpack.c.l.s4 %v8681_v10  ;;  %v1245_v12 = vlaneseq }
 0x116   : > { %v1183_v19 = vpack.c.bf16 %v1137_v16, %v1136_v15  ;;  %v1505_v20 = vsel %vm11610_vm3, %v1496_v17, %v1504_v18  ;;  %v1240_v17 = vpop.permute.xlu0 %1239 }
 0x117   : > { %1515 = vrot.lane.b32.xlu0 %v1505_v20, %s11600_s29  ;;  %v963_v21 = vpop.f32.mrb[16].mxu0 }
 0x118   : > { %v1507_v22 = vshrl.u32 %v1183_v19, 16  ;;  %v1510_v23 = vshll.u32 %v1183_v19, 16  ;;  %v964_v24 = vadd.f32 %v8935_v35, %v963_v21  ;;  %v7799_v25 = vpop.f32.mrb[17].mxu0  ;;  %v1648_v40 = vrot.slane %v1183_v19, 1 }
 0x119   : > { %v966_v26 = vpop.f32.mrb[18].mxu0  ;;  %v1244_v21 = vunpack.c.0.s8 %v1243_v11 }
 0x11a   : > { %v1509_v27 = vrot.slane %v1507_v22, 4  ;;  %v1512_v28 = vrot.slane %v1510_v23, 5  ;;  %v967_v29 = vadd.f32 %v8935_v35, %v966_v26  ;;  %v7800_v30 = vpop.f32.mrb[19].mxu0  ;;  %v1138_v31 = vmax.f32 %v964_v24, 0.0 }
 0x11b   : > { %v8972_v22 = vshrl.u32 %v1245_v12, 7 }
 0x11c   : > { %v1139_v32 = vmax.f32 %v967_v29, 0.0  ;;  %v1513_v33 = vor.u32 %v1512_v28, %v1509_v27 }
 0x11d   : > { %11623 = vst [vmem:[#allocation2_spill] sm:$0xff] %v8972_v22 }
 0x11e   : > { %v8951_v34 = vpack.c.bf16 %v1139_v32, %v1138_v31  ;;  %v1514_v36 = vsel %vm11610_vm3, %v1504_v18, %v1513_v33  ;;  %v8979_v31 = vsub.s32 %v1244_v21, %v8972_v22  ;;  %v1252_v32 = vpop.permute.xlu0 %1251 }
 0x11f   : > { %1517 = vrot.lane.b32.xlu1 %v1514_v36, %s11600_s29  ;;  %v971_v37 = vpop.f32.mrb[20].mxu0 }
 0x120   : > { %v972_v38 = vadd.f32 %v8935_v35, %v971_v37  ;;  %v7803_v39 = vpop.f32.mrb[21].mxu0  ;;  %v1649_v41 = vrot.slane %v8951_v34, 1  ;;  %v1745_v42 = vshrl.u32 %v8951_v34, 16  ;;  %v1748_v48 = vshll.u32 %v8951_v34, 16  ;;  %11624 = vst [vmem:[#allocation3_spill] sm:$0xff] %v8979_v31 }
 0x121   : > { %v974_v43 = vpop.f32.mrb[22].mxu0 }
 0x122   : > { %v975_v44 = vadd.f32 %v8935_v35, %v974_v43  ;;  %v7804_v45 = vpop.f32.mrb[23].mxu0  ;;  %v1650_v46 = vsel %vm11591_vm4, %v1648_v40, %v1649_v41  ;;  %v1747_v47 = vrot.slane %v1745_v42, 7  ;;  %v1140_v49 = vmax.f32 %v972_v38, 0.0  ;;  %v1264_v38 = vpop.permute.xlu1 %1263 }
 0x123   : > { %1651 = vrot.lane.b32.xlu1 %v1650_v46, %s11600_s29  ;;  %v1260_v45 = vrot.slane %v1252_v32, %v8979_v31 }
 0x124   : > { %v1141_v50 = vmax.f32 %v975_v44, 0.0  ;;  %v1750_v51 = vor.u32 %v1748_v48, %v1747_v47  ;;  %v1248_v44 = vrot.slane %v1240_v17, %v8979_v31 }
 0x126   : > { %v1185_v52 = vpack.c.bf16 %v1141_v50, %v1140_v49  ;;  %1767 = vrot.lane.b32.xlu0 %v1750_v51, %s11600_s29 }
 0x127   : > { %v979_v53 = vpop.f32.mrb[24].mxu0 }
 0x128   : > { %v1752_v54 = vshrl.u32 %v1185_v52, 16  ;;  %v980_v55 = vadd.f32 %v8935_v35, %v979_v53  ;;  %v7807_v56 = vpop.f32.mrb[25].mxu0  ;;  %v1755_v59 = vshll.u32 %v1185_v52, 16 }
 0x129   : > { %v982_v57 = vpop.f32.mrb[26].mxu0  ;;  %v8990_v56 = vcombine.low %v1248_v44, %v1260_v45 }
 0x12a   : > { %v1754_v58 = vrot.slane %v1752_v54, 7  ;;  %v983_v60 = vadd.f32 %v8935_v35, %v982_v57  ;;  %v7808_v61 = vpop.f32.mrb[27].mxu0  ;;  %v1142_v62 = vmax.f32 %v980_v55, 0.0  ;;  %v1276_v55 = vpop.permute.xlu1 %1275 }
 0x12c   : > { %v1143_v63 = vmax.f32 %v983_v60, 0.0  ;;  %v1757_v0 = vor.u32 %v1755_v59, %v1754_v58 }
 0x12e   : > { %v1186_v2 = vpack.c.bf16 %v1143_v63, %v1142_v62  ;;  %v8968_v3 = vsel %vm11587_vm5, %v1747_v47, %v1757_v0  ;;  %v1272_v63 = vrot.slane %v1264_v38, %v8979_v31 }
 0x12f   : > { %v987_v4 = vpop.f32.mrb[28].mxu0 }
 0x130   : > { %v1760_v5 = vshrl.u32 %v1186_v2, 16  ;;  %v988_v6 = vadd.f32 %v8935_v35, %v987_v4  ;;  %v7811_v7 = vpop.f32.mrb[29].mxu0  ;;  %v1763_v14 = vshll.u32 %v1186_v2, 16  ;;  %v1396_v29 = vrot.slane %v1186_v2, 2 }
 0x131   : > { %v990_v9 = vpop.f32.mrb[30].mxu0  ;;  %v1284_v2 = vrot.slane %v1276_v55, %v8979_v31 }
 0x132   : > { %v1762_v13 = vrot.slane %v1760_v5, 7  ;;  %v991_v15 = vadd.f32 %v8935_v35, %v990_v9  ;;  %v7812_v16 = vpop.f32.mrb[31].mxu0  ;;  %v1144_v18 = vmax.f32 %v988_v6, 0.0 }
 0x134   : > { %v1145_v19 = vmax.f32 %v991_v15, 0.0  ;;  %v1765_v20 = vor.u32 %v1763_v14, %v1762_v13  ;;  %v9006_v14 = vcombine.low %v1272_v63, %v1284_v2 }
 0x136   : > { %v1187_v23 = vpack.c.bf16 %v1145_v19, %v1144_v18  ;;  %v8975_v24 = vsel %vm11587_vm5, %v1754_v58, %v1765_v20 }
 0x137   : > { %v995_v25 = vpop.f32.mrb[32].mxu0 }
 0x138   : > { %v996_v26 = vadd.f32 %v8935_v35, %v995_v25  ;;  %v7815_v27 = vpop.f32.mrb[33].mxu0  ;;  %v1397_v28 = vrot.slane %v1187_v23, 2  ;;  %v1521_v39 = vshrl.u32 %v1187_v23, 16  ;;  %v1524_v40 = vshll.u32 %v1187_v23, 16 }
 0x139   : > { %v998_v30 = vpop.f32.mrb[34].mxu0  ;;  %v1352_v59 = vrot.slane %v1187_v23, 6 }
 0x13a   : > { %v999_v33 = vadd.f32 %v8935_v35, %v998_v30  ;;  %1487 = vrot.lane.b32.xlu1 %v1397_v28, %s11592_s30  ;;  %1401 = vrot.lane.b32.xlu0 %v1397_v28, %s11594_s20  ;;  %v7816_v36 = vpop.f32.mrb[35].mxu0  ;;  %v1398_v37 = vsel %vm11586_vm6, %v1396_v29, %v1397_v28  ;;  %v1146_v42 = vmax.f32 %v996_v26, 0.0  ;;  %v1523_v48 = vrot.slane %v1521_v39, 6 }
 0x13b   : > { %v1526_v49 = vrot.slane %v1524_v40, 7 }
 0x13c   : > { %v1147_v43 = vmax.f32 %v999_v33, 0.0 }
 0x13d   : > { %v1527_v5 = vor.u32 %v1526_v49, %v1523_v48 }
 0x13e   : > { %v1188_v46 = vpack.c.bf16 %v1147_v43, %v1146_v42  ;;  %1399 = vrot.lane.b32.xlu1 %v1398_v37, %s11594_s20  ;;  %1485 = vrot.lane.b32.xlu0 %v1398_v37, %s11592_s30 }
 0x13f   : > { %v1003_v47 = vpop.f32.mrb[36].mxu0 }
 0x140   : > { %v1353_v50 = vrot.slane %v1188_v46, 6  ;;  %v1529_v51 = vshrl.u32 %v1188_v46, 16  ;;  %v1532_v52 = vshll.u32 %v1188_v46, 16  ;;  %v1004_v53 = vadd.f32 %v8935_v35, %v1003_v47  ;;  %v7819_v54 = vpop.f32.mrb[37].mxu0 }
 0x141   : > { %v1006_v57 = vpop.f32.mrb[38].mxu0 }
 0x142   : > { %v1531_v60 = vrot.slane %v1529_v51, 6  ;;  %v1534_v61 = vrot.slane %v1532_v52, 7  ;;  %v1007_v62 = vadd.f32 %v8935_v35, %v1006_v57  ;;  %v7820_v0 = vpop.f32.mrb[39].mxu0  ;;  %v1354_v4 = vsel %vm11570_vm0, %v1352_v59, %v1353_v50 }
 0x143   : > { %v1148_v6 = vmax.f32 %v1004_v53, 0.0  ;;  %v1359_v9 = vsel %vm8994_vm8, 0, %v1354_v4 }
 0x144   : > { %v1149_v7 = vmax.f32 %v1007_v62, 0.0  ;;  %v1535_v10 = vor.u32 %v1534_v61, %v1531_v60  ;;  %v1360_v11 = vmul.bf16 %v8990_v56, %v1359_v9 }
 0x146   : > { %v1189_v12 = vpack.c.bf16 %v1149_v7, %v1148_v6  ;;  %v1536_v13 = vsel %vm11590_vm9, %v1527_v5, %v1535_v10  ;;  %1385 = vrot.lane.b32.xlu1 %v1360_v11, %s11592_s30 }
 0x147   : > { %1546 = vrot.lane.b32.xlu0 %v1536_v13, %s11594_s20  ;;  %v1011_v15 = vpop.f32.mrb[40].mxu0 }
 0x148   : > { %v1012_v16 = vadd.f32 %v8935_v35, %v1011_v15  ;;  %v7823_v17 = vpop.f32.mrb[41].mxu0  ;;  %v1735_v18 = vrot.slane %v1189_v12, 5  ;;  %v1355_v19 = vrot.slane %v1189_v12, 6  ;;  %v1538_v20 = vshrl.u32 %v1189_v12, 16 }
 0x149   : > { %v1014_v21 = vpop.f32.mrb[42].mxu0  ;;  %v1541_v23 = vshll.u32 %v1189_v12, 16  ;;  %v1655_v44 = vrot.slane %v1189_v12, 3 }
 0x14a   : > { %v1015_v25 = vadd.f32 %v8935_v35, %v1014_v21  ;;  %v7824_v26 = vpop.f32.mrb[43].mxu0  ;;  %v1356_v27 = vsel %vm11570_vm0, %v1353_v50, %v1355_v19  ;;  %v1540_v28 = vrot.slane %v1538_v20, 6  ;;  %1738 = vrot.lane.b32.xlu1 %v1735_v18, %s11592_s30  ;;  %v1150_v32 = vmax.f32 %v1012_v16, 0.0 }
 0x14b   : > { %v1361_v29 = vmul.bf16 %v9006_v14, %v1356_v27  ;;  %v1543_v30 = vrot.slane %v1541_v23, 7 }
 0x14c   : > { %v1151_v33 = vmax.f32 %v1015_v25, 0.0 }
 0x14d   : > { %1387 = vrot.lane.b32.xlu0 %v1361_v29, %s11592_s30  ;;  %v1544_v36 = vor.u32 %v1543_v30, %v1540_v28 }
 0x14e   : > { %v9016_v37 = vpack.c.bf16 %v1151_v33, %v1150_v32 }
 0x14f   : > { %v1545_v38 = vsel %vm11590_vm9, %v1535_v10, %v1544_v36  ;;  %v1019_v39 = vpop.f32.mrb[44].mxu0  ;;  %vm1452_vm9 = vcmask 654336  }
 0x150   : > { %1548 = vrot.lane.b32.xlu1 %v1545_v38, %s11594_s20  ;;  %v1020_v40 = vadd.f32 %v8935_v35, %v1019_v39  ;;  %v7827_v42 = vpop.f32.mrb[45].mxu0  ;;  %v1736_v43 = vrot.slane %v9016_v37, 5  ;;  %v1656_v45 = vrot.slane %v9016_v37, 3  ;;  %v1775_v55 = vshrl.u32 %v9016_v37, 16 }
 0x151   : > { %v1022_v46 = vpop.f32.mrb[46].mxu0  ;;  %v1613_v0 = vrot.slane %v9016_v37, 7 }
 0x152   : > { %v1023_v47 = vadd.f32 %v8935_v35, %v1022_v46  ;;  %v7828_v48 = vpop.f32.mrb[47].mxu0  ;;  %v1737_v49 = vsel %vm11571_vm10, %v1735_v18, %v1736_v43  ;;  %v1657_v50 = vsel %vm11589_vm11, %v1655_v44, %v1656_v45  ;;  %v1152_v51 = vmax.f32 %v1020_v40, 0.0 }
 0x153   : > { %1740 = vrot.lane.b32.xlu0 %v1737_v49, %s11592_s30  ;;  %v1777_v9 = vrot.slane %v1775_v55, 1 }
 0x154   : > { %v1153_v52 = vmax.f32 %v1023_v47, 0.0  ;;  %1658 = vrot.lane.b32.xlu1 %v1657_v50, %s11594_s20 }
 0x156   : > { %v1191_v53 = vpack.c.bf16 %v1153_v52, %v1152_v51 }
 0x157   : > { %v1027_v54 = vpop.f32.mrb[48].mxu0 }
 0x158   : > { %v1614_v57 = vrot.slane %v1191_v53, 7  ;;  %v1779_v59 = vshrl.u32 %v1191_v53, 16  ;;  %v1782_v60 = vshll.u32 %v1191_v53, 16  ;;  %v1028_v61 = vadd.f32 %v8935_v35, %v1027_v54  ;;  %v7831_v62 = vpop.f32.mrb[49].mxu0 }
 0x159   : > { %v1030_v63 = vpop.f32.mrb[50].mxu0 }
 0x15a   : > { %v1781_v2 = vrot.slane %v1779_v59, 1  ;;  %v1784_v4 = vrot.slane %v1782_v60, 2  ;;  %v1031_v5 = vadd.f32 %v8935_v35, %v1030_v63  ;;  %v7832_v6 = vpop.f32.mrb[51].mxu0  ;;  %v1615_v7 = vsel %vm11613_vm7, %v1613_v0, %v1614_v57 }
 0x15b   : > { %v1154_v10 = vmax.f32 %v1028_v61, 0.0  ;;  %v1620_v12 = vsel %vm8994_vm8, 0, %v1615_v7 }
 0x15c   : > { %v1155_v11 = vmax.f32 %v1031_v5, 0.0  ;;  %v1785_v13 = vor.u32 %v1784_v4, %v1781_v2  ;;  %v1621_v15 = vmul.bf16 %v8990_v56, %v1620_v12 }
 0x15e   : > { %v1192_v16 = vpack.c.bf16 %v1155_v11, %v1154_v10  ;;  %v1786_v17 = vsel %vm11567_vm12, %v1777_v9, %v1785_v13  ;;  %1642 = vrot.lane.b32.xlu0 %v1621_v15, %s11592_s30 }
 0x15f   : > { %1796 = vrot.lane.b32.xlu1 %v1786_v17, %s11594_s20  ;;  %v1035_v18 = vpop.f32.mrb[52].mxu0 }
 0x160   : > { %v1036_v19 = vadd.f32 %v8935_v35, %v1035_v18  ;;  %v7835_v20 = vpop.f32.mrb[53].mxu0  ;;  %v1616_v21 = vrot.slane %v1192_v16, 7  ;;  %v1788_v23 = vshrl.u32 %v1192_v16, 16  ;;  %v1791_v26 = vshll.u32 %v1192_v16, 16 }
 0x161   : > { %v1038_v25 = vpop.f32.mrb[54].mxu0  ;;  %v1413_v48 = vrot.slane %v1192_v16, 4 }
 0x162   : > { %v1039_v27 = vadd.f32 %v8935_v35, %v1038_v25  ;;  %v7836_v28 = vpop.f32.mrb[55].mxu0  ;;  %v9046_v29 = vsel %vm11613_vm7, %v1614_v57, %v1616_v21  ;;  %v1790_v30 = vrot.slane %v1788_v23, 1  ;;  %v1793_v32 = vrot.slane %v1791_v26, 2 }
 0x163   : > { %v1156_v33 = vmax.f32 %v1036_v19, 0.0 }
 0x164   : > { %v1157_v36 = vmax.f32 %v1039_v27, 0.0  ;;  %v9048_v38 = vor.u32 %v1793_v32, %v1790_v30 }
 0x166   : > { %v1193_v39 = vpack.c.bf16 %v1157_v36, %v1156_v33  ;;  %v9052_v42 = vsel %vm11567_vm12, %v1785_v13, %v9048_v38  ;;  %vm9081_vm12 = vmand %vm11571_vm10, %vm11572_vm2 }
 0x167   : > { %v1043_v40 = vpop.f32.mrb[56].mxu0 }
 0x168   : > { %v1414_v44 = vrot.slane %v1193_v39, 4  ;;  %v1044_v46 = vadd.f32 %v8935_v35, %v1043_v40  ;;  %v7839_v47 = vpop.f32.mrb[57].mxu0 }
 0x169   : > { %v1046_v49 = vpop.f32.mrb[58].mxu0 }
 0x16a   : > { %v1047_v50 = vadd.f32 %v8935_v35, %v1046_v49  ;;  %v7840_v51 = vpop.f32.mrb[59].mxu0  ;;  %v1415_v52 = vsel %vm1412_vm13, %v1413_v48, %v1414_v44  ;;  %v1158_v53 = vmax.f32 %v1044_v46, 0.0 }
 0x16b   : > { %1632 = vrot.lane.b32.xlu0 %v1415_v52, %s11596_s22  ;;  %1418 = vrot.lane.b32.xlu1 %v1415_v52, %s11598_s2 }
 0x16c   : > { %v1159_v54 = vmax.f32 %v1047_v50, 0.0 }
 0x16e   : > { %v1194_v55 = vpack.c.bf16 %v1159_v54, %v1158_v53 }
 0x16f   : > { %v1051_v57 = vpop.f32.mrb[60].mxu0 }
 0x170   : > { %v1556_v59 = vshrl.u32 %v1194_v55, 16  ;;  %v1558_v60 = vshll.u32 %v1194_v55, 16  ;;  %v1052_v61 = vadd.f32 %v8935_v35, %v1051_v57  ;;  %v7843_v62 = vpop.f32.mrb[61].mxu0  ;;  %v1416_v63 = vrot.slane %v1194_v55, 4 }
 0x171   : > { %v1054_v0 = vpop.f32.mrb[62].mxu0 }
 0x172   : > { %v1055_v2 = vadd.f32 %v8935_v35, %v1054_v0  ;;  %v7844_v4 = vpop.f32.mrb[63].mxu0  ;;  %v1417_v5 = vsel %vm1412_vm13, %v1414_v44, %v1416_v63  ;;  %v1715_v6 = vrot.slane %v1556_v59, 2  ;;  %v1716_v7 = vrot.slane %v1558_v60, 3 }
 0x173   : > { %1634 = vrot.lane.b32.xlu1 %v1417_v5, %s11596_s22  ;;  %1420 = vrot.lane.b32.xlu0 %v1417_v5, %s11598_s2  ;;  %v1160_v9 = vmax.f32 %v1052_v61, 0.0  ;;  %v1560_v13 = vrot.slane %v1558_v60, 1  ;;  %v11627_v0 = vmov 0 }
 0x174   : > { %v1161_v10 = vmax.f32 %v1055_v2, 0.0  ;;  %v1717_v11 = vor.u32 %v1716_v7, %v1715_v6  ;;  %v11628_v0 = vsel %vm9081_vm12, 4294967295, %v11627_v0 }
 0x175   : > { %v1561_v25 = vor.u32 %v1560_v13, %v1556_v59  ;;  %11629 = vst [vmem:[#allocation4_spill] sm:$0xff] %v11628_v0 }
 0x176   : > { %v1195_v12 = vpack.c.bf16 %v1161_v10, %v1160_v9 }
 0x177   : > { %1719 = vrot.lane.b32.xlu0 %v1717_v11, %s11596_s22  ;;  %v1059_v15 = vpop.f32.mrb[64].mxu0 }
 0x178   : > { %v1304_v16 = vshll.u32 %v1195_v12, 16  ;;  %v1060_v17 = vadd.f32 %v8935_v35, %v1059_v15  ;;  %v7847_v18 = vpop.f32.mrb[65].mxu0  ;;  %v1301_v19 = vshrl.u32 %v1195_v12, 16  ;;  %v1670_v47 = vrot.slane %v1195_v12, 5 }
 0x179   : > { %v1062_v20 = vpop.f32.mrb[66].mxu0 }
 0x17a   : > { %v1063_v21 = vadd.f32 %v8935_v35, %v1062_v20  ;;  %v7848_v23 = vpop.f32.mrb[67].mxu0  ;;  %v1562_v26 = vrot.slane %v1304_v16, 1  ;;  %v1303_v27 = vrot.slane %v1301_v19, 2  ;;  %v1306_v28 = vrot.slane %v1304_v16, 3 }
 0x17b   : > { %v1162_v30 = vmax.f32 %v1060_v17, 0.0  ;;  %v8160_v23 = vld [vmem:[%s11549_s5] sm:$0xff]  }
 0x17c   : > { %v1163_v32 = vmax.f32 %v1063_v21, 0.0  ;;  %v1563_v33 = vsel %vm1554_vm14, %v1561_v25, %v1562_v26  ;;  %v1564_v36 = vor.u32 %v1562_v26, %v1301_v19  ;;  %v9069_v39 = vor.u32 %v1306_v28, %v1303_v27  ;;  %2097 = vmatpush1.bf16.msra.mxu1 %v8160_v23 }
 0x17d   : > { %1565 = vrot.lane.b32.xlu0 %v1563_v33, %s11598_s2  ;;  %2098 = vmatprep.subr.bf16.mxu1 %v11575_v8 }
 0x17e   : > { %v1196_v40 = vpack.c.bf16 %v1163_v32, %v1162_v30  ;;  %1567 = vrot.lane.b32.xlu1 %v1564_v36, %s11598_s2  ;;  %v1718_v46 = vsel %vm11585_vm15, %v1717_v11, %v9069_v39  ;;  %v8161_v30 = vld [vmem:[%s11549_s5 + $0x8] sm:$0xff]  }
 0x17f   : > { %v1067_v44 = vpop.f32.mrb[68].mxu0 }
 0x180   : > { %v1068_v48 = vadd.f32 %v8935_v35, %v1067_v44  ;;  %v7851_v49 = vpop.f32.mrb[69].mxu0  ;;  %v1671_v50 = vrot.slane %v1196_v40, 5  ;;  %v1309_v51 = vshrl.u32 %v1196_v40, 16  ;;  %v1312_v52 = vshll.u32 %v1196_v40, 16  ;;  %2099 = vmatpush1.bf16.msra.mxu1 %v8161_v30  ;;  %v8166_v30 = vld [vmem:[%s11549_s5 + $0x30] sm:$0xff]  }
 0x181   : > { %1721 = vrot.lane.b32.xlu0 %v1718_v46, %s11596_s22  ;;  %v1070_v53 = vpop.f32.mrb[70].mxu0  ;;  %v8162_v46 = vld [vmem:[%s11549_s5 + $0x10] sm:$0xff]   ;;  %2100 = vmatprep.subr.bf16.mxu1 %v11575_v8 }
 0x182   : > { %v1071_v54 = vadd.f32 %v8935_v35, %v1070_v53  ;;  %v7852_v55 = vpop.f32.mrb[71].mxu0  ;;  %v1672_v57 = vsel %vm11571_vm10, %v1670_v47, %v1671_v50  ;;  %v1311_v59 = vrot.slane %v1309_v51, 2  ;;  %v1314_v60 = vrot.slane %v1312_v52, 3 }
 0x183   : > { %v1164_v61 = vmax.f32 %v1068_v48, 0.0 }
 0x184   : > { %v1165_v62 = vmax.f32 %v1071_v54, 0.0  ;;  %v1315_v63 = vor.u32 %v1314_v60, %v1311_v59  ;;  %2101 = vmatpush1.bf16.msra.mxu1 %v8162_v46  ;;  %v8163_v59 = vld [vmem:[%s11549_s5 + $0x18] sm:$0xff]  }
 0x185   : > { %1675 = vrot.lane.b32.xlu0 %v1672_v57, %s11598_s2  ;;  %2102 = vmatprep.subr.bf16.mxu1 %v11575_v8 }
 0x186   : > { %v9085_v2 = vpack.c.bf16 %v1165_v62, %v1164_v61  ;;  %1376 = vrot.lane.b32.xlu1 %v1315_v63, %s11596_s22  ;;  %v1316_v5 = vsel %vm11585_vm15, %v9069_v39, %v1315_v63  ;;  %v8164_v62 = vld [vmem:[%s11549_s5 + $0x20] sm:$0xff]  }
 0x187   : > { %v1075_v4 = vpop.f32.mrb[72].mxu0  ;;  %v1318_v9 = vsel %vm9081_vm12, 0, %v1316_v5 }
 0x188   : > { %v1076_v6 = vadd.f32 %v8935_v35, %v1075_v4  ;;  %v7855_v7 = vpop.f32.mrb[73].mxu0  ;;  %v1470_v10 = vrot.slane %v9085_v2, 7  ;;  %v1673_v12 = vrot.slane %v9085_v2, 5  ;;  %2103 = vmatpush1.bf16.msra.mxu1 %v8163_v59 }
 0x189   : > { %1374 = vrot.lane.b32.xlu0 %v1318_v9, %s11596_s22  ;;  %v1078_v11 = vpop.f32.mrb[74].mxu0  ;;  %2104 = vmatprep.subr.bf16.mxu1 %v11575_v8 }
 0x18a   : > { %v1079_v13 = vadd.f32 %v8935_v35, %v1078_v11  ;;  %v7856_v15 = vpop.f32.mrb[75].mxu0  ;;  %v9098_v16 = vsel %vm11571_vm10, %v1671_v50, %v1673_v12  ;;  %v1166_v17 = vmax.f32 %v1076_v6, 0.0  ;;  %v1474_v19 = vsel %vm9081_vm12, 0, %v1470_v10  ;;  %v8165_v12 = vld [vmem:[%s11549_s5 + $0x28] sm:$0xff]  }
 0x18c   : > { %v1167_v18 = vmax.f32 %v1079_v13, 0.0  ;;  %2105 = vmatpush1.bf16.msra.mxu1 %v8164_v62 }
 0x18d   : > { %1476 = vrot.lane.b32.xlu0 %v1474_v19, %s11596_s22  ;;  %2106 = vmatprep.subr.bf16.mxu1 %v11575_v8 }
 0x18e   : > { %v9103_v20 = vpack.c.bf16 %v1167_v18, %v1166_v17 }
 0x18f   : > { %v1083_v21 = vpop.f32.mrb[76].mxu0 }
 0x190   : > { %v1084_v25 = vadd.f32 %v8935_v35, %v1083_v21  ;;  %v7859_v26 = vpop.f32.mrb[77].mxu0  ;;  %v1471_v27 = vrot.slane %v9103_v20, 7  ;;  %v1424_v52 = vrot.slane %v9103_v20, 6  ;;  %2107 = vmatpush1.bf16.msra.mxu1 %v8165_v12 }
 0x191   : > { %v1086_v28 = vpop.f32.mrb[78].mxu0  ;;  %2108 = vmatprep.subr.bf16.mxu1 %v11575_v8 }
 0x192   : > { %v1087_v32 = vadd.f32 %v8935_v35, %v1086_v28  ;;  %v7860_v33 = vpop.f32.mrb[79].mxu0  ;;  %v1472_v36 = vsel %vm11613_vm7, %v1470_v10, %v1471_v27  ;;  %v1168_v40 = vmax.f32 %v1084_v25, 0.0 }
 0x193   : > { %1478 = vrot.lane.b32.xlu1 %v1472_v36, %s11596_s22 }
 0x194   : > { %v1169_v44 = vmax.f32 %v1087_v32, 0.0  ;;  %2109 = vmatpush1.bf16.msra.mxu1 %v8166_v30 }
 0x195   : > { %2110 = vmatprep.subr.bf16.mxu1 %v11575_v8 }
 0x196   : > { %v9120_v47 = vpack.c.bf16 %v1169_v44, %v1168_v40 }
 0x197   : > { %v1091_v48 = vpop.f32.mrb[80].mxu0 }
 0x198   : > { %v1425_v49 = vrot.slane %v9120_v47, 6  ;;  %v1092_v50 = vadd.f32 %v8935_v35, %v1091_v48  ;;  %v7863_v51 = vpop.f32.mrb[81].mxu0 }
 0x199   : > { %v1094_v53 = vpop.f32.mrb[82].mxu0  ;;  %v8167_v51 = vld [vmem:[%s11549_s5 + $0x38] sm:$0xff]  }
 0x19a   : > { %v1095_v54 = vadd.f32 %v8935_v35, %v1094_v53  ;;  %v7864_v55 = vpop.f32.mrb[83].mxu0  ;;  %v1426_v57 = vsel %vm11570_vm0, %v1424_v52, %v1425_v49  ;;  %v1170_v60 = vmax.f32 %v1092_v50, 0.0  ;;  %2111 = vmatpush1.bf16.msra.mxu1 %v8167_v51 }
 0x19b   : > { %1636 = vrot.lane.b32.xlu1 %v1426_v57, %s11602_s23  ;;  %1550 = vrot.lane.b32.xlu0 %v1426_v57, %s11606_s24 }
 0x19c   : > { %v1171_v61 = vmax.f32 %v1095_v54, 0.0  ;;  %7154 = vmatprep.mubr.msk.bf16.mxu1 %vm11605_vm1, %v1426_v57  ;;  %2112 = vmatprep.subr.bf16.mxu1 %v11575_v8 }
 0x19e   : > { %v9138_v63 = vpack.c.bf16 %v1171_v61, %v1170_v60 }
 0x19f   : > { %v1099_v4 = vpop.f32.mrb[84].mxu0 }
 0x1a0   : > { %v1100_v5 = vadd.f32 %v8935_v35, %v1099_v4  ;;  %v7867_v6 = vpop.f32.mrb[85].mxu0  ;;  %v1427_v7 = vrot.slane %v9138_v63, 6  ;;  %v1570_v9 = vshrl.u32 %v9138_v63, 16  ;;  %v1573_v10 = vshll.u32 %v9138_v63, 16 }
 0x1a1   : > { %v1102_v11 = vpop.f32.mrb[86].mxu0  ;;  %v1365_v36 = vrot.slane %v9138_v63, 2 }
 0x1a2   : > { %v1103_v13 = vadd.f32 %v8935_v35, %v1102_v11  ;;  %v7868_v15 = vpop.f32.mrb[87].mxu0  ;;  %v9150_v17 = vsel %vm11570_vm0, %v1425_v49, %v1427_v7  ;;  %v1572_v18 = vrot.slane %v1570_v9, 2  ;;  %v1575_v19 = vrot.slane %v1573_v10, 3 }
 0x1a3   : > { %1552 = vrot.lane.b32.xlu0 %v9150_v17, %s11606_s24  ;;  %v1725_v21 = vrot.slane %v1570_v9, 4  ;;  %v1726_v23 = vrot.slane %v1573_v10, 5  ;;  %v1172_v25 = vmax.f32 %v1100_v5, 0.0  ;;  %v8168_v9 = vld [vmem:[%s11549_s5 + $0x40] sm:$0xff]   ;;  %vm11609_vm0 = vsmask.f32 4352 }
 0x1a4   : > { %v1173_v26 = vmax.f32 %v1103_v13, 0.0  ;;  %v1576_v27 = vor.u32 %v1575_v19, %v1572_v18  ;;  %2113 = vmatpush1.bf16.msra.mxu1 %v8168_v9  ;;  %vm9217_vm10 = vmand %vm11589_vm11, %vm11609_vm0 }
 0x1a5   : > { %v1727_v28 = vor.u32 %v1726_v23, %v1725_v21 }
 0x1a6   : > { %v9158_v32 = vpack.c.bf16 %v1173_v26, %v1172_v25 }
 0x1a7   : > { %1729 = vrot.lane.b32.xlu0 %v1727_v28, %s11602_s23  ;;  %v1107_v33 = vpop.f32.mrb[88].mxu0 }
 0x1a8   : > { %v1108_v40 = vadd.f32 %v8935_v35, %v1107_v33  ;;  %v7871_v44 = vpop.f32.mrb[89].mxu0  ;;  %v1366_v46 = vrot.slane %v9158_v32, 2  ;;  %v1321_v48 = vshrl.u32 %v9158_v32, 16  ;;  %v1324_v49 = vshll.u32 %v9158_v32, 16 }
 0x1a9   : > { %v1110_v50 = vpop.f32.mrb[90].mxu0  ;;  %v1802_v15 = vrot.slane %v9158_v32, 1  ;;  %v1680_v51 = vrot.slane %v9158_v32, 7 }
 0x1aa   : > { %v1111_v52 = vadd.f32 %v8935_v35, %v1110_v50  ;;  %v7872_v53 = vpop.f32.mrb[91].mxu0  ;;  %v9172_v54 = vmul.bf16 %v9006_v14, %v1366_v46  ;;  %v1367_v55 = vsel %vm11586_vm6, %v1365_v36, %v1366_v46  ;;  %v1323_v59 = vrot.slane %v1321_v48, 4 }
 0x1ab   : > { %v1370_v57 = vsel %vm8994_vm8, 0, %v1367_v55  ;;  %v1326_v60 = vrot.slane %v1324_v49, 5  ;;  %v1577_v61 = vrot.slane %v1321_v48, 2  ;;  %v1174_v62 = vmax.f32 %v1108_v40, 0.0 }
 0x1ac   : > { %v1175_v4 = vmax.f32 %v1111_v52, 0.0  ;;  %1407 = vrot.lane.b32.xlu0 %v9172_v54, %s11606_s24  ;;  %v9181_v5 = vmul.bf16 %v8990_v56, %v1370_v57  ;;  %v1578_v6 = vrot.slane %v1324_v49, 3 }
 0x1ad   : > { %v9183_v7 = vor.u32 %v1326_v60, %v1323_v59 }
 0x1ae   : > { %v9188_v10 = vpack.c.bf16 %v1175_v4, %v1174_v62  ;;  %1405 = vrot.lane.b32.xlu1 %v9181_v5, %s11606_s24  ;;  %v1579_v11 = vor.u32 %v1578_v6, %v1577_v61 }
 0x1af   : > { %v1115_v12 = vpop.f32.mrb[92].mxu0  ;;  %v1728_v13 = vsel %vm11610_vm3, %v1727_v28, %v9183_v7 }
 0x1b0   : > { %v1681_v18 = vrot.slane %v9188_v10, 7  ;;  %v1116_v19 = vadd.f32 %v8935_v35, %v1115_v12  ;;  %v1329_v21 = vshrl.u32 %v9188_v10, 16  ;;  %v1332_v23 = vshll.u32 %v9188_v10, 16  ;;  %v7875_v25 = vpop.f32.mrb[93].mxu0 }
 0x1b1   : > { %v1803_v26 = vrot.slane %v9188_v10, 1  ;;  %v1580_v30 = vsel %vm11585_vm15, %v1576_v27, %v1579_v11  ;;  %v1915_v33 = vshrl.u32 %v1579_v11, 16  ;;  %v1918_v36 = vshll.u32 %v1579_v11, 16  ;;  %v1118_v40 = vpop.f32.mrb[94].mxu0 }
 0x1b2   : > { %1731 = vrot.lane.b32.xlu1 %v1728_v13, %s11602_s23  ;;  %v1331_v28 = vrot.slane %v1329_v21, 4  ;;  %v1334_v44 = vrot.slane %v1332_v23, 5  ;;  %v1119_v46 = vadd.f32 %v8935_v35, %v1118_v40  ;;  %v7876_v48 = vpop.f32.mrb[95].mxu0  ;;  %v1899_v50 = vshrl.u32 %v1580_v30, 16 }
 0x1b3   : > { %v9205_v49 = vsel %vm11591_vm4, %v1802_v15, %v1803_v26  ;;  %v1902_v53 = vshll.u32 %v1580_v30, 16  ;;  %v1917_v27 = vrot.slane %v1915_v33, 3  ;;  %v1920_v55 = vrot.slane %v1918_v36, 4 }
 0x1b4   : > { %v1335_v52 = vor.u32 %v1334_v44, %v1331_v28  ;;  %v1176_v57 = vmax.f32 %v1116_v19, 0.0  ;;  %v1177_v59 = vmax.f32 %v1119_v46, 0.0  ;;  %v1901_v60 = vrot.slane %v1899_v50, 3  ;;  %v8667_v44 = vld [vmem:[%s11622_s4] ss:$0 sm:$0xff] }
 0x1b5   : > { %v1682_v61 = vsel %vm11613_vm7, %v1680_v51, %v1681_v18  ;;  %v1904_v4 = vrot.slane %v1902_v53, 4  ;;  %v1921_v6 = vor.u32 %v1920_v55, %v1917_v27 }
 0x1b6   : > { %v1336_v62 = vsel %vm11610_vm3, %v9183_v7, %v1335_v52  ;;  %v1929_v9 = vrot.slane %v1682_v61, 7  ;;  %v1203_v10 = vpack.c.bf16 %v1177_v59, %v1176_v57 }
 0x1b7   : > { %v1123_v11 = vpop.f32.mrb[96].mxu0  ;;  %v9213_v32 = vsel %vm9081_vm12, 0, %v1336_v62  ;;  %v9223_v15 = vor.u32 %v1904_v4, %v1901_v60 }
 0x1b8   : > { %1379 = vrot.lane.b32.xlu1 %v9213_v32, %s11602_s23  ;;  %v7879_v13 = vpop.f32.mrb[97].mxu0  ;;  %v9226_v19 = vsel %vm11613_vm7, %v1921_v6, %v1929_v9  ;;  %v1124_v21 = vadd.f32 %v8935_v35, %v1123_v11  ;;  %v1338_v23 = vshrl.u32 %v1203_v10, 16  ;;  %v1341_v25 = vshll.u32 %v1203_v10, 16 }
 0x1b9   : > { %v9229_v30 = vrot.slane %v1203_v10, 1  ;;  %v1126_v33 = vpop.f32.mrb[98].mxu0  ;;  %v9237_v40 = vsel %vm11609_vm0, %v9223_v15, %v1921_v6  ;;  %v1683_v28 = vrot.slane %v1203_v10, 7 }
 0x1ba   : > { %v1127_v35 = vadd.f32 %v8667_v44, %v1126_v33  ;;  %v7880_v46 = vpop.f32.mrb[99].mxu0  ;;  %v1340_v48 = vrot.slane %v1338_v23, 4  ;;  %v1343_v50 = vrot.slane %v1341_v25, 5  ;;  %v1836_v51 = vrot.slane %v1338_v23, 5 }
 0x1bb   : > { %v1837_v53 = vrot.slane %v1341_v25, 6  ;;  %v9244_v27 = vsel %vm11591_vm4, %v1803_v26, %v9229_v30  ;;  %v1684_v55 = vsel %vm11613_vm7, %v1681_v18, %v1683_v28  ;;  %v1178_v57 = vmax.f32 %v1124_v21, 0.0 }
 0x1bc   : > { %v1179_v59 = vmax.f32 %v1127_v35, 0.0  ;;  %v1344_v60 = vor.u32 %v1343_v50, %v1340_v48  ;;  %v1932_v61 = vrot.slane %v1684_v55, 7  ;;  %v1624_v26 = vrot.slane %v1203_v10, 3 }
 0x1bd   : > { %v1838_v62 = vor.u32 %v1837_v53, %v1836_v51  ;;  %v1814_v48 = vshrl.u32 %v9085_v2, 16  ;;  %v1817_v50 = vshll.u32 %v9085_v2, 16  ;;  %v1622_v2 = vmul.bf16 %v9006_v14, %v9046_v29 }
 0x1be   : > { %v9247_v4 = vpack.c.bf16 %v1179_v59, %v1178_v57  ;;  %v9250_v6 = vsel %vm11610_vm3, %v1335_v52, %v1344_v60  ;;  %v9253_v11 = vsel %vm11613_vm7, %v1929_v9, %v1932_v61 }
 0x1bf   : > { %1381 = vrot.lane.b32.xlu1 %v9250_v6, %s11602_s23  ;;  %v1949_v25 = vshll.u32 %v1838_v62, 16  ;;  %v1947_v61 = vshrl.u32 %v1838_v62, 16 }
 0x1c0   : > { %v1840_v13 = vshrl.u32 %v9247_v4, 16  ;;  %v1843_v18 = vshll.u32 %v9247_v4, 16  ;;  %v1209_v21 = vrot.slane %v9247_v4, 1  ;;  %v1625_v23 = vrot.slane %v9247_v4, 3 }
 0x1c1   : > { %v1951_v55 = vrot.slane %v1949_v25, 1 }
 0x1c2   : > { %v1842_v33 = vrot.slane %v1840_v13, 5  ;;  %v1845_v28 = vrot.slane %v1843_v18, 6  ;;  %v1210_v52 = vsel %vm11591_vm4, %v9229_v30, %v1209_v21  ;;  %v1626_v9 = vsel %vm11589_vm11, %v1624_v26, %v1625_v23 }
 0x1c3   : > { %1483 = vrot.lane.b32.xlu1 %v1209_v21, %s11602_s23  ;;  %v9267_v10 = vsel %vm9081_vm12, 0, %v1210_v52  ;;  %v1225_v44 = vshrl.u32 %v1209_v21, 16  ;;  %v1228_v53 = vshll.u32 %v1209_v21, 16  ;;  %v1816_v13 = vrot.slane %v1814_v48, 3 }
 0x1c4   : > { %v9269_v35 = vor.u32 %v1845_v28, %v1842_v33  ;;  %1481 = vrot.lane.b32.xlu0 %v9267_v10, %s11602_s23  ;;  %v1218_v46 = vshrl.u32 %v9267_v10, 16  ;;  %v1819_v18 = vrot.slane %v1817_v50, 4  ;;  %v1952_v25 = vor.u32 %v1951_v55, %v1947_v61 }
 0x1c5   : > { %v1227_v51 = vrot.slane %v1225_v44, 7  ;;  %v1822_v28 = vshrl.u32 %v9103_v20, 16  ;;  %v1825_v52 = vshll.u32 %v9103_v20, 16  ;;  %vm11611_vm11 = vcmask 785408  }
 0x1c6   : > { %11632 = vst [vmem:[#allocation5_spill] sm:$0xff] %v9269_v35  ;;  %v9276_v57 = vrot.slane %v1218_v46, 7  ;;  %v1847_v59 = vsel %vm11572_vm2, %v1838_v62, %v9269_v35  ;;  %v1969_v26 = vshll.u32 %v9269_v35, 16  ;;  %vm9293_vm2 = vmand %vm11586_vm6, %vm11585_vm15  ;;  %v1820_v50 = vor.u32 %v1819_v18, %v1816_v13 }
 0x1c7   : > { %1769 = vrot.lane.b32.xlu1 %v8968_v3, %s11600_s29  ;;  %v1230_v60 = vor.u32 %v1228_v53, %v1227_v51  ;;  %v1954_v4 = vshll.u32 %v1847_v59, 16  ;;  %v1965_v62 = vshrl.u32 %v1847_v59, 16  ;;  %v1824_v53 = vrot.slane %v1822_v28, 3  ;;  %v9318_v59 = vpop.permute.xlu0 %1393  ;;  %v10777_v3 = vld [vmem:[%s11560_s16] ss:$0 sm:$0xff] }
 0x1c8   : > { %1638 = vrot.lane.b32.xlu0 %v9150_v17, %s11602_s23  ;;  %v9303_v46 = vrot.slane %v1969_v26, 1  ;;  %v1827_v55 = vrot.slane %v1825_v52, 4  ;;  %v1629_v26 = vsel %vm8994_vm8, 0, %v1626_v9  ;;  %vm11612_vm15 = vcmask 261120  }
 0x1c9   : > { %v9289_v21 = vsel %vm11587_vm5, %v9276_v57, %v1230_v60  ;;  %v1956_v33 = vrot.slane %v1954_v4, 1  ;;  %v9325_v60 = vpop.permute.xlu1 %1391  ;;  %v1630_v34 = vmul.bf16 %v8990_v56, %v1629_v26  ;;  %vm11604_vm6 = vcmask 392192  }
 0x1ca   : > { %11636 = vst [vmem:[#allocation7_spill] sm:$0xff] %v9303_v46  ;;  %vm1447_vm5 = vcmask 523264   ;;  %vm1462_vm4 = vcmask 916480  }
 0x1cb   : > { %1644 = vrot.lane.b32.xlu1 %v1622_v2, %s11592_s30  ;;  %v9301_v29 = vsel %vm1554_vm14, %v1952_v25, %v1956_v33  ;;  %v1967_v44 = vor.u32 %v1965_v62, %v1956_v33  ;;  %v9327_v61 = vpop.permute.xlu0 %1515 }
 0x1cc   : > { %11635 = vst [vmem:[#allocation6_spill] sm:$0xff] %v9301_v29  ;;  %1806 = vrot.lane.b32.xlu0 %v9205_v49, %s11606_s24  ;;  %v1828_v49 = vor.u32 %v1827_v55, %v1824_v53 }
 0x1cd   : > { %v9313_v51 = vsel %vm1554_vm14, %v1967_v44, %v9303_v46 }
 0x1ce   : > { %11637 = vst [vmem:[#allocation8_spill] sm:$0xff] %v9313_v51  ;;  %v1829_v4 = vsel %vm11609_vm0, %v1820_v50, %v1828_v49 }
 0x1cf   : > { %1830 = vrot.lane.b32.xlu1 %v1820_v50, %s11598_s2 }
 0x1d0   : > { %1798 = vrot.lane.b32.xlu0 %v9052_v42, %s11594_s20  ;;  %v9336_v42 = vpop.permute.xlu1 %1517 }
 0x1d3   : > { %1808 = vrot.lane.b32.xlu1 %v9244_v27, %s11606_s24  ;;  %v1631_v27 = vmul.bf16 %v9006_v14, %v1625_v23 }
 0x1d4   : > { %1653 = vrot.lane.b32.xlu0 %v1649_v41, %s11600_s29  ;;  %v9339_v41 = vpop.permute.xlu0 %1767  ;;  %v9346_v9 = vpop.permute.xlu1 %1651 }
 0x1d7   : > { %1832 = vrot.lane.b32.xlu1 %v1829_v4, %s11598_s2 }
 0x1d8   : > { %1660 = vrot.lane.b32.xlu0 %v1656_v45, %s11594_s20  ;;  %v9344_v2 = vpop.permute.xlu0 %1401  ;;  %v9352_v45 = vpop.permute.xlu1 %1487 }
 0x1db   : > { %1664 = vrot.lane.b32.xlu1 %v1630_v34, %s11606_s24 }
 0x1dc   : > { %1666 = vrot.lane.b32.xlu0 %v1631_v27, %s11606_s24  ;;  %v9356_v23 = vpop.permute.xlu0 %1485  ;;  %v1221_v27 = vshll.u32 %v9267_v10, 16 }
 0x1de   : > { %v1223_v48 = vor.u32 %v1221_v27, %v9276_v57 }
 0x1df   : > { %1677 = vrot.lane.b32.xlu1 %v9098_v16, %s11598_s2 }
 0x1e0   : > { %1723 = vrot.lane.b32.xlu0 %v9069_v39, %s11596_s22  ;;  %v9363_v13 = vpop.permute.xlu0 %1546  ;;  %v1400_v39 = vpop.permute.xlu1 %1399  ;;  %v1236_v31 = vsel %vm8994_vm8, 0, %v1223_v48 }
 0x1e1   : > { %v1297_v46 = vmul.bf16 %v8990_v56, %v1236_v31 }
 0x1e3   : > { %1733 = vrot.lane.b32.xlu1 %v9183_v7, %s11602_s23  ;;  %s11681_s23 = smov 96  }
 0x1e4   : > { %1742 = vrot.lane.b32.xlu0 %v1736_v43, %s11592_s30  ;;  %v1388_v16 = vpop.permute.xlu0 %1387  ;;  %v1386_v7 = vpop.permute.xlu1 %1385  ;;  %s11716_s30 = smov 80  }
 0x1e7   : > { %1771 = vrot.lane.b32.xlu1 %v8975_v24, %s11600_s29  ;;  %s11650_s29 = smov 64  }
 0x1e8   : > { %1800 = vrot.lane.b32.xlu0 %v9048_v38, %s11594_s20  ;;  %v9370_v18 = vpop.permute.xlu0 %1740  ;;  %v9372_v37 = vpop.permute.xlu1 %1738 }
 0x1eb   : > { %1810 = vrot.lane.b32.xlu1 %v9229_v30, %s11606_s24 }
 0x1ec   : > { %1834 = vrot.lane.b32.xlu0 %v1828_v49, %s11598_s2  ;;  %v9374_v43 = vpop.permute.xlu0 %1642  ;;  %v1549_v25 = vpop.permute.xlu1 %1548 }
 0x1f0   : > { %v9376_v24 = vpop.permute.xlu0 %1632  ;;  %v9380_v38 = vpop.permute.xlu1 %1658 }
 0x1f4   : > { %v9378_v33 = vpop.permute.xlu0 %1420  ;;  %v9384_v30 = vpop.permute.xlu1 %1796 }
 0x1f8   : > { %v9382_v62 = vpop.permute.xlu0 %1719  ;;  %v1419_v52 = vpop.permute.xlu1 %1418 }
 0x1fc   : > { %v1566_v28 = vpop.permute.xlu0 %1565  ;;  %v9386_v44 = vpop.permute.xlu1 %1634 }
 0x200   : > { %v9388_v50 = vpop.permute.xlu0 %1721  ;;  %v1568_v53 = vpop.permute.xlu1 %1567 }
 0x204   : > { %v9390_v55 = vpop.permute.xlu0 %1675  ;;  %v1377_v49 = vpop.permute.xlu1 %1376 }
 0x208   : > { %v1479_v4 = vpop.permute.xlu1 %1478  ;;  %v1375_v26 = vpop.permute.xlu0 %1374 }
 0x209   : > { %v1433_v35 = vsel %vm11605_vm1, %v1297_v46, %v1375_v26  ;;  %v1298_v46 = vmul.bf16 %v9006_v14, %v9289_v21 }
 0x20c   : > { %v1477_v1 = vpop.permute.xlu0 %1476 }
 0x20d   : > { %v9392_v34 = vpop.permute.xlu1 %1636 }
 0x210   : > { %v1551_v36 = vpop.permute.xlu0 %1550 }
 0x215   : > { %v1553_v0 = vpop.permute.xlu0 %1552 }
 0x219   : > { %v1730_v57 = vpop.permute.xlu0 %1729 }
 0x220   : > { %v1406_v8 = vpop.permute.xlu1 %1405 }
 0x224   : > { %v9398_v22 = vpop.permute.xlu1 %1731 }
 0x22a   : > { %v1380_v51 = vpop.permute.xlu1 %1379 }
 0x22b   : > { %v1439_v10 = vsel %vm11612_vm15, %v1433_v35, %v1380_v51  ;;  %v1436_v35 = vsel %vm11605_vm1, %v1298_v46, %v1377_v49 }
 0x22c   : > { %v1444_v29 = vsel %vm11604_vm6, %v1439_v10, %v1386_v7 }
 0x22d   : > { %v1449_v48 = vsel %vm1447_vm5, %v1444_v29, %v9325_v60  ;;  %v11638_v29 = vsel %vm9217_vm10, %v9150_v17, %v9223_v15  ;;  %v1408_v60 = vpop.permute.xlu0 %1407 }
 0x22e   : > { %v1454_v27 = vsel %vm1452_vm9, %v1449_v48, %v1400_v39 }
 0x22f   : > { %v1459_v31 = vsel %vm11611_vm11, %v1454_v27, %v1406_v8  ;;  %v1586_v8 = vsel %vm11605_vm1, %v9250_v6, %v1479_v4 }
 0x230   : > { %v1464_v26 = vsel %vm1462_vm4, %v1459_v31, %v1419_v52  ;;  %v1583_v52 = vsel %vm11605_vm1, %v9213_v32, %v1477_v1 }
 0x231   : > { %2129 = vmatmul.mubr.bf16.vlgmr.msra.gmra.mrb[0].mxu1 %v1464_v26  ;;  %v1382_v51 = vpop.permute.xlu1 %1381 }
 0x232   : > { %7155 = vmatprep.mubr.msk.bf16.mxu1 %vm11605_vm1, %v11638_v29  ;;  %v1441_v39 = vsel %vm11612_vm15, %v1436_v35, %v1382_v51 }
 0x233   : > { %v1446_v21 = vsel %vm11604_vm6, %v1441_v39, %v1388_v16 }
 0x234   : > { %v1451_v48 = vsel %vm1447_vm5, %v1446_v21, %v9318_v59 }
 0x235   : > { %v1484_v7 = vpop.permute.xlu1 %1483 }
 0x236   : > { %v1590_v49 = vsel %vm11612_vm15, %v1586_v8, %v1484_v7  ;;  %v1482_v10 = vpop.permute.xlu0 %1481 }
 0x237   : > { %v1594_v17 = vsel %vm11604_vm6, %v1590_v49, %v9352_v45  ;;  %v1588_v15 = vsel %vm11612_vm15, %v1583_v52, %v1482_v10 }
 0x238   : > { %v1598_v6 = vsel %vm1447_vm5, %v1594_v17, %v9336_v42  ;;  %v1592_v16 = vsel %vm11604_vm6, %v1588_v15, %v9356_v23  ;;  %v1456_v42 = vsel %vm1452_vm9, %v1451_v48, %v9344_v2 }
 0x239   : > { %v1602_v4 = vsel %vm1452_vm9, %v1598_v6, %v1549_v25  ;;  %v1596_v1 = vsel %vm1447_vm5, %v1592_v16, %v9327_v61  ;;  %v1770_v32 = vpop.permute.xlu1 %1769  ;;  %v1461_v51 = vsel %vm11611_vm11, %v1456_v42, %v1408_v60  ;;  %v1687_v60 = vsel %vm11605_vm1, %v9181_v5, %v9376_v24 }
 0x23a   : > { %v1606_v27 = vsel %vm11611_vm11, %v1602_v4, %v1553_v0  ;;  %v1600_v45 = vsel %vm1452_vm9, %v1596_v1, %v9363_v13  ;;  %v1639_v31 = vpop.permute.xlu0 %1638  ;;  %v1852_v5 = vsel %vm11605_vm1, %v9120_v47, %v9388_v50 }
 0x23b   : > { %v1604_v59 = vsel %vm11611_vm11, %v1600_v45, %v1551_v36  ;;  %v1610_v23 = vsel %vm1462_vm4, %v1606_v27, %v1568_v53  ;;  %v1849_v36 = vsel %vm11605_vm1, %v9103_v20, %v9382_v62  ;;  %v1467_v53 = vsel %vm1462_vm4, %v1461_v51, %v9378_v33 }
 0x23c   : > { %v1608_v46 = vsel %vm1462_vm4, %v1604_v59, %v1566_v28  ;;  %v1906_v39 = vshrl.u32 %v1610_v23, 16  ;;  %v1909_v13 = vshll.u32 %v1610_v23, 16  ;;  %v1856_v28 = vsel %vm11612_vm15, %v1849_v36, %v1730_v57 }
 0x23d   : > { %v1645_v25 = vpop.permute.xlu1 %1644  ;;  %v1891_v26 = vshrl.u32 %v1608_v46, 16  ;;  %v1894_v35 = vshll.u32 %v1608_v46, 16  ;;  %v1692_v20 = vsel %vm11612_vm15, %v1687_v60, %v9392_v34  ;;  %v1862_v62 = vsel %vm11604_vm6, %v1856_v28, %v9372_v37 }
 0x23e   : > { %v1807_v61 = vpop.permute.xlu0 %1806  ;;  %v1908_v52 = vrot.slane %v1906_v39, 3  ;;  %v1911_v49 = vrot.slane %v1909_v13, 4  ;;  %v1696_v24 = vsel %vm11604_vm6, %v1692_v20, %v9374_v43  ;;  %v1858_v34 = vsel %vm11612_vm15, %v1852_v5, %v9398_v22  ;;  %v11641_v20 = vld [vmem:[#allocation8_spill] sm:$0xff] }
 0x23f   : > { %v1893_v0 = vrot.slane %v1891_v26, 3  ;;  %v1896_v29 = vrot.slane %v1894_v35, 4  ;;  %v1868_v17 = vsel %vm1447_vm5, %v1862_v62, %v9339_v41  ;;  %v1864_v48 = vsel %vm11604_vm6, %v1858_v34, %v9370_v18 }
 0x240   : > { %v1912_v10 = vor.u32 %v1911_v49, %v1908_v52  ;;  %v1874_v47 = vsel %vm1452_vm9, %v1868_v17, %v9384_v30  ;;  %v1690_v22 = vsel %vm11605_vm1, %v9172_v54, %v9386_v44  ;;  %v1870_v50 = vsel %vm1447_vm5, %v1864_v48, %v1770_v32  ;;  %v11642_v17 = vld [vmem:[#allocation5_spill] sm:$0xff] }
 0x241   : > { %v1831_v8 = vpop.permute.xlu1 %1830  ;;  %v1897_v2 = vor.u32 %v1896_v29, %v1893_v0  ;;  %v1880_v41 = vsel %vm11611_vm11, %v1874_v47, %v1807_v61  ;;  %v1694_v6 = vsel %vm11612_vm15, %v1690_v22, %v1639_v31  ;;  %v11639_v0 = vld [vmem:[#allocation6_spill] sm:$0xff] }
 0x242   : > { %v1799_v21 = vpop.permute.xlu0 %1798  ;;  %v1698_v54 = vsel %vm11604_vm6, %v1694_v6, %v1645_v25  ;;  %v11640_v29 = vsel %vm9293_vm2, %v9253_v11, %v11639_v0  ;;  %v8169_v22 = vld [vmem:[%s11551_s7 + $0x40] sm:$0xff]   ;;  %v8172_v6 = vld [vmem:[%s11551_s7 + $0x8] sm:$0xff]  }
 0x243   : > { %v1984_v7 = vsel %vm9217_vm10, %v1467_v53, %v1897_v2  ;;  %v1913_v43 = vsel %vm11609_vm0, %v1897_v2, %v1912_v10  ;;  %v1876_v18 = vsel %vm1452_vm9, %v1870_v50, %v1799_v21  ;;  %v8170_v50 = vld [vmem:[%s11551_s7] sm:$0xff]   ;;  %7525 = vmatprep.subr.bf16.mxu1 %v8169_v22  ;;  %vm11667_vm0 = vcmask 1042432  }
 0x244   : > { %2137 = vmatmul.mubr.bf16.gmra.mrb[4].mxu1 %v1984_v7 }
 0x245   : > { %v1809_v57 = vpop.permute.xlu1 %1808  ;;  %7156 = vmatprep.mubr.msk.bf16.mxu1 %vm11605_vm1, %v9237_v40  ;;  %v1700_v40 = vsel %vm1447_vm5, %v1696_v24, %v9346_v9  ;;  %v1886_v9 = vsel %vm1462_vm4, %v1880_v41, %v1831_v8  ;;  %v8171_v41 = vld [vmem:[%s11551_s7 + $0x48] sm:$0xff]   ;;  %7526 = vmatpush3.bf16.msra.mxu1 %v8170_v50 }
 0x246   : > { %v1654_v33 = vpop.permute.xlu0 %1653  ;;  %v1704_v30 = vsel %vm1452_vm9, %v1700_v40, %v9380_v38  ;;  %v1882_v44 = vsel %vm11611_vm11, %v1876_v18, %v1809_v57  ;;  %v1938_v31 = vshll.u32 %v1886_v9, 16  ;;  %v1936_v13 = vshrl.u32 %v1886_v9, 16  ;;  %v11643_v40 = vld [vmem:[#allocation7_spill] sm:$0xff]  ;;  %7527 = vmatprep.subr.bf16.mxu1 %v8171_v41  ;;  %v8173_v9 = vld [vmem:[%s11551_s7 + $0x50] sm:$0xff]  }
 0x247   : > { %v1702_v32 = vsel %vm1447_vm5, %v1698_v54, %v1654_v33  ;;  %v8174_v18 = vld [vmem:[%s11551_s7 + $0x10] sm:$0xff]   ;;  %v9553_v54 = vld [vmem:[%s11550_s6] ss:$0 sm:$0xff] }
 0x248   : > { %v1940_v61 = vrot.slane %v1938_v31, 1 }
 0x249   : > { %v1833_v37 = vpop.permute.xlu1 %1832  ;;  %7528 = vmatpush3.bf16.msra.mxu1 %v8172_v6 }
 0x24a   : > { %v1661_v15 = vpop.permute.xlu0 %1660  ;;  %v1888_v27 = vsel %vm1462_vm4, %v1882_v44, %v1833_v37  ;;  %v1941_v28 = vor.u32 %v1940_v61, %v1936_v13  ;;  %v1976_v37 = vshrl.u32 %v11642_v17, 16  ;;  %7529 = vmatprep.subr.bf16.mxu1 %v8173_v9  ;;  %v8181_v9 = vld [vmem:[%s11551_s7 + $0x70] sm:$0xff]  }
 0x24b   : > { %v1706_v38 = vsel %vm1452_vm9, %v1702_v32, %v1661_v15  ;;  %v1942_v46 = vshll.u32 %v1888_v27, 16  ;;  %v1958_v5 = vshrl.u32 %v1888_v27, 16 }
 0x24c   : > { %2145 = vmatmul.mubr.bf16.gmra.mrb[8].mxu1 %v1913_v43  ;;  %v1978_v48 = vor.u32 %v1976_v37, %v11643_v40  ;;  %v8180_v40 = vld [vmem:[%s11551_s7 + $0x28] sm:$0xff]  }
 0x24d   : > { %v1665_v16 = vpop.permute.xlu1 %1664  ;;  %7157 = vmatprep.mubr.msk.bf16.mxu1 %vm11605_vm1, %v9226_v19  ;;  %v1944_v36 = vrot.slane %v1942_v46, 1  ;;  %7530 = vmatpush3.bf16.msra.mxu1 %v8174_v18  ;;  %v8182_v18 = vld [vmem:[%s11551_s7 + $0x30] sm:$0xff]  }
 0x24e   : > { %v1708_v4 = vsel %vm11611_vm11, %v1704_v30, %v1665_v16  ;;  %v1667_v1 = vpop.permute.xlu0 %1666  ;;  %v8175_v30 = vld [vmem:[%s11551_s7 + $0x58] sm:$0xff]  }
 0x24f   : > { %v1712_v45 = vsel %vm1462_vm4, %v1708_v4, %v9390_v55  ;;  %v1710_v19 = vsel %vm11611_vm11, %v1706_v38, %v1667_v1  ;;  %v1945_v7 = vsel %vm1554_vm14, %v1941_v28, %v1944_v36  ;;  %v8176_v16 = vld [vmem:[%s11551_s7 + $0x18] sm:$0xff]   ;;  %7531 = vmatprep.subr.bf16.mxu1 %v8175_v30 }
 0x250   : > { %v1928_v59 = vrot.slane %v1712_v45, 7 }
 0x251   : > { %v1678_v42 = vpop.permute.xlu1 %1677  ;;  %7532 = vmatpush3.bf16.msra.mxu1 %v8176_v16 }
 0x252   : > { %v1714_v23 = vsel %vm1462_vm4, %v1710_v19, %v1678_v42  ;;  %v1724_v25 = vpop.permute.xlu0 %1723  ;;  %v1989_v26 = vsel %vm11613_vm7, %v1912_v10, %v1928_v59  ;;  %v1960_v10 = vor.u32 %v1958_v5, %v1944_v36 }
 0x253   : > { %v1930_v35 = vrot.slane %v1714_v23, 7  ;;  %v1854_v51 = vsel %vm11605_vm1, %v9138_v63, %v1724_v25 }
 0x254   : > { %2153 = vmatmul.mubr.bf16.gmra.mrb[12].mxu1 %v1989_v26 }
 0x255   : > { %v1734_v55 = vpop.permute.xlu1 %1733  ;;  %7158 = vmatprep.mubr.msk.bf16.mxu1 %vm11605_vm1, %v11640_v29  ;;  %v1931_v39 = vsel %vm11613_vm7, %v1928_v59, %v1930_v35 }
 0x256   : > { %v1860_v8 = vsel %vm11612_vm15, %v1854_v51, %v1734_v55  ;;  %v1743_v2 = vpop.permute.xlu0 %1742  ;;  %v1995_v11 = vsel %vm9293_vm2, %v1931_v39, %v1945_v7 }
 0x257   : > { %v1866_v21 = vsel %vm11604_vm6, %v1860_v8, %v1743_v2  ;;  %v8177_v8 = vld [vmem:[%s11551_s7 + $0x60] sm:$0xff]   ;;  %vm11653_vm6 = vsmask.f32 2304 }
 0x258   : > { %v8178_v2 = vld [vmem:[%s11551_s7 + $0x20] sm:$0xff]   ;;  %7533 = vmatprep.subr.bf16.mxu1 %v8177_v8 }
 0x259   : > { %v1772_v53 = vpop.permute.xlu1 %1771  ;;  %7534 = vmatpush3.bf16.msra.mxu1 %v8178_v2 }
 0x25a   : > { %v1872_v63 = vsel %vm1447_vm5, %v1866_v21, %v1772_v53  ;;  %v1801_v60 = vpop.permute.xlu0 %1800 }
 0x25b   : > { %v1878_v52 = vsel %vm1452_vm9, %v1872_v63, %v1801_v60  ;;  %vm11647_vm9 = vsmask.f32 1280 }
 0x25c   : > { %2161 = vmatmul.mubr.bf16.gmra.mrb[16].mxu1 %v1995_v11 }
 0x25d   : > { %v1811_v49 = vpop.permute.xlu1 %1810  ;;  %7159 = vmatprep.mubr.msk.bf16.mxu1 %vm11605_vm1, %v11641_v20 }
 0x25e   : > { %v1884_v62 = vsel %vm11611_vm11, %v1878_v52, %v1811_v49  ;;  %v1835_v57 = vpop.permute.xlu0 %1834 }
 0x25f   : > { %v1890_v33 = vsel %vm1462_vm4, %v1884_v62, %v1835_v57  ;;  %vm11646_vm4 = vcmask 1046528  }
 0x260   : > { %v1961_v24 = vshll.u32 %v1890_v33, 16  ;;  %v1973_v47 = vshrl.u32 %v1890_v33, 16 }
 0x262   : > { %v1963_v34 = vrot.slane %v1961_v24, 1 }
 0x264   : > { %v1964_v15 = vsel %vm1554_vm14, %v1960_v10, %v1963_v34  ;;  %v1975_v43 = vor.u32 %v1973_v47, %v1963_v34 }
 0x265   : > { %2169 = vmatmul.mubr.bf16.gmra.mrb[20].mxu1 %v1964_v15  ;;  %v8179_v15 = vld [vmem:[%s11551_s7 + $0x68] sm:$0xff]  }
 0x266   : > { %7160 = vmatprep.mubr.msk.bf16.mxu1 %vm11605_vm1, %v1978_v48  ;;  %7535 = vmatprep.subr.bf16.mxu1 %v8179_v15  ;;  %v9626_v15 = vld [vmem:[%s11551_s7 + $0x80] sm:$0xff]   ;;  %vm11654_vm1 = vmmov %vm11653_vm6 }
 0x267   : > { %7536 = vmatpush3.bf16.msra.mxu1 %v8180_v40 }
 0x268   : > { %7537 = vmatprep.subr.bf16.mxu1 %v8181_v9 }
 0x26b   : > { %7538 = vmatpush3.bf16.msra.mxu1 %v8182_v18 }
 0x26d   : > { %2177 = vmatmul.mubr.bf16.gmra.mrb[24].mxu1 %v1975_v43 }
 0x304   : > { %v2130_v44 = vpop.f32.mrb[0].mxu1 }
 0x305   : > { %v2131_v4 = vadd.f32 %v9553_v54, %v2130_v44  ;;  %v2132_v1 = vpop.f32.mrb[1].mxu1 }
 0x306   : > { %v2133_v32 = vpop.f32.mrb[2].mxu1 }
 0x307   : > { %v2134_v27 = vadd.f32 %v9553_v54, %v2133_v32  ;;  %v2135_v45 = vpop.f32.mrb[3].mxu1  ;;  %v2184_v31 = vmax.f32 %v2131_v4, 0.0 }
 0x309   : > { %v2185_v38 = vmax.f32 %v2134_v27, 0.0 }
 0x30b   : > { %v9557_v59 = vpack.c.bf16 %v2185_v38, %v2184_v31 }
 0x317   : > { %v2138_v19 = vpop.f32.mrb[4].mxu1 }
 0x318   : > { %v2139_v42 = vadd.f32 %v9553_v54, %v2138_v19  ;;  %v2140_v46 = vpop.f32.mrb[5].mxu1 }
 0x319   : > { %v2141_v23 = vpop.f32.mrb[6].mxu1 }
 0x31a   : > { %v2142_v25 = vadd.f32 %v9553_v54, %v2141_v23  ;;  %v2143_v26 = vpop.f32.mrb[7].mxu1  ;;  %v2186_v35 = vmax.f32 %v2139_v42, 0.0 }
 0x31c   : > { %v2187_v61 = vmax.f32 %v2142_v25, 0.0 }
 0x31e   : > { %v9561_v51 = vpack.c.bf16 %v2187_v61, %v2186_v35 }
 0x31f   : > { %v2146_v55 = vpop.f32.mrb[8].mxu1 }
 0x320   : > { %v2147_v0 = vadd.f32 %v9553_v54, %v2146_v55  ;;  %v2148_v29 = vpop.f32.mrb[9].mxu1  ;;  %v2291_v28 = vshrl.u32 %v9561_v51, 16  ;;  %v2294_v21 = vshll.u32 %v9561_v51, 16  ;;  %v2253_v24 = vrot.slane %v9561_v51, 4 }
 0x321   : > { %v2149_v39 = vpop.f32.mrb[10].mxu1 }
 0x322   : > { %v2150_v13 = vadd.f32 %v9553_v54, %v2149_v39  ;;  %v2151_v36 = vpop.f32.mrb[11].mxu1  ;;  %v2188_v53 = vmax.f32 %v2147_v0, 0.0  ;;  %v2293_v11 = vrot.slane %v2291_v28, 4  ;;  %v2296_v52 = vrot.slane %v2294_v21, 5 }
 0x324   : > { %v2189_v63 = vmax.f32 %v2150_v13, 0.0  ;;  %v2297_v47 = vor.u32 %v2296_v52, %v2293_v11  ;;  %v8184_v11 = vld [vmem:[%s11551_s7 + $0x38] sm:$0xff]  }
 0x326   : > { %v2199_v60 = vpack.c.bf16 %v2189_v63, %v2188_v53 }
 0x327   : > { %v2154_v7 = vpop.f32.mrb[12].mxu1 }
 0x328   : > { %v2254_v49 = vrot.slane %v2199_v60, 4  ;;  %v2299_v20 = vshrl.u32 %v2199_v60, 16  ;;  %v2302_v62 = vshll.u32 %v2199_v60, 16  ;;  %v2155_v57 = vadd.f32 %v9553_v54, %v2154_v7  ;;  %v2156_v33 = vpop.f32.mrb[13].mxu1  ;;  %v8183_v7 = vld [vmem:[%s11551_s7 + $0x78] sm:$0xff]  }
 0x329   : > { %v2157_v5 = vpop.f32.mrb[14].mxu1  ;;  %7539 = vmatprep.subr.bf16.mxu1 %v8183_v7 }
 0x32a   : > { %v2301_v10 = vrot.slane %v2299_v20, 4  ;;  %v2304_v34 = vrot.slane %v2302_v62, 5  ;;  %v2158_v17 = vadd.f32 %v9553_v54, %v2157_v5  ;;  %v2159_v37 = vpop.f32.mrb[15].mxu1  ;;  %v2255_v48 = vsel %vm1412_vm13, %v2253_v24, %v2254_v49  ;;  %7540 = vmatpush3.bf16.msra.mxu1 %v8184_v11 }
 0x32b   : > { %v2190_v43 = vmax.f32 %v2155_v57, 0.0  ;;  %v2260_v50 = vsel %vm8994_vm8, 0, %v2255_v48  ;;  %7881 = vmatprep.subr.bf16.mxu1 %v9626_v15 }
 0x32c   : > { %v2191_v22 = vmax.f32 %v2158_v17, 0.0  ;;  %v2305_v41 = vor.u32 %v2304_v34, %v2301_v10  ;;  %v2261_v6 = vmul.bf16 %v8990_v56, %v2260_v50 }
 0x32e   : > { %v2200_v30 = vpack.c.bf16 %v2191_v22, %v2190_v43  ;;  %v2306_v16 = vsel %vm11610_vm3, %v2297_v47, %v2305_v41  ;;  %2286 = vrot.lane.b32.xlu0 %v2261_v6, %s11606_s24 }
 0x32f   : > { %v2162_v44 = vpop.f32.mrb[16].mxu1  ;;  %2311 = vrot.lane.b32.xlu1 %v2306_v16, %s11644_s27 }
 0x330   : > { %v2163_v4 = vadd.f32 %v9553_v54, %v2162_v44  ;;  %v2164_v1 = vpop.f32.mrb[17].mxu1  ;;  %v2232_v32 = vshrl.u32 %v2200_v30, 16  ;;  %v2235_v27 = vshll.u32 %v2200_v30, 16  ;;  %v2256_v31 = vrot.slane %v2200_v30, 4 }
 0x331   : > { %v2165_v45 = vpop.f32.mrb[18].mxu1  ;;  %v2321_v2 = vrot.slane %v2200_v30, 1 }
 0x332   : > { %v2166_v38 = vadd.f32 %v9553_v54, %v2165_v45  ;;  %v2167_v19 = vpop.f32.mrb[19].mxu1  ;;  %v2234_v42 = vrot.slane %v2232_v32, 6  ;;  %v2237_v46 = vrot.slane %v2235_v27, 7  ;;  %v2307_v23 = vrot.slane %v2232_v32, 4 }
 0x333   : > { %v2308_v25 = vrot.slane %v2235_v27, 5  ;;  %v9598_v26 = vsel %vm1412_vm13, %v2254_v49, %v2256_v31  ;;  %v2192_v35 = vmax.f32 %v2163_v4, 0.0 }
 0x334   : > { %v2193_v61 = vmax.f32 %v2166_v38, 0.0  ;;  %v2238_v55 = vor.u32 %v2237_v46, %v2234_v42 }
 0x335   : > { %v2309_v0 = vor.u32 %v2308_v25, %v2307_v23 }
 0x336   : > { %v9600_v29 = vpack.c.bf16 %v2193_v61, %v2192_v35  ;;  %v2249_v13 = vsel %vm9081_vm12, 0, %v2238_v55 }
 0x337   : > { %2275 = vrot.lane.b32.xlu0 %v2249_v13, %s11644_s27  ;;  %v9606_v36 = vsel %vm11610_vm3, %v2305_v41, %v2309_v0 }
 0x338   : > { %v2170_v8 = vpop.f32.mrb[20].mxu1  ;;  %v2322_v28 = vrot.slane %v9600_v29, 1  ;;  %v2240_v21 = vshrl.u32 %v9600_v29, 16  ;;  %v2243_v60 = vshll.u32 %v9600_v29, 16  ;;  %v2206_v43 = vrot.slane %v9600_v29, 3 }
 0x339   : > { %v2171_v53 = vadd.f32 %v9553_v54, %v2170_v8  ;;  %v2172_v63 = vpop.f32.mrb[21].mxu1  ;;  %v2264_v22 = vrot.slane %v9600_v29, 5 }
 0x33a   : > { %v2173_v52 = vpop.f32.mrb[22].mxu1  ;;  %v2323_v49 = vsel %vm11646_vm4, %v2321_v2, %v2322_v28  ;;  %v2242_v20 = vrot.slane %v2240_v21, 6  ;;  %v2328_v62 = vrot.slane %v2240_v21, 5  ;;  %v2245_v5 = vrot.slane %v2243_v60, 7 }
 0x33b   : > { %v2174_v57 = vadd.f32 %v9553_v54, %v2173_v52  ;;  %v2175_v33 = vpop.f32.mrb[23].mxu1  ;;  %2324 = vrot.lane.b32.xlu1 %v2323_v49, %s11606_s24  ;;  %v2329_v24 = vrot.slane %v2243_v60, 6  ;;  %v2194_v10 = vmax.f32 %v2171_v53, 0.0  ;;  %vm11648_vm4 = vcmask 1044480  }
 0x33c   : > { %v2246_v17 = vor.u32 %v2245_v5, %v2242_v20  ;;  %v2262_v49 = vmul.bf16 %v9006_v14, %v9598_v26 }
 0x33d   : > { %v2195_v34 = vmax.f32 %v2174_v57, 0.0  ;;  %v2330_v37 = vor.u32 %v2329_v24, %v2328_v62 }
 0x33e   : > { %v2247_v48 = vsel %vm11647_vm9, %v2238_v55, %v2246_v17  ;;  %vm11649_vm9 = vcmask 1042432  }
 0x33f   : > { %v2202_v40 = vpack.c.bf16 %v2195_v34, %v2194_v10 }
 0x340   : > { %v2178_v47 = vpop.f32.mrb[24].mxu1 }
 0x341   : > { %v2179_v50 = vadd.f32 %v9553_v54, %v2178_v47  ;;  %v2180_v41 = vpop.f32.mrb[25].mxu1  ;;  %v2207_v6 = vrot.slane %v2202_v40, 3  ;;  %v2265_v9 = vrot.slane %v2202_v40, 5  ;;  %v2332_v18 = vshrl.u32 %v2202_v40, 16  ;;  %v8186_v47 = vld [vmem:[%s11551_s7 + $0x88] sm:$0xff]  }
 0x342   : > { %v2181_v30 = vpop.f32.mrb[26].mxu1  ;;  %v2335_v16 = vshll.u32 %v2202_v40, 16 }
 0x343   : > { %v2196_v44 = vmax.f32 %v2179_v50, 0.0  ;;  %v2182_v4 = vpop.f32.mrb[27].mxu1  ;;  %v2208_v1 = vsel %vm11648_vm4, %v2206_v43, %v2207_v6  ;;  %v2266_v32 = vsel %vm11649_vm9, %v2264_v22, %v2265_v9  ;;  %v2219_v27 = vshrl.u32 %v2207_v6, 16  ;;  %vm11651_vm4 = vmmov %vm11649_vm9 }
 0x344   : > { %v2210_v45 = vsel %vm9081_vm12, 0, %v2208_v1  ;;  %v2271_v31 = vsel %vm8994_vm8, 0, %v2266_v32  ;;  %v2334_v54 = vrot.slane %v2332_v18, 5  ;;  %v2222_v23 = vshll.u32 %v2207_v6, 16  ;;  %v8189_v4 = vld [vmem:[%s11553_s9 + $0x1c8] sm:$0xff]   ;;  %v8191_v32 = vld [vmem:[%s11553_s9 + $0x1d0] sm:$0xff]  }
 0x345   : > { %v2203_v38 = vpack.c.bf16 %v2196_v44, %v2196_v44  ;;  %v2212_v19 = vshrl.u32 %v2210_v45, 16  ;;  %2280 = vrot.lane.b32.xlu0 %v2210_v45, %s11650_s29  ;;  %v2272_v42 = vmul.bf16 %v8990_v56, %v2271_v31  ;;  %v2221_v46 = vrot.slane %v2219_v27, 7  ;;  %v8190_v1 = vld [vmem:[%s11553_s9 + $0x188] sm:$0xff]   ;;  %v8192_v27 = vld [vmem:[%s11553_s9 + $0x190] sm:$0xff]   ;;  %v8195_v31 = vld [vmem:[%s11553_s9 + $0x40] sm:$0xff]  }
 0x346   : > { %v2337_v25 = vrot.slane %v2335_v16, 6  ;;  %vm11652_vm9 = vsmask.f32 256  ;;  %v2215_v20 = vshll.u32 %v2210_v45, 16  ;;  %v8193_v45 = vld [vmem:[%s11553_s9 + $0x1d8] sm:$0xff]  }
 0x347   : > { %v2267_v35 = vrot.slane %v2203_v38, 5  ;;  %v2341_v61 = vshrl.u32 %v2203_v38, 16  ;;  %v2344_v55 = vshll.u32 %v2203_v38, 16  ;;  %v2214_v0 = vrot.slane %v2212_v19, 7  ;;  %2317 = vrot.lane.b32.xlu1 %v2272_v42, %s11650_s29  ;;  %v8197_v38 = vld [vmem:[%s11553_s9 + $0x48] sm:$0xff]   ;;  %v8194_v19 = vld [vmem:[%s11553_s9 + $0x198] sm:$0xff]  }
 0x348   : > { %v2224_v13 = vor.u32 %v2222_v23, %v2221_v46  ;;  %v2338_v8 = vor.u32 %v2337_v25, %v2334_v54  ;;  %v8196_v54 = vld [vmem:[%s11553_s9] sm:$0xff]   ;;  %v8198_v42 = vld [vmem:[%s11553_s9 + $0x8] sm:$0xff]   ;;  %v8200_v23 = vld [vmem:[%s11553_s9 + $0x50] sm:$0xff]  }
 0x349   : > { %v2343_v2 = vrot.slane %v2341_v61, 5  ;;  %v2346_v21 = vrot.slane %v2344_v55, 6  ;;  %2277 = vrot.lane.b32.xlu0 %v2247_v48, %s11644_s27  ;;  %v2268_v53 = vsel %vm11651_vm4, %v2265_v9, %v2267_v35  ;;  %v2217_v62 = vor.u32 %v2215_v20, %v2214_v0  ;;  %v8199_v46 = vld [vmem:[%s11553_s9 + $0x1e0] sm:$0xff]   ;;  %v8202_v35 = vld [vmem:[%s11553_s9 + $0x10] sm:$0xff]   ;;  %v8203_v61 = vld [vmem:[%s11553_s9 + $0x58] sm:$0xff]  }
 0x34a   : > { %v2225_v63 = vsel %vm11652_vm9, %v2214_v0, %v2224_v13  ;;  %v2339_v60 = vsel %vm11653_vm6, %v2330_v37, %v2338_v8  ;;  %v2273_v11 = vmul.bf16 %v9006_v14, %v2268_v53  ;;  %v8201_v25 = vld [vmem:[%s11553_s9 + $0x1a0] sm:$0xff]   ;;  %v8204_v55 = vld [vmem:[%s11553_s9 + $0x18] sm:$0xff]   ;;  %v8210_v53 = vld [vmem:[%s11553_s9 + $0x30] sm:$0xff]   ;;  %vm11660_vm6 = vsmask.f32 1280 }
 0x34b   : > { %v2347_v7 = vor.u32 %v2346_v21, %v2343_v2  ;;  %2313 = vrot.lane.b32.xlu1 %v9606_v36, %s11644_s27  ;;  %v2228_v33 = vsel %vm8994_vm8, 0, %v2217_v62  ;;  %v2230_v50 = vmul.bf16 %v9006_v14, %v2225_v63  ;;  %v8187_v14 = vld [vmem:[%s11553_s9 + $0x1c0] sm:$0xff]   ;;  %v8208_v2 = vld [vmem:[%s11553_s9 + $0x28] sm:$0xff]   ;;  %v8209_v21 = vld [vmem:[%s11553_s9 + $0x70] sm:$0xff]   ;;  %vm11661_vm4 = vcmask 1041408  }
 0x34c   : > { %v2229_v10 = vmul.bf16 %v8990_v56, %v2228_v33  ;;  %7623 = vmatprep.subr.bf16.mxu0 %v8187_v14  ;;  %v8205_v0 = vld [vmem:[%s11553_s9 + $0x60] sm:$0xff]   ;;  %v8211_v63 = vld [vmem:[%s11553_s9 + $0x78] sm:$0xff]   ;;  %vm10541_vm9 = vmand %vm11661_vm4, %vm11660_vm6 }
 0x34d   : > { %2282 = vrot.lane.b32.xlu0 %v2207_v6, %s11650_s29  ;;  %v2348_v52 = vsel %vm11654_vm1, %v2338_v8, %v2347_v7  ;;  %v8206_v13 = vld [vmem:[%s11553_s9 + $0x20] sm:$0xff]   ;;  %v8207_v8 = vld [vmem:[%s11553_s9 + $0x68] sm:$0xff]   ;;  %vm11657_vm1 = vmmov 0   ;;  %vm11664_vm6 = vmmov %vm11661_vm4 }
 0x34e   : > { %vm10557_vm4 = vmand %vm1412_vm13, %vm11610_vm3  ;;  %vm11669_vm3 = vsmask.f32 6400 }
 0x34f   : > { %2319 = vrot.lane.b32.xlu1 %v2273_v11, %s11650_s29 }
 0x351   : > { %2288 = vrot.lane.b32.xlu0 %v2262_v49, %s11606_s24 }
 0x353   : > { %2326 = vrot.lane.b32.xlu1 %v2322_v28, %s11606_s24  ;;  %s11699_s24 = smov 16  }
 0x3a0   : > { %v2287_v36 = vpop.permute.xlu0 %2286 }
 0x3a1   : > { %v2312_v57 = vpop.permute.xlu1 %2311 }
 0x3a2   : > { %v2367_v17 = vsel %vm11612_vm15, %v9557_v59, %v2312_v57 }
 0x3a9   : > { %v2276_v5 = vpop.permute.xlu0 %2275 }
 0x3aa   : > { %v2351_v26 = vsel %vm11612_vm15, %v2229_v10, %v2276_v5  ;;  %v7161_v10 = vld [vmem:[%s11552_s8] ss:$0 sm:$0xff] }
 0x3ad   : > { %v2325_v24 = vpop.permute.xlu1 %2324 }
 0x3b7   : > { %v2281_v34 = vpop.permute.xlu0 %2280 }
 0x3b8   : > { %v2356_v29 = vsel %vm1447_vm5, %v2351_v26, %v2281_v34  ;;  %v8212_v26 = vld [vmem:[%s11553_s9 + $0x38] sm:$0xff]  }
 0x3b9   : > { %v2318_v28 = vpop.permute.xlu1 %2317  ;;  %v2360_v56 = vsel %vm11611_vm11, %v2356_v29, %v2287_v36 }
 0x3ba   : > { %v2371_v37 = vsel %vm1447_vm5, %v2367_v17, %v2318_v28  ;;  %v8213_v28 = vld [vmem:[%s11553_s9 + $0xc0] sm:$0xff]  }
 0x3bb   : > { %v2278_v40 = vpop.permute.xlu0 %2277  ;;  %v2375_v48 = vsel %vm11611_vm11, %v2371_v37, %v2325_v24  ;;  %v8214_v37 = vld [vmem:[%s11553_s9 + $0x1e8] sm:$0xff]  }
 0x3bc   : > { %2569 = vmatprep.mubr.bf16.mxu1 %v2375_v48  ;;  %v2354_v9 = vsel %vm11612_vm15, %v2230_v50, %v2278_v40 }
 0x3bd   : > { %v2314_v43 = vpop.permute.xlu1 %2313  ;;  %2570 = vmatmul.mubr.bf16.vlgmr.msra.gmra.mrb[28].mxu1 %v2360_v56 }
 0x3be   : > { %7882 = vmatpush3.bf16.msra.mxu1 %v9626_v15  ;;  %v2369_v41 = vsel %vm11612_vm15, %v9561_v51, %v2314_v43  ;;  %v8188_v51 = vld [vmem:[%s11553_s9 + $0x180] sm:$0xff]  }
 0x3bf   : > { %v2283_v59 = vpop.permute.xlu0 %2282  ;;  %7883 = vmatprep.subr.bf16.mxu1 %v8186_v47  ;;  %7624 = vmatpush3.bf16.msra.mxu0 %v8188_v51  ;;  %v8220_v51 = vld [vmem:[%s11553_s9 + $0x1b0] sm:$0xff]  }
 0x3c0   : > { %v2358_v16 = vsel %vm1447_vm5, %v2354_v9, %v2283_v59  ;;  %7625 = vmatprep.subr.bf16.mxu0 %v8189_v4  ;;  %v8217_v9 = vld [vmem:[%s11553_s9 + $0x1f0] sm:$0xff]   ;;  %v8221_v4 = vld [vmem:[%s11553_s9 + $0x1f8] sm:$0xff]  }
 0x3c1   : > { %v2320_v22 = vpop.permute.xlu1 %2319 }
 0x3c2   : > { %7884 = vmatpush3.bf16.msra.mxu1 %v8186_v47  ;;  %v2373_v18 = vsel %vm1447_vm5, %v2369_v41, %v2320_v22 }
 0x3c3   : > { %v2289_v6 = vpop.permute.xlu0 %2288  ;;  %7626 = vmatpush3.bf16.msra.mxu0 %v8190_v1  ;;  %7557 = vmatprep.subr.bf16.mxu1 %v8195_v31 }
 0x3c4   : > { %v2363_v15 = vsel %vm11611_vm11, %v2358_v16, %v2289_v6  ;;  %7627 = vmatprep.subr.bf16.mxu0 %v8191_v32  ;;  %v8216_v6 = vld [vmem:[%s11553_s9 + $0x1a8] sm:$0xff]  }
 0x3c5   : > { %v2327_v30 = vpop.permute.xlu1 %2326 }
 0x3c6   : > { %v2378_v44 = vsel %vm11611_vm11, %v2373_v18, %v2327_v30  ;;  %vm11670_vm11 = vcmask 1046528  }
 0x3c7   : > { %2577 = vmatprep.mubr.bf16.mxu1 %v2378_v44  ;;  %7628 = vmatpush3.bf16.msra.mxu0 %v8192_v27  ;;  %v8224_v27 = vld [vmem:[%s11553_s9 + $0x1b8] sm:$0xff]  }
 0x3c8   : > { %2578 = vmatmul.mubr.bf16.gmra.mrb[32].mxu1 %v2363_v15  ;;  %7629 = vmatprep.subr.bf16.mxu0 %v8193_v45  ;;  %v8225_v45 = vld [vmem:[%s11553_s9 + $0x2c0] sm:$0xff]  }
 0x3c9   : > { %7885 = vmatprep.mubr.msk.bf16.mxu1 %vm11612_vm15, %v2339_v60 }
 0x3cb   : > { %7630 = vmatpush3.bf16.msra.mxu0 %v8194_v19 }
 0x3cc   : > { %7631 = vmatprep.subr.bf16.mxu0 %v8199_v46 }
 0x3cf   : > { %7632 = vmatpush3.bf16.msra.mxu0 %v8201_v25 }
 0x3d0   : > { %7886 = vmatmul.mubr.msk.bf16.vlgmr.msra.gmra.mrb[36].mxu1 %vm11612_vm15, %v2348_v52  ;;  %7633 = vmatprep.subr.bf16.mxu0 %v8214_v37  ;;  %vm10582_vm15 = vmand %vm11670_vm11, %vm11669_vm3 }
 0x3d1   : > { %7558 = vmatpush3.bf16.msra.mxu1 %v8196_v54 }
 0x3d2   : > { %7559 = vmatprep.subr.bf16.mxu1 %v8197_v38 }
 0x3d3   : > { %7634 = vmatpush3.bf16.msra.mxu0 %v8216_v6 }
 0x3d4   : > { %7635 = vmatprep.subr.bf16.mxu0 %v8217_v9  ;;  %v8237_v9 = vld [vmem:[%s11553_s9 + $0xf0] sm:$0xff]  }
 0x3d5   : > { %7560 = vmatpush3.bf16.msra.mxu1 %v8198_v42 }
 0x3d6   : > { %7561 = vmatprep.subr.bf16.mxu1 %v8200_v23 }
 0x3d7   : > { %7636 = vmatpush3.bf16.msra.mxu0 %v8220_v51  ;;  %v8242_v51 = vld [vmem:[%s11553_s9 + $0x2e0] sm:$0xff]  }
 0x3d8   : > { %7637 = vmatprep.subr.bf16.mxu0 %v8221_v4  ;;  %v8243_v4 = vld [vmem:[%s11553_s9 + $0xb8] sm:$0xff]  }
 0x3d9   : > { %7562 = vmatpush3.bf16.msra.mxu1 %v8202_v35 }
 0x3da   : > { %7563 = vmatprep.subr.bf16.mxu1 %v8203_v61 }
 0x3db   : > { %7638 = vmatpush3.bf16.msra.mxu0 %v8224_v27  ;;  %v8246_v27 = vld [vmem:[%s11553_s9 + $0x2e8] sm:$0xff]  }
 0x3dc   : > { %7667 = vmatprep.subr.bf16.mxu0 %v8225_v45 }
 0x3dd   : > { %7564 = vmatpush3.bf16.msra.mxu1 %v8204_v55 }
 0x3de   : > { %7565 = vmatprep.subr.bf16.mxu1 %v8205_v0 }
 0x3e1   : > { %7566 = vmatpush3.bf16.msra.mxu1 %v8206_v13 }
 0x3e2   : > { %7567 = vmatprep.subr.bf16.mxu1 %v8207_v8  ;;  %v8215_v8 = vld [vmem:[%s11553_s9 + $0x80] sm:$0xff]  }
 0x3e5   : > { %7568 = vmatpush3.bf16.msra.mxu1 %v8208_v2 }
 0x3e6   : > { %7569 = vmatprep.subr.bf16.mxu1 %v8209_v21  ;;  %v8218_v21 = vld [vmem:[%s11553_s9 + $0xc8] sm:$0xff]  }
 0x3e9   : > { %7570 = vmatpush3.bf16.msra.mxu1 %v8210_v53 }
 0x3ea   : > { %7571 = vmatprep.subr.bf16.mxu1 %v8211_v63 }
 0x3ed   : > { %7572 = vmatpush3.bf16.msra.mxu1 %v8212_v26  ;;  %v8228_v26 = vld [vmem:[%s11553_s9 + $0x280] sm:$0xff]  }
 0x3ee   : > { %7579 = vmatprep.subr.bf16.mxu1 %v8213_v28  ;;  %v8230_v28 = vld [vmem:[%s11553_s9 + $0x2c8] sm:$0xff]  }
 0x490   : > { %v7541_v60 = vpop.f32.mrb[28].mxu1 }
 0x491   : > { %v7542_v7 = vpop.f32.mrb[29].mxu1 }
 0x492   : > { %v7543_v11 = vadd.f32 %v7542_v7, %v7541_v60  ;;  %v7544_v52 = vpop.f32.mrb[30].mxu1 }
 0x493   : > { %v7545_v49 = vpop.f32.mrb[31].mxu1 }
 0x494   : > { %v7546_v20 = vadd.f32 %v7545_v49, %v7544_v52  ;;  %v2572_v29 = vadd.f32 %v7543_v11, %v7161_v10  ;;  %v8219_v11 = vld [vmem:[%s11553_s9 + $0x88] sm:$0xff]   ;;  %v8222_v49 = vld [vmem:[%s11553_s9 + $0xd0] sm:$0xff]  }
 0x496   : > { %v2575_v59 = vadd.f32 %v7546_v20, %v7161_v10 }
 0x49b   : > { %v7547_v62 = vpop.f32.mrb[32].mxu1 }
 0x49c   : > { %v7548_v36 = vpop.f32.mrb[33].mxu1 }
 0x49d   : > { %v7549_v57 = vadd.f32 %v7548_v36, %v7547_v62  ;;  %v7550_v33 = vpop.f32.mrb[34].mxu1  ;;  %v8223_v36 = vld [vmem:[%s11553_s9 + $0x90] sm:$0xff]  }
 0x49e   : > { %v7551_v5 = vpop.f32.mrb[35].mxu1 }
 0x49f   : > { %v7552_v24 = vadd.f32 %v7551_v5, %v7550_v33  ;;  %v2580_v34 = vadd.f32 %v7549_v57, %v7161_v10  ;;  %v8226_v57 = vld [vmem:[%s11553_s9 + $0xd8] sm:$0xff]  }
 0x4a1   : > { %v2583_v47 = vadd.f32 %v7552_v24, %v7161_v10 }
 0x4a3   : > { %v7887_v17 = vpop.f32.mrb[36].mxu1 }
 0x4a4   : > { %v2629_v40 = vadd.f32 %v7887_v17, %v2580_v34  ;;  %v2620_v48 = vpop.f32.mrb[37].mxu1  ;;  %v8227_v34 = vld [vmem:[%s11553_s9 + $0x98] sm:$0xff]  }
 0x4a5   : > { %v2621_v56 = vadd.f32 %v2620_v48, %v2572_v29  ;;  %v7888_v43 = vpop.f32.mrb[38].mxu1  ;;  %v8229_v29 = vld [vmem:[%s11553_s9 + $0xe0] sm:$0xff]  }
 0x4a6   : > { %v2632_v22 = vadd.f32 %v7888_v43, %v2583_v47  ;;  %v2623_v50 = vpop.f32.mrb[39].mxu1  ;;  %v2637_v18 = vmax.f32 %v2629_v40, 0.0  ;;  %v8231_v48 = vld [vmem:[%s11553_s9 + $0xa0] sm:$0xff]   ;;  %v8232_v47 = vld [vmem:[%s11553_s9 + $0x288] sm:$0xff]   ;;  %v8234_v43 = vld [vmem:[%s11553_s9 + $0x2d0] sm:$0xff]  }
 0x4a7   : > { %v2624_v41 = vadd.f32 %v2623_v50, %v2575_v59  ;;  %v2635_v16 = vmax.f32 %v2621_v56, 0.0  ;;  %v8233_v56 = vld [vmem:[%s11553_s9 + $0xe8] sm:$0xff]  }
 0x4a8   : > { %v2638_v30 = vmax.f32 %v2632_v22, 0.0  ;;  %v8235_v50 = vld [vmem:[%s11553_s9 + $0xa8] sm:$0xff]  }
 0x4a9   : > { %v2636_v44 = vmax.f32 %v2624_v41, 0.0  ;;  %v8236_v41 = vld [vmem:[%s11553_s9 + $0x290] sm:$0xff]  }
 0x4aa   : > { %v9775_v15 = vpack.c.bf16 %v2638_v30, %v2637_v18  ;;  %v8238_v18 = vld [vmem:[%s11553_s9 + $0x2d8] sm:$0xff]   ;;  %v8239_v30 = vld [vmem:[%s11553_s9 + $0xb0] sm:$0xff]  }
 0x4ab   : > { %v9777_v14 = vpack.c.bf16 %v2636_v44, %v2635_v16  ;;  %v8240_v16 = vld [vmem:[%s11553_s9 + $0x298] sm:$0xff]  }
 0x4ac   : > { %v2707_v23 = vshrl.u32 %v9775_v15, 16  ;;  %v2720_v59 = vrot.slane %v9775_v15, 3  ;;  %v8241_v44 = vld [vmem:[%s11553_s9 + $0xf8] sm:$0xff]  }
 0x4ad   : > { %v2642_v1 = vshrl.u32 %v9777_v14, 16  ;;  %v2647_v0 = vrot.slane %v9777_v14, 1  ;;  %v2655_v60 = vrot.slane %v9777_v14, 3  ;;  %v2671_v5 = vrot.slane %v9777_v14, 7 }
 0x4ae   : > { %v2713_v25 = vrot.slane %v2707_v23, 1  ;;  %v2717_v35 = vrot.slane %v2707_v23, 2  ;;  %v2721_v61 = vrot.slane %v2707_v23, 3  ;;  %v2667_v24 = vrot.slane %v9777_v14, 6 }
 0x4af   : > { %2644 = vrot.lane.b32.xlu0 %v2642_v1, %s11650_s29  ;;  %v2648_v32 = vrot.slane %v2642_v1, 1  ;;  %v2652_v31 = vrot.slane %v2642_v1, 2  ;;  %v2656_v54 = vrot.slane %v2642_v1, 3  ;;  %v2660_v38 = vrot.slane %v2642_v1, 4 }
 0x4b0   : > { %v2664_v19 = vrot.slane %v2642_v1, 5  ;;  %v2668_v42 = vrot.slane %v2642_v1, 6  ;;  %v2672_v46 = vrot.slane %v2642_v1, 7  ;;  %v8244_v1 = vld [vmem:[%s11553_s9 + $0x2a0] sm:$0xff]   ;;  %v2651_v45 = vrot.slane %v9777_v14, 2 }
 0x4b1   : > { %2649 = vrot.lane.b32.xlu1 %v2648_v32, %s11650_s29  ;;  %v8245_v32 = vld [vmem:[%s11553_s9 + $0x140] sm:$0xff]  }
 0x4b3   : > { %2653 = vrot.lane.b32.xlu0 %v2652_v31, %s11650_s29  ;;  %v8247_v31 = vld [vmem:[%s11553_s9 + $0x100] sm:$0xff]  }
 0x4b5   : > { %2657 = vrot.lane.b32.xlu1 %v2656_v54, %s11650_s29  ;;  %v2663_v54 = vrot.slane %v9777_v14, 5 }
 0x4b7   : > { %2661 = vrot.lane.b32.xlu0 %v2660_v38, %s11650_s29  ;;  %v8248_v38 = vld [vmem:[%s11553_s9 + $0x2a8] sm:$0xff]  }
 0x4b9   : > { %2665 = vrot.lane.b32.xlu1 %v2664_v19, %s11650_s29  ;;  %v8249_v19 = vld [vmem:[%s11553_s9 + $0x148] sm:$0xff]  }
 0x4bb   : > { %2669 = vrot.lane.b32.xlu0 %v2668_v42, %s11650_s29 }
 0x4bd   : > { %2673 = vrot.lane.b32.xlu1 %v2672_v46, %s11650_s29  ;;  %v8250_v46 = vld [vmem:[%s11553_s9 + $0x2f0] sm:$0xff]  }
 0x4bf   : > { %2709 = vrot.lane.b32.xlu0 %v2707_v23, %s11650_s29 }
 0x4c1   : > { %2714 = vrot.lane.b32.xlu1 %v2713_v25, %s11650_s29  ;;  %v8251_v25 = vld [vmem:[%s11553_s9 + $0x108] sm:$0xff]  }
 0x4c3   : > { %2718 = vrot.lane.b32.xlu0 %v2717_v35, %s11650_s29  ;;  %v8252_v35 = vld [vmem:[%s11553_s9 + $0x2b0] sm:$0xff]  }
 0x4c5   : > { %2722 = vrot.lane.b32.xlu1 %v2721_v61, %s11650_s29  ;;  %v8253_v61 = vld [vmem:[%s11553_s9 + $0x150] sm:$0xff]  }
 0x521   : > { %v2645_v55 = vpop.permute.xlu0 %2644 }
 0x522   : > { %v2676_v53 = vsel %vm1447_vm5, %v9777_v14, %v2645_v55 }
 0x523   : > { %v2650_v13 = vpop.permute.xlu1 %2649 }
 0x524   : > { %v2680_v2 = vsel %vm1447_vm5, %v2647_v0, %v2650_v13  ;;  %v8254_v0 = vld [vmem:[%s11553_s9 + $0x2f8] sm:$0xff]   ;;  %v8255_v13 = vld [vmem:[%s11553_s9 + $0x110] sm:$0xff]  }
 0x525   : > { %v9815_v63 = vpop.permute.xlu0 %2653  ;;  %3576 = vmatprep.mubr.bf16.mxu1 %v2680_v2  ;;  %v8257_v2 = vld [vmem:[%s11553_s9 + $0x158] sm:$0xff]  }
 0x526   : > { %3577 = vmatmul.mubr.bf16.vlgmr.msra.gmra.mrb[40].mxu1 %v2676_v53  ;;  %v2684_v42 = vsel %vm1447_vm5, %v2651_v45, %v9815_v63  ;;  %v8258_v53 = vld [vmem:[%s11553_s9 + $0x118] sm:$0xff]   ;;  %v2716_v63 = vrot.slane %v9775_v15, 2  ;;  %v8295_v45 = vld [vmem:[%s11555_s11 + $0x6c] ss:$52 sps:$4 sm:$0xff]  }
 0x527   : > { %7580 = vmatpush3.bf16.msra.mxu1 %v8215_v8  ;;  %v2658_v7 = vpop.permute.xlu1 %2657  ;;  %v8256_v8 = vld [vmem:[%s11553_s9 + $0x2b8] sm:$0xff]  }
 0x528   : > { %7581 = vmatprep.subr.bf16.mxu1 %v8218_v21  ;;  %v2688_v52 = vsel %vm1447_vm5, %v2655_v60, %v2658_v7  ;;  %v8259_v60 = vld [vmem:[%s11553_s9 + $0x160] sm:$0xff]  }
 0x529   : > { %v9825_v20 = vpop.permute.xlu0 %2661  ;;  %3616 = vmatprep.mubr.bf16.mxu1 %v2688_v52  ;;  %v8261_v52 = vld [vmem:[%s11553_s9 + $0x168] sm:$0xff]  }
 0x52b   : > { %7582 = vmatpush3.bf16.msra.mxu1 %v8219_v11  ;;  %v9827_v62 = vpop.permute.xlu1 %2665  ;;  %v8260_v11 = vld [vmem:[%s11553_s9 + $0x120] sm:$0xff]  }
 0x52c   : > { %7583 = vmatprep.subr.bf16.mxu1 %v8222_v49  ;;  %v2696_v23 = vsel %vm1447_vm5, %v2663_v54, %v9827_v62  ;;  %v11655_v49 = vmov 0   ;;  %v8262_v62 = vld [vmem:[%s11553_s9 + $0x128] sm:$0xff]  }
 0x52d   : > { %v2670_v33 = vpop.permute.xlu0 %2669  ;;  %v8293_v54 = vld [vmem:[%s11555_s11 + $0x68] ss:$52 sps:$4 sm:$0xff]  }
 0x52e   : > { %v2700_v37 = vsel %vm1447_vm5, %v2667_v24, %v2670_v33  ;;  %v8265_v33 = vld [vmem:[%s11553_s9 + $0x178] sm:$0xff]   ;;  %v8267_v24 = vld [vmem:[%s11553_s9 + $0x240] sm:$0xff]  }
 0x52f   : > { %7584 = vmatpush3.bf16.msra.mxu1 %v8223_v36  ;;  %v2674_v10 = vpop.permute.xlu1 %2673  ;;  %v8263_v36 = vld [vmem:[%s11553_s9 + $0x170] sm:$0xff]  }
 0x530   : > { %7585 = vmatprep.subr.bf16.mxu1 %v8226_v57  ;;  %v2704_v17 = vsel %vm1447_vm5, %v2671_v5, %v2674_v10  ;;  %v8264_v57 = vld [vmem:[%s11553_s9 + $0x130] sm:$0xff]   ;;  %v8266_v5 = vld [vmem:[%s11553_s9 + $0x138] sm:$0xff]   ;;  %v2659_v10 = vrot.slane %v9777_v14, 4  ;;  %v8270_v14 = vld [vmem:[%s11553_s9 + $0x208] sm:$0xff]  }
 0x531   : > { %3696 = vmatprep.mubr.bf16.mxu0 %v2704_v17  ;;  %v9930_v55 = vpop.permute.xlu0 %2709  ;;  %v8269_v17 = vld [vmem:[%s11553_s9 + $0x248] sm:$0xff]  }
 0x532   : > { %3697 = vmatmul.mubr.bf16.vlgmr.msra.gmra.mrb[100].mxu0 %v2700_v37  ;;  %v8271_v37 = vld [vmem:[%s11553_s9 + $0x250] sm:$0xff]  }
 0x533   : > { %7586 = vmatpush3.bf16.msra.mxu1 %v8227_v34  ;;  %7668 = vmatpush3.bf16.msra.mxu0 %v8228_v26  ;;  %v9851_v40 = vpop.permute.xlu1 %2714  ;;  %v8268_v34 = vld [vmem:[%s11553_s9 + $0x200] sm:$0xff]   ;;  %v2712_v26 = vrot.slane %v9775_v15, 1 }
 0x534   : > { %7587 = vmatprep.subr.bf16.mxu1 %v8229_v29  ;;  %7669 = vmatprep.subr.bf16.mxu0 %v8230_v28  ;;  %v2692_v29 = vsel %vm1447_vm5, %v2659_v10, %v9825_v20  ;;  %v8272_v20 = vld [vmem:[%s11553_s9 + $0x210] sm:$0xff]  }
 0x535   : > { %v2719_v21 = vpop.permute.xlu0 %2718  ;;  %v2730_v28 = vsel %vm1447_vm5, %v2712_v26, %v9851_v40  ;;  %v8273_v40 = vld [vmem:[%s11553_s9 + $0x258] sm:$0xff]  }
 0x536   : > { %v2734_v7 = vsel %vm1447_vm5, %v2716_v63, %v2719_v21  ;;  %v8319_v21 = vld [vmem:[%s11555_s11 + $0x20c] ss:$52 sps:$4 sm:$0xff]   ;;  %v8317_v63 = vld [vmem:[%s11555_s11 + $0x208] ss:$52 sps:$4 sm:$0xff]  }
 0x537   : > { %7588 = vmatpush3.bf16.msra.mxu1 %v8231_v48  ;;  %7670 = vmatpush3.bf16.msra.mxu0 %v8232_v47  ;;  %v2723_v22 = vpop.permute.xlu1 %2722  ;;  %v8274_v48 = vld [vmem:[%s11553_s9 + $0x218] sm:$0xff]   ;;  %v8275_v47 = vld [vmem:[%s11553_s9 + $0x260] sm:$0xff]  }
 0x538   : > { %7589 = vmatprep.subr.bf16.mxu1 %v8233_v56  ;;  %7671 = vmatprep.subr.bf16.mxu0 %v8234_v43  ;;  %v2738_v6 = vsel %vm1447_vm5, %v2720_v59, %v2723_v22  ;;  %v8276_v56 = vld [vmem:[%s11553_s9 + $0x220] sm:$0xff]   ;;  %v8277_v43 = vld [vmem:[%s11553_s9 + $0x268] sm:$0xff]   ;;  %v8279_v22 = vld [vmem:[%s11553_s9 + $0x270] sm:$0xff]  }
 0x539   : > { %3776 = vmatprep.mubr.bf16.mxu0 %v2738_v6  ;;  %v8278_v59 = vld [vmem:[%s11553_s9 + $0x228] sm:$0xff]   ;;  %v8282_v6 = vld [vmem:[%s11553_s9 + $0x238] sm:$0xff]  }
 0x53a   : > { %v8340_v10 = vld [vmem:[%s11555_s11 + $0x1c] ss:$52 sps:$4 sm:$0xff]  }
 0x53b   : > { %7590 = vmatpush3.bf16.msra.mxu1 %v8235_v50  ;;  %7672 = vmatpush3.bf16.msra.mxu0 %v8236_v41  ;;  %v8280_v50 = vld [vmem:[%s11553_s9 + $0x230] sm:$0xff]   ;;  %v8281_v41 = vld [vmem:[%s11553_s9 + $0x278] sm:$0xff]  }
 0x53c   : > { %7591 = vmatprep.subr.bf16.mxu1 %v8237_v9  ;;  %7673 = vmatprep.subr.bf16.mxu0 %v8238_v18  ;;  %v8283_v9 = vld [vmem:[%s11553_s9 + $0x300] sm:$0xff]   ;;  %v11656_v18 = vmov 0.0  }
 0x53f   : > { %7592 = vmatpush3.bf16.msra.mxu1 %v8239_v30  ;;  %7674 = vmatpush3.bf16.msra.mxu0 %v8240_v16  ;;  %v2726_v30 = vsel %vm1447_vm5, %v9775_v15, %v9930_v55  ;;  %v8284_v16 = vld [vmem:[%s11553_s9 + $0x308] sm:$0xff]   ;;  %v8310_v55 = vld [vmem:[%s11555_s11 + $0x144] ss:$52 sps:$4 sm:$0xff]  }
 0x540   : > { %7593 = vmatprep.subr.bf16.mxu1 %v8241_v44  ;;  %7675 = vmatprep.subr.bf16.mxu0 %v8242_v51  ;;  %v8285_v44 = vld [vmem:[%s11553_s9 + $0x310] sm:$0xff]   ;;  %v8286_v51 = vld [vmem:[%s11553_s9 + $0x318] sm:$0xff]  }
 0x543   : > { %7594 = vmatpush3.bf16.msra.mxu1 %v8243_v4  ;;  %7676 = vmatpush3.bf16.msra.mxu0 %v8244_v1  ;;  %v2724_v4 = vrot.slane %v9775_v15, 4  ;;  %v8287_v1 = vld [vmem:[%s11555_s11] ss:$52 sps:$4 sm:$0xff]  }
 0x544   : > { %7601 = vmatprep.subr.bf16.mxu1 %v8245_v32  ;;  %7677 = vmatprep.subr.bf16.mxu0 %v8246_v27  ;;  %v8289_v32 = vld [vmem:[%s11555_s11 + $0x4] ss:$52 sps:$4 sm:$0xff]   ;;  %v8290_v27 = vld [vmem:[%s11555_s11 + $0x8] ss:$52 sps:$4 sm:$0xff]   ;;  %v8292_v15 = vld [vmem:[%s11555_s11 + $0xc] ss:$52 sps:$4 sm:$0xff]  }
 0x546   : > { %3617 = vmatmul.mubr.bf16.vlgmr.msra.gmra.mrb[44].mxu1 %v2684_v42  ;;  %v8304_v42 = vld [vmem:[%s11555_s11 + $0xdc] ss:$52 sps:$4 sm:$0xff]  }
 0x547   : > { %7602 = vmatpush3.bf16.msra.mxu1 %v8247_v31  ;;  %3656 = vmatprep.mubr.bf16.mxu1 %v2696_v23  ;;  %v8298_v31 = vld [vmem:[%s11555_s11 + $0x74] ss:$52 sps:$4 sm:$0xff]   ;;  %v8302_v23 = vld [vmem:[%s11555_s11 + $0xd8] ss:$52 sps:$4 sm:$0xff]  }
 0x548   : > { %7678 = vmatpush3.bf16.msra.mxu0 %v8248_v38  ;;  %7603 = vmatprep.subr.bf16.mxu1 %v8249_v19  ;;  %v8296_v38 = vld [vmem:[%s11555_s11 + $0x70] ss:$52 sps:$4 sm:$0xff]   ;;  %v8301_v19 = vld [vmem:[%s11555_s11 + $0xd4] ss:$52 sps:$4 sm:$0xff]  }
 0x549   : > { %7679 = vmatprep.subr.bf16.mxu0 %v8250_v46  ;;  %v8299_v46 = vld [vmem:[%s11555_s11 + $0xd0] ss:$52 sps:$4 sm:$0xff]  }
 0x54b   : > { %7604 = vmatpush3.bf16.msra.mxu1 %v8251_v25  ;;  %v8305_v25 = vld [vmem:[%s11555_s11 + $0x138] ss:$52 sps:$4 sm:$0xff]  }
 0x54c   : > { %7680 = vmatpush3.bf16.msra.mxu0 %v8252_v35  ;;  %7605 = vmatprep.subr.bf16.mxu1 %v8253_v61  ;;  %v8307_v35 = vld [vmem:[%s11555_s11 + $0x13c] ss:$52 sps:$4 sm:$0xff]   ;;  %v8308_v61 = vld [vmem:[%s11555_s11 + $0x140] ss:$52 sps:$4 sm:$0xff]  }
 0x54d   : > { %7681 = vmatprep.subr.bf16.mxu0 %v8254_v0  ;;  %v8311_v0 = vld [vmem:[%s11555_s11 + $0x1a0] ss:$52 sps:$4 sm:$0xff]  }
 0x54f   : > { %7606 = vmatpush3.bf16.msra.mxu1 %v8255_v13  ;;  %v8313_v13 = vld [vmem:[%s11555_s11 + $0x1a4] ss:$52 sps:$4 sm:$0xff]  }
 0x550   : > { %7682 = vmatpush3.bf16.msra.mxu0 %v8256_v8  ;;  %7607 = vmatprep.subr.bf16.mxu1 %v8257_v2  ;;  %v8314_v8 = vld [vmem:[%s11555_s11 + $0x1a8] ss:$52 sps:$4 sm:$0xff]   ;;  %v8316_v2 = vld [vmem:[%s11555_s11 + $0x1ac] ss:$52 sps:$4 sm:$0xff]  }
 0x551   : > { %4534 = vmatprep.subr.bf16.mxu0 %v8289_v32 }
 0x553   : > { %3777 = vmatmul.mubr.bf16.vlgmr.msra.gmra.mrb[104].mxu0 %v2734_v7  ;;  %7608 = vmatpush3.bf16.msra.mxu1 %v8258_v53  ;;  %v8322_v53 = vld [vmem:[%s11555_s11 + $0x214] ss:$52 sps:$4 sm:$0xff]  }
 0x554   : > { %7609 = vmatprep.subr.bf16.mxu1 %v8259_v60  ;;  %4566 = vmatprep.mubr.bf16.mxu0 %v11655_v49  ;;  %v8320_v60 = vld [vmem:[%s11555_s11 + $0x210] ss:$52 sps:$4 sm:$0xff]   ;;  %v8325_v7 = vld [vmem:[%s11555_s11 + $0x274] ss:$52 sps:$4 sm:$0xff]  }
 0x555   : > { %4535 = vmatpush1.bf16.msra.mxu0 %v8287_v1 }
 0x556   : > { %4536 = vmatprep.subr.bf16.mxu0 %v8295_v45 }
 0x557   : > { %7610 = vmatpush3.bf16.msra.mxu1 %v8260_v11  ;;  %v8328_v11 = vld [vmem:[%s11555_s11 + $0x27c] ss:$52 sps:$4 sm:$0xff]  }
 0x558   : > { %7611 = vmatprep.subr.bf16.mxu1 %v8261_v52  ;;  %v8323_v52 = vld [vmem:[%s11555_s11 + $0x270] ss:$52 sps:$4 sm:$0xff]  }
 0x559   : > { %4537 = vmatpush1.bf16.msra.mxu0 %v8293_v54 }
 0x55a   : > { %4538 = vmatprep.subr.bf16.mxu0 %v8301_v19 }
 0x55b   : > { %7612 = vmatpush3.bf16.msra.mxu1 %v8262_v62  ;;  %v8326_v62 = vld [vmem:[%s11555_s11 + $0x278] ss:$52 sps:$4 sm:$0xff]  }
 0x55c   : > { %7613 = vmatprep.subr.bf16.mxu1 %v8263_v36  ;;  %v8331_v36 = vld [vmem:[%s11555_s11 + $0x2dc] ss:$52 sps:$4 sm:$0xff]  }
 0x55d   : > { %4539 = vmatpush1.bf16.msra.mxu0 %v8299_v46 }
 0x55e   : > { %4540 = vmatprep.subr.bf16.mxu0 %v8307_v35 }
 0x55f   : > { %7614 = vmatpush3.bf16.msra.mxu1 %v8264_v57  ;;  %v8334_v57 = vld [vmem:[%s11555_s11 + $0x2e4] ss:$52 sps:$4 sm:$0xff]  }
 0x560   : > { %7615 = vmatprep.subr.bf16.mxu1 %v8265_v33  ;;  %v8329_v33 = vld [vmem:[%s11555_s11 + $0x2d8] ss:$52 sps:$4 sm:$0xff]  }
 0x561   : > { %4541 = vmatpush1.bf16.msra.mxu0 %v8305_v25 }
 0x562   : > { %4542 = vmatprep.subr.bf16.mxu0 %v8313_v13  ;;  %v8335_v13 = vld [vmem:[%s11555_s11 + $0x10] ss:$52 sps:$4 sm:$0xff]  }
 0x563   : > { %7616 = vmatpush3.bf16.msra.mxu1 %v8266_v5  ;;  %v8332_v5 = vld [vmem:[%s11555_s11 + $0x2e0] ss:$52 sps:$4 sm:$0xff]  }
 0x564   : > { %7645 = vmatprep.subr.bf16.mxu1 %v8267_v24  ;;  %v8337_v24 = vld [vmem:[%s11555_s11 + $0x14] ss:$52 sps:$4 sm:$0xff]  }
 0x565   : > { %4543 = vmatpush1.bf16.msra.mxu0 %v8311_v0 }
 0x566   : > { %3657 = vmatmul.mubr.bf16.vlgmr.msra.gmra.mrb[48].mxu1 %v2692_v29  ;;  %4544 = vmatprep.subr.bf16.mxu0 %v8319_v21 }
 0x567   : > { %7646 = vmatpush3.bf16.msra.mxu1 %v8268_v34  ;;  %3736 = vmatprep.mubr.bf16.mxu1 %v2730_v28 }
 0x568   : > { %7647 = vmatprep.subr.bf16.mxu1 %v8269_v17 }
 0x569   : > { %4545 = vmatpush1.bf16.msra.mxu0 %v8317_v63  ;;  %v8346_v63 = vld [vmem:[%s11555_s11 + $0x84] ss:$52 sps:$4 sm:$0xff]  }
 0x56a   : > { %4546 = vmatprep.subr.bf16.mxu0 %v8325_v7  ;;  %v8344_v7 = vld [vmem:[%s11555_s11 + $0x80] ss:$52 sps:$4 sm:$0xff]  }
 0x56b   : > { %7648 = vmatpush3.bf16.msra.mxu1 %v8270_v14 }
 0x56c   : > { %7649 = vmatprep.subr.bf16.mxu1 %v8271_v37 }
 0x56d   : > { %4547 = vmatpush1.bf16.msra.mxu0 %v8323_v52  ;;  %v8352_v52 = vld [vmem:[%s11555_s11 + $0xec] ss:$52 sps:$4 sm:$0xff]  }
 0x56e   : > { %4548 = vmatprep.subr.bf16.mxu0 %v8331_v36  ;;  %v8350_v36 = vld [vmem:[%s11555_s11 + $0xe8] ss:$52 sps:$4 sm:$0xff]  }
 0x56f   : > { %7650 = vmatpush3.bf16.msra.mxu1 %v8272_v20 }
 0x570   : > { %7651 = vmatprep.subr.bf16.mxu1 %v8273_v40 }
 0x571   : > { %4549 = vmatpush1.bf16.msra.mxu0 %v8329_v33  ;;  %v8358_v33 = vld [vmem:[%s11555_s11 + $0x154] ss:$52 sps:$4 sm:$0xff]  }
 0x572   : > { %4616 = vmatprep.subr.bf16.mxu0 %v8337_v24  ;;  %v8356_v24 = vld [vmem:[%s11555_s11 + $0x150] ss:$52 sps:$4 sm:$0xff]  }
 0x573   : > { %7652 = vmatpush3.bf16.msra.mxu1 %v8274_v48 }
 0x574   : > { %7653 = vmatprep.subr.bf16.mxu1 %v8275_v47  ;;  %v2940_v47 = vld [vmem:[%s11554_s10] sm:$0x1] }
 0x577   : > { %7654 = vmatpush3.bf16.msra.mxu1 %v8276_v56 }
 0x578   : > { %7655 = vmatprep.subr.bf16.mxu1 %v8277_v43 }
 0x57b   : > { %7656 = vmatpush3.bf16.msra.mxu1 %v8278_v59 }
 0x57c   : > { %7657 = vmatprep.subr.bf16.mxu1 %v8279_v22 }
 0x57f   : > { %7658 = vmatpush3.bf16.msra.mxu1 %v8280_v50 }
 0x580   : > { %7659 = vmatprep.subr.bf16.mxu1 %v8281_v41 }
 0x583   : > { %7660 = vmatpush3.bf16.msra.mxu1 %v8282_v6 }
 0x584   : > { %7889 = vmatprep.subr.bf16.mxu1 %v11656_v18 }
 0x586   : > { %3737 = vmatmul.mubr.bf16.vlgmr.msra.gmra.mrb[52].mxu1 %v2726_v30 }
 0x587   : > { %7890 = vmatpush3.bf16.msra.mxu1 %v8283_v9  ;;  %7897 = vmatprep.mubr.msk.bf16.mxu1 %vm11657_vm1, %v11656_v18 }
 0x588   : > { %7891 = vmatprep.subr.bf16.mxu1 %v11656_v18 }
 0x58b   : > { %7892 = vmatpush3.bf16.msra.mxu1 %v8284_v16 }
 0x58c   : > { %7893 = vmatprep.subr.bf16.mxu1 %v11656_v18 }
 0x58f   : > { %7894 = vmatpush3.bf16.msra.mxu1 %v8285_v44 }
 0x590   : > { %7895 = vmatprep.subr.bf16.mxu1 %v11656_v18 }
 0x593   : > { %7896 = vmatpush3.bf16.msra.mxu1 %v8286_v51 }
 0x594   : > { %4575 = vmatprep.subr.bf16.mxu1 %v8292_v15 }
 0x596   : > { %7898 = vmatmul.mubr.msk.bf16.vlgmr.msra.gmra.mrb[56].mxu1 %vm1447_vm5, %v2724_v4 }
 0x597   : > { %4607 = vmatprep.mubr.bf16.mxu1 %v11655_v49  ;;  %4576 = vmatpush1.bf16.msra.mxu1 %v8290_v27 }
 0x598   : > { %4577 = vmatprep.subr.bf16.mxu1 %v8298_v31 }
 0x59b   : > { %4578 = vmatpush1.bf16.msra.mxu1 %v8296_v38 }
 0x59c   : > { %4579 = vmatprep.subr.bf16.mxu1 %v8304_v42 }
 0x59f   : > { %4580 = vmatpush1.bf16.msra.mxu1 %v8302_v23 }
 0x5a0   : > { %4581 = vmatprep.subr.bf16.mxu1 %v8310_v55 }
 0x5a3   : > { %4582 = vmatpush1.bf16.msra.mxu1 %v8308_v61 }
 0x5a4   : > { %4583 = vmatprep.subr.bf16.mxu1 %v8316_v2 }
 0x5a7   : > { %4584 = vmatpush1.bf16.msra.mxu1 %v8314_v8  ;;  %v8338_v8 = vld [vmem:[%s11555_s11 + $0x18] ss:$52 sps:$4 sm:$0xff]  }
 0x5a8   : > { %4585 = vmatprep.subr.bf16.mxu1 %v8322_v53  ;;  %v8343_v53 = vld [vmem:[%s11555_s11 + $0x7c] ss:$52 sps:$4 sm:$0xff]  }
 0x5ab   : > { %4586 = vmatpush1.bf16.msra.mxu1 %v8320_v60  ;;  %v8341_v60 = vld [vmem:[%s11555_s11 + $0x78] ss:$52 sps:$4 sm:$0xff]  }
 0x5ac   : > { %4587 = vmatprep.subr.bf16.mxu1 %v8328_v11  ;;  %v8349_v11 = vld [vmem:[%s11555_s11 + $0xe4] ss:$52 sps:$4 sm:$0xff]  }
 0x5af   : > { %4588 = vmatpush1.bf16.msra.mxu1 %v8326_v62  ;;  %v8347_v62 = vld [vmem:[%s11555_s11 + $0xe0] ss:$52 sps:$4 sm:$0xff]  }
 0x5b0   : > { %4589 = vmatprep.subr.bf16.mxu1 %v8334_v57  ;;  %v8355_v57 = vld [vmem:[%s11555_s11 + $0x14c] ss:$52 sps:$4 sm:$0xff]  }
 0x5b3   : > { %4590 = vmatpush1.bf16.msra.mxu1 %v8332_v5  ;;  %v8353_v5 = vld [vmem:[%s11555_s11 + $0x148] ss:$52 sps:$4 sm:$0xff]  }
 0x5b4   : > { %4657 = vmatprep.subr.bf16.mxu1 %v8340_v10  ;;  %v8361_v10 = vld [vmem:[%s11555_s11 + $0x1b4] ss:$52 sps:$4 sm:$0xff]  }
 0x5f9   : > { %v7573_v34 = vpop.f32.mrb[40].mxu1 }
 0x5fa   : > { %v7574_v26 = vpop.f32.mrb[41].mxu1 }
 0x5fb   : > { %v7575_v17 = vadd.f32 %v7574_v26, %v7573_v34  ;;  %v7576_v29 = vpop.f32.mrb[42].mxu1  ;;  %v8364_v34 = vld [vmem:[%s11555_s11 + $0x1bc] ss:$52 sps:$4 sm:$0xff]  }
 0x5fc   : > { %v7577_v28 = vpop.f32.mrb[43].mxu1  ;;  %v8359_v26 = vld [vmem:[%s11555_s11 + $0x1b0] ss:$52 sps:$4 sm:$0xff]  }
 0x5fd   : > { %v3579_v59 = vadd.f32 %v7575_v17, %v2940_v47  ;;  %v8362_v17 = vld [vmem:[%s11555_s11 + $0x1b8] ss:$52 sps:$4 sm:$0xff]   ;;  %v8367_v29 = vld [vmem:[%s11555_s11 + $0x21c] ss:$52 sps:$4 sm:$0xff]  }
 0x5fe   : > { %v8370_v28 = vld [vmem:[%s11555_s11 + $0x224] ss:$52 sps:$4 sm:$0xff]   ;;  %v8374_v47 = vld [vmem:[%s11555_s11 + $0x288] ss:$52 sps:$4 sm:$0xff]  }
 0x605   : > { %v7639_v14 = vpop.f32.mrb[100].mxu0 }
 0x606   : > { %v7640_v37 = vpop.f32.mrb[101].mxu0 }
 0x607   : > { %v7641_v20 = vadd.f32 %v7640_v37, %v7639_v14  ;;  %v7642_v40 = vpop.f32.mrb[102].mxu0  ;;  %v8365_v14 = vld [vmem:[%s11555_s11 + $0x218] ss:$52 sps:$4 sm:$0xff]   ;;  %v8368_v37 = vld [vmem:[%s11555_s11 + $0x220] ss:$52 sps:$4 sm:$0xff]  }
 0x608   : > { %v7643_v48 = vpop.f32.mrb[103].mxu0  ;;  %v8376_v40 = vld [vmem:[%s11555_s11 + $0x28c] ss:$52 sps:$4 sm:$0xff]  }
 0x609   : > { %v8371_v48 = vld [vmem:[%s11555_s11 + $0x280] ss:$52 sps:$4 sm:$0xff]  }
 0x619   : > { %v7595_v56 = vpop.f32.mrb[44].mxu1 }
 0x61a   : > { %v7596_v43 = vpop.f32.mrb[45].mxu1 }
 0x61b   : > { %v7597_v22 = vadd.f32 %v7596_v43, %v7595_v56  ;;  %v7598_v50 = vpop.f32.mrb[46].mxu1  ;;  %v8379_v56 = vld [vmem:[%s11555_s11 + $0x2ec] ss:$52 sps:$4 sm:$0xff]   ;;  %v8382_v43 = vld [vmem:[%s11555_s11 + $0x2f4] ss:$52 sps:$4 sm:$0xff]  }
 0x61c   : > { %v7599_v41 = vpop.f32.mrb[47].mxu1  ;;  %v8385_v50 = vld [vmem:[%s11555_s11 + $0x24] ss:$52 sps:$4 sm:$0xff]  }
 0x61d   : > { %v3619_v6 = vadd.f32 %v7597_v22, %v3579_v59  ;;  %v8377_v59 = vld [vmem:[%s11555_s11 + $0x2e8] ss:$52 sps:$4 sm:$0xff]   ;;  %v8380_v22 = vld [vmem:[%s11555_s11 + $0x2f0] ss:$52 sps:$4 sm:$0xff]   ;;  %v8388_v41 = vld [vmem:[%s11555_s11 + $0x2c] ss:$52 sps:$4 sm:$0xff]  }
 0x626   : > { %v7683_v9 = vpop.f32.mrb[104].mxu0 }
 0x627   : > { %v7684_v30 = vpop.f32.mrb[105].mxu0 }
 0x628   : > { %v7685_v16 = vadd.f32 %v7684_v30, %v7683_v9  ;;  %v7686_v44 = vpop.f32.mrb[106].mxu0  ;;  %v8386_v9 = vld [vmem:[%s11555_s11 + $0x28] ss:$52 sps:$4 sm:$0xff]   ;;  %v8391_v30 = vld [vmem:[%s11555_s11 + $0x8c] ss:$52 sps:$4 sm:$0xff]  }
 0x629   : > { %v7687_v51 = vpop.f32.mrb[107].mxu0  ;;  %v8389_v44 = vld [vmem:[%s11555_s11 + $0x88] ss:$52 sps:$4 sm:$0xff]  }
 0x62a   : > { %v8392_v51 = vld [vmem:[%s11555_s11 + $0x90] ss:$52 sps:$4 sm:$0xff]  }
 0x639   : > { %v7617_v4 = vpop.f32.mrb[48].mxu1 }
 0x63a   : > { %v7618_v1 = vpop.f32.mrb[49].mxu1 }
 0x63b   : > { %v7619_v32 = vadd.f32 %v7618_v1, %v7617_v4  ;;  %v7620_v27 = vpop.f32.mrb[50].mxu1  ;;  %v8397_v4 = vld [vmem:[%s11555_s11 + $0xf4] ss:$52 sps:$4 sm:$0xff]   ;;  %v8400_v1 = vld [vmem:[%s11555_s11 + $0xfc] ss:$52 sps:$4 sm:$0xff]  }
 0x63c   : > { %v7621_v15 = vpop.f32.mrb[51].mxu1  ;;  %v8398_v27 = vld [vmem:[%s11555_s11 + $0xf8] ss:$52 sps:$4 sm:$0xff]  }
 0x63d   : > { %v3659_v45 = vadd.f32 %v7619_v32, %v3619_v6  ;;  %v8383_v6 = vld [vmem:[%s11555_s11 + $0x20] ss:$52 sps:$4 sm:$0xff]   ;;  %v8395_v32 = vld [vmem:[%s11555_s11 + $0xf0] ss:$52 sps:$4 sm:$0xff]  }
 0x63e   : > { %v8403_v15 = vld [vmem:[%s11555_s11 + $0x15c] ss:$52 sps:$4 sm:$0xff]  }
 0x63f   : > { %v3699_v31 = vadd.f32 %v7641_v20, %v3659_v45  ;;  %v8373_v20 = vld [vmem:[%s11555_s11 + $0x284] ss:$52 sps:$4 sm:$0xff]  }
 0x640   : > { %v8401_v45 = vld [vmem:[%s11555_s11 + $0x158] ss:$52 sps:$4 sm:$0xff]  }
 0x659   : > { %v7661_v54 = vpop.f32.mrb[52].mxu1 }
 0x65a   : > { %v7662_v38 = vpop.f32.mrb[53].mxu1 }
 0x65b   : > { %v7663_v19 = vadd.f32 %v7662_v38, %v7661_v54  ;;  %v7664_v42 = vpop.f32.mrb[54].mxu1  ;;  %v8409_v54 = vld [vmem:[%s11555_s11 + $0x1c4] ss:$52 sps:$4 sm:$0xff]   ;;  %v8412_v38 = vld [vmem:[%s11555_s11 + $0x1cc] ss:$52 sps:$4 sm:$0xff]  }
 0x65c   : > { %v7665_v46 = vpop.f32.mrb[55].mxu1  ;;  %v8410_v42 = vld [vmem:[%s11555_s11 + $0x1c8] ss:$52 sps:$4 sm:$0xff]  }
 0x65d   : > { %v3739_v23 = vadd.f32 %v7663_v19, %v3699_v31  ;;  %v8404_v31 = vld [vmem:[%s11555_s11 + $0x160] ss:$52 sps:$4 sm:$0xff]  }
 0x65e   : > { %v8407_v19 = vld [vmem:[%s11555_s11 + $0x1c0] ss:$52 sps:$4 sm:$0xff]  }
 0x65f   : > { %v3779_v25 = vadd.f32 %v7685_v16, %v3739_v23  ;;  %v8394_v16 = vld [vmem:[%s11555_s11 + $0x94] ss:$52 sps:$4 sm:$0xff]   ;;  %v8415_v46 = vld [vmem:[%s11555_s11 + $0x22c] ss:$52 sps:$4 sm:$0xff]  }
 0x660   : > { %v8418_v23 = vld [vmem:[%s11555_s11 + $0x234] ss:$52 sps:$4 sm:$0xff]  }
 0x669   : > { %v3818_v35 = vpop.f32.mrb[56].mxu1 }
 0x66a   : > { %v3819_v61 = vadd.f32 %v3818_v35, %v3779_v25  ;;  %v7899_v55 = vpop.f32.mrb[57].mxu1  ;;  %v8413_v25 = vld [vmem:[%s11555_s11 + $0x228] ss:$52 sps:$4 sm:$0xff]   ;;  %v8416_v35 = vld [vmem:[%s11555_s11 + $0x230] ss:$52 sps:$4 sm:$0xff]  }
 0x66b   : > { %v3821_v0 = vpop.f32.mrb[58].mxu1  ;;  %v8424_v55 = vld [vmem:[%s11555_s11 + $0x29c] ss:$52 sps:$4 sm:$0xff]  }
 0x66c   : > { %v10163_v2 = vpack.c.bf16 %v3819_v61, %v3819_v61  ;;  %v7900_v21 = vpop.f32.mrb[59].mxu1  ;;  %v8421_v61 = vld [vmem:[%s11555_s11 + $0x294] ss:$52 sps:$4 sm:$0xff]   ;;  %v8419_v0 = vld [vmem:[%s11555_s11 + $0x290] ss:$52 sps:$4 sm:$0xff]  }
 0x66d   : > { %v8430_v21 = vld [vmem:[%s11555_s11 + $0x304] ss:$52 sps:$4 sm:$0xff]  }
 0x66e   : > { %4567 = vmatmul.mubr.bf16.vlgmr.msra.gmra.mrb[108].mxu0 %v10163_v2  ;;  %4608 = vmatmul.mubr.bf16.vlgmr.msra.gmra.mrb[60].mxu1 %v10163_v2 }
 0x66f   : > { %4617 = vmatpush1.bf16.msra.mxu0 %v8335_v13  ;;  %4658 = vmatpush1.bf16.msra.mxu1 %v8338_v8  ;;  %v8422_v13 = vld [vmem:[%s11555_s11 + $0x298] ss:$52 sps:$4 sm:$0xff]   ;;  %v8427_v8 = vld [vmem:[%s11555_s11 + $0x2fc] ss:$52 sps:$4 sm:$0xff]  }
 0x670   : > { %4618 = vmatprep.subr.bf16.mxu0 %v8343_v53  ;;  %4659 = vmatprep.subr.bf16.mxu1 %v8346_v63  ;;  %v8425_v53 = vld [vmem:[%s11555_s11 + $0x2f8] ss:$52 sps:$4 sm:$0xff]   ;;  %v8428_v63 = vld [vmem:[%s11555_s11 + $0x300] ss:$52 sps:$4 sm:$0xff]  }
 0x671   : > { %4648 = vmatprep.mubr.bf16.mxu0 %v11655_v49  ;;  %4689 = vmatprep.mubr.bf16.mxu1 %v11655_v49 }
 0x673   : > { %4619 = vmatpush1.bf16.msra.mxu0 %v8341_v60  ;;  %4660 = vmatpush1.bf16.msra.mxu1 %v8344_v7  ;;  %v8431_v60 = vld [vmem:[%s11555_s11 + $0x30] ss:$52 sps:$4 sm:$0xff]   ;;  %v8432_v7 = vld [vmem:[%s11555_s11 + $0x98] ss:$52 sps:$4 sm:$0xff]  }
 0x674   : > { %4620 = vmatprep.subr.bf16.mxu0 %v8349_v11  ;;  %4661 = vmatprep.subr.bf16.mxu1 %v8352_v52  ;;  %v8433_v11 = vld [vmem:[%s11555_s11 + $0x100] ss:$52 sps:$4 sm:$0xff]   ;;  %v8434_v52 = vld [vmem:[%s11555_s11 + $0x168] ss:$52 sps:$4 sm:$0xff]  }
 0x677   : > { %4621 = vmatpush1.bf16.msra.mxu0 %v8347_v62  ;;  %4662 = vmatpush1.bf16.msra.mxu1 %v8350_v36  ;;  %v8435_v62 = vld [vmem:[%s11555_s11 + $0x1d0] ss:$52 sps:$4 sm:$0xff]   ;;  %v8436_v36 = vld [vmem:[%s11555_s11 + $0x238] ss:$52 sps:$4 sm:$0xff]  }
 0x678   : > { %4622 = vmatprep.subr.bf16.mxu0 %v8355_v57  ;;  %4663 = vmatprep.subr.bf16.mxu1 %v8358_v33  ;;  %v8437_v57 = vld [vmem:[%s11555_s11 + $0x2a0] ss:$52 sps:$4 sm:$0xff]   ;;  %v8438_v33 = vld [vmem:[%s11555_s11 + $0x308] ss:$52 sps:$4 sm:$0xff]  }
 0x67b   : > { %4623 = vmatpush1.bf16.msra.mxu0 %v8353_v5  ;;  %4664 = vmatpush1.bf16.msra.mxu1 %v8356_v24  ;;  %v11658_v5 = vld [vmem:[#allocation2_spill] sm:$0xff] }
 0x67c   : > { %4624 = vmatprep.subr.bf16.mxu0 %v8361_v10  ;;  %4665 = vmatprep.subr.bf16.mxu1 %v8364_v34  ;;  %v4471_v24 = vsub.s32 0, %v11658_v5  ;;  %v4479_v10 = vsub.s32 2, %v11658_v5  ;;  %v3937_v34 = vld [vmem:[%s11556_s12] sm:$0xff] }
 0x67f   : > { %4625 = vmatpush1.bf16.msra.mxu0 %v8359_v26  ;;  %4666 = vmatpush1.bf16.msra.mxu1 %v8362_v17  ;;  %v4475_v26 = vsub.s32 1, %v11658_v5  ;;  %v4483_v17 = vsub.s32 3, %v11658_v5 }
 0x680   : > { %4626 = vmatprep.subr.bf16.mxu0 %v8367_v29  ;;  %4667 = vmatprep.subr.bf16.mxu1 %v8370_v28  ;;  %v4472_v29 = vrot.slane %v3937_v34, %v4471_v24 }
 0x681   : > { %v4476_v28 = vrot.slane %v3937_v34, %v4475_v26 }
 0x683   : > { %4627 = vmatpush1.bf16.msra.mxu0 %v8365_v14  ;;  %4668 = vmatpush1.bf16.msra.mxu1 %v8368_v37  ;;  %v4484_v14 = vrot.slane %v3937_v34, %v4483_v17 }
 0x684   : > { %4628 = vmatprep.subr.bf16.mxu0 %v8373_v20  ;;  %4669 = vmatprep.subr.bf16.mxu1 %v8376_v40 }
 0x687   : > { %4629 = vmatpush1.bf16.msra.mxu0 %v8371_v48  ;;  %4670 = vmatpush1.bf16.msra.mxu1 %v8374_v47 }
 0x688   : > { %4630 = vmatprep.subr.bf16.mxu0 %v8379_v56  ;;  %4671 = vmatprep.subr.bf16.mxu1 %v8382_v43 }
 0x68b   : > { %4631 = vmatpush1.bf16.msra.mxu0 %v8377_v59  ;;  %4672 = vmatpush1.bf16.msra.mxu1 %v8380_v22 }
 0x68c   : > { %4698 = vmatprep.subr.bf16.mxu0 %v8385_v50  ;;  %4739 = vmatprep.subr.bf16.mxu1 %v8388_v41 }
 0x68e   : > { %4649 = vmatmul.mubr.bf16.vlgmr.msra.gmra.mrb[112].mxu0 %v10163_v2  ;;  %4690 = vmatmul.mubr.bf16.vlgmr.msra.gmra.mrb[64].mxu1 %v10163_v2 }
 0x68f   : > { %4699 = vmatpush1.bf16.msra.mxu0 %v8383_v6  ;;  %4740 = vmatpush1.bf16.msra.mxu1 %v8386_v9 }
 0x690   : > { %4700 = vmatprep.subr.bf16.mxu0 %v8391_v30  ;;  %4741 = vmatprep.subr.bf16.mxu1 %v8394_v16 }
 0x691   : > { %4730 = vmatprep.mubr.bf16.mxu0 %v11655_v49  ;;  %4771 = vmatprep.mubr.bf16.mxu1 %v11655_v49  ;;  %v8406_v49 = vld [vmem:[%s11555_s11 + $0x164] ss:$52 sps:$4 sm:$0xff]  }
 0x693   : > { %4701 = vmatpush1.bf16.msra.mxu0 %v8389_v44  ;;  %4742 = vmatpush1.bf16.msra.mxu1 %v8392_v51 }
 0x694   : > { %4702 = vmatprep.subr.bf16.mxu0 %v8397_v4  ;;  %4743 = vmatprep.subr.bf16.mxu1 %v8400_v1 }
 0x697   : > { %4703 = vmatpush1.bf16.msra.mxu0 %v8395_v32  ;;  %4744 = vmatpush1.bf16.msra.mxu1 %v8398_v27 }
 0x698   : > { %4704 = vmatprep.subr.bf16.mxu0 %v8403_v15  ;;  %4745 = vmatprep.subr.bf16.mxu1 %v8406_v49 }
 0x69b   : > { %4705 = vmatpush1.bf16.msra.mxu0 %v8401_v45  ;;  %4746 = vmatpush1.bf16.msra.mxu1 %v8404_v31 }
 0x69c   : > { %4706 = vmatprep.subr.bf16.mxu0 %v8409_v54  ;;  %4747 = vmatprep.subr.bf16.mxu1 %v8412_v38 }
 0x69f   : > { %4707 = vmatpush1.bf16.msra.mxu0 %v8407_v19  ;;  %4748 = vmatpush1.bf16.msra.mxu1 %v8410_v42 }
 0x6a0   : > { %4708 = vmatprep.subr.bf16.mxu0 %v8415_v46  ;;  %4749 = vmatprep.subr.bf16.mxu1 %v8418_v23 }
 0x6a3   : > { %4709 = vmatpush1.bf16.msra.mxu0 %v8413_v25  ;;  %4750 = vmatpush1.bf16.msra.mxu1 %v8416_v35 }
 0x6a4   : > { %4710 = vmatprep.subr.bf16.mxu0 %v8421_v61  ;;  %4751 = vmatprep.subr.bf16.mxu1 %v8424_v55 }
 0x6a7   : > { %4711 = vmatpush1.bf16.msra.mxu0 %v8419_v0  ;;  %4752 = vmatpush1.bf16.msra.mxu1 %v8422_v13 }
 0x6a8   : > { %4712 = vmatprep.subr.bf16.mxu0 %v8427_v8  ;;  %4753 = vmatprep.subr.bf16.mxu1 %v8430_v21  ;;  %v4487_v8 = vsub.s32 4, %v11658_v5  ;;  %v4495_v21 = vsub.s32 6, %v11658_v5 }
 0x6ab   : > { %4713 = vmatpush1.bf16.msra.mxu0 %v8425_v53  ;;  %4754 = vmatpush1.bf16.msra.mxu1 %v8428_v63  ;;  %v4491_v53 = vsub.s32 5, %v11658_v5  ;;  %v4499_v63 = vsub.s32 7, %v11658_v5 }
 0x6ac   : > { %7901 = vmatprep.subr.bf16.mxu0 %v11656_v18 }
 0x6ae   : > { %4731 = vmatmul.mubr.bf16.vlgmr.msra.gmra.mrb[116].mxu0 %v10163_v2  ;;  %4772 = vmatmul.mubr.bf16.vlgmr.msra.gmra.mrb[68].mxu1 %v10163_v2 }
 0x6af   : > { %7902 = vmatpush3.bf16.msra.mxu0 %v8431_v60  ;;  %7917 = vmatprep.mubr.msk.bf16.mxu0 %vm11657_vm1, %v11656_v18  ;;  %v4488_v60 = vrot.slane %v3937_v34, %v4487_v8 }
 0x6b0   : > { %7903 = vmatprep.subr.bf16.mxu0 %v11656_v18 }
 0x6b3   : > { %7904 = vmatpush3.bf16.msra.mxu0 %v8432_v7  ;;  %v4496_v7 = vrot.slane %v3937_v34, %v4495_v21 }
 0x6b4   : > { %7905 = vmatprep.subr.bf16.mxu0 %v11656_v18 }
 0x6b7   : > { %7906 = vmatpush3.bf16.msra.mxu0 %v8433_v11  ;;  %v4492_v11 = vrot.slane %v3937_v34, %v4491_v53 }
 0x6b8   : > { %7907 = vmatprep.subr.bf16.mxu0 %v11656_v18 }
 0x6bb   : > { %7908 = vmatpush3.bf16.msra.mxu0 %v8434_v52  ;;  %v4500_v52 = vrot.slane %v3937_v34, %v4499_v63 }
 0x6bc   : > { %7909 = vmatprep.subr.bf16.mxu0 %v11656_v18 }
 0x6bf   : > { %7910 = vmatpush3.bf16.msra.mxu0 %v8435_v62 }
 0x6c0   : > { %7911 = vmatprep.subr.bf16.mxu0 %v11656_v18 }
 0x6c3   : > { %7912 = vmatpush3.bf16.msra.mxu0 %v8436_v36 }
 0x6c4   : > { %7913 = vmatprep.subr.bf16.mxu0 %v11656_v18 }
 0x6c7   : > { %7914 = vmatpush3.bf16.msra.mxu0 %v8437_v57 }
 0x6c8   : > { %7915 = vmatprep.subr.bf16.mxu0 %v11656_v18 }
 0x6cb   : > { %7916 = vmatpush3.bf16.msra.mxu0 %v8438_v33 }
 0x6cc   : > { %7921 = vmatprep.subr.bf16.mxu0 %v11656_v18 }
 0x6ce   : > { %7918 = vmatmul.mubr.bf16.vlgmr.msra.gmra.mrb[120].mxu0 %v10163_v2  ;;  %v4480_v2 = vrot.slane %v3937_v34, %v4479_v10 }
 0x6cf   : > { %7937 = vmatprep.mubr.msk.bf16.mxu0 %vm11657_vm1, %v11656_v18 }
 0x741   : > { %v4568_v37 = vpop.f32.mrb[108].mxu0  ;;  %v4609_v20 = vpop.f32.mrb[60].mxu1 }
 0x742   : > { %v4569_v40 = vadd.f32 %v4568_v37, %v4472_v29  ;;  %v4610_v48 = vadd.f32 %v4609_v20, %v4480_v2  ;;  %v4570_v47 = vpop.f32.mrb[109].mxu0  ;;  %v4611_v56 = vpop.f32.mrb[61].mxu1  ;;  %v10431_v29 = vld [vmem:[%s11556_s12 + $0x8] sm:$0x1f] }
 0x743   : > { %v4571_v43 = vadd.f32 %v4570_v47, %v4476_v28  ;;  %v4612_v59 = vadd.f32 %v4611_v56, %v4484_v14  ;;  %v4572_v22 = vpop.f32.mrb[110].mxu0  ;;  %v4613_v50 = vpop.f32.mrb[62].mxu1  ;;  %v4504_v14 = vrot.slane %v10431_v29, %v4471_v24  ;;  %v4512_v37 = vrot.slane %v10431_v29, %v4479_v10 }
 0x744   : > { %v4820_v41 = vmax.f32 %v4569_v40, 0.0  ;;  %v4822_v6 = vmax.f32 %v4610_v48, 0.0  ;;  %v4573_v9 = vpop.f32.mrb[111].mxu0  ;;  %v4614_v30 = vpop.f32.mrb[63].mxu1  ;;  %v4508_v40 = vrot.slane %v10431_v29, %v4475_v26  ;;  %v4516_v48 = vrot.slane %v10431_v29, %v4483_v17 }
 0x745   : > { %v4821_v16 = vmax.f32 %v4571_v43, 0.0  ;;  %v4823_v44 = vmax.f32 %v4612_v59, 0.0 }
 0x746   : > { %v10408_v51 = vpack.c.bf16 %v4822_v6, %v4822_v6  ;;  %v10410_v4 = vpack.c.bf16 %v4820_v41, %v4820_v41 }
 0x747   : > { %v10412_v1 = vpack.c.bf16 %v4821_v16, %v4821_v16  ;;  %v10414_v32 = vpack.c.bf16 %v4823_v44, %v4823_v44 }
 0x748   : > { %v4864_v27 = vshll.u32 %v10408_v51, 16  ;;  %v4847_v31 = vshll.u32 %v10410_v4, 16 }
 0x749   : > { %v4855_v15 = vshll.u32 %v10412_v1, 16  ;;  %v4873_v49 = vshll.u32 %v10414_v32, 16 }
 0x74a   : > { %v4866_v45 = vrot.slane %v4864_v27, 6 }
 0x74b   : > { %v4857_v54 = vrot.slane %v4855_v15, 7  ;;  %v4875_v38 = vrot.slane %v4873_v49, 5 }
 0x74d   : > { %v8107_v19 = vpack.i.bf16 %v4875_v38, %v4866_v45  ;;  %v8102_v42 = vpack.i.bf16 %v4857_v54, %v4847_v31 }
 0x74f   : > { %8108 = vrot.lane.b32.xlu0 %v8107_v19, %s11650_s29  ;;  %8103 = vrot.lane.b32.xlu1 %v8102_v42, %s11650_s29 }
 0x761   : > { %v4650_v46 = vpop.f32.mrb[112].mxu0  ;;  %v4691_v23 = vpop.f32.mrb[64].mxu1 }
 0x762   : > { %v4652_v25 = vpop.f32.mrb[113].mxu0  ;;  %v4693_v35 = vpop.f32.mrb[65].mxu1  ;;  %v4651_v62 = vadd.f32 %v4650_v46, %v4488_v60  ;;  %v4692_v36 = vadd.f32 %v4691_v23, %v4496_v7 }
 0x763   : > { %v4654_v61 = vpop.f32.mrb[114].mxu0  ;;  %v4695_v55 = vpop.f32.mrb[66].mxu1  ;;  %v4653_v57 = vadd.f32 %v4652_v25, %v4492_v11  ;;  %v4694_v33 = vadd.f32 %v4693_v35, %v4500_v52 }
 0x764   : > { %v4655_v0 = vpop.f32.mrb[115].mxu0  ;;  %v4696_v13 = vpop.f32.mrb[67].mxu1  ;;  %v4824_v2 = vmax.f32 %v4651_v62, 0.0  ;;  %v4826_v28 = vmax.f32 %v4692_v36, 0.0 }
 0x765   : > { %v4825_v34 = vmax.f32 %v4653_v57, 0.0  ;;  %v4827_v20 = vmax.f32 %v4694_v33, 0.0  ;;  %v611_v33 = vld [vmem:[%s11659_s3] sm:$0xf] }
 0x766   : > { %v10445_v47 = vpack.c.bf16 %v4824_v2, %v4824_v2  ;;  %v10447_v59 = vpack.c.bf16 %v4826_v28, %v4826_v28  ;;  %v612_v2 = vld [vmem:[%s11659_s3 + $0x4] sm:$0xf]  ;;  %v613_v28 = vld [vmem:[%s11659_s3 + $0x8] sm:$0xf] }
 0x767   : > { %v10449_v41 = vpack.c.bf16 %v4825_v34, %v4825_v34  ;;  %v10451_v6 = vpack.c.bf16 %v4827_v20, %v4827_v20  ;;  %v8439_v20 = vld [vmem:[%s11557_s13 + $0x40] sm:$0xff]  }
 0x768   : > { %v4882_v17 = vshll.u32 %v10445_v47, 16  ;;  %v4900_v54 = vshll.u32 %v10447_v59, 16  ;;  %7703 = vmatprep.subr.bf16.mxu1 %v8439_v20 }
 0x769   : > { %v4891_v42 = vshll.u32 %v10449_v41, 16  ;;  %v4909_v46 = vshll.u32 %v10451_v6, 16 }
 0x76a   : > { %v4884_v35 = vrot.slane %v4882_v17, 4  ;;  %v4902_v21 = vrot.slane %v4900_v54, 2  ;;  %v8451_v17 = vld [vmem:[%s11557_s13 + $0x70] sm:$0xff]   ;;  %v4853_v54 = vrot.slane %v10412_v1, 7 }
 0x76b   : > { %v4893_v60 = vrot.slane %v4891_v42, 3  ;;  %v4911_v7 = vrot.slane %v4909_v46, 1 }
 0x781   : > { %v4732_v56 = vpop.f32.mrb[116].mxu0  ;;  %v4773_v43 = vpop.f32.mrb[68].mxu1 }
 0x782   : > { %v4733_v24 = vadd.f32 %v4732_v56, %v4504_v14  ;;  %v4774_v22 = vadd.f32 %v4773_v43, %v4512_v37  ;;  %v4734_v50 = vpop.f32.mrb[117].mxu0  ;;  %v4775_v10 = vpop.f32.mrb[69].mxu1  ;;  %v614_v14 = vld [vmem:[%s11659_s3 + $0xc] sm:$0x1]  ;;  %v4520_v37 = vrot.slane %v10431_v29, %v4487_v8  ;;  %v8443_v29 = vld [vmem:[%s11557_s13 + $0x50] sm:$0xff]  }
 0x783   : > { %v4735_v9 = vadd.f32 %v4734_v50, %v4508_v40  ;;  %v4776_v26 = vadd.f32 %v4775_v10, %v4516_v48  ;;  %v4736_v30 = vpop.f32.mrb[118].mxu0  ;;  %v4777_v16 = vpop.f32.mrb[70].mxu1  ;;  %v8440_v40 = vld [vmem:[%s11557_s13] sm:$0xff]   ;;  %v8441_v48 = vld [vmem:[%s11557_s13 + $0x48] sm:$0xff]   ;;  %v8445_v50 = vld [vmem:[%s11557_s13 + $0x58] sm:$0xff]  }
 0x784   : > { %v4828_v44 = vmax.f32 %v4733_v24, 0.0  ;;  %v4830_v27 = vmax.f32 %v4774_v22, 0.0  ;;  %v4737_v15 = vpop.f32.mrb[119].mxu0  ;;  %v4778_v49 = vpop.f32.mrb[71].mxu1  ;;  %7704 = vmatpush3.bf16.msra.mxu1 %v8440_v40  ;;  %v8442_v8 = vld [vmem:[%s11557_s13 + $0x8] sm:$0xff]   ;;  %v8444_v22 = vld [vmem:[%s11557_s13 + $0x10] sm:$0xff]  }
 0x785   : > { %v4829_v45 = vmax.f32 %v4735_v9, 0.0  ;;  %v4831_v31 = vmax.f32 %v4776_v26, 0.0  ;;  %7705 = vmatprep.subr.bf16.mxu1 %v8441_v48  ;;  %v8446_v10 = vld [vmem:[%s11557_s13 + $0x18] sm:$0xff]   ;;  %v8447_v9 = vld [vmem:[%s11557_s13 + $0x60] sm:$0xff]   ;;  %v8449_v30 = vld [vmem:[%s11557_s13 + $0x68] sm:$0xff]  }
 0x786   : > { %v10455_v38 = vpack.c.bf16 %v4828_v44, %v4828_v44  ;;  %v10457_v19 = vpack.c.bf16 %v4830_v27, %v4830_v27  ;;  %v8448_v26 = vld [vmem:[%s11557_s13 + $0x20] sm:$0xff]   ;;  %v8450_v16 = vld [vmem:[%s11557_s13 + $0x28] sm:$0xff]   ;;  %v8452_v44 = vld [vmem:[%s11557_s13 + $0x30] sm:$0xff]  }
 0x787   : > { %v10461_v23 = vpack.c.bf16 %v4829_v45, %v4829_v45  ;;  %v10463_v25 = vpack.c.bf16 %v4831_v31, %v4831_v31  ;;  %v8453_v27 = vld [vmem:[%s11557_s13 + $0x78] sm:$0xff]  }
 0x788   : > { %v4962_v61 = vshll.u32 %v10455_v38, 16  ;;  %v4979_v55 = vshll.u32 %v10457_v19, 16  ;;  %7706 = vmatpush3.bf16.msra.mxu1 %v8442_v8  ;;  %v8454_v15 = vld [vmem:[%s11557_s13 + $0x38] sm:$0xff]  }
 0x789   : > { %v4970_v0 = vshll.u32 %v10461_v23, 16  ;;  %v4988_v13 = vshll.u32 %v10463_v25, 16  ;;  %7707 = vmatprep.subr.bf16.mxu1 %v8443_v29  ;;  %v4986_v8 = vrot.slane %v10463_v25, 5 }
 0x78a   : > { %v4981_v53 = vrot.slane %v4979_v55, 6  ;;  %v8112_v63 = vpack.i.bf16 %v4884_v35, %v4962_v61  ;;  %v4862_v61 = vrot.slane %v10408_v51, 6 }
 0x78b   : > { %v4972_v11 = vrot.slane %v4970_v0, 7  ;;  %v4990_v52 = vrot.slane %v4988_v13, 5 }
 0x78c   : > { %8113 = vrot.lane.b32.xlu1 %v8112_v63, %s11650_s29  ;;  %v8117_v62 = vpack.i.bf16 %v4902_v21, %v4981_v53  ;;  %7708 = vmatpush3.bf16.msra.mxu1 %v8444_v22  ;;  %v4871_v21 = vrot.slane %v10414_v32, 5 }
 0x78d   : > { %v8122_v36 = vpack.i.bf16 %v4893_v60, %v4972_v11  ;;  %v8127_v57 = vpack.i.bf16 %v4911_v7, %v4990_v52  ;;  %7709 = vmatprep.subr.bf16.mxu1 %v8445_v50 }
 0x78f   : > { %8123 = vrot.lane.b32.xlu0 %v8122_v36, %s11650_s29 }
 0x790   : > { %8118 = vrot.lane.b32.xlu1 %v8117_v62, %s11650_s29  ;;  %7710 = vmatpush3.bf16.msra.mxu1 %v8446_v10 }
 0x791   : > { %7711 = vmatprep.subr.bf16.mxu1 %v8447_v9 }
 0x793   : > { %8128 = vrot.lane.b32.xlu0 %v8127_v57, %s11650_s29  ;;  %v4889_v57 = vrot.slane %v10449_v41, 3 }
 0x794   : > { %5036 = vperm.xlu1 %8101, %v611_v33   ;;  %7712 = vmatpush3.bf16.msra.mxu1 %v8448_v26  ;;  %v4968_v33 = vrot.slane %v10461_v23, 7  ;;  %v4977_v23 = vrot.slane %v10457_v19, 6 }
 0x795   : > { %7713 = vmatprep.subr.bf16.mxu1 %v8449_v30 }
 0x797   : > { %5048 = vperm.xlu0 %8100, %v612_v2   ;;  %v4898_v2 = vrot.slane %v10447_v59, 2 }
 0x798   : > { %5060 = vperm.xlu1 %8101, %v613_v28   ;;  %7714 = vmatpush3.bf16.msra.mxu1 %v8450_v16 }
 0x799   : > { %7715 = vmatprep.subr.bf16.mxu1 %v8451_v17 }
 0x79b   : > { %5072 = vperm.xlu0 %8100, %v614_v14  }
 0x79c   : > { %7716 = vmatpush3.bf16.msra.mxu1 %v8452_v44 }
 0x79d   : > { %7717 = vmatprep.subr.bf16.mxu1 %v8453_v27 }
 0x7a0   : > { %7718 = vmatpush3.bf16.msra.mxu1 %v8454_v15 }
 0x7a1   : > { %v4814_v34 = vpop.f32.mrb[120].mxu0  ;;  %8073 = vmatprep.subr.bf16.mxu1 %v11656_v18 }
 0x7a2   : > { %v10497_v56 = vadd.f32 %v4814_v34, %v4520_v37  ;;  %v7919_v43 = vpop.f32.mrb[121].mxu0 }
 0x7a3   : > { %v4817_v24 = vpop.f32.mrb[122].mxu0 }
 0x7a4   : > { %v7920_v5 = vpop.f32.mrb[123].mxu0  ;;  %v4832_v52 = vmax.f32 %v10497_v56, 0.0 }
 0x7a5   : > { %v4907_v5 = vrot.slane %v10451_v6, 1 }
 0x7a6   : > { %v4845_v48 = vpack.c.bf16 %v4832_v52, %v4832_v52 }
 0x7a8   : > { %v4995_v25 = vrot.slane %v4845_v48, 4 }
 0x7c1   : > { %v8104_v49 = vpop.permute.xlu1 %8103  ;;  %v8109_v42 = vpop.permute.xlu0 %8108 }
 0x7c2   : > { %v8105_v45 = vunpack.i.l.bf16 %v8104_v49  ;;  %v8106_v46 = vunpack.i.h.bf16 %v8104_v49  ;;  %v8110_v0 = vunpack.i.l.bf16 %v8109_v42  ;;  %v8111_v63 = vunpack.i.h.bf16 %v8109_v42 }
 0x7c4   : > { %v4915_v35 = vsel %vm8994_vm8, %v10410_v4, %v8105_v45  ;;  %v4880_v4 = vrot.slane %v10445_v47, 4 }
 0x7c5   : > { %v4918_v55 = vsel %vm11613_vm7, %v4915_v35, %v4853_v54 }
 0x7c6   : > { %v4921_v13 = vsel %vm10541_vm9, %v4918_v55, %v8106_v46 }
 0x7c7   : > { %v4924_v53 = vsel %vm11664_vm6, %v4921_v13, %v4862_v61  ;;  %vm11668_vm6 = vcmask 1044480  }
 0x7c8   : > { %v4926_v51 = vsel %vm9081_vm12, %v4924_v53, %v8110_v0 }
 0x7c9   : > { %v4930_v60 = vsel %vm11667_vm0, %v4926_v51, %v4871_v21  ;;  %vm4958_vm0 = vcmask 1047552  }
 0x7ca   : > { %v4933_v7 = vsel %vm10557_vm4, %v4930_v60, %v8111_v63  ;;  %vm10596_vm3 = vmand %vm4958_vm0, %vm1554_vm14  ;;  %vm11679_vm0 = vcmask 1041408  }
 0x7cb   : > { %v4937_v32 = vsel %vm1412_vm13, %v4933_v7, %v4880_v4 }
 0x7fe   : > { %v8114_v11 = vpop.permute.xlu1 %8113 }
 0x7ff   : > { %v8116_v62 = vunpack.i.h.bf16 %v8114_v11  ;;  %v8115_v36 = vunpack.i.l.bf16 %v8114_v11 }
 0x801   : > { %v4939_v47 = vsel %vm9217_vm10, %v4937_v32, %v8116_v62  ;;  %v4996_v28 = vsel %vm8994_vm8, %v10455_v38, %v8115_v36  ;;  %v8124_v14 = vpop.permute.xlu0 %8123 }
 0x802   : > { %v8126_v37 = vunpack.i.h.bf16 %v8124_v14  ;;  %v8125_v34 = vunpack.i.l.bf16 %v8124_v14  ;;  %v4943_v20 = vsel %vm11668_vm6, %v4939_v47, %v4889_v57  ;;  %v4999_v40 = vsel %vm11613_vm7, %v4996_v28, %v4968_v33  ;;  %v8119_v41 = vpop.permute.xlu1 %8118  ;;  %v11680_v57 = vld [vmem:[#allocation3_spill] sm:$0xff] }
 0x803   : > { %v8121_v56 = vunpack.i.h.bf16 %v8119_v41  ;;  %v8120_v38 = vunpack.i.l.bf16 %v8119_v41  ;;  %vm11673_vm6 = vcmask 1045504   ;;  %vm11674_vm7 = vcmask 1041408  }
 0x804   : > { %v4945_v43 = vsel %vm9293_vm2, %v4943_v20, %v8126_v37  ;;  %v5001_v24 = vsel %vm10541_vm9, %v4999_v40, %v8125_v34 }
 0x805   : > { %v4949_v19 = vsel %vm11673_vm6, %v4945_v43, %v4898_v2  ;;  %v5004_v29 = vsel %vm11674_vm7, %v5001_v24, %v4977_v23  ;;  %v8129_v50 = vpop.permute.xlu0 %8128  ;;  %vm11677_vm6 = vcmask 1042432   ;;  %vm11678_vm7 = vsmask.f32 5376  ;;  %v8455_v23 = vld [vmem:[%s11559_s15] sm:$0xff]   ;;  %v8456_v24 = vld [vmem:[%s11559_s15 + $0x8] sm:$0xff]  }
 0x806   : > { %v4952_v10 = vsel %vm10582_vm15, %v4949_v19, %v8121_v56  ;;  %v5006_v9 = vsel %vm9081_vm12, %v5004_v29, %v8120_v38  ;;  %v8131_v6 = vunpack.i.h.bf16 %v8129_v50  ;;  %v8130_v26 = vunpack.i.l.bf16 %v8129_v50  ;;  %7922 = vmatpush3.bf16.msra.mxu0 %v8455_v23 }
 0x807   : > { %v4956_v30 = vsel %vm11670_vm11, %v4952_v10, %v4907_v5  ;;  %v5009_v16 = vsel %vm11677_vm6, %v5006_v9, %v4986_v8  ;;  %7923 = vmatprep.subr.bf16.mxu0 %v11656_v18  ;;  %v8457_v10 = vld [vmem:[%s11559_s15 + $0x10] sm:$0xff]   ;;  %v8458_v9 = vld [vmem:[%s11559_s15 + $0x18] sm:$0xff]   ;;  %vm11682_vm11 = vmmov %vm11678_vm7 }
 0x808   : > { %v10608_v17 = vsel %vm10596_vm3, %v4956_v30, %v8131_v6  ;;  %v5011_v44 = vsel %vm10557_vm4, %v5009_v16, %v8130_v26  ;;  %v8459_v6 = vld [vmem:[%s11559_s15 + $0x20] sm:$0xff]   ;;  %vm11683_vm6 = vmmov %vm11679_vm0 }
 0x809   : > { %v10613_v27 = vsel %vm1412_vm13, %v5011_v44, %v4995_v25  ;;  %v5016_v15 = vshrl.u32 %v10608_v17, 16  ;;  %v5018_v49 = vshll.u32 %v10608_v17, 16 }
 0x80a   : > { %v5022_v45 = vshll.u32 %v10613_v27, 16  ;;  %v5026_v54 = vshrl.u32 %v10613_v27, 16  ;;  %7924 = vmatpush3.bf16.msra.mxu0 %v8456_v24 }
 0x80b   : > { %v5096_v42 = vrot.slane %v5016_v15, 2  ;;  %v5097_v46 = vrot.slane %v5018_v49, 3  ;;  %v5020_v63 = vrot.slane %v5018_v49, 1  ;;  %7925 = vmatprep.subr.bf16.mxu0 %v11656_v18 }
 0x80c   : > { %v5099_v35 = vrot.slane %v5026_v54, 2  ;;  %v5100_v61 = vrot.slane %v5022_v45, 3  ;;  %v5024_v11 = vrot.slane %v5022_v45, 1 }
 0x80d   : > { %v5098_v55 = vor.u32 %v5097_v46, %v5096_v42  ;;  %v5021_v32 = vor.u32 %v5020_v63, %v5016_v15  ;;  %v7389_v46 = vld [vmem:[%s11558_s14] ss:$0 sm:$0xff] }
 0x80e   : > { %v5101_v0 = vor.u32 %v5100_v61, %v5099_v35  ;;  %v5028_v41 = vor.u32 %v5026_v54, %v5024_v11  ;;  %7926 = vmatpush3.bf16.msra.mxu0 %v8457_v10  ;;  %v8461_v54 = vld [vmem:[%s11559_s15 + $0x30] sm:$0xff]  }
 0x80f   : > { %v5025_v20 = vsel %vm1554_vm14, %v5021_v32, %v5024_v11  ;;  %7927 = vmatprep.subr.bf16.mxu0 %v11656_v18 }
 0x810   : > { %v5102_v13 = vsel %vm11678_vm7, %v5098_v55, %v5101_v0  ;;  %v5104_v21 = vsel %vm11679_vm0, %v5101_v0, 0  ;;  %v5032_v19 = vsel %vm1412_vm13, %v5028_v41, 0  ;;  %vm11684_vm7 = vcmask 261120  }
 0x811   : > { %v5108_v53 = vshll.u32 %v5102_v13, 16  ;;  %v5112_v51 = vshll.u32 %v5104_v21, 16  ;;  %v5106_v7 = vshrl.u32 %v5102_v13, 16  ;;  %v5116_v28 = vshrl.u32 %v5104_v21, 16 }
 0x812   : > { %7928 = vmatpush3.bf16.msra.mxu0 %v8458_v9  ;;  %vm11685_vm0 = vcmask 785408  }
 0x813   : > { %v5037_v4 = vpop.permute.xlu1 %5036  ;;  %v5110_v60 = vrot.slane %v5108_v53, 1  ;;  %v5114_v36 = vrot.slane %v5112_v51, 1  ;;  %7929 = vmatprep.subr.bf16.mxu0 %v11656_v18 }
 0x814   : > { %v5045_v33 = vrot.slane %v5037_v4, %v11680_v57 }
 0x815   : > { %v5111_v62 = vor.u32 %v5110_v60, %v5106_v7  ;;  %v5118_v40 = vor.u32 %v5116_v28, %v5114_v36 }
 0x816   : > { %v5049_v52 = vpop.permute.xlu0 %5048  ;;  %7930 = vmatpush3.bf16.msra.mxu0 %v8459_v6 }
 0x817   : > { %v5057_v2 = vrot.slane %v5049_v52, %v11680_v57  ;;  %v5061_v47 = vpop.permute.xlu1 %5060  ;;  %v5115_v34 = vsel %vm1554_vm14, %v5111_v62, %v5114_v36  ;;  %v5121_v8 = vsel %vm1412_vm13, %v5118_v40, 0  ;;  %7931 = vmatprep.subr.bf16.mxu0 %v11656_v18 }
 0x818   : > { %v5069_v48 = vrot.slane %v5061_v47, %v11680_v57 }
 0x819   : > { %v10623_v14 = vcombine.low %v5045_v33, %v5057_v2 }
 0x81a   : > { %v5073_v37 = vpop.permute.xlu0 %5072 }
 0x81b   : > { %v5081_v56 = vrot.slane %v5073_v37, %v11680_v57  ;;  %v5123_v38 = vmul.bf16 %v10623_v14, %v5115_v34  ;;  %v5094_v43 = vmul.bf16 %v10623_v14, %v5025_v20 }
 0x81d   : > { %v10637_v5 = vcombine.low %v5069_v48, %v5081_v56  ;;  %5133 = vrot.lane.b32.xlu1 %v5123_v38, %s11650_s29  ;;  %5127 = vrot.lane.b32.xlu0 %v5094_v43, %s11650_s29 }
 0x81f   : > { %v5124_v29 = vmul.bf16 %v10637_v5, %v5121_v8  ;;  %v5095_v50 = vmul.bf16 %v10637_v5, %v5032_v19 }
 0x821   : > { %5135 = vrot.lane.b32.xlu1 %v5124_v29, %s11650_s29  ;;  %5129 = vrot.lane.b32.xlu0 %v5095_v50, %s11650_s29 }
 0x88f   : > { %v5134_v26 = vpop.permute.xlu1 %5133  ;;  %v5128_v25 = vpop.permute.xlu0 %5127 }
 0x890   : > { %v5138_v30 = vsel %vm1447_vm5, %v10608_v17, %v5128_v25  ;;  %v5144_v16 = vsel %vm1447_vm5, %v5102_v13, %v5134_v26  ;;  %v8460_v17 = vld [vmem:[%s11559_s15 + $0x28] sm:$0xff]  }
 0x891   : > { %5316 = vmatprep.mubr.bf16.mxu1 %v5144_v16  ;;  %7932 = vmatpush3.bf16.msra.mxu0 %v8460_v17 }
 0x892   : > { %5317 = vmatmul.mubr.bf16.vlgmr.msra.gmra.mrb[72].mxu1 %v5138_v30  ;;  %7933 = vmatprep.subr.bf16.mxu0 %v11656_v18 }
 0x893   : > { %v5136_v44 = vpop.permute.xlu1 %5135  ;;  %v5130_v49 = vpop.permute.xlu0 %5129 }
 0x894   : > { %v5147_v15 = vsel %vm1447_vm5, %v5104_v21, %v5136_v44  ;;  %v5141_v45 = vsel %vm1447_vm5, %v10613_v27, %v5130_v49  ;;  %v8462_v27 = vld [vmem:[%s11559_s15 + $0x38] sm:$0xff]  }
 0x895   : > { %5324 = vmatprep.mubr.bf16.mxu1 %v5147_v15  ;;  %7934 = vmatpush3.bf16.msra.mxu0 %v8461_v54 }
 0x896   : > { %7935 = vmatprep.subr.bf16.mxu0 %v11656_v18 }
 0x899   : > { %7936 = vmatpush3.bf16.msra.mxu0 %v8462_v27 }
 0x89a   : > { %5325 = vmatmul.mubr.bf16.gmra.mrb[76].mxu1 %v5141_v45  ;;  %7965 = vmatprep.subr.bf16.mxu0 %v11656_v18 }
 0x89b   : > { %8005 = vmatprep.mubr.msk.bf16.mxu1 %vm11657_vm1, %v11656_v18 }
 0x965   : > { %v7719_v42 = vpop.f32.mrb[72].mxu1 }
 0x966   : > { %v7720_v35 = vpop.f32.mrb[73].mxu1 }
 0x967   : > { %v7721_v61 = vadd.f32 %v7720_v35, %v7719_v42  ;;  %v7722_v55 = vpop.f32.mrb[74].mxu1  ;;  %v8463_v35 = vld [vmem:[%s11561_s17] sm:$0xff]  }
 0x968   : > { %v7723_v0 = vpop.f32.mrb[75].mxu1  ;;  %8077 = vmatpush3.bf16.msra.mxu1 %v8463_v35 }
 0x969   : > { %v5319_v13 = vadd.f32 %v7721_v61, %v7389_v46  ;;  %v7724_v21 = vadd.f32 %v7723_v0, %v7722_v55  ;;  %v8464_v61 = vld [vmem:[%s11561_s17 + $0x8] sm:$0xff]   ;;  %8074 = vmatprep.subr.bf16.mxu1 %v11656_v18  ;;  %v8465_v55 = vld [vmem:[%s11561_s17 + $0x10] sm:$0xff]   ;;  %v8466_v0 = vld [vmem:[%s11561_s17 + $0x18] sm:$0xff]  }
 0x96b   : > { %v5322_v53 = vadd.f32 %v7724_v21, %v7389_v46  ;;  %v5333_v63 = vmax.f32 %v5319_v13, 0.0 }
 0x96c   : > { %8078 = vmatpush3.bf16.msra.mxu1 %v8464_v61 }
 0x96d   : > { %v5334_v51 = vmax.f32 %v5322_v53, 0.0  ;;  %v7725_v4 = vpop.f32.mrb[76].mxu1  ;;  %8075 = vmatprep.subr.bf16.mxu1 %v11656_v18 }
 0x96e   : > { %v7726_v60 = vpop.f32.mrb[77].mxu1 }
 0x96f   : > { %v5337_v7 = vpack.c.bf16 %v5334_v51, %v5333_v63  ;;  %v7727_v32 = vadd.f32 %v7726_v60, %v7725_v4  ;;  %v7728_v11 = vpop.f32.mrb[78].mxu1 }
 0x970   : > { %v7729_v52 = vpop.f32.mrb[79].mxu1  ;;  %8079 = vmatpush3.bf16.msra.mxu1 %v8465_v55 }
 0x971   : > { %v5327_v62 = vadd.f32 %v7727_v32, %v7389_v46  ;;  %v7730_v36 = vadd.f32 %v7729_v52, %v7728_v11  ;;  %5368 = vrot.lane.b32.xlu1 %v5337_v7, %s11681_s23  ;;  %7938 = vmatmul.mubr.bf16.vlgmr.msra.gmra.mrb[124].mxu0 %v5337_v7  ;;  %v5349_v33 = vshll.u32 %v5337_v7, 16  ;;  %v5347_v28 = vshrl.u32 %v5337_v7, 16 }
 0x972   : > { %7941 = vmatprep.mubr.msk.bf16.mxu0 %vm11657_vm1, %v11656_v18  ;;  %7966 = vmatpush3.bf16.msra.mxu0 %v8463_v35 }
 0x973   : > { %v5330_v57 = vadd.f32 %v7730_v36, %v7389_v46  ;;  %v5335_v2 = vmax.f32 %v5327_v62, 0.0  ;;  %v5351_v34 = vrot.slane %v5349_v33, 1  ;;  %v5388_v41 = vrot.slane %v5347_v28, 2  ;;  %7967 = vmatprep.subr.bf16.mxu0 %v11656_v18  ;;  %8076 = vmatprep.subr.bf16.mxu1 %v11656_v18 }
 0x974   : > { %v5389_v23 = vrot.slane %v5349_v33, 3  ;;  %8080 = vmatpush3.bf16.msra.mxu1 %v8466_v0 }
 0x975   : > { %v5336_v47 = vmax.f32 %v5330_v57, 0.0  ;;  %v5352_v48 = vor.u32 %v5351_v34, %v5347_v28 }
 0x976   : > { %v5390_v50 = vor.u32 %v5389_v23, %v5388_v41  ;;  %7968 = vmatpush3.bf16.msra.mxu0 %v8464_v61 }
 0x977   : > { %v10687_v37 = vpack.c.bf16 %v5336_v47, %v5335_v2  ;;  %7969 = vmatprep.subr.bf16.mxu0 %v11656_v18 }
 0x979   : > { %5370 = vrot.lane.b32.xlu1 %v10687_v37, %s11681_s23  ;;  %v5353_v20 = vshll.u32 %v10687_v37, 16  ;;  %v5357_v40 = vshrl.u32 %v10687_v37, 16 }
 0x97a   : > { %7970 = vmatpush3.bf16.msra.mxu0 %v8465_v55 }
 0x97b   : > { %v5355_v56 = vrot.slane %v5353_v20, 1  ;;  %v5391_v38 = vrot.slane %v5357_v40, 2  ;;  %v5392_v43 = vrot.slane %v5353_v20, 3  ;;  %7971 = vmatprep.subr.bf16.mxu0 %v11656_v18 }
 0x97d   : > { %5397 = vrot.lane.b32.xlu1 %v5337_v7, %s11650_s29  ;;  %v5356_v24 = vsel %vm1554_vm14, %v5352_v48, %v5355_v56  ;;  %v5359_v8 = vor.u32 %v5357_v40, %v5355_v56  ;;  %v5393_v19 = vor.u32 %v5392_v43, %v5391_v38 }
 0x97e   : > { %v5364_v29 = vmul.bf16 %v10623_v14, %v5356_v24  ;;  %7972 = vmatpush3.bf16.msra.mxu0 %v8466_v0 }
 0x97f   : > { %v5362_v10 = vsel %vm1412_vm13, %v5359_v8, 0  ;;  %v5394_v9 = vsel %vm11682_vm11, %v5390_v50, %v5393_v19  ;;  %v5396_v25 = vsel %vm11683_vm6, %v5393_v19, 0  ;;  %vm11686_vm11 = vmmov %vm11684_vm7 }
 0x980   : > { %5374 = vrot.lane.b32.xlu0 %v5364_v29, %s11644_s27  ;;  %v5365_v6 = vmul.bf16 %v10637_v5, %v5362_v10  ;;  %v5417_v26 = vshll.u32 %v5394_v9, 16  ;;  %v5415_v16 = vshrl.u32 %v5394_v9, 16  ;;  %v5421_v44 = vshll.u32 %v5396_v25, 16  ;;  %vm11687_vm6 = vmmov %vm11685_vm0 }
 0x981   : > { %5434 = vrot.lane.b32.xlu1 %v5337_v7, %s11644_s27  ;;  %v5425_v17 = vshrl.u32 %v5396_v25, 16 }
 0x982   : > { %v5419_v30 = vrot.slane %v5417_v26, 1  ;;  %v5423_v49 = vrot.slane %v5421_v44, 1 }
 0x984   : > { %5376 = vrot.lane.b32.xlu0 %v5365_v6, %s11644_s27  ;;  %v5420_v15 = vor.u32 %v5419_v30, %v5415_v16  ;;  %v5427_v27 = vor.u32 %v5425_v17, %v5423_v49 }
 0x985   : > { %5442 = vrot.lane.b32.xlu1 %v5394_v9, %s11644_s27 }
 0x986   : > { %v5424_v45 = vsel %vm1554_vm14, %v5420_v15, %v5423_v49  ;;  %v5430_v42 = vsel %vm1412_vm13, %v5427_v27, 0 }
 0x987   : > { %v5432_v54 = vmul.bf16 %v10623_v14, %v5424_v45  ;;  %v5433_v46 = vmul.bf16 %v10637_v5, %v5430_v42 }
 0x988   : > { %5402 = vrot.lane.b32.xlu0 %v5394_v9, %s11650_s29 }
 0x989   : > { %5399 = vrot.lane.b32.xlu1 %v10687_v37, %s11650_s29 }
 0x98c   : > { %5438 = vrot.lane.b32.xlu0 %v5364_v29, %s11681_s23 }
 0x98d   : > { %5436 = vrot.lane.b32.xlu1 %v10687_v37, %s11644_s27 }
 0x990   : > { %5404 = vrot.lane.b32.xlu0 %v5396_v25, %s11650_s29 }
 0x991   : > { %5444 = vrot.lane.b32.xlu1 %v5396_v25, %s11644_s27 }
 0x994   : > { %5448 = vrot.lane.b32.xlu0 %v5432_v54, %s11681_s23 }
 0x998   : > { %5440 = vrot.lane.b32.xlu0 %v5365_v6, %s11681_s23 }
 0x99c   : > { %5450 = vrot.lane.b32.xlu0 %v5433_v46, %s11681_s23 }
 0x9e3   : > { %v5369_v13 = vpop.permute.xlu1 %5368 }
 0x9eb   : > { %v5371_v21 = vpop.permute.xlu1 %5370 }
 0x9ef   : > { %v5398_v53 = vpop.permute.xlu1 %5397 }
 0x9f2   : > { %v5375_v63 = vpop.permute.xlu0 %5374 }
 0x9f3   : > { %v5380_v51 = vsel %vm11684_vm7, %v5369_v13, %v5375_v63  ;;  %v5435_v7 = vpop.permute.xlu1 %5434 }
 0x9f4   : > { %v5384_v4 = vsel %vm1447_vm5, %v5380_v51, %v5369_v13 }
 0x9f5   : > { %v5386_v60 = vsel %vm11685_vm0, %v5384_v4, %v5375_v63  ;;  %vm11688_vm0 = vsmask.f32 4352 }
 0x9f6   : > { %v5466_v32 = vshrl.u32 %v5386_v60, 16  ;;  %v5469_v11 = vshll.u32 %v5386_v60, 16  ;;  %v5377_v52 = vpop.permute.xlu0 %5376 }
 0x9f7   : > { %v5383_v62 = vsel %vm11686_vm11, %v5371_v21, %v5377_v52  ;;  %v5443_v40 = vpop.permute.xlu1 %5442  ;;  %vm11689_vm11 = vmmov %vm11687_vm6 }
 0x9f8   : > { %v5468_v36 = vrot.slane %v5466_v32, 3  ;;  %v5471_v57 = vrot.slane %v5469_v11, 4  ;;  %v5385_v33 = vsel %vm1447_vm5, %v5383_v62, %v5371_v21 }
 0x9f9   : > { %v5387_v2 = vsel %vm11687_vm6, %v5385_v33, %v5377_v52 }
 0x9fa   : > { %v5472_v47 = vor.u32 %v5471_v57, %v5468_v36  ;;  %v5473_v28 = vshrl.u32 %v5387_v2, 16  ;;  %v5476_v34 = vshll.u32 %v5387_v2, 16  ;;  %v5403_v20 = vpop.permute.xlu0 %5402 }
 0x9fb   : > { %v5400_v43 = vpop.permute.xlu1 %5399  ;;  %v5409_v24 = vsel %vm1447_vm5, %v5398_v53, %v5403_v20 }
 0x9fc   : > { %v5475_v41 = vrot.slane %v5473_v28, 3  ;;  %v5478_v23 = vrot.slane %v5476_v34, 4  ;;  %v5507_v48 = vsel %vm9217_vm10, %v10687_v37, %v5472_v47  ;;  %v5412_v50 = vsel %vm11689_vm11, %v5409_v24, %v5403_v20  ;;  %vm11690_vm10 = vmmov %vm11687_vm6 }
 0x9fd   : > { %7942 = vmatmul.mubr.bf16.gmra.mrb[128].mxu0 %v5507_v48  ;;  %v5485_v6 = vrot.slane %v5412_v50, 7  ;;  %vm11691_vm6 = vmmov %vm11684_vm7 }
 0x9fe   : > { %v5439_v56 = vpop.permute.xlu0 %5438  ;;  %7945 = vmatprep.mubr.msk.bf16.mxu0 %vm11657_vm1, %v11656_v18  ;;  %v5479_v38 = vor.u32 %v5478_v23, %v5475_v41 }
 0x9ff   : > { %v5454_v19 = vsel %vm11684_vm7, %v5435_v7, %v5439_v56  ;;  %v5437_v10 = vpop.permute.xlu1 %5436  ;;  %vm11692_vm7 = vmmov %vm11690_vm10 }
 0xa00   : > { %v5480_v29 = vsel %vm11688_vm0, %v5472_v47, %v5479_v38  ;;  %v5459_v12 = vsel %vm1447_vm5, %v5454_v19, %v5443_v40  ;;  %vm11693_vm0 = vcmask 1040384   ;;  %vm11694_vm11 = vmmov %vm11692_vm7 }
 0xa01   : > { %v5510_v17 = vsel %vm11693_vm0, %v5479_v38, %v5485_v6 }
 0xa02   : > { %v5405_v8 = vpop.permute.xlu0 %5404 }
 0xa03   : > { %v5411_v30 = vsel %vm1447_vm5, %v5400_v43, %v5405_v8  ;;  %v5445_v54 = vpop.permute.xlu1 %5444 }
 0xa04   : > { %v5413_v15 = vsel %vm11692_vm7, %v5411_v30, %v5405_v8  ;;  %vm11700_vm7 = vcmask 1041408  }
 0xa05   : > { %7946 = vmatmul.mubr.bf16.gmra.mrb[132].mxu0 %v5480_v29  ;;  %v5486_v46 = vrot.slane %v5413_v15, 7 }
 0xa06   : > { %v5449_v37 = vpop.permute.xlu0 %5448  ;;  %7949 = vmatprep.mubr.msk.bf16.mxu0 %vm11657_vm1, %v11656_v18 }
 0xa07   : > { %v5463_v9 = vsel %vm11690_vm10, %v5459_v12, %v5449_v37  ;;  %vm11695_vm10 = vmmov %vm11693_vm0  ;;  %vm11701_vm0 = vsmask.f32 4352 }
 0xa08   : > { %v5489_v26 = vshrl.u32 %v5463_v9, 16  ;;  %v5492_v25 = vshll.u32 %v5463_v9, 16  ;;  %v5487_v13 = vsel %vm11695_vm10, %v5485_v6, %v5486_v46  ;;  %vm11704_vm10 = vmmov %vm11701_vm0 }
 0xa0a   : > { %v5441_v16 = vpop.permute.xlu0 %5440  ;;  %v5491_v49 = vrot.slane %v5489_v26, 2  ;;  %v5494_v45 = vrot.slane %v5492_v25, 3 }
 0xa0b   : > { %v5457_v44 = vsel %vm11691_vm6, %v5437_v10, %v5441_v16  ;;  %vm11696_vm6 = vsmask.f32 5376 }
 0xa0c   : > { %v5461_v27 = vsel %vm1447_vm5, %v5457_v44, %v5445_v54  ;;  %v5495_v61 = vor.u32 %v5494_v45, %v5491_v49 }
 0xa0d   : > { %7950 = vmatmul.mubr.bf16.gmra.mrb[136].mxu0 %v5510_v17 }
 0xa0e   : > { %v5451_v42 = vpop.permute.xlu0 %5450  ;;  %7953 = vmatprep.mubr.msk.bf16.mxu0 %vm11657_vm1, %v11656_v18  ;;  %v5512_v63 = vsel %vm9293_vm2, %v5487_v13, %v5495_v61  ;;  %vm11698_vm2 = vmmov %vm11696_vm6 }
 0xa0f   : > { %v5465_v35 = vsel %vm11694_vm11, %v5461_v27, %v5451_v42  ;;  %vm11703_vm11 = vsmask.f32 3328 }
 0xa10   : > { %v5496_v55 = vshrl.u32 %v5465_v35, 16  ;;  %v5499_v0 = vshll.u32 %v5465_v35, 16 }
 0xa12   : > { %v5498_v21 = vrot.slane %v5496_v55, 2  ;;  %v5501_v53 = vrot.slane %v5499_v0, 3 }
 0xa14   : > { %v5502_v51 = vor.u32 %v5501_v53, %v5498_v21 }
 0xa15   : > { %7954 = vmatmul.mubr.bf16.gmra.mrb[140].mxu0 %v5512_v63 }
 0xa16   : > { %7957 = vmatprep.mubr.msk.bf16.mxu0 %vm11657_vm1, %v11656_v18  ;;  %v5503_v4 = vsel %vm11696_vm6, %v5495_v61, %v5502_v51  ;;  %vm11705_vm6 = vmmov %vm11698_vm2 }
 0xa1d   : > { %7958 = vmatmul.mubr.bf16.gmra.mrb[144].mxu0 %v5503_v4 }
 0xa1e   : > { %7961 = vmatprep.mubr.msk.bf16.mxu0 %vm11657_vm1, %v11656_v18 }
 0xa25   : > { %7962 = vmatmul.mubr.bf16.gmra.mrb[148].mxu0 %v5502_v51 }
 0xa26   : > { %7973 = vmatprep.mubr.msk.bf16.mxu0 %vm11657_vm1, %v11656_v18 }
 0xa44   : > { %v5618_v60 = vpop.f32.mrb[124].mxu0 }
 0xa45   : > { %v5619_v7 = vadd.f32 %v10777_v3, %v5618_v60  ;;  %v7939_v32 = vpop.f32.mrb[125].mxu0 }
 0xa46   : > { %v5621_v11 = vpop.f32.mrb[126].mxu0 }
 0xa47   : > { %v5622_v52 = vadd.f32 %v10777_v3, %v5621_v11  ;;  %v7940_v62 = vpop.f32.mrb[127].mxu0  ;;  %v5672_v36 = vmax.f32 %v5619_v7, 0.0 }
 0xa49   : > { %v5673_v57 = vmax.f32 %v5622_v52, 0.0 }
 0xa4b   : > { %v10781_v33 = vpack.c.bf16 %v5673_v57, %v5672_v36 }
 0xa4d   : > { %7974 = vmatmul.mubr.msk.bf16.vlgmr.msra.gmra.mrb[152].mxu0 %vm1447_vm5, %v10781_v33  ;;  %v5760_v20 = vshll.u32 %v10781_v33, 16  ;;  %v5758_v56 = vshrl.u32 %v10781_v33, 16 }
 0xa4e   : > { %7977 = vmatprep.mubr.msk.bf16.mxu0 %vm11657_vm1, %v11656_v18 }
 0xa4f   : > { %v5762_v43 = vrot.slane %v5760_v20, 1  ;;  %v5955_v37 = vrot.slane %v5758_v56, 2  ;;  %v5956_v10 = vrot.slane %v5760_v20, 3 }
 0xa51   : > { %v5763_v26 = vor.u32 %v5762_v43, %v5758_v56  ;;  %v5957_v55 = vor.u32 %v5956_v10, %v5955_v37 }
 0xad0   : > { %v5626_v2 = vpop.f32.mrb[128].mxu0 }
 0xad1   : > { %v5627_v47 = vadd.f32 %v10777_v3, %v5626_v2  ;;  %v7943_v28 = vpop.f32.mrb[129].mxu0 }
 0xad2   : > { %v5629_v34 = vpop.f32.mrb[130].mxu0 }
 0xad3   : > { %v5630_v40 = vadd.f32 %v10777_v3, %v5629_v34  ;;  %v7944_v41 = vpop.f32.mrb[131].mxu0  ;;  %v5674_v23 = vmax.f32 %v5627_v47, 0.0 }
 0xad5   : > { %v5675_v48 = vmax.f32 %v5630_v40, 0.0 }
 0xad7   : > { %v10791_v38 = vpack.c.bf16 %v5675_v48, %v5674_v23 }
 0xad8   : > { %v5634_v24 = vpop.f32.mrb[132].mxu0 }
 0xad9   : > { %v5635_v8 = vadd.f32 %v10777_v3, %v5634_v24  ;;  %5719 = vrot.lane.b32.xlu1 %v10791_v38, %s11697_s1  ;;  %v7947_v19 = vpop.f32.mrb[133].mxu0  ;;  %7978 = vmatmul.mubr.msk.bf16.gmra.mrb[156].mxu0 %vm1447_vm5, %v10791_v38  ;;  %v5724_v29 = vshll.u32 %v10791_v38, 16  ;;  %v5721_v50 = vshrl.u32 %v10791_v38, 16 }
 0xada   : > { %v5637_v12 = vpop.f32.mrb[134].mxu0  ;;  %7981 = vmatprep.mubr.msk.bf16.mxu0 %vm11657_vm1, %v11656_v18 }
 0xadb   : > { %v5638_v9 = vadd.f32 %v10777_v3, %v5637_v12  ;;  %v7948_v6 = vpop.f32.mrb[135].mxu0  ;;  %v5764_v25 = vrot.slane %v5724_v29, 1  ;;  %v5958_v30 = vrot.slane %v5721_v50, 2  ;;  %v5959_v16 = vrot.slane %v5724_v29, 3 }
 0xadc   : > { %v5723_v44 = vrot.slane %v5721_v50, 4  ;;  %v5726_v15 = vrot.slane %v5724_v29, 5  ;;  %v5676_v49 = vmax.f32 %v5635_v8, 0.0 }
 0xadd   : > { %v5677_v45 = vmax.f32 %v5638_v9, 0.0  ;;  %v5765_v17 = vsel %vm1554_vm14, %v5763_v26, %v5764_v25  ;;  %v5766_v54 = vor.u32 %v5764_v25, %v5721_v50  ;;  %v5960_v42 = vor.u32 %v5959_v16, %v5958_v30 }
 0xade   : > { %v5771_v27 = vmul.bf16 %v10623_v14, %v5765_v17  ;;  %v10805_v46 = vor.u32 %v5726_v15, %v5723_v44 }
 0xadf   : > { %v10807_v35 = vpack.c.bf16 %v5677_v45, %v5676_v49  ;;  %v5769_v61 = vsel %vm1412_vm13, %v5766_v54, 0  ;;  %v10817_v4 = vsel %vm11698_vm2, %v5957_v55, %v5960_v42  ;;  %v10832_v23 = vsel %vm11700_vm7, %v5960_v42, 0  ;;  %vm11706_vm2 = vmmov %vm11703_vm11 }
 0xae0   : > { %v5642_v0 = vpop.f32.mrb[136].mxu0  ;;  %v5780_v13 = vshrl.u32 %v5771_v27, 16  ;;  %v5783_v21 = vshll.u32 %v5771_v27, 16  ;;  %v5772_v53 = vmul.bf16 %v10637_v5, %v5769_v61  ;;  %v6149_v28 = vshll.u32 %v10817_v4, 16  ;;  %vm11707_vm7 = vmmov %vm11705_vm6 }
 0xae1   : > { %v5643_v63 = vadd.f32 %v10777_v3, %v5642_v0  ;;  %5775 = vrot.lane.b32.xlu0 %v10807_v35, %s11697_s1  ;;  %v7951_v51 = vpop.f32.mrb[137].mxu0  ;;  %7982 = vmatmul.mubr.msk.bf16.gmra.mrb[160].mxu0 %vm1447_vm5, %v10807_v35  ;;  %v6147_v50 = vshrl.u32 %v10817_v4, 16  ;;  %v6153_v12 = vshll.u32 %v10832_v23, 16  ;;  %v6157_v17 = vshrl.u32 %v10832_v23, 16 }
 0xae2   : > { %v5645_v60 = vpop.f32.mrb[138].mxu0  ;;  %v5782_v7 = vrot.slane %v5780_v13, 3  ;;  %v5785_v32 = vrot.slane %v5783_v21, 4  ;;  %7985 = vmatprep.mubr.msk.bf16.mxu0 %vm11657_vm1, %v11656_v18  ;;  %v5788_v11 = vshrl.u32 %v5772_v53, 16  ;;  %v5791_v52 = vshll.u32 %v5772_v53, 16 }
 0xae3   : > { %v5646_v62 = vadd.f32 %v10777_v3, %v5645_v60  ;;  %v7952_v36 = vpop.f32.mrb[139].mxu0  ;;  %v5678_v34 = vmax.f32 %v5643_v63, 0.0  ;;  %v6151_v43 = vrot.slane %v6149_v28, 1  ;;  %v6155_v30 = vrot.slane %v6153_v12, 1 }
 0xae4   : > { %v10822_v57 = vor.u32 %v5785_v32, %v5782_v7  ;;  %v5790_v2 = vrot.slane %v5788_v11, 3  ;;  %v5793_v47 = vrot.slane %v5791_v52, 4 }
 0xae5   : > { %v5679_v20 = vmax.f32 %v5646_v62, 0.0  ;;  %v6152_v6 = vor.u32 %v6151_v43, %v6147_v50  ;;  %v6159_v7 = vor.u32 %v6157_v17, %v6155_v30 }
 0xae6   : > { %5796 = vrot.lane.b32.xlu1 %v10822_v57, %s11699_s24  ;;  %v10827_v40 = vor.u32 %v5793_v47, %v5790_v2 }
 0xae7   : > { %v10829_v41 = vpack.c.bf16 %v5679_v20, %v5678_v34  ;;  %v6156_v54 = vsel %vm1554_vm14, %v6152_v6, %v6155_v30  ;;  %vm11702_vm14 = vsmask.f32 6400  ;;  %v6162_v28 = vsel %vm1412_vm13, %v6159_v7, 0 }
 0xae8   : > { %v5650_v48 = vpop.f32.mrb[140].mxu0  ;;  %v10837_v56 = vsel %vm11701_vm0, %v10822_v57, %v10827_v40  ;;  %v6164_v12 = vmul.bf16 %v10623_v14, %v6156_v54  ;;  %vm11708_vm0 = vcmask 1046528  }
 0xae9   : > { %v5651_v24 = vadd.f32 %v10777_v3, %v5650_v48  ;;  %5798 = vrot.lane.b32.xlu0 %v10837_v56, %s11699_s24  ;;  %v7955_v8 = vpop.f32.mrb[141].mxu0  ;;  %7986 = vmatmul.mubr.msk.bf16.gmra.mrb[164].mxu0 %vm1447_vm5, %v10829_v41  ;;  %v5736_v29 = vshrl.u32 %v10829_v41, 16  ;;  %v5739_v9 = vshll.u32 %v10829_v41, 16 }
 0xaea   : > { %5777 = vrot.lane.b32.xlu1 %v10829_v41, %s11697_s1  ;;  %v5653_v19 = vpop.f32.mrb[142].mxu0  ;;  %7989 = vmatprep.mubr.msk.bf16.mxu0 %vm11657_vm1, %v11656_v18 }
 0xaeb   : > { %v5654_v37 = vadd.f32 %v10777_v3, %v5653_v19  ;;  %v7956_v10 = vpop.f32.mrb[143].mxu0  ;;  %v5680_v26 = vmax.f32 %v5651_v24, 0.0  ;;  %v10855_v16 = vrot.slane %v5736_v29, 4  ;;  %v10859_v15 = vrot.slane %v5739_v9, 5 }
 0xaec   : > { %v5855_v45 = vrot.slane %v5736_v29, 1  ;;  %v5856_v0 = vrot.slane %v5739_v9, 2 }
 0xaed   : > { %v5681_v25 = vmax.f32 %v5654_v37, 0.0  ;;  %5800 = vrot.lane.b32.xlu0 %v10827_v40, %s11699_s24  ;;  %v5742_v21 = vor.u32 %v10859_v15, %v10855_v16 }
 0xaee   : > { %v5857_v52 = vor.u32 %v5856_v0, %v5855_v45 }
 0xaef   : > { %v10857_v44 = vpack.c.bf16 %v5681_v25, %v5680_v26 }
 0xaf0   : > { %v5658_v49 = vpop.f32.mrb[144].mxu0 }
 0xaf1   : > { %v5659_v27 = vadd.f32 %v10777_v3, %v5658_v49  ;;  %5817 = vrot.lane.b32.xlu0 %v10857_v44, %s11697_s1  ;;  %v7959_v42 = vpop.f32.mrb[145].mxu0  ;;  %7990 = vmatmul.mubr.msk.bf16.gmra.mrb[168].mxu0 %vm1447_vm5, %v10857_v44  ;;  %v10869_v61 = vshrl.u32 %v10857_v44, 16  ;;  %v10872_v55 = vshll.u32 %v10857_v44, 16 }
 0xaf2   : > { %v5661_v13 = vpop.f32.mrb[146].mxu0  ;;  %7993 = vmatprep.mubr.msk.bf16.mxu0 %vm11657_vm1, %v11656_v18 }
 0xaf3   : > { %v5662_v53 = vadd.f32 %v10777_v3, %v5661_v13  ;;  %v7960_v63 = vpop.f32.mrb[147].mxu0  ;;  %v5858_v51 = vrot.slane %v10869_v61, 1  ;;  %v5859_v60 = vrot.slane %v10872_v55, 2  ;;  %v5682_v32 = vmax.f32 %v5659_v27, 0.0 }
 0xaf4   : > { %v5821_v48 = vrot.slane %v10869_v61, 4  ;;  %v5824_v43 = vrot.slane %v10872_v55, 5  ;;  %v6183_v13 = vshrl.u32 %v6164_v12, 16 }
 0xaf5   : > { %v5683_v11 = vmax.f32 %v5662_v53, 0.0  ;;  %v5860_v62 = vor.u32 %v5859_v60, %v5858_v51 }
 0xaf6   : > { %v5825_v27 = vor.u32 %v5824_v43, %v5821_v48  ;;  %v6185_v43 = vrot.slane %v6183_v13, 2 }
 0xaf7   : > { %v10881_v36 = vpack.c.bf16 %v5683_v11, %v5682_v32  ;;  %v5861_v2 = vsel %vm11702_vm14, %v5857_v52, %v5860_v62  ;;  %v5864_v47 = vsel %vm1412_vm13, %v5860_v62, 0  ;;  %v6186_v52 = vshll.u32 %v6164_v12, 16  ;;  %vm11709_vm14 = vmmov %vm11708_vm0 }
 0xaf8   : > { %v5666_v34 = vpop.f32.mrb[148].mxu0  ;;  %v5866_v20 = vmul.bf16 %v10623_v14, %v5861_v2  ;;  %v5867_v24 = vmul.bf16 %v10637_v5, %v5864_v47  ;;  %v6165_v14 = vmul.bf16 %v10637_v5, %v6162_v28 }
 0xaf9   : > { %v5667_v8 = vadd.f32 %v10777_v3, %v5666_v34  ;;  %5870 = vrot.lane.b32.xlu1 %v10881_v36, %s11697_s1  ;;  %v7963_v19 = vpop.f32.mrb[149].mxu0  ;;  %7994 = vmatmul.mubr.msk.bf16.gmra.mrb[172].mxu0 %vm1447_vm5, %v10881_v36  ;;  %v5826_v29 = vshrl.u32 %v10881_v36, 16  ;;  %v5829_v50 = vshll.u32 %v10881_v36, 16 }
 0xafa   : > { %v5669_v37 = vpop.f32.mrb[150].mxu0  ;;  %v5875_v10 = vshrl.u32 %v5866_v20, 16  ;;  %v5878_v9 = vshll.u32 %v5866_v20, 16  ;;  %v5883_v6 = vshrl.u32 %v5867_v24, 16  ;;  %v5886_v26 = vshll.u32 %v5867_v24, 16  ;;  %7997 = vmatprep.mubr.msk.bf16.mxu0 %vm11657_vm1, %v11656_v18 }
 0xafb   : > { %v5684_v3 = vmax.f32 %v5667_v8, 0.0  ;;  %v7964_v25 = vpop.f32.mrb[151].mxu0  ;;  %v5828_v30 = vrot.slane %v5826_v29, 4  ;;  %v5831_v49 = vrot.slane %v5829_v50, 5  ;;  %v6188_v19 = vrot.slane %v6186_v52, 3 }
 0xafc   : > { %v5877_v45 = vrot.slane %v5875_v10, 2  ;;  %v5880_v17 = vrot.slane %v5878_v9, 3  ;;  %v5885_v0 = vrot.slane %v5883_v6, 2  ;;  %v5888_v63 = vrot.slane %v5886_v26, 3 }
 0xafd   : > { %v10905_v54 = vpack.c.bf16 %v5684_v3, %v5684_v3  ;;  %v5832_v42 = vor.u32 %v5831_v49, %v5828_v30  ;;  %v6082_v51 = vrot.slane %v5875_v10, 3  ;;  %v6083_v60 = vrot.slane %v5878_v9, 4 }
 0xafe   : > { %v10907_v53 = vor.u32 %v5880_v17, %v5877_v45  ;;  %v6085_v62 = vrot.slane %v5883_v6, 3  ;;  %v6086_v28 = vrot.slane %v5886_v26, 4  ;;  %v10920_v34 = vor.u32 %v5888_v63, %v5885_v0 }
 0xaff   : > { %v10910_v7 = vsel %vm11703_vm11, %v5825_v27, %v5832_v42  ;;  %v5834_v32 = vshrl.u32 %v10905_v54, 16  ;;  %v5837_v11 = vshll.u32 %v10905_v54, 16  ;;  %v10918_v5 = vor.u32 %v6083_v60, %v6082_v51 }
 0xb00   : > { %5891 = vrot.lane.b32.xlu0 %v10907_v53, %s11699_s24  ;;  %5842 = vrot.lane.b32.xlu1 %v10910_v7, %s11699_s24  ;;  %v10926_v8 = vor.u32 %v6086_v28, %v6085_v62  ;;  %v6191_v12 = vshrl.u32 %v6165_v14, 16  ;;  %v6194_v10 = vshll.u32 %v6165_v14, 16  ;;  %v10939_v26 = vor.u32 %v6188_v19, %v6185_v43 }
 0xb01   : > { %v5836_v2 = vrot.slane %v5834_v32, 4  ;;  %v5839_v47 = vrot.slane %v5837_v11, 5  ;;  %v10922_v20 = vrot.slane %v5834_v32, 5  ;;  %v10924_v48 = vrot.slane %v5837_v11, 6 }
 0xb02   : > { %v10937_v9 = vsel %vm11704_vm10, %v10918_v5, %v10926_v8  ;;  %v6193_v6 = vrot.slane %v6191_v12, 2  ;;  %v6196_v3 = vrot.slane %v6194_v10, 3  ;;  %v10944_v25 = vsel %vm11705_vm6, %v10907_v53, %v10920_v34  ;;  %vm11711_vm10 = vmmov %vm11708_vm0 }
 0xb03   : > { %v5840_v24 = vor.u32 %v5839_v47, %v5836_v2  ;;  %v6046_v37 = vor.u32 %v10924_v48, %v10922_v20  ;;  %v10950_v49 = vrot.slane %v10857_v44, 1  ;;  %v5915_v17 = vrot.slane %v10829_v41, 1 }
 0xb04   : > { %5895 = vrot.lane.b32.xlu0 %v10920_v34, %s11699_s24  ;;  %5872 = vrot.lane.b32.xlu1 %v10905_v54, %s11697_s1  ;;  %v10956_v45 = vor.u32 %v6196_v3, %v6193_v6  ;;  %v5984_v0 = vrot.slane %v10829_v41, 7  ;;  %v10983_v63 = vrot.slane %v10905_v54, 1  ;;  %v5982_v51 = vrot.slane %v10807_v35, 7 }
 0xb05   : > { %v10947_v30 = vsel %vm11706_vm2, %v5832_v42, %v5840_v24  ;;  %v10966_v14 = vsel %vm11708_vm0, %v5915_v17, %v10950_v49  ;;  %v5934_v42 = vrot.slane %v10881_v36, 1  ;;  %v5981_v60 = vrot.slane %v10791_v38, 7 }
 0xb06   : > { %v10962_v27 = vsel %vm11707_vm7, %v10939_v26, %v10956_v45  ;;  %vm11710_vm11 = vcmask 1040384   ;;  %vm11713_vm2 = vcmask 1041408   ;;  %v11007_v2 = vrot.slane %v10817_v4, 7  ;;  %v11021_v4 = vld [vmem:[%s11562_s18] ss:$0 sm:$0xff] }
 0xb07   : > { %v10980_v13 = vsel %vm11709_vm14, %v10950_v49, %v5934_v42  ;;  %v5985_v32 = vsel %vm11710_vm11, %v5982_v51, %v5984_v0  ;;  %v10994_v11 = vsel %vm11711_vm10, %v5934_v42, %v10983_v63  ;;  %vm11712_vm6 = vmmov %vm11710_vm11  ;;  %v5968_v43 = vrot.slane %v10832_v23, 7 }
 0xb08   : > { %5893 = vrot.lane.b32.xlu0 %v10944_v25, %s11699_s24  ;;  %5844 = vrot.lane.b32.xlu1 %v10947_v30, %s11699_s24  ;;  %v10997_v52 = vsel %vm11712_vm6, %v5981_v60, %v5982_v51  ;;  %v11004_v62 = vsel %vm11713_vm2, %v5985_v32, 0  ;;  %vm11714_vm7 = vmmov %vm11712_vm6  ;;  %v5728_v32 = vshrl.u32 %v10807_v35, 16  ;;  %vm11715_vm0 = vsmask.f32 5376 }
 0xb09   : > { %v5993_v47 = vshrl.u32 %v10997_v52, 16  ;;  %v5996_v28 = vshll.u32 %v10997_v52, 16  ;;  %v6000_v24 = vshrl.u32 %v11004_v62, 16  ;;  %v6003_v19 = vshll.u32 %v11004_v62, 16 }
 0xb0a   : > { %v11025_v23 = vsel %vm11714_vm7, %v11007_v2, %v5968_v43  ;;  %vm11717_vm14 = vsmask.f32 3328  ;;  %vm11718_vm11 = vsmask.f32 2304  ;;  %vm11721_vm6 = vcmask 130048  }
 0xb0b   : > { %v5995_v12 = vrot.slane %v5993_v47, 2  ;;  %v5998_v10 = vrot.slane %v5996_v28, 3  ;;  %v6002_v6 = vrot.slane %v6000_v24, 2  ;;  %v6005_v3 = vrot.slane %v6003_v19, 3  ;;  %vm11720_vm10 = vmmov %vm11717_vm14 }
 0xb0c   : > { %5918 = vrot.lane.b32.xlu0 %v10966_v14, %s11644_s27  ;;  %5911 = vrot.lane.b32.xlu1 %v10781_v33, %s11681_s23  ;;  %v5731_v19 = vshll.u32 %v10807_v35, 16  ;;  %vm11722_vm2 = vmmov %vm11721_vm6 }
 0xb0d   : > { %v11032_v60 = vor.u32 %v5998_v10, %v5995_v12  ;;  %v11036_v24 = vor.u32 %v6005_v3, %v6002_v6  ;;  %v5730_v10 = vrot.slane %v5728_v32, 4  ;;  %v6040_v3 = vrot.slane %v5826_v29, 5  ;;  %vm11723_vm7 = vmmov %vm11718_vm11 }
 0xb0e   : > { %v6038_v32 = vrot.slane %v10872_v55, 6 }
 0xb0f   : > { %v11046_v12 = vsel %vm11715_vm0, %v11032_v60, %v11036_v24  ;;  %vm11724_vm0 = vmmov %vm11722_vm2 }
 0xb10   : > { %5920 = vrot.lane.b32.xlu0 %v10950_v49, %s11644_s27  ;;  %5913 = vrot.lane.b32.xlu1 %v10791_v38, %s11681_s23 }
 0xb14   : > { %5938 = vrot.lane.b32.xlu0 %v10980_v13, %s11644_s27  ;;  %5930 = vrot.lane.b32.xlu1 %v10807_v35, %s11681_s23 }
 0xb18   : > { %5932 = vrot.lane.b32.xlu0 %v10829_v41, %s11681_s23  ;;  %5940 = vrot.lane.b32.xlu1 %v10994_v11, %s11644_s27 }
 0xb1c   : > { %5970 = vrot.lane.b32.xlu0 %v11007_v2, %s11644_s27  ;;  %5942 = vrot.lane.b32.xlu1 %v10983_v63, %s11644_s27 }
 0xb20   : > { %5972 = vrot.lane.b32.xlu0 %v11025_v23, %s11644_s27  ;;  %5964 = vrot.lane.b32.xlu1 %v10857_v44, %s11681_s23  ;;  %v6476_v17 = vpop.f32.mrb[152].mxu0 }
 0xb21   : > { %v6477_v42 = vadd.f32 %v11021_v4, %v6476_v17  ;;  %v7975_v0 = vpop.f32.mrb[153].mxu0 }
 0xb22   : > { %v6479_v51 = vpop.f32.mrb[154].mxu0  ;;  %v6041_v0 = vrot.slane %v5829_v50, 6 }
 0xb23   : > { %v7445_v47 = vmul.f32 -1.442695, %v6477_v42  ;;  %v6480_v28 = vadd.f32 %v11021_v4, %v6479_v51  ;;  %v7976_v43 = vpop.f32.mrb[155].mxu0  ;;  %v5733_v42 = vrot.slane %v5731_v19, 5  ;;  %v6037_v51 = vrot.slane %v10869_v61, 5 }
 0xb24   : > { %6008 = vrot.lane.b32.xlu0 %v11032_v60, %s11644_s27  ;;  %5988 = vrot.lane.b32.xlu1 %v10881_v36, %s11681_s23  ;;  %v6042_v29 = vor.u32 %v6041_v0, %v6040_v3 }
 0xb25   : > { %8467 = vpow2.f32 %v7445_v47  ;;  %v7446_v17 = vmul.f32 -1.442695, %v6480_v28  ;;  %v5734_v6 = vor.u32 %v5733_v42, %v5730_v10  ;;  %v6039_v19 = vor.u32 %v6038_v32, %v6037_v51 }
 0xb27   : > { %8469 = vpow2.f32 %v7446_v17  ;;  %v11064_v28 = vsel %vm11717_vm14, %v10805_v46, %v5734_v6  ;;  %v6043_v17 = vsel %vm11718_vm11, %v6039_v19, %v6042_v29  ;;  %v11079_v46 = vsel %vm11720_vm10, %v5734_v6, %v5742_v21 }
 0xb28   : > { %5990 = vrot.lane.b32.xlu0 %v10905_v54, %s11681_s23  ;;  %6010 = vrot.lane.b32.xlu1 %v11046_v12, %s11644_s27  ;;  %s7087_s23 = sshll.u32 %s11858_s25, 3  ;;  %vm11725_vm14 = vcmask 261120   ;;  %vm11726_vm11 = vcmask 1040384   ;;  %vm11727_vm10 = vcmask 392192  }
 0xb29   : > { %s11088_s26 = scalar_lea.vmem %s11563_s19, %s7087_s23 }
 0xb2c   : > { %6025 = vrot.lane.b32.xlu0 %v10781_v33, %s11716_s30  ;;  %6012 = vrot.lane.b32.xlu1 %v11036_v24, %s11644_s27  ;;  %s11719_s27 = smov 48  }
 0xb2f   : > { %v8468_v47 = vpop.eup %8467 }
 0xb30   : > { %v6825_v43 = vadd.f32 1.0, %v8468_v47  ;;  %6033 = vrot.lane.b32.xlu0 %v10966_v14, %s11699_s24  ;;  %6029 = vrot.lane.b32.xlu1 %v11064_v28, %s11697_s1 }
 0xb31   : > { %v8470_v50 = vpop.eup %8469 }
 0xb32   : > { %8471 = vrcp.f32 %v6825_v43  ;;  %v6826_v61 = vadd.f32 1.0, %v8470_v50 }
 0xb34   : > { %8473 = vrcp.f32 %v6826_v61  ;;  %6027 = vrot.lane.b32.xlu0 %v10791_v38, %s11716_s30  ;;  %6048 = vrot.lane.b32.xlu1 %v6043_v17, %s11719_s27 }
 0xb38   : > { %6035 = vrot.lane.b32.xlu0 %v10950_v49, %s11699_s24  ;;  %6031 = vrot.lane.b32.xlu1 %v11079_v46, %s11697_s1 }
 0xb3c   : > { %v8472_v38 = vpop.eup %8471  ;;  %6066 = vrot.lane.b32.xlu0 %v10807_v35, %s11716_s30  ;;  %6070 = vrot.lane.b32.xlu1 %v10822_v57, %s11697_s1  ;;  %v6047_v35 = vsel %vm11723_vm7, %v6042_v29, %v6046_v37  ;;  %vm11730_vm7 = vmmov %vm11727_vm10 }
 0xb3d   : > { %6975 = vst.msk [vmem:[%s11088_s26] sm:$0xff] %vm11721_vm6, %v8472_v38  ;;  %vm11728_vm6 = vmmov %vm11724_vm0 }
 0xb3e   : > { %v8474_v16 = vpop.eup %8473 }
 0xb3f   : > { %6976 = vst.msk [vmem:[%s11088_s26 + $0x8] sm:$0xff] %vm11722_vm2, %v8474_v16  ;;  %vm11729_vm2 = vmmov %vm11725_vm14 }
 0xb40   : > { %6072 = vrot.lane.b32.xlu0 %v10837_v56, %s11697_s1  ;;  %6076 = vrot.lane.b32.xlu1 %v10980_v13, %s11699_s24  ;;  %v6127_v56 = vrot.slane %v11004_v62, 7 }
 0xb44   : > { %6078 = vrot.lane.b32.xlu0 %v10994_v11, %s11699_s24  ;;  %6089 = vrot.lane.b32.xlu1 %v10918_v5, %s11719_s27 }
 0xb48   : > { %6091 = vrot.lane.b32.xlu0 %v10937_v9, %s11719_s27  ;;  %6068 = vrot.lane.b32.xlu1 %v10829_v41, %s11716_s30 }
 0xb4b   : > { %v11122_v57 = vpop.permute.xlu1 %5719 }
 0xb4c   : > { %6074 = vrot.lane.b32.xlu0 %v10827_v40, %s11697_s1  ;;  %6080 = vrot.lane.b32.xlu1 %v10983_v63, %s11699_s24  ;;  %v6126_v40 = vrot.slane %v10997_v52, 7 }
 0xb4e   : > { %v6128_v5 = vsel %vm11726_vm11, %v6126_v40, %v6127_v56  ;;  %vm11733_vm11 = vmmov %vm11729_vm2 }
 0xb50   : > { %6117 = vrot.lane.b32.xlu0 %v10910_v7, %s11697_s1  ;;  %6093 = vrot.lane.b32.xlu1 %v10926_v8, %s11719_s27 }
 0xb53   : > { %v5776_v41 = vpop.permute.xlu0 %5775 }
 0xb54   : > { %6121 = vrot.lane.b32.xlu0 %v11007_v2, %s11699_s24  ;;  %6050 = vrot.lane.b32.xlu1 %v6047_v35, %s11719_s27 }
 0xb58   : > { %v5797_v15 = vpop.permute.xlu1 %5796  ;;  %6115 = vrot.lane.b32.xlu0 %v10857_v44, %s11716_s30  ;;  %6129 = vrot.lane.b32.xlu1 %v6126_v40, %s11719_s27 }
 0xb59   : > { %v5803_v55 = vsel %vm11724_vm0, %v11122_v57, %v5797_v15  ;;  %vm11731_vm0 = vcmask 1041408  }
 0xb5a   : > { %v5810_v21 = vsel %vm11725_vm14, %v5803_v55, %v11122_v57  ;;  %vm11732_vm14 = vmmov %vm11728_vm6 }
 0xb5b   : > { %v5799_v7 = vpop.permute.xlu0 %5798  ;;  %v11138_v20 = vsel %vm11727_vm10, %v5810_v21, %v5797_v15  ;;  %vm11734_vm10 = vmmov %vm11730_vm7 }
 0xb5c   : > { %v5806_v48 = vsel %vm11728_vm6, %v5776_v41, %v5799_v7  ;;  %6123 = vrot.lane.b32.xlu0 %v11025_v23, %s11699_s24  ;;  %6131 = vrot.lane.b32.xlu1 %v6128_v5, %s11719_s27  ;;  %v6234_v37 = vrot.slane %v11138_v20, 6 }
 0xb5d   : > { %v5811_v44 = vsel %vm11729_vm2, %v5806_v48, %v5776_v41 }
 0xb5e   : > { %v5814_v8 = vsel %vm11730_vm7, %v5811_v44, %v5799_v7 }
 0xb5f   : > { %v6235_v9 = vrot.slane %v5814_v8, 6  ;;  %v5801_v14 = vpop.permute.xlu0 %5800 }
 0xb60   : > { %6166 = vrot.lane.b32.xlu0 %v10881_v36, %s11716_s30  ;;  %6170 = vrot.lane.b32.xlu1 %v10907_v53, %s11697_s1  ;;  %v5778_v36 = vpop.permute.xlu1 %5777 }
 0xb61   : > { %v6236_v49 = vsel %vm11731_vm0, %v6234_v37, %v6235_v9  ;;  %v5809_v53 = vsel %vm11732_vm14, %v5778_v36, %v5801_v14  ;;  %vm11735_vm0 = vmmov %vm11728_vm6  ;;  %vm11736_vm14 = vcmask 1041408  }
 0xb62   : > { %8006 = vmatmul.mubr.msk.bf16.vlgmr.msra.gmra.mrb[80].mxu1 %vm1447_vm5, %v6236_v49 }
 0xb63   : > { %8009 = vmatprep.mubr.msk.bf16.mxu1 %vm11657_vm1, %v11656_v18  ;;  %v5818_v13 = vpop.permute.xlu0 %5817 }
 0xb64   : > { %6172 = vrot.lane.b32.xlu0 %v10944_v25, %s11697_s1  ;;  %5717 = vrot.lane.b32.xlu1 %v10781_v33, %s11697_s1  ;;  %v5812_v25 = vsel %vm11733_vm11, %v5809_v53, %v5778_v36  ;;  %vm11737_vm11 = vcmask 1042432  }
 0xb65   : > { %v5815_v63 = vsel %vm11734_vm10, %v5812_v25, %v5801_v14  ;;  %vm11738_vm10 = vmmov %vm11729_vm2 }
 0xb66   : > { %v6237_v52 = vrot.slane %v5815_v63, 6 }
 0xb68   : > { %5744 = vrot.lane.b32.xlu0 %v11064_v28, %s11699_s24  ;;  %6119 = vrot.lane.b32.xlu1 %v10947_v30, %s11697_s1  ;;  %v6238_v10 = vsel %vm11736_vm14, %v6235_v9, %v6237_v52 }
 0xb6b   : > { %v5871_v33 = vpop.permute.xlu1 %5870 }
 0xb6c   : > { %6178 = vrot.lane.b32.xlu0 %v11046_v12, %s11699_s24  ;;  %6176 = vrot.lane.b32.xlu1 %v11032_v60, %s11699_s24 }
 0xb70   : > { %6201 = vrot.lane.b32.xlu0 %v10962_v27, %s11719_s27  ;;  %6199 = vrot.lane.b32.xlu1 %v10939_v26, %s11719_s27 }
 0xb72   : > { %v5843_v30 = vpop.permute.xlu1 %5842  ;;  %v5892_v11 = vpop.permute.xlu0 %5891 }
 0xb73   : > { %v5847_v62 = vsel %vm11728_vm6, %v5778_v36, %v5843_v30  ;;  %v5898_v27 = vsel %vm11735_vm0, %v5818_v13, %v5892_v11  ;;  %vm11739_vm6 = vmmov %vm11735_vm0 }
 0xb74   : > { %v5851_v2 = vsel %vm11729_vm2, %v5847_v62, %v5778_v36  ;;  %6168 = vrot.lane.b32.xlu0 %v10905_v54, %s11716_s30  ;;  %5746 = vrot.lane.b32.xlu1 %v11079_v46, %s11699_s24  ;;  %v5905_v6 = vsel %vm11738_vm10, %v5898_v27, %v5818_v13  ;;  %vm11740_vm2 = vmmov %vm11730_vm7 }
 0xb75   : > { %v5853_v23 = vsel %vm11730_vm7, %v5851_v2, %v5843_v30  ;;  %v5908_v32 = vsel %vm11740_vm2, %v5905_v6, %v5892_v11  ;;  %vm11741_vm7 = vmmov %vm11738_vm10  ;;  %vm11744_vm10 = vcmask 1041408  }
 0xb76   : > { %v6242_v60 = vrot.slane %v5853_v23, 6  ;;  %v5873_v12 = vpop.permute.xlu1 %5872  ;;  %v5896_v26 = vpop.permute.xlu0 %5895  ;;  %vm11742_vm14 = vmmov %vm11740_vm2  ;;  %v6249_v50 = vrot.slane %v5908_v32, 6 }
 0xb78   : > { %6180 = vrot.lane.b32.xlu0 %v11036_v24, %s11699_s24  ;;  %6174 = vrot.lane.b32.xlu1 %v10920_v34, %s11697_s1  ;;  %v6320_v42 = vsel %vm11737_vm11, %v6238_v10, %v6242_v60  ;;  %vm11743_vm11 = vmmov %vm11741_vm7 }
 0xb79   : > { %8010 = vmatmul.mubr.msk.bf16.gmra.mrb[84].mxu1 %vm1447_vm5, %v6320_v42 }
 0xb7a   : > { %v5845_v3 = vpop.permute.xlu1 %5844  ;;  %v5894_v0 = vpop.permute.xlu0 %5893  ;;  %8013 = vmatprep.mubr.msk.bf16.mxu1 %vm11657_vm1, %v11656_v18 }
 0xb7b   : > { %v5850_v51 = vsel %vm11739_vm6, %v5818_v13, %v5845_v3  ;;  %v5901_v47 = vsel %vm11735_vm0, %v5871_v33, %v5894_v0  ;;  %vm11745_vm6 = vmmov %vm11740_vm2 }
 0xb7c   : > { %v5852_v24 = vsel %vm11741_vm7, %v5850_v51, %v5818_v13  ;;  %6203 = vrot.lane.b32.xlu1 %v10956_v45, %s11719_s27  ;;  %v5906_v19 = vsel %vm11743_vm11, %v5901_v47, %v5871_v33  ;;  %vm11746_vm2 = vmmov %vm11735_vm0 }
 0xb7d   : > { %v5854_v34 = vsel %vm11742_vm14, %v5852_v24, %v5845_v3  ;;  %v5909_v46 = vsel %vm11745_vm6, %v5906_v19, %v5894_v0  ;;  %v5904_v45 = vsel %vm11746_vm2, %v5873_v12, %v5896_v26  ;;  %vm11747_vm0 = vmmov %vm11741_vm7 }
 0xb7e   : > { %v6243_v28 = vrot.slane %v5854_v34, 6  ;;  %v5912_v29 = vpop.permute.xlu1 %5911  ;;  %v5919_v43 = vpop.permute.xlu0 %5918  ;;  %v6250_v35 = vrot.slane %v5909_v46, 6  ;;  %v5907_v15 = vsel %vm11747_vm0, %v5904_v45, %v5873_v12  ;;  %vm11748_vm14 = vmmov %vm11744_vm10 }
 0xb7f   : > { %v5925_v56 = vsel %vm11741_vm7, %v5912_v29, %v5919_v43  ;;  %vm11754_vm7 = vmmov %vm11747_vm0 }
 0xb80   : > { %v6244_v61 = vsel %vm11744_vm10, %v6242_v60, %v6243_v28  ;;  %v6251_v22 = vsel %vm11748_vm14, %v6249_v50, %v6250_v35  ;;  %vm11751_vm10 = vmmov %vm11747_vm0 }
 0xb81   : > { %v6321_v17 = vsel %vm10596_vm3, %v6244_v61, %v6249_v50  ;;  %vm11749_vm3 = vmmov %vm11745_vm6 }
 0xb82   : > { %v5914_v38 = vpop.permute.xlu1 %5913  ;;  %8014 = vmatmul.mubr.msk.bf16.gmra.mrb[88].mxu1 %vm1447_vm5, %v6321_v17  ;;  %v5921_v16 = vpop.permute.xlu0 %5920  ;;  %v5928_v55 = vsel %vm11749_vm3, %v5925_v56, %v5919_v43  ;;  %vm11750_vm11 = vmmov %vm11749_vm3 }
 0xb83   : > { %8017 = vmatprep.mubr.msk.bf16.mxu1 %vm11657_vm1, %v11656_v18  ;;  %v5910_v5 = vsel %vm11750_vm11, %v5907_v15, %v5896_v26  ;;  %v6257_v48 = vrot.slane %v5928_v55, 4  ;;  %v5927_v49 = vsel %vm11751_vm10, %v5914_v38, %v5921_v16  ;;  %vm11752_vm6 = vmmov %vm11748_vm14 }
 0xb84   : > { %v6252_v44 = vrot.slane %v5910_v5, 6  ;;  %vm11753_vm2 = vmmov %vm11749_vm3 }
 0xb85   : > { %v5929_v53 = vsel %vm11753_vm2, %v5927_v49, %v5921_v16  ;;  %vm11755_vm14 = vmmov %vm11753_vm2 }
 0xb86   : > { %v5931_v40 = vpop.permute.xlu1 %5930  ;;  %v5939_v41 = vpop.permute.xlu0 %5938  ;;  %v6253_v14 = vsel %vm11752_vm6, %v6250_v35, %v6252_v44  ;;  %v6258_v63 = vrot.slane %v5929_v53, 4  ;;  %vm11756_vm3 = vmmov %vm11753_vm2 }
 0xb87   : > { %v6324_v36 = vsel %vm1412_vm13, %v6253_v14, %v6257_v48  ;;  %v5947_v30 = vsel %vm11747_vm0, %v5914_v38, %v5939_v41  ;;  %vm11757_vm11 = vmmov %vm11747_vm0 }
 0xb88   : > { %v5952_v2 = vsel %vm11756_vm3, %v5947_v30, %v5939_v41  ;;  %v6259_v23 = vsel %vm1412_vm13, %v6257_v48, %v6258_v63  ;;  %vm11758_vm10 = vmmov %vm11753_vm2 }
 0xb89   : > { %v6264_v26 = vrot.slane %v5952_v2, 4  ;;  %vm11759_vm6 = vmmov %vm11747_vm0 }
 0xb8a   : > { %v5941_v21 = vpop.permute.xlu1 %5940  ;;  %8018 = vmatmul.mubr.msk.bf16.gmra.mrb[92].mxu1 %vm1447_vm5, %v6251_v22  ;;  %v5933_v7 = vpop.permute.xlu0 %5932  ;;  %vm11764_vm3 = vmmov %vm11759_vm6 }
 0xb8b   : > { %8021 = vmatprep.mubr.msk.bf16.mxu1 %vm11657_vm1, %v11656_v18  ;;  %v5949_v33 = vsel %vm11754_vm7, %v5931_v40, %v5941_v21  ;;  %vm11760_vm7 = vmmov %vm11747_vm0  ;;  %vm11761_vm0 = vcmask 1044480  }
 0xb8c   : > { %v5953_v62 = vsel %vm11755_vm14, %v5949_v33, %v5941_v21  ;;  %vm11763_vm14 = vmmov %vm11759_vm6 }
 0xb8d   : > { %v6265_v60 = vrot.slane %v5953_v62, 4 }
 0xb8e   : > { %v5943_v8 = vpop.permute.xlu1 %5942  ;;  %v5971_v9 = vpop.permute.xlu0 %5970 }
 0xb8f   : > { %v5951_v10 = vsel %vm11757_vm11, %v5933_v7, %v5943_v8  ;;  %v6266_v3 = vsel %vm1412_vm13, %v6264_v26, %v6265_v60  ;;  %v5976_v51 = vsel %vm11759_vm6, %v5933_v7, %v5971_v9  ;;  %vm11765_vm11 = vmmov %vm11753_vm2 }
 0xb90   : > { %v5954_v0 = vsel %vm11758_vm10, %v5951_v10, %v5943_v8  ;;  %v6325_v32 = vsel %vm8994_vm8, %v6258_v63, %v6266_v3  ;;  %v5979_v47 = vsel %vm11753_vm2, %v5976_v51, %v5971_v9  ;;  %vm11762_vm8 = vmmov %vm11753_vm2 }
 0xb91   : > { %v6267_v24 = vrot.slane %v5954_v0, 4  ;;  %v6272_v29 = vrot.slane %v5979_v47, 4  ;;  %vm11766_vm10 = vmmov %vm11753_vm2  ;;  %vm11768_vm2 = vcmask 130048  }
 0xb92   : > { %v5965_v25 = vpop.permute.xlu1 %5964  ;;  %8022 = vmatmul.mubr.msk.bf16.gmra.mrb[96].mxu1 %vm1447_vm5, %v6324_v36  ;;  %v5973_v13 = vpop.permute.xlu0 %5972  ;;  %vm11767_vm6 = vmmov %vm11764_vm3 }
 0xb93   : > { %8025 = vmatprep.mubr.msk.bf16.mxu1 %vm11657_vm1, %v11656_v18  ;;  %v6268_v19 = vsel %vm1412_vm13, %v6265_v60, %v6267_v24  ;;  %v5978_v61 = vsel %vm11760_vm7, %v5965_v25, %v5973_v13  ;;  %vm11769_vm7 = vmmov %vm11762_vm8 }
 0xb94   : > { %v6328_v58 = vsel %vm11761_vm0, %v6268_v19, %v6272_v29  ;;  %v5980_v17 = vsel %vm11762_vm8, %v5978_v61, %v5973_v13  ;;  %vm11770_vm0 = vmmov %vm11764_vm3 }
 0xb95   : > { %v6273_v35 = vrot.slane %v5980_v17, 4  ;;  %vm11771_vm8 = vmmov %vm11769_vm7 }
 0xb96   : > { %v5989_v11 = vpop.permute.xlu1 %5988  ;;  %v6009_v52 = vpop.permute.xlu0 %6008 }
 0xb97   : > { %v6017_v56 = vsel %vm11764_vm3, %v5965_v25, %v6009_v52  ;;  %v6274_v9 = vsel %vm1412_vm13, %v6272_v29, %v6273_v35  ;;  %vm11775_vm3 = vmmov %vm11768_vm2 }
 0xb98   : > { %v6022_v44 = vsel %vm11766_vm10, %v6017_v56, %v6009_v52  ;;  %vm11777_vm10 = vmmov %vm11770_vm0 }
 0xb99   : > { %v6279_v53 = vrot.slane %v6022_v44, 4 }
 0xb9a   : > { %v6011_v27 = vpop.permute.xlu1 %6010  ;;  %8026 = vmatmul.mubr.msk.bf16.gmra.mrb[100].mxu1 %vm1447_vm5, %v6259_v23  ;;  %v5991_v12 = vpop.permute.xlu0 %5990 }
 0xb9b   : > { %8029 = vmatprep.mubr.msk.bf16.mxu1 %vm11657_vm1, %v11656_v18  ;;  %v6019_v16 = vsel %vm11763_vm14, %v5989_v11, %v6011_v27  ;;  %vm11773_vm14 = vmmov %vm11768_vm2 }
 0xb9c   : > { %v6023_v55 = vsel %vm11765_vm11, %v6019_v16, %v6011_v27  ;;  %vm11776_vm11 = vmmov %vm11769_vm7 }
 0xb9d   : > { %v6280_v49 = vrot.slane %v6023_v55, 4 }
 0xb9e   : > { %v6013_v42 = vpop.permute.xlu1 %6012  ;;  %v6026_v6 = vpop.permute.xlu0 %6025 }
 0xb9f   : > { %v6021_v13 = vsel %vm11767_vm6, %v5991_v12, %v6013_v42  ;;  %v6281_v62 = vsel %vm1412_vm13, %v6279_v53, %v6280_v49  ;;  %vm11778_vm6 = vmmov %vm11768_vm2 }
 0xba0   : > { %v6024_v26 = vsel %vm11769_vm7, %v6021_v13, %v6013_v42  ;;  %v6329_v3 = vsel %vm10541_vm9, %v6273_v35, %v6281_v62  ;;  %vm11772_vm9 = vcmask 1045504  }
 0xba1   : > { %v6282_v42 = vrot.slane %v6024_v26, 4 }
 0xba2   : > { %v6030_v34 = vpop.permute.xlu1 %6029  ;;  %8030 = vmatmul.mubr.msk.bf16.gmra.mrb[104].mxu1 %vm1447_vm5, %v6325_v32  ;;  %v6034_v28 = vpop.permute.xlu0 %6033 }
 0xba3   : > { %8033 = vmatprep.mubr.msk.bf16.mxu1 %vm11657_vm1, %v11656_v18  ;;  %v6054_v30 = vsel %vm11768_vm2, %v6026_v6, %v6030_v34  ;;  %v6283_v35 = vsel %vm1412_vm13, %v6280_v49, %v6282_v42  ;;  %vm11774_vm13 = vmmov %vm11770_vm0 }
 0xba4   : > { %v6059_v10 = vsel %vm11770_vm0, %v6054_v30, %v6034_v28 }
 0xba6   : > { %v6049_v43 = vpop.permute.xlu1 %6048  ;;  %v11243_v50 = vpop.permute.xlu0 %6027 }
 0xba7   : > { %v11286_v6 = vsel %vm11771_vm8, %v6059_v10, %v6049_v43  ;;  %vm11779_vm8 = vmmov %vm11772_vm9 }
 0xba8   : > { %v6287_v31 = vrot.slane %v11286_v6, 2 }
 0xbaa   : > { %v11249_v46 = vpop.permute.xlu1 %6031  ;;  %8034 = vmatmul.mubr.msk.bf16.gmra.mrb[108].mxu1 %vm1447_vm5, %v6328_v58  ;;  %v11252_v38 = vpop.permute.xlu0 %6035 }
 0xbab   : > { %8037 = vmatprep.mubr.msk.bf16.mxu1 %vm11657_vm1, %v11656_v18  ;;  %v6057_v55 = vsel %vm11773_vm14, %v11243_v50, %v11249_v46  ;;  %vm11781_vm14 = vmmov %vm11769_vm7 }
 0xbac   : > { %v6484_v45 = vpop.f32.mrb[156].mxu0  ;;  %v6061_v49 = vsel %vm11774_vm13, %v6057_v55, %v11252_v38  ;;  %vm11782_vm13 = vmmov %vm11768_vm2 }
 0xbad   : > { %v6485_v40 = vadd.f32 %v11021_v4, %v6484_v45  ;;  %v7979_v41 = vpop.f32.mrb[157].mxu0 }
 0xbae   : > { %v11259_v15 = vpop.permute.xlu1 %6070  ;;  %v6487_v22 = vpop.f32.mrb[158].mxu0  ;;  %v6332_v41 = vsel %vm11772_vm9, %v6283_v35, %v6287_v31  ;;  %vm11780_vm9 = vmmov %vm11768_vm2 }
 0xbaf   : > { %v7447_v21 = vmul.f32 -1.442695, %v6485_v40  ;;  %v6488_v7 = vadd.f32 %v11021_v4, %v6487_v22  ;;  %v11263_v5 = vpop.permute.xlu0 %6066  ;;  %v7980_v48 = vpop.f32.mrb[159].mxu0 }
 0xbb1   : > { %8475 = vpow2.f32 %v7447_v21  ;;  %v7448_v8 = vmul.f32 -1.442695, %v6488_v7 }
 0xbb2   : > { %v11267_v14 = vpop.permute.xlu1 %6076  ;;  %8038 = vmatmul.mubr.msk.bf16.gmra.mrb[112].mxu1 %vm1447_vm5, %v6274_v9 }
 0xbb3   : > { %8477 = vpow2.f32 %v7448_v8  ;;  %v11270_v36 = vpop.permute.xlu0 %6072  ;;  %8041 = vmatprep.mubr.msk.bf16.mxu1 %vm11657_vm1, %v11656_v18 }
 0xbb4   : > { %v6492_v25 = vpop.f32.mrb[160].mxu0  ;;  %v6099_v46 = vsel %vm11775_vm3, %v11263_v5, %v11270_v36  ;;  %vm11783_vm3 = vmmov %vm11779_vm8 }
 0xbb5   : > { %v6493_v33 = vadd.f32 %v11021_v4, %v6492_v25  ;;  %v7983_v63 = vpop.f32.mrb[161].mxu0 }
 0xbb6   : > { %v11277_v11 = vpop.permute.xlu1 %6089  ;;  %v6495_v52 = vpop.f32.mrb[162].mxu0 }
 0xbb7   : > { %v7449_v2 = vmul.f32 -1.442695, %v6493_v33  ;;  %v6496_v23 = vadd.f32 %v11021_v4, %v6495_v52  ;;  %v6079_v60 = vpop.permute.xlu0 %6078  ;;  %v7984_v27 = vpop.f32.mrb[163].mxu0 }
 0xbb8   : > { %v6106_v38 = vsel %vm11777_vm10, %v6099_v46, %v6079_v60  ;;  %v6096_v27 = vsel %vm11768_vm2, %v11243_v50, %v11259_v15  ;;  %vm11785_vm10 = vmmov %vm11770_vm0 }
 0xbb9   : > { %8479 = vpow2.f32 %v7449_v2  ;;  %v7450_v12 = vmul.f32 -1.442695, %v6496_v23  ;;  %v6104_v10 = vsel %vm11770_vm0, %v6096_v27, %v11267_v14 }
 0xbba   : > { %v11288_v0 = vpop.permute.xlu1 %6068  ;;  %8042 = vmatmul.mubr.msk.bf16.gmra.mrb[116].mxu1 %vm1447_vm5, %v6329_v3  ;;  %v6110_v6 = vsel %vm11781_vm14, %v6104_v10, %v11277_v11  ;;  %vm11793_vm14 = vcmask 1046528  }
 0xbbb   : > { %v8476_v51 = vpop.eup %8475  ;;  %8481 = vpow2.f32 %v7450_v12  ;;  %v6092_v32 = vpop.permute.xlu0 %6091  ;;  %8045 = vmatprep.mubr.msk.bf16.mxu1 %vm11657_vm1, %v11656_v18 }
 0xbbc   : > { %v6827_v24 = vadd.f32 1.0, %v8476_v51  ;;  %v6500_v47 = vpop.f32.mrb[164].mxu0  ;;  %v11323_v5 = vsel %vm11769_vm7, %v6106_v38, %v6092_v32 }
 0xbbd   : > { %v8478_v34 = vpop.eup %8477  ;;  %v6501_v28 = vadd.f32 %v11021_v4, %v6500_v47  ;;  %v7987_v29 = vpop.f32.mrb[165].mxu0  ;;  %v6295_v15 = vrot.slane %v11323_v5, 2  ;;  %v6294_v47 = vrot.slane %v6110_v6, 2 }
 0xbbe   : > { %8483 = vrcp.f32 %v6827_v24  ;;  %v6828_v43 = vadd.f32 1.0, %v8478_v34  ;;  %v11295_v19 = vpop.permute.xlu1 %6080  ;;  %v6503_v61 = vpop.f32.mrb[166].mxu0 }
 0xbbf   : > { %v7451_v58 = vmul.f32 -1.442695, %v6501_v28  ;;  %v6504_v17 = vadd.f32 %v11021_v4, %v6503_v61  ;;  %v6075_v16 = vpop.permute.xlu0 %6074  ;;  %v7988_v45 = vpop.f32.mrb[167].mxu0 }
 0xbc0   : > { %8485 = vrcp.f32 %v6828_v43  ;;  %v6102_v34 = vsel %vm11782_vm13, %v11288_v0, %v6075_v16  ;;  %v6296_v45 = vsel %vm11783_vm3, %v6294_v47, %v6295_v15 }
 0xbc1   : > { %8487 = vpow2.f32 %v7451_v58  ;;  %v7452_v40 = vmul.f32 -1.442695, %v6504_v17  ;;  %v6108_v35 = vsel %vm11785_vm10, %v6102_v34, %v11295_v19 }
 0xbc2   : > { %v11300_v56 = vpop.permute.xlu1 %6093  ;;  %8046 = vmatmul.mubr.msk.bf16.gmra.mrb[120].mxu1 %vm1447_vm5, %v6332_v41 }
 0xbc3   : > { %v8480_v22 = vpop.eup %8479  ;;  %8489 = vpow2.f32 %v7452_v40  ;;  %v6118_v21 = vpop.permute.xlu0 %6117  ;;  %8049 = vmatprep.mubr.msk.bf16.mxu1 %vm11657_vm1, %v11656_v18 }
 0xbc4   : > { %v6829_v7 = vadd.f32 1.0, %v8480_v22  ;;  %v6508_v48 = vpop.f32.mrb[168].mxu0 }
 0xbc5   : > { %v8482_v44 = vpop.eup %8481  ;;  %v6509_v8 = vadd.f32 %v11021_v4, %v6508_v48  ;;  %v7991_v9 = vpop.f32.mrb[169].mxu0 }
 0xbc6   : > { %8491 = vrcp.f32 %v6829_v7  ;;  %v6830_v53 = vadd.f32 1.0, %v8482_v44  ;;  %v6051_v25 = vpop.permute.xlu1 %6050  ;;  %v6511_v13 = vpop.f32.mrb[170].mxu0 }
 0xbc7   : > { %v7453_v33 = vmul.f32 -1.442695, %v6509_v8  ;;  %v6065_v63 = vsel %vm11776_vm11, %v6061_v49, %v6051_v25  ;;  %v6512_v30 = vadd.f32 %v11021_v4, %v6511_v13  ;;  %v6122_v52 = vpop.permute.xlu0 %6121  ;;  %v7992_v62 = vpop.f32.mrb[171].mxu0  ;;  %vm11784_vm11 = vmmov %vm11768_vm2 }
 0xbc8   : > { %v8484_v2 = vpop.eup %8483  ;;  %8493 = vrcp.f32 %v6830_v53  ;;  %v6288_v23 = vrot.slane %v6065_v63, 2 }
 0xbc9   : > { %6977 = vst.msk [vmem:[%s11088_s26 + $0x10] sm:$0xff] %vm11778_vm6, %v8484_v2  ;;  %8495 = vpow2.f32 %v7453_v33  ;;  %v7454_v36 = vmul.f32 -1.442695, %v6512_v30  ;;  %vm11786_vm6 = vmmov %vm11768_vm2 }
 0xbca   : > { %v8486_v26 = vpop.eup %8485  ;;  %v6130_v12 = vpop.permute.xlu1 %6129  ;;  %v6289_v3 = vsel %vm11779_vm8, %v6287_v31, %v6288_v23  ;;  %v6134_v16 = vsel %vm11786_vm6, %v11288_v0, %v6118_v21  ;;  %vm11787_vm2 = vmmov %vm11769_vm7  ;;  %v6333_v48 = vsel %vm9081_vm12, %v6288_v23, %v6296_v45 }
 0xbcb   : > { %v8488_v60 = vpop.eup %8487  ;;  %6978 = vst.msk [vmem:[%s11088_s26 + $0x18] sm:$0xff] %vm11780_vm9, %v8486_v26  ;;  %8497 = vpow2.f32 %v7454_v36  ;;  %v11332_v50 = vpop.permute.xlu0 %6115  ;;  %8050 = vmatmul.mubr.msk.bf16.gmra.mrb[124].mxu1 %vm1447_vm5, %v6289_v3  ;;  %v6114_v22 = vsel %vm11787_vm2, %v6108_v35, %v11300_v56  ;;  %vm11788_vm7 = vmmov %vm11770_vm0 }
 0xbcc   : > { %v6831_v51 = vadd.f32 1.0, %v8488_v60  ;;  %v6516_v32 = vpop.f32.mrb[172].mxu0  ;;  %8053 = vmatprep.mubr.msk.bf16.mxu1 %vm11657_vm1, %v11656_v18  ;;  %v6139_v55 = vsel %vm11788_vm7, %v6134_v16, %v6122_v52  ;;  %vm11789_vm0 = vmmov %vm11786_vm6  ;;  %v6297_v8 = vrot.slane %v6114_v22, 2 }
 0xbcd   : > { %v8490_v14 = vpop.eup %8489  ;;  %v6517_v42 = vadd.f32 %v11021_v4, %v6516_v32  ;;  %v7995_v24 = vpop.f32.mrb[173].mxu0  ;;  %vm11790_vm8 = vmmov %vm11787_vm2 }
 0xbce   : > { %8499 = vrcp.f32 %v6831_v51  ;;  %v6832_v11 = vadd.f32 1.0, %v8490_v14  ;;  %v6132_v31 = vpop.permute.xlu1 %6131  ;;  %v6519_v28 = vpop.f32.mrb[174].mxu0  ;;  %v6143_v19 = vsel %vm11790_vm8, %v6139_v55, %v6130_v12  ;;  %vm11791_vm12 = vmmov %vm11789_vm0 }
 0xbcf   : > { %v7455_v29 = vmul.f32 -1.442695, %v6517_v42  ;;  %v6520_v43 = vadd.f32 %v11021_v4, %v6519_v28  ;;  %v6124_v61 = vpop.permute.xlu0 %6123  ;;  %v7996_v58 = vpop.f32.mrb[175].mxu0  ;;  %v6302_v9 = vrot.slane %v6143_v19, 2  ;;  %vm11792_vm9 = vmmov %vm11783_vm3 }
 0xbd0   : > { %v8492_v17 = vpop.eup %8491  ;;  %8501 = vrcp.f32 %v6832_v11  ;;  %v6298_v13 = vsel %vm11792_vm9, %v6295_v15, %v6297_v8  ;;  %vm11794_vm13 = vmmov %vm11789_vm0 }
 0xbd1   : > { %6979 = vst.msk [vmem:[%s11088_s26 + $0x20] sm:$0xff] %vm11784_vm11, %v8492_v17  ;;  %8503 = vpow2.f32 %v7455_v29  ;;  %v7456_v40 = vmul.f32 -1.442695, %v6520_v43  ;;  %v6336_v63 = vsel %vm11793_vm14, %v6298_v13, %v6302_v9  ;;  %vm11795_vm3 = vmmov %vm11789_vm0 }
 0xbd2   : > { %v8494_v41 = vpop.eup %8493  ;;  %v6171_v7 = vpop.permute.xlu1 %6170  ;;  %vm11796_vm11 = vmmov %vm11788_vm7 }
 0xbd3   : > { %v8496_v44 = vpop.eup %8495  ;;  %6980 = vst.msk [vmem:[%s11088_s26 + $0x28] sm:$0xff] %vm11789_vm0, %v8494_v41  ;;  %8505 = vpow2.f32 %v7456_v40  ;;  %v6167_v0 = vpop.permute.xlu0 %6166  ;;  %8054 = vmatmul.mubr.msk.bf16.gmra.mrb[128].mxu1 %vm1447_vm5, %v6333_v48  ;;  %vm11797_vm10 = vmmov %vm11789_vm0 }
 0xbd4   : > { %v6833_v21 = vadd.f32 1.0, %v8496_v44  ;;  %8057 = vmatprep.mubr.msk.bf16.mxu1 %vm11657_vm1, %v11656_v18  ;;  %vm11798_vm6 = vmmov %vm11787_vm2 }
 0xbd5   : > { %v8498_v56 = vpop.eup %8497  ;;  %vm11799_vm2 = vmmov %vm11788_vm7 }
 0xbd6   : > { %8507 = vrcp.f32 %v6833_v21  ;;  %v6834_v39 = vadd.f32 1.0, %v8498_v56  ;;  %v5718_v49 = vpop.permute.xlu1 %5717  ;;  %vm11800_vm7 = vmmov %vm11798_vm6 }
 0xbd7   : > { %v6173_v53 = vpop.permute.xlu0 %6172  ;;  %vm11801_vm8 = vmmov %vm11789_vm0 }
 0xbd8   : > { %v8500_v25 = vpop.eup %8499  ;;  %8509 = vrcp.f32 %v6834_v39  ;;  %v6206_v51 = vsel %vm11801_vm8, %v11332_v50, %v6171_v7  ;;  %vm11803_vm9 = vmmov %vm11789_vm0 }
 0xbd9   : > { %6981 = vst.msk [vmem:[%s11088_s26 + $0x30] sm:$0xff] %vm11791_vm12, %v8500_v25  ;;  %vm11802_vm12 = vcmask 1041408   ;;  %v6209_v42 = vsel %vm11803_vm9, %v6167_v0, %v6173_v53  ;;  %vm11804_vm14 = vmmov %vm11799_vm2 }
 0xbda   : > { %v8502_v46 = vpop.eup %8501  ;;  %v6120_v33 = vpop.permute.xlu1 %6119 }
 0xbdb   : > { %v8504_v30 = vpop.eup %8503  ;;  %6982 = vst.msk [vmem:[%s11088_s26 + $0x38] sm:$0xff] %vm11794_vm13, %v8502_v46  ;;  %v6137_v52 = vsel %vm11795_vm3, %v11332_v50, %v6120_v33  ;;  %v5745_v62 = vpop.permute.xlu0 %5744  ;;  %8058 = vmatmul.mubr.msk.bf16.gmra.mrb[132].mxu1 %vm1447_vm5, %v6336_v63  ;;  %vm11805_vm13 = vcmask 1045504   ;;  %vm11806_vm3 = vmmov %vm11789_vm0 }
 0xbdc   : > { %v6835_v2 = vadd.f32 1.0, %v8504_v30  ;;  %v6141_v38 = vsel %vm11796_vm11, %v6137_v52, %v6124_v61  ;;  %v5750_v23 = vsel %vm11797_vm10, %v5718_v49, %v5745_v62  ;;  %8061 = vmatprep.mubr.msk.bf16.mxu1 %vm11657_vm1, %v11656_v18  ;;  %vm11807_vm11 = vmmov %vm11799_vm2 }
 0xbdd   : > { %v8506_v27 = vpop.eup %8505  ;;  %v6145_v5 = vsel %vm11798_vm6, %v6141_v38, %v6132_v31  ;;  %v5754_v36 = vsel %vm11799_vm2, %v5750_v23, %v5718_v49  ;;  %vm11808_vm10 = vmmov %vm11798_vm6 }
 0xbde   : > { %8511 = vrcp.f32 %v6835_v2  ;;  %v6836_v26 = vadd.f32 1.0, %v8506_v27  ;;  %v6303_v10 = vrot.slane %v6145_v5, 2  ;;  %v5756_v12 = vsel %vm11800_vm7, %v5754_v36, %v5745_v62  ;;  %v6177_v3 = vpop.permute.xlu1 %6176  ;;  %vm11809_vm2 = vmmov %vm11789_vm0 }
 0xbdf   : > { %v6227_v60 = vrot.slane %v5756_v12, 6  ;;  %v6179_v6 = vpop.permute.xlu0 %6178  ;;  %v6214_v24 = vsel %vm11804_vm14, %v6206_v51, %v6177_v3  ;;  %vm11810_vm7 = vmmov %vm11805_vm13 }
 0xbe0   : > { %v8508_v15 = vpop.eup %8507  ;;  %8513 = vrcp.f32 %v6836_v26  ;;  %v6304_v11 = vsel %vm11805_vm13, %v6302_v9, %v6303_v10  ;;  %v6216_v34 = vsel %vm11807_vm11, %v6209_v42, %v6179_v6  ;;  %vm11812_vm8 = vmmov %vm11809_vm2  ;;  %vm11816_vm13 = vcmask 1041408  }
 0xbe1   : > { %6983 = vst.msk [vmem:[%s11088_s26 + $0x40] sm:$0xff] %vm11789_vm0, %v8508_v15  ;;  %v6316_v32 = vsel %vm11802_vm12, %v10905_v54, %v6227_v60  ;;  %vm11811_vm0 = vmmov %vm11807_vm11 }
 0xbe2   : > { %v8510_v14 = vpop.eup %8509  ;;  %7998 = vmatmul.mubr.msk.bf16.gmra.mrb[176].mxu0 %vm1447_vm5, %v6316_v32  ;;  %v6200_v47 = vpop.permute.xlu1 %6199  ;;  %vm11813_vm12 = vmmov %vm11798_vm6 }
 0xbe3   : > { %6984 = vst.msk [vmem:[%s11088_s26 + $0x48] sm:$0xff] %vm11806_vm3, %v8510_v14  ;;  %v6220_v50 = vsel %vm11808_vm10, %v6214_v24, %v6200_v47  ;;  %v6202_v31 = vpop.permute.xlu0 %6201  ;;  %8062 = vmatmul.mubr.msk.bf16.gmra.mrb[136].mxu1 %vm1447_vm5, %v6304_v11  ;;  %8001 = vmatprep.mubr.msk.bf16.mxu0 %vm11657_vm1, %v11656_v18  ;;  %vm11814_vm9 = vmmov %vm11809_vm2 }
 0xbe4   : > { %v6309_v54 = vrot.slane %v6220_v50, 2  ;;  %v6222_v28 = vsel %vm11798_vm6, %v6216_v34, %v6202_v31  ;;  %8065 = vmatprep.mubr.msk.bf16.mxu1 %vm11657_vm1, %v11656_v18  ;;  %vm11815_vm14 = vmmov %vm11809_vm2 }
 0xbe5   : > { %v6310_v29 = vrot.slane %v6222_v28, 2  ;;  %vm11817_vm3 = vmmov %vm11811_vm0 }
 0xbe6   : > { %v5747_v43 = vpop.permute.xlu1 %5746  ;;  %vm11819_vm11 = vmmov %vm11810_vm7 }
 0xbe7   : > { %v5753_v61 = vsel %vm11809_vm2, %v11122_v57, %v5747_v43  ;;  %v6169_v58 = vpop.permute.xlu0 %6168  ;;  %v6311_v17 = vsel %vm11810_vm7, %v6309_v54, %v6310_v29 }
 0xbe8   : > { %v8512_v45 = vpop.eup %8511  ;;  %v5755_v35 = vsel %vm11811_vm0, %v5753_v61, %v11122_v57  ;;  %v6337_v55 = vsel %vm10557_vm4, %v6303_v10, %v6311_v17  ;;  %vm11818_vm4 = vmmov %vm11798_vm6 }
 0xbe9   : > { %6985 = vst.msk [vmem:[%s11088_s26 + $0x50] sm:$0xff] %vm11812_vm8, %v8512_v45  ;;  %v5757_v16 = vsel %vm11813_vm12, %v5755_v35, %v5747_v43 }
 0xbea   : > { %v8514_v40 = vpop.eup %8513  ;;  %v6228_v41 = vrot.slane %v5757_v16, 6  ;;  %v6175_v22 = vpop.permute.xlu1 %6174 }
 0xbeb   : > { %6986 = vst.msk [vmem:[%s11088_s26 + $0x58] sm:$0xff] %vm11814_vm9, %v8514_v40  ;;  %v6212_v7 = vsel %vm11815_vm14, %v6169_v58, %v6175_v22  ;;  %v6181_v48 = vpop.permute.xlu0 %6180  ;;  %8066 = vmatmul.mubr.msk.bf16.gmra.mrb[140].mxu1 %vm1447_vm5, %v6337_v55 }
 0xbec   : > { %v6229_v44 = vsel %vm11816_vm13, %v6227_v60, %v6228_v41  ;;  %8069 = vmatprep.mubr.msk.bf16.mxu1 %vm11657_vm1, %v11656_v18  ;;  %v6218_v1 = vsel %vm11817_vm3, %v6212_v7, %v6181_v48  ;;  %vm11822_vm1 = vmmov %vm11809_vm2 }
 0xbed   : > { %v6317_v57 = vsel %vm10582_vm15, %v6229_v44, %v6234_v37  ;;  %vm11821_vm15 = vmmov %vm11809_vm2 }
 0xbee   : > { %v6204_v19 = vpop.permute.xlu1 %6203  ;;  %8002 = vmatmul.mubr.msk.bf16.gmra.mrb[180].mxu0 %vm1447_vm5, %v6317_v57  ;;  %vm11823_vm10 = vmmov %vm11822_vm1 }
 0xbef   : > { %v6224_v0 = vsel %vm11818_vm4, %v6218_v1, %v6204_v19  ;;  %vm11824_vm6 = vmmov %vm11822_vm1 }
 0xbf0   : > { %v6312_v21 = vrot.slane %v6224_v0, 2  ;;  %v11443_v0 = vld [vmem:[%s11562_s18] ss:$0 sm:$0xff]  ;;  %vm11826_vm7 = vmmov %vm11822_vm1 }
 0xbf1   : > { %vm11827_vm0 = vmmov %vm11822_vm1 }
 0xbf2   : > { %v6313_v56 = vsel %vm11819_vm11, %v6310_v29, %v6312_v21  ;;  %vm11828_vm8 = vmmov %vm11827_vm0 }
 0xbf3   : > { %8070 = vmatmul.mubr.msk.bf16.gmra.mrb[144].mxu1 %vm1447_vm5, %v6313_v56  ;;  %vm11820_vm5 = vmmov %vm11809_vm2 }
 0xbf4   : > { %vm11825_vm2 = vmmov %vm11822_vm1 }
 0xbf5   : > { %vm11829_vm12 = vmmov %vm11827_vm0 }
 0xbf6   : > { %vm11830_vm9 = vmmov %vm11827_vm0 }
 0xbf7   : > { %vm11831_vm14 = vmmov %vm11827_vm0 }
 0xbf8   : > { %vm11832_vm13 = vmmov %vm11827_vm0 }
 0xbf9   : > { %vm11833_vm3 = vmmov %vm11827_vm0 }
 0xbfa   : > { %vm11834_vm4 = vmmov %vm11827_vm0 }
 0xbfb   : > { %vm11835_vm11 = vmmov %vm11827_vm0 }
 0xc35   : > { %v6540_v8 = vpop.f32.mrb[80].mxu1 }
 0xc36   : > { %v6541_v18 = vadd.f32 %v11021_v4, %v6540_v8  ;;  %v8007_v39 = vpop.f32.mrb[81].mxu1 }
 0xc37   : > { %v6543_v20 = vpop.f32.mrb[82].mxu1 }
 0xc38   : > { %v7461_v9 = vmul.f32 -1.442695, %v6541_v18  ;;  %v6544_v59 = vadd.f32 %v11021_v4, %v6543_v20  ;;  %v8008_v37 = vpop.f32.mrb[83].mxu1 }
 0xc3a   : > { %8515 = vpow2.f32 %v7461_v9  ;;  %v7462_v49 = vmul.f32 -1.442695, %v6544_v59 }
 0xc3c   : > { %8517 = vpow2.f32 %v7462_v49 }
 0xc44   : > { %v8516_v53 = vpop.eup %8515 }
 0xc45   : > { %v6841_v25 = vadd.f32 1.0, %v8516_v53 }
 0xc46   : > { %v8518_v13 = vpop.eup %8517 }
 0xc47   : > { %8519 = vrcp.f32 %v6841_v25  ;;  %v6842_v46 = vadd.f32 1.0, %v8518_v13 }
 0xc49   : > { %8521 = vrcp.f32 %v6842_v46 }
 0xc4c   : > { %v6548_v33 = vpop.f32.mrb[84].mxu1 }
 0xc4d   : > { %v6549_v63 = vadd.f32 %v11021_v4, %v6548_v33  ;;  %v8011_v30 = vpop.f32.mrb[85].mxu1 }
 0xc4e   : > { %v6551_v52 = vpop.f32.mrb[86].mxu1 }
 0xc4f   : > { %v7463_v62 = vmul.f32 -1.442695, %v6549_v63  ;;  %v6552_v2 = vadd.f32 %v11021_v4, %v6551_v52  ;;  %v8012_v38 = vpop.f32.mrb[87].mxu1 }
 0xc51   : > { %v8520_v23 = vpop.eup %8519  ;;  %8523 = vpow2.f32 %v7463_v62  ;;  %v7464_v27 = vmul.f32 -1.442695, %v6552_v2 }
 0xc52   : > { %6991 = vst.msk [vmem:[%s11088_s26 + $0x80] sm:$0xff] %vm11820_vm5, %v8520_v23  ;;  %vm11836_vm5 = vmmov %vm11827_vm0 }
 0xc53   : > { %v8522_v5 = vpop.eup %8521  ;;  %8525 = vpow2.f32 %v7464_v27 }
 0xc54   : > { %6992 = vst.msk [vmem:[%s11088_s26 + $0x88] sm:$0xff] %vm11821_vm15, %v8522_v5  ;;  %vm11837_vm15 = vmmov %vm11827_vm0 }
 0xc55   : > { %v6556_v36 = vpop.f32.mrb[88].mxu1 }
 0xc56   : > { %v6557_v26 = vadd.f32 %v11021_v4, %v6556_v36  ;;  %v8015_v10 = vpop.f32.mrb[89].mxu1 }
 0xc57   : > { %v6559_v12 = vpop.f32.mrb[90].mxu1 }
 0xc58   : > { %v7465_v3 = vmul.f32 -1.442695, %v6557_v26  ;;  %v6560_v60 = vadd.f32 %v11021_v4, %v6559_v12  ;;  %v8016_v6 = vpop.f32.mrb[91].mxu1 }
 0xc5a   : > { %8527 = vpow2.f32 %v7465_v3  ;;  %v7466_v15 = vmul.f32 -1.442695, %v6560_v60 }
 0xc5b   : > { %v8524_v51 = vpop.eup %8523 }
 0xc5c   : > { %v6843_v32 = vadd.f32 1.0, %v8524_v51  ;;  %8529 = vpow2.f32 %v7466_v15 }
 0xc5d   : > { %v8526_v14 = vpop.eup %8525  ;;  %v6564_v42 = vpop.f32.mrb[92].mxu1 }
 0xc5e   : > { %8531 = vrcp.f32 %v6843_v32  ;;  %v6844_v24 = vadd.f32 1.0, %v8526_v14  ;;  %v6565_v47 = vadd.f32 %v11021_v4, %v6564_v42  ;;  %v8019_v11 = vpop.f32.mrb[93].mxu1 }
 0xc5f   : > { %v6567_v34 = vpop.f32.mrb[94].mxu1 }
 0xc60   : > { %8533 = vrcp.f32 %v6844_v24  ;;  %v7467_v50 = vmul.f32 -1.442695, %v6565_v47  ;;  %v6568_v31 = vadd.f32 %v11021_v4, %v6567_v34  ;;  %v8020_v54 = vpop.f32.mrb[95].mxu1 }
 0xc62   : > { %8535 = vpow2.f32 %v7467_v50  ;;  %v7468_v28 = vmul.f32 -1.442695, %v6568_v31 }
 0xc64   : > { %v8528_v29 = vpop.eup %8527  ;;  %8537 = vpow2.f32 %v7468_v28 }
 0xc65   : > { %v6845_v43 = vadd.f32 1.0, %v8528_v29  ;;  %v6572_v61 = vpop.f32.mrb[96].mxu1 }
 0xc66   : > { %v8530_v58 = vpop.eup %8529  ;;  %v6573_v17 = vadd.f32 %v11021_v4, %v6572_v61  ;;  %v8023_v45 = vpop.f32.mrb[97].mxu1 }
 0xc67   : > { %8539 = vrcp.f32 %v6845_v43  ;;  %v6846_v35 = vadd.f32 1.0, %v8530_v58  ;;  %v6575_v16 = vpop.f32.mrb[98].mxu1 }
 0xc68   : > { %v8532_v40 = vpop.eup %8531  ;;  %v7469_v41 = vmul.f32 -1.442695, %v6573_v17  ;;  %v6576_v22 = vadd.f32 %v11021_v4, %v6575_v16  ;;  %v8024_v55 = vpop.f32.mrb[99].mxu1 }
 0xc69   : > { %6993 = vst.msk [vmem:[%s11088_s26 + $0x90] sm:$0xff] %vm11822_vm1, %v8532_v40  ;;  %8541 = vrcp.f32 %v6846_v35  ;;  %vm11838_vm1 = vmmov %vm11827_vm0 }
 0xc6a   : > { %v8534_v7 = vpop.eup %8533  ;;  %8543 = vpow2.f32 %v7469_v41  ;;  %v7470_v48 = vmul.f32 -1.442695, %v6576_v22 }
 0xc6b   : > { %6994 = vst.msk [vmem:[%s11088_s26 + $0x98] sm:$0xff] %vm11823_vm10, %v8534_v7  ;;  %vm11839_vm10 = vmmov %vm11827_vm0 }
 0xc6c   : > { %v8536_v44 = vpop.eup %8535  ;;  %8545 = vpow2.f32 %v7470_v48 }
 0xc6d   : > { %v6847_v57 = vadd.f32 1.0, %v8536_v44  ;;  %v6580_v1 = vpop.f32.mrb[100].mxu1 }
 0xc6e   : > { %v8538_v19 = vpop.eup %8537  ;;  %v6581_v4 = vadd.f32 %v11443_v0, %v6580_v1  ;;  %v8027_v21 = vpop.f32.mrb[101].mxu1 }
 0xc6f   : > { %8547 = vrcp.f32 %v6847_v57  ;;  %v6848_v56 = vadd.f32 1.0, %v8538_v19  ;;  %v6583_v8 = vpop.f32.mrb[102].mxu1 }
 0xc70   : > { %v7471_v18 = vmul.f32 -1.442695, %v6581_v4  ;;  %v6584_v39 = vadd.f32 %v11443_v0, %v6583_v8  ;;  %v8028_v20 = vpop.f32.mrb[103].mxu1 }
 0xc71   : > { %v8540_v9 = vpop.eup %8539  ;;  %8549 = vrcp.f32 %v6848_v56 }
 0xc72   : > { %6995 = vst.msk [vmem:[%s11088_s26 + $0xa0] sm:$0xff] %vm11824_vm6, %v8540_v9  ;;  %8551 = vpow2.f32 %v7471_v18  ;;  %v7472_v59 = vmul.f32 -1.442695, %v6584_v39  ;;  %vm11840_vm6 = vmmov %vm11827_vm0 }
 0xc73   : > { %v8542_v37 = vpop.eup %8541 }
 0xc74   : > { %v8544_v49 = vpop.eup %8543  ;;  %6996 = vst.msk [vmem:[%s11088_s26 + $0xa8] sm:$0xff] %vm11825_vm2, %v8542_v37  ;;  %8553 = vpow2.f32 %v7472_v59  ;;  %vm11841_vm2 = vmmov %vm11827_vm0 }
 0xc75   : > { %v6849_v53 = vadd.f32 1.0, %v8544_v49  ;;  %v6588_v25 = vpop.f32.mrb[104].mxu1 }
 0xc76   : > { %v8546_v13 = vpop.eup %8545  ;;  %v6589_v46 = vadd.f32 %v11443_v0, %v6588_v25  ;;  %v8031_v33 = vpop.f32.mrb[105].mxu1 }
 0xc77   : > { %8555 = vrcp.f32 %v6849_v53  ;;  %v6850_v63 = vadd.f32 1.0, %v8546_v13  ;;  %v6591_v30 = vpop.f32.mrb[106].mxu1 }
 0xc78   : > { %v7473_v52 = vmul.f32 -1.442695, %v6589_v46  ;;  %v6592_v62 = vadd.f32 %v11443_v0, %v6591_v30  ;;  %v8032_v2 = vpop.f32.mrb[107].mxu1 }
 0xc79   : > { %v8548_v38 = vpop.eup %8547  ;;  %8557 = vrcp.f32 %v6850_v63 }
 0xc7a   : > { %6997 = vst.msk [vmem:[%s11088_s26 + $0xb0] sm:$0xff] %vm11826_vm7, %v8548_v38  ;;  %8559 = vpow2.f32 %v7473_v52  ;;  %v7474_v23 = vmul.f32 -1.442695, %v6592_v62  ;;  %vm11842_vm7 = vmmov %vm11827_vm0 }
 0xc7b   : > { %v8550_v27 = vpop.eup %8549 }
 0xc7c   : > { %v8552_v5 = vpop.eup %8551  ;;  %6998 = vst.msk [vmem:[%s11088_s26 + $0xb8] sm:$0xff] %vm11827_vm0, %v8550_v27  ;;  %8561 = vpow2.f32 %v7474_v23 }
 0xc7d   : > { %v6851_v36 = vadd.f32 1.0, %v8552_v5  ;;  %v6596_v26 = vpop.f32.mrb[108].mxu1 }
 0xc7e   : > { %v8554_v10 = vpop.eup %8553  ;;  %v6597_v12 = vadd.f32 %v11443_v0, %v6596_v26  ;;  %v8035_v3 = vpop.f32.mrb[109].mxu1 }
 0xc7f   : > { %8563 = vrcp.f32 %v6851_v36  ;;  %v6852_v60 = vadd.f32 1.0, %v8554_v10  ;;  %v6599_v6 = vpop.f32.mrb[110].mxu1 }
 0xc80   : > { %v7475_v15 = vmul.f32 -1.442695, %v6597_v12  ;;  %v6600_v51 = vadd.f32 %v11443_v0, %v6599_v6  ;;  %v8036_v32 = vpop.f32.mrb[111].mxu1 }
 0xc81   : > { %v8556_v14 = vpop.eup %8555  ;;  %8565 = vrcp.f32 %v6852_v60 }
 0xc82   : > { %6999 = vst.msk [vmem:[%s11088_s26 + $0xc0] sm:$0xff] %vm11828_vm8, %v8556_v14  ;;  %8567 = vpow2.f32 %v7475_v15  ;;  %v7476_v42 = vmul.f32 -1.442695, %v6600_v51  ;;  %vm11843_vm8 = vmmov %vm11827_vm0 }
 0xc83   : > { %v8558_v24 = vpop.eup %8557 }
 0xc84   : > { %v8560_v47 = vpop.eup %8559  ;;  %7000 = vst.msk [vmem:[%s11088_s26 + $0xc8] sm:$0xff] %vm11829_vm12, %v8558_v24  ;;  %8569 = vpow2.f32 %v7476_v42  ;;  %vm11844_vm12 = vmmov %vm11827_vm0 }
 0xc85   : > { %v6853_v11 = vadd.f32 1.0, %v8560_v47  ;;  %v6604_v34 = vpop.f32.mrb[112].mxu1 }
 0xc86   : > { %v8562_v50 = vpop.eup %8561  ;;  %v6605_v31 = vadd.f32 %v11443_v0, %v6604_v34  ;;  %v8039_v54 = vpop.f32.mrb[113].mxu1 }
 0xc87   : > { %8571 = vrcp.f32 %v6853_v11  ;;  %v6854_v28 = vadd.f32 1.0, %v8562_v50  ;;  %v6607_v29 = vpop.f32.mrb[114].mxu1 }
 0xc88   : > { %v7477_v43 = vmul.f32 -1.442695, %v6605_v31  ;;  %v6608_v61 = vadd.f32 %v11443_v0, %v6607_v29  ;;  %v8040_v58 = vpop.f32.mrb[115].mxu1 }
 0xc89   : > { %v8564_v17 = vpop.eup %8563  ;;  %8573 = vrcp.f32 %v6854_v28 }
 0xc8a   : > { %7001 = vst.msk [vmem:[%s11088_s26 + $0xd0] sm:$0xff] %vm11830_vm9, %v8564_v17  ;;  %8575 = vpow2.f32 %v7477_v43  ;;  %v7478_v45 = vmul.f32 -1.442695, %v6608_v61  ;;  %vm11845_vm9 = vmmov %vm11827_vm0 }
 0xc8b   : > { %v8566_v35 = vpop.eup %8565 }
 0xc8c   : > { %v8568_v16 = vpop.eup %8567  ;;  %7002 = vst.msk [vmem:[%s11088_s26 + $0xd8] sm:$0xff] %vm11831_vm14, %v8566_v35  ;;  %8577 = vpow2.f32 %v7478_v45  ;;  %vm11846_vm14 = vmmov %vm11827_vm0 }
 0xc8d   : > { %v6855_v40 = vadd.f32 1.0, %v8568_v16  ;;  %v6612_v41 = vpop.f32.mrb[116].mxu1 }
 0xc8e   : > { %v8570_v22 = vpop.eup %8569  ;;  %v6613_v55 = vadd.f32 %v11443_v0, %v6612_v41  ;;  %v8043_v7 = vpop.f32.mrb[117].mxu1 }
 0xc8f   : > { %8579 = vrcp.f32 %v6855_v40  ;;  %v6856_v48 = vadd.f32 1.0, %v8570_v22  ;;  %v6615_v44 = vpop.f32.mrb[118].mxu1 }
 0xc90   : > { %v7479_v57 = vmul.f32 -1.442695, %v6613_v55  ;;  %v6616_v1 = vadd.f32 %v11443_v0, %v6615_v44  ;;  %v8044_v19 = vpop.f32.mrb[119].mxu1 }
 0xc91   : > { %v8572_v4 = vpop.eup %8571  ;;  %8581 = vrcp.f32 %v6856_v48 }
 0xc92   : > { %7003 = vst.msk [vmem:[%s11088_s26 + $0xe0] sm:$0xff] %vm11832_vm13, %v8572_v4  ;;  %8583 = vpow2.f32 %v7479_v57  ;;  %v7480_v21 = vmul.f32 -1.442695, %v6616_v1  ;;  %vm11847_vm13 = vmmov %vm11827_vm0 }
 0xc93   : > { %v8574_v56 = vpop.eup %8573 }
 0xc94   : > { %v8576_v8 = vpop.eup %8575  ;;  %7004 = vst.msk [vmem:[%s11088_s26 + $0xe8] sm:$0xff] %vm11833_vm3, %v8574_v56  ;;  %8585 = vpow2.f32 %v7480_v21  ;;  %vm11848_vm3 = vmmov %vm11827_vm0 }
 0xc95   : > { %v6857_v18 = vadd.f32 1.0, %v8576_v8  ;;  %v6620_v39 = vpop.f32.mrb[120].mxu1 }
 0xc96   : > { %v8578_v20 = vpop.eup %8577  ;;  %v6621_v9 = vadd.f32 %v11443_v0, %v6620_v39  ;;  %v8047_v59 = vpop.f32.mrb[121].mxu1 }
 0xc97   : > { %8587 = vrcp.f32 %v6857_v18  ;;  %v6858_v37 = vadd.f32 1.0, %v8578_v20  ;;  %v6623_v49 = vpop.f32.mrb[122].mxu1 }
 0xc98   : > { %v7481_v53 = vmul.f32 -1.442695, %v6621_v9  ;;  %v6624_v25 = vadd.f32 %v11443_v0, %v6623_v49  ;;  %v8048_v13 = vpop.f32.mrb[123].mxu1 }
 0xc99   : > { %v8580_v46 = vpop.eup %8579  ;;  %8589 = vrcp.f32 %v6858_v37 }
 0xc9a   : > { %7005 = vst.msk [vmem:[%s11088_s26 + $0xf0] sm:$0xff] %vm11834_vm4, %v8580_v46  ;;  %8591 = vpow2.f32 %v7481_v53  ;;  %v7482_v33 = vmul.f32 -1.442695, %v6624_v25  ;;  %vm11849_vm4 = vmmov %vm11827_vm0 }
 0xc9b   : > { %v8582_v63 = vpop.eup %8581 }
 0xc9c   : > { %v8584_v30 = vpop.eup %8583  ;;  %7006 = vst.msk [vmem:[%s11088_s26 + $0xf8] sm:$0xff] %vm11835_vm11, %v8582_v63  ;;  %8593 = vpow2.f32 %v7482_v33  ;;  %vm11850_vm11 = vmmov %vm11827_vm0 }
 0xc9d   : > { %v6859_v52 = vadd.f32 1.0, %v8584_v30 }
 0xc9e   : > { %v8586_v62 = vpop.eup %8585  ;;  %v6628_v2 = vpop.f32.mrb[124].mxu1 }
 0xc9f   : > { %8595 = vrcp.f32 %v6859_v52  ;;  %v6860_v38 = vadd.f32 1.0, %v8586_v62  ;;  %v6629_v23 = vadd.f32 %v11443_v0, %v6628_v2  ;;  %v8051_v27 = vpop.f32.mrb[125].mxu1 }
 0xca0   : > { %v6631_v5 = vpop.f32.mrb[126].mxu1 }
 0xca1   : > { %v8588_v36 = vpop.eup %8587  ;;  %8597 = vrcp.f32 %v6860_v38  ;;  %v7483_v26 = vmul.f32 -1.442695, %v6629_v23  ;;  %v6632_v10 = vadd.f32 %v11443_v0, %v6631_v5  ;;  %v8052_v12 = vpop.f32.mrb[127].mxu1 }
 0xca2   : > { %7007 = vst.msk [vmem:[%s11088_s26 + $0x100] sm:$0xff] %vm11836_vm5, %v8588_v36  ;;  %vm11851_vm5 = vmmov %vm11827_vm0 }
 0xca3   : > { %v8590_v3 = vpop.eup %8589  ;;  %8599 = vpow2.f32 %v7483_v26  ;;  %v7484_v60 = vmul.f32 -1.442695, %v6632_v10 }
 0xca4   : > { %v8592_v6 = vpop.eup %8591  ;;  %7008 = vst.msk [vmem:[%s11088_s26 + $0x108] sm:$0xff] %vm11837_vm15, %v8590_v3  ;;  %vm11852_vm15 = vmmov %vm11827_vm0 }
 0xca5   : > { %v6861_v15 = vadd.f32 1.0, %v8592_v6  ;;  %8601 = vpow2.f32 %v7484_v60 }
 0xca6   : > { %v8594_v51 = vpop.eup %8593  ;;  %v6636_v32 = vpop.f32.mrb[128].mxu1 }
 0xca7   : > { %8603 = vrcp.f32 %v6861_v15  ;;  %v6862_v14 = vadd.f32 1.0, %v8594_v51  ;;  %v6637_v42 = vadd.f32 %v11443_v0, %v6636_v32  ;;  %v8055_v24 = vpop.f32.mrb[129].mxu1 }
 0xca8   : > { %v6639_v47 = vpop.f32.mrb[130].mxu1 }
 0xca9   : > { %v8596_v11 = vpop.eup %8595  ;;  %8605 = vrcp.f32 %v6862_v14  ;;  %v7485_v34 = vmul.f32 -1.442695, %v6637_v42  ;;  %v6640_v50 = vadd.f32 %v11443_v0, %v6639_v47  ;;  %v8056_v31 = vpop.f32.mrb[131].mxu1 }
 0xcaa   : > { %7009 = vst.msk [vmem:[%s11088_s26 + $0x110] sm:$0xff] %vm11838_vm1, %v8596_v11  ;;  %vm11853_vm1 = vmmov %vm11827_vm0 }
 0xcab   : > { %v8598_v54 = vpop.eup %8597  ;;  %8607 = vpow2.f32 %v7485_v34  ;;  %v7486_v28 = vmul.f32 -1.442695, %v6640_v50 }
 0xcac   : > { %7010 = vst.msk [vmem:[%s11088_s26 + $0x118] sm:$0xff] %vm11839_vm10, %v8598_v54  ;;  %vm11854_vm10 = vmmov %vm11827_vm0 }
 0xcad   : > { %v8600_v29 = vpop.eup %8599  ;;  %8609 = vpow2.f32 %v7486_v28 }
 0xcae   : > { %v6863_v43 = vadd.f32 1.0, %v8600_v29  ;;  %v6644_v61 = vpop.f32.mrb[132].mxu1 }
 0xcaf   : > { %v8602_v58 = vpop.eup %8601  ;;  %v6645_v17 = vadd.f32 %v11443_v0, %v6644_v61  ;;  %v8059_v45 = vpop.f32.mrb[133].mxu1 }
 0xcb0   : > { %8611 = vrcp.f32 %v6863_v43  ;;  %v6864_v35 = vadd.f32 1.0, %v8602_v58  ;;  %v6647_v16 = vpop.f32.mrb[134].mxu1 }
 0xcb1   : > { %v8604_v40 = vpop.eup %8603  ;;  %v7487_v41 = vmul.f32 -1.442695, %v6645_v17  ;;  %v6648_v22 = vadd.f32 %v11443_v0, %v6647_v16  ;;  %v8060_v55 = vpop.f32.mrb[135].mxu1 }
 0xcb2   : > { %7011 = vst.msk [vmem:[%s11088_s26 + $0x120] sm:$0xff] %vm11840_vm6, %v8604_v40  ;;  %8613 = vrcp.f32 %v6864_v35  ;;  %vm11855_vm6 = vmmov %vm11827_vm0 }
 0xcb3   : > { %v8606_v7 = vpop.eup %8605  ;;  %8615 = vpow2.f32 %v7487_v41  ;;  %v7488_v48 = vmul.f32 -1.442695, %v6648_v22 }
 0xcb4   : > { %7012 = vst.msk [vmem:[%s11088_s26 + $0x128] sm:$0xff] %vm11841_vm2, %v8606_v7  ;;  %vm11856_vm2 = vmmov %vm11827_vm0 }
 0xcb5   : > { %v8608_v44 = vpop.eup %8607  ;;  %8617 = vpow2.f32 %v7488_v48  ;;  %v6524_v57 = vpop.f32.mrb[176].mxu0 }
 0xcb6   : > { %v6865_v1 = vadd.f32 1.0, %v8608_v44  ;;  %v6525_v19 = vadd.f32 %v11443_v0, %v6524_v57  ;;  %v7999_v4 = vpop.f32.mrb[177].mxu0  ;;  %v6652_v21 = vpop.f32.mrb[136].mxu1 }
 0xcb7   : > { %v8610_v56 = vpop.eup %8609  ;;  %v6527_v8 = vpop.f32.mrb[178].mxu0  ;;  %v6653_v18 = vadd.f32 %v11443_v0, %v6652_v21 }
 0xcb8   : > { %v8063_v39 = vpop.f32.mrb[137].mxu1  ;;  %8619 = vrcp.f32 %v6865_v1  ;;  %v6866_v20 = vadd.f32 1.0, %v8610_v56  ;;  %v7457_v9 = vmul.f32 -1.442695, %v6525_v19  ;;  %v6528_v59 = vadd.f32 %v11443_v0, %v6527_v8  ;;  %v8000_v37 = vpop.f32.mrb[179].mxu0 }
 0xcb9   : > { %v6655_v49 = vpop.f32.mrb[138].mxu1  ;;  %v7489_v53 = vmul.f32 -1.442695, %v6653_v18 }
 0xcba   : > { %v6656_v25 = vadd.f32 %v11443_v0, %v6655_v49  ;;  %v8064_v13 = vpop.f32.mrb[139].mxu1  ;;  %v8612_v46 = vpop.eup %8611  ;;  %8621 = vrcp.f32 %v6866_v20  ;;  %v7458_v33 = vmul.f32 -1.442695, %v6528_v59 }
 0xcbb   : > { %7013 = vst.msk [vmem:[%s11088_s26 + $0x130] sm:$0xff] %vm11842_vm7, %v8612_v46  ;;  %8623 = vpow2.f32 %v7457_v9 }
 0xcbc   : > { %v7490_v63 = vmul.f32 -1.442695, %v6656_v25  ;;  %v8614_v30 = vpop.eup %8613  ;;  %8625 = vpow2.f32 %v7458_v33 }
 0xcbd   : > { %v8616_v52 = vpop.eup %8615  ;;  %7014 = vst.msk [vmem:[%s11088_s26 + $0x138] sm:$0xff] %vm11827_vm0, %v8614_v30  ;;  %8627 = vpow2.f32 %v7489_v53 }
 0xcbe   : > { %v6867_v62 = vadd.f32 1.0, %v8616_v52  ;;  %8629 = vpow2.f32 %v7490_v63  ;;  %v6660_v2 = vpop.f32.mrb[140].mxu1 }
 0xcbf   : > { %v8618_v38 = vpop.eup %8617  ;;  %v6661_v23 = vadd.f32 %v11443_v0, %v6660_v2  ;;  %v8067_v27 = vpop.f32.mrb[141].mxu1 }
 0xcc0   : > { %8631 = vrcp.f32 %v6867_v62  ;;  %v6868_v5 = vadd.f32 1.0, %v8618_v38  ;;  %v6663_v36 = vpop.f32.mrb[142].mxu1 }
 0xcc1   : > { %v7491_v26 = vmul.f32 -1.442695, %v6661_v23  ;;  %v6664_v10 = vadd.f32 %v11443_v0, %v6663_v36  ;;  %v6532_v12 = vpop.f32.mrb[180].mxu0  ;;  %v8068_v3 = vpop.f32.mrb[143].mxu1 }
 0xcc2   : > { %v8620_v60 = vpop.eup %8619  ;;  %8633 = vrcp.f32 %v6868_v5  ;;  %v6533_v6 = vadd.f32 %v11443_v0, %v6532_v12  ;;  %v8003_v15 = vpop.f32.mrb[181].mxu0 }
 0xcc3   : > { %7015 = vst.msk [vmem:[%s11088_s26 + $0x140] sm:$0xff] %vm11843_vm8, %v8620_v60  ;;  %8635 = vpow2.f32 %v7491_v26  ;;  %v7492_v51 = vmul.f32 -1.442695, %v6664_v10  ;;  %v6535_v32 = vpop.f32.mrb[182].mxu0 }
 0xcc4   : > { %v8622_v14 = vpop.eup %8621  ;;  %v7459_v42 = vmul.f32 -1.442695, %v6533_v6  ;;  %v6536_v24 = vadd.f32 %v11443_v0, %v6535_v32  ;;  %v8004_v47 = vpop.f32.mrb[183].mxu0 }
 0xcc5   : > { %v8624_v11 = vpop.eup %8623  ;;  %7016 = vst.msk [vmem:[%s11088_s26 + $0x148] sm:$0xff] %vm11844_vm12, %v8622_v14  ;;  %8637 = vpow2.f32 %v7492_v51 }
 0xcc6   : > { %v8626_v34 = vpop.eup %8625  ;;  %v6837_v50 = vadd.f32 1.0, %v8624_v11  ;;  %8639 = vpow2.f32 %v7459_v42  ;;  %v6668_v31 = vpop.f32.mrb[144].mxu1  ;;  %v7460_v17 = vmul.f32 -1.442695, %v6536_v24 }
 0xcc7   : > { %v8628_v54 = vpop.eup %8627  ;;  %v6838_v28 = vadd.f32 1.0, %v8626_v34  ;;  %v6669_v29 = vadd.f32 %v11443_v0, %v6668_v31  ;;  %v8071_v43 = vpop.f32.mrb[145].mxu1 }
 0xcc8   : > { %v8630_v61 = vpop.eup %8629  ;;  %8641 = vrcp.f32 %v6837_v50  ;;  %v6869_v58 = vadd.f32 1.0, %v8628_v54  ;;  %v6671_v45 = vpop.f32.mrb[146].mxu1 }
 0xcc9   : > { %8643 = vrcp.f32 %v6838_v28  ;;  %v6870_v35 = vadd.f32 1.0, %v8630_v61  ;;  %v7493_v16 = vmul.f32 -1.442695, %v6669_v29  ;;  %v6672_v40 = vadd.f32 %v11443_v0, %v6671_v45  ;;  %v8072_v41 = vpop.f32.mrb[147].mxu1 }
 0xcca   : > { %v8632_v22 = vpop.eup %8631  ;;  %8645 = vrcp.f32 %v6869_v58 }
 0xccb   : > { %7017 = vst.msk [vmem:[%s11088_s26 + $0x150] sm:$0xff] %vm11845_vm9, %v8632_v22  ;;  %8647 = vrcp.f32 %v6870_v35  ;;  %v7494_v55 = vmul.f32 -1.442695, %v6672_v40 }
 0xccc   : > { %v8634_v7 = vpop.eup %8633  ;;  %8649 = vpow2.f32 %v7460_v17 }
 0xccd   : > { %v8636_v48 = vpop.eup %8635  ;;  %7018 = vst.msk [vmem:[%s11088_s26 + $0x158] sm:$0xff] %vm11846_vm14, %v8634_v7  ;;  %8651 = vpow2.f32 %v7493_v16 }
 0xcce   : > { %v6871_v44 = vadd.f32 1.0, %v8636_v48  ;;  %8653 = vpow2.f32 %v7494_v55 }
 0xccf   : > { %v8638_v0 = vpop.eup %8637 }
 0xcd0   : > { %v8640_v57 = vpop.eup %8639  ;;  %8655 = vrcp.f32 %v6871_v44  ;;  %v6872_v1 = vadd.f32 1.0, %v8638_v0 }
 0xcd1   : > { %v6839_v19 = vadd.f32 1.0, %v8640_v57 }
 0xcd2   : > { %v8642_v4 = vpop.eup %8641  ;;  %8657 = vrcp.f32 %v6872_v1 }
 0xcd3   : > { %v8644_v21 = vpop.eup %8643  ;;  %6987 = vst.msk [vmem:[%s11088_s26 + $0x60] sm:$0xff] %vm11847_vm13, %v8642_v4  ;;  %8659 = vrcp.f32 %v6839_v19 }
 0xcd4   : > { %v8646_v56 = vpop.eup %8645  ;;  %6988 = vst.msk [vmem:[%s11088_s26 + $0x68] sm:$0xff] %vm11848_vm3, %v8644_v21 }
 0xcd5   : > { %v8648_v8 = vpop.eup %8647  ;;  %7019 = vst.msk [vmem:[%s11088_s26 + $0x160] sm:$0xff] %vm11849_vm4, %v8646_v56 }
 0xcd6   : > { %v8650_v18 = vpop.eup %8649  ;;  %7020 = vst.msk [vmem:[%s11088_s26 + $0x168] sm:$0xff] %vm11850_vm11, %v8648_v8 }
 0xcd7   : > { %v8652_v39 = vpop.eup %8651  ;;  %v6840_v20 = vadd.f32 1.0, %v8650_v18 }
 0xcd8   : > { %v8654_v9 = vpop.eup %8653  ;;  %v6873_v59 = vadd.f32 1.0, %v8652_v39 }
 0xcd9   : > { %8661 = vrcp.f32 %v6840_v20  ;;  %v6874_v37 = vadd.f32 1.0, %v8654_v9 }
 0xcda   : > { %v8656_v49 = vpop.eup %8655  ;;  %8663 = vrcp.f32 %v6873_v59 }
 0xcdb   : > { %7021 = vst.msk [vmem:[%s11088_s26 + $0x170] sm:$0xff] %vm11851_vm5, %v8656_v49  ;;  %8665 = vrcp.f32 %v6874_v37 }
 0xcdc   : > { %v8658_v53 = vpop.eup %8657 }
 0xcdd   : > { %v8660_v25 = vpop.eup %8659  ;;  %7022 = vst.msk [vmem:[%s11088_s26 + $0x178] sm:$0xff] %vm11852_vm15, %v8658_v53 }
 0xcde   : > { %6989 = vst.msk [vmem:[%s11088_s26 + $0x70] sm:$0xff] %vm11853_vm1, %v8660_v25 }
 0xce3   : > { %v8662_v13 = vpop.eup %8661 }
 0xce4   : > { %v8664_v46 = vpop.eup %8663  ;;  %6990 = vst.msk [vmem:[%s11088_s26 + $0x78] sm:$0xff] %vm11854_vm10, %v8662_v13 }
 0xce5   : > { %v8666_v33 = vpop.eup %8665  ;;  %7023 = vst.msk [vmem:[%s11088_s26 + $0x180] sm:$0xff] %vm11855_vm6, %v8664_v46 }
 0xce6   : > { %7024 = vst.msk [vmem:[%s11088_s26 + $0x188] sm:$0xff] %vm11856_vm2, %v8666_v33 }
 0xce7 PF: > { %s29_s0 = sadd.s32 1, %s8675_s0  }
 0xce8   : > { %p26_p4 = scmp.ge.s32.totalorder %s29_s0, 4  }
 0xcea   :  { %28 = sbr.rel (!%p26_p4) target bundleno = 6 (0x6), region = 126 }

</bundles_post_ra>
